<compile_context>
chip_gen: v7x
topology: tpu7x:2x2x1
jax: 0.10.0
libtpu: 0.0.40
codegen_flags: <defaults>
</compile_context>

<pallas_src>
import jax
import jax.numpy as jnp
from jax.experimental import pallas as pl
from jax.experimental.pallas import tpu as pltpu

NEG_SLOPE = 0.01
MASK_NEG = -1e30
PAD = 128  # lane-dense padding of kernel outputs


# ----------------------------- in-kernel helpers -----------------------------
def _leaky(x, slope=NEG_SLOPE):
    return jnp.where(x >= 0, x, slope * x)


def _elu(x):
    return jnp.where(x > 0, x, jnp.exp(jnp.minimum(x, 0.0)) - 1.0)


def _masked_softmax(logits, mask):
    # torch_geometric.utils.softmax: max shift, +1e-16 denominator, empty rows -> zeros.
    l = jnp.where(mask > 0, logits, jnp.full_like(logits, MASK_NEG))
    m = jnp.max(l, axis=-1, keepdims=True)
    p = jnp.exp(l - m) * mask
    s = jnp.sum(p, axis=-1, keepdims=True) + 1e-16
    return p * pl.reciprocal(s, approx=True)   # divide moved to the (idle) EUP slot


# ------------------ pass 1: lin1 + GATEConv + ELU (target-tiled) -------------
def gateconv_kernel(x_full_ref, x_tile_ref, adj_ref, ea_ref,
                    lin1_w_ref, lin1_b_ref,
                    gate_w1x_ref, gate_w2t_ref, gate_we_ref,
                    gate_attl_ref, gate_attr_ref, gate_b_ref,
                    h_out_ref):
    Hd = lin1_w_ref.shape[1]
    De = ea_ref.shape[0]
    Tm, N = adj_ref.shape

    # lin1 + leaky_relu: source (all nodes) and target (this tile) views.  Recomputed each
    # grid step (O(N*Fin*Hd) per step) - negligible vs the O(Tm*N*De) edge work.
    x_src = _leaky(jnp.dot(x_full_ref[...], lin1_w_ref[...],
                           preferred_element_type=jnp.float32) + lin1_b_ref[...])      # [N, Hd]
    x_tgt = _leaky(jnp.dot(x_tile_ref[...], lin1_w_ref[...],
                           preferred_element_type=jnp.float32) + lin1_b_ref[...])      # [Tm, Hd]

    # GATEConv node-side projections: msg_j = lin2(x_j); node part of lin1 kept as [Hd, N].
    msg = jnp.dot(x_src, gate_w2t_ref[...], preferred_element_type=jnp.float32)        # [N, Hd]
    xw1T = jax.lax.dot_general(gate_w1x_ref[...], x_src, (((1,), (1,)), ((), ())),
                               preferred_element_type=jnp.float32)                     # [Hd, N]
    alpha_r = jnp.sum(x_tgt * gate_attr_ref[...], axis=-1, keepdims=True)              # [Tm, 1]

    # Edge-attr projection + attention, kept as 2-D [Tm, N] slabs (lane = source nodes);
    # the naive [Tm, N, Hd] thin-last-dim intermediate is never materialised.
    gw = gate_we_ref[...]      # [Hd, De]  (edge part of GATEConv.lin1)
    al = gate_attl_ref[...]    # [1, Hd]
    ea = [ea_ref[k].astype(jnp.float32) for k in range(De)]      # De slabs of [Tm, N]
    alpha_l = jnp.zeros((Tm, N), jnp.float32)
    for d in range(Hd):
        acc = xw1T[d:d + 1, :]                                   # [1, N] node part
        for k in range(De):
            acc = acc + gw[d:d + 1, k:k + 1] * ea[k]             # [Tm, N]
        alpha_l = alpha_l + al[0:1, d:d + 1] * _leaky(acc)

    mask = adj_ref[...].astype(jnp.float32)                      # [Tm, N]
    att = _masked_softmax(_leaky(alpha_l + alpha_r), mask)
    h_tile = _elu(jnp.dot(att.astype(jnp.bfloat16), msg.astype(jnp.bfloat16),
                          preferred_element_type=jnp.float32) + gate_b_ref[...])       # [Tm, Hd]

    # lane-dense padded writeback: first Hd lanes carry h, remaining lanes are zero.
    h_out_ref[...] = jnp.zeros_like(h_out_ref)
    h_out_ref[:, :Hd] = h_tile


# --------------- pass 2: 4-head GATConv + ELU (target-tiled) -----------------
def gatconv_kernel(h_full_ref, h_tile_ref, adj_ref, ea_ref, loop_attr_ref,
                   gat1_w_ref, gat1_asrc_ref, gat1_adst_ref, gat1_wea_ref, gat1_b_ref,
                   h2_out_ref):
    Hh, HhHd = gat1_asrc_ref.shape
    Hd = HhHd // Hh
    De = ea_ref.shape[0]
    Tm, N = adj_ref.shape

    # per-head projections, heads concatenated along lanes (K is the zero-padded 128 dim)
    xs = jnp.dot(h_full_ref[...], gat1_w_ref[...], preferred_element_type=jnp.float32)    # [N, Hh*Hd]
    xs_t = jnp.dot(h_tile_ref[...], gat1_w_ref[...], preferred_element_type=jnp.float32)  # [Tm, Hh*Hd]
    a_src = jax.lax.dot_general(gat1_asrc_ref[...], xs, (((1,), (1,)), ((), ())),
                                preferred_element_type=jnp.float32)                       # [Hh, N]
    a_dst = jnp.dot(xs_t, gat1_adst_ref[...], preferred_element_type=jnp.float32)         # [Tm, Hh]

    # add_self_loops(fill_value='mean') built IN-KERNEL: no adj1 / second edge tensor in HBM.
    r0 = pl.program_id(0) * Tm
    rows = jax.lax.broadcasted_iota(jnp.int32, (Tm, N), 0) + r0
    cols = jax.lax.broadcasted_iota(jnp.int32, (Tm, N), 1)
    eye = (rows == cols).astype(jnp.float32)                                              # [Tm, N]
    mask = jnp.maximum(adj_ref[...].astype(jnp.float32), eye)

    wea = gat1_wea_ref[...]            # [De, Hh] = lin_edge^T @ att_edge, folded offline
    gb = gat1_b_ref[...]               # [1, Hh*Hd]
    la = loop_attr_ref[...]            # [Tm, De]  self-loop ('mean') edge attrs, this tile
    ea = [ea_ref[k].astype(jnp.float32) for k in range(De)]

    h2_out_ref[...] = jnp.zeros_like(h2_out_ref)       # zero the lane padding once
    for hh in range(Hh):
        a_edge = jnp.zeros((Tm, N), jnp.float32)
        diag = jnp.zeros((Tm, 1), jnp.float32)         # self-loop edge-attr correction
        for k in range(De):
            w = wea[k:k + 1, hh:hh + 1]
            a_edge = a_edge + w * ea[k]
            diag = diag + w * la[:, k:k + 1]
        logit = _leaky(a_edge + eye * diag + a_dst[:, hh:hh + 1] + a_src[hh:hh + 1, :])
        att = _masked_softmax(logit, mask)
        agg = jnp.dot(att.astype(jnp.bfloat16),
                      xs[:, hh * Hd:(hh + 1) * Hd].astype(jnp.bfloat16),
                      preferred_element_type=jnp.float32)                                 # [Tm, Hd]
        # per-head direct write into the output lanes (no concatenate, no extra temporary)
        h2_out_ref[:, hh * Hd:(hh + 1) * Hd] = _elu(agg + gb[:, hh * Hd:(hh + 1) * Hd])


# ------- pass 3: sum-pool + ReLU + bipartite GATConv (small, O(B*N)) ---------
def subgraph_kernel(h2_ref, pool_ref, adjsub_ref,
                    sub_w_ref, sub_asrc_ref, sub_adst_ref, sub_b_ref,
                    z_out_ref):
    Hd = sub_w_ref.shape[1]
    h2 = h2_ref[...]                                                            # [N, 128] (zero-padded)
    pooled = jnp.maximum(
        jnp.dot(pool_ref[...].astype(jnp.float32), h2,
                preferred_element_type=jnp.float32), 0.0)                       # [B, 128]
    xs = jnp.dot(h2, sub_w_ref[...], preferred_element_type=jnp.float32)        # [N, Hd]
    xd = jnp.dot(pooled, sub_w_ref[...], preferred_element_type=jnp.float32)    # [B, Hd]
    s_src = jax.lax.dot_general(sub_asrc_ref[...], xs, (((1,), (1,)), ((), ())),
                                preferred_element_type=jnp.float32)             # [1, N]
    s_dst = jnp.sum(xd * sub_adst_ref[...], axis=-1, keepdims=True)             # [B, 1]
    att = _masked_softmax(_leaky(s_dst + s_src), adjsub_ref[...].astype(jnp.float32))
    z = jnp.dot(att, xs, preferred_element_type=jnp.float32) + sub_b_ref[...]   # [B, Hd]
    z_out_ref[...] = jnp.zeros_like(z_out_ref)
    z_out_ref[:, :Hd] = z


# --------------------------------- wrapper -----------------------------------
def hgate_encoder_forward(params, x, adj0, eaT, loop_attr, pool_mat, adj_sub, row_tile=16):
    N, Fin = x.shape
    B = pool_mat.shape[0]
    De = eaT.shape[0]
    Hd = params['lin1_w'].shape[1]
    Hh = params['gat1_asrc'].shape[0]
    HhHd = Hh * Hd
    Tm = row_tile
    assert N % Tm == 0 and (Tm % 16 == 0 or Tm == N), "row_tile must tile N (bf16 sublane pack = 16)"
    grid = (N // Tm,)

    cp = pltpu.CompilerParams(
        dimension_semantics=("parallel",),            # target tiles split across TensorCores
        vmem_limit_bytes=64 * 1024 * 1024,            # raised past the scoped default
    )
    # TODO(synk): at realistic N, pick row_tile from the per-chip VMEM budget
    # (roughly half the v6e tile on v7x's 64 MiB, half again on v5e's 16 MiB scoped default).

    def _const(arr):
        nd = arr.ndim
        return pl.BlockSpec(arr.shape, lambda i, nd=nd: (0,) * nd)

    # ---- pass 1: lin1 + GATEConv + ELU ----
    a_in = (x, x, adj0, eaT,
            params['lin1_w'], params['lin1_b'],
            params['gate_w1x'], params['gate_w2t'], params['gate_we'],
            params['gate_attl'], params['gate_attr'], params['gate_b'])
    a_specs = [
        _const(x),                                           # x, all source nodes (resident)
        pl.BlockSpec((Tm, Fin), lambda i: (i, 0)),           # x, this tile's target rows
        pl.BlockSpec((Tm, N), lambda i: (i, 0)),             # adjacency row tile (bf16)
        pl.BlockSpec((De, Tm, N), lambda i: (0, i, 0)),      # edge-attr row tile (bf16)
    ] + [_const(a) for a in a_in[4:]]
    h_pad = pl.pallas_call(
        gateconv_kernel,
        out_shape=jax.ShapeDtypeStruct((N, PAD), jnp.float32),
        grid=grid,
        in_specs=a_specs,
        out_specs=pl.BlockSpec((Tm, PAD), lambda i: (i, 0)),
        compiler_params=cp,
    )(*a_in)

    # ---- pass 2: 4-head GATConv + ELU ----
    b_in = (h_pad, h_pad, adj0, eaT, loop_attr,
            params['gat1_w'], params['gat1_asrc'], params['gat1_adst'],
            params['gat1_wea'], params['gat1_b'])
    b_specs = [
        _const(h_pad),                                       # h, all source nodes (resident)
        pl.BlockSpec((Tm, PAD), lambda i: (i, 0)),           # h, this tile's target rows
        pl.BlockSpec((Tm, N), lambda i: (i, 0)),             # adjacency row tile (bf16)
        pl.BlockSpec((De, Tm, N), lambda i: (0, i, 0)),      # edge-attr row tile (bf16)
        pl.BlockSpec((Tm, De), lambda i: (i, 0)),            # self-loop 'mean' attrs, tile rows
    ] + [_const(a) for a in b_in[5:]]
    h2_pad = pl.pallas_call(
        gatconv_kernel,
        out_shape=jax.ShapeDtypeStruct((N, PAD), jnp.float32),
        grid=grid,
        in_specs=b_specs,
        out_specs=pl.BlockSpec((Tm, PAD), lambda i: (i, 0)),
        compiler_params=cp,
    )(*b_in)

    # ---- pass 3: global_add_pool + relu + bipartite GATConv ----
    # TODO(synk): tile this over source-node chunks too if N grows past a few 10^4.
    z_pad = pl.pallas_call(
        subgraph_kernel,
        out_shape=jax.ShapeDtypeStruct((B, PAD), jnp.float32),
    )(h2_pad, pool_mat, adj_sub,
      params['sub_w'], params['sub_asrc'], params['sub_adst'], params['sub_b'])

    return h2_pad[:, :HhHd], z_pad[:, :Hd]


# ---------------------------- params & graph glue -----------------------------
def init_params(key, Fin, Hd, Hh, De, pad=PAD):
    ks = jax.random.split(key, 17)
    s = 0.3
    n = lambda k, shp: jax.random.normal(k, shp, jnp.float32) * s
    # --- torch-layout parameters ([out, in] weights, as in the nn.Module) ---
    lin1_w = n(ks[0], (Hd, Fin)); lin1_b = n(ks[1], (Hd,))
    gate_w1 = n(ks[2], (Hd, Hd + De))          # GATEConv.lin1.weight (node ++ edge)
    gate_w2 = n(ks[3], (Hd, Hd))               # GATEConv.lin2.weight
    gate_att_l = n(ks[4], (1, Hd)); gate_att_r = n(ks[5], (1, Hd)); gate_b = n(ks[6], (Hd,))
    gat_w = n(ks[7], (Hh * Hd, Hd))            # GATConv.lin.weight
    gat_we = n(ks[8], (Hh * Hd, De))           # GATConv.lin_edge.weight
    gat_att_src = n(ks[9], (1, Hh, Hd)); gat_att_dst = n(ks[10], (1, Hh, Hd))
    gat_att_edge = n(ks[11], (1, Hh, Hd)); gat_b = n(ks[12], (Hh * Hd,))
    sub_w = n(ks[13], (Hd, Hh * Hd))           # subgraph GATConv.lin.weight (shared src/dst)
    sub_att_src = n(ks[14], (1, 1, Hd)); sub_att_dst = n(ks[15], (1, 1, Hd)); sub_b = n(ks[16], (Hd,))
    # NOTE: the module's lin2 / lin3 are never used in forward() -> omitted.

    # --- pack to kernel-ready layouts (parameter-only transforms, exact) ---
    asrc = jnp.zeros((Hh, Hh * Hd), jnp.float32)
    adst = jnp.zeros((Hh * Hd, Hh), jnp.float32)
    wea = jnp.zeros((De, Hh), jnp.float32)     # lin_edge^T @ att_edge folded per head
    for h in range(Hh):
        asrc = asrc.at[h, h * Hd:(h + 1) * Hd].set(gat_att_src[0, h])
        adst = adst.at[h * Hd:(h + 1) * Hd, h].set(gat_att_dst[0, h])
        wea = wea.at[:, h].set(gat_we[h * Hd:(h + 1) * Hd, :].T @ gat_att_edge[0, h])
    gat1_w = jnp.zeros((pad, Hh * Hd), jnp.float32).at[:Hd].set(gat_w.T)      # K padded to 128
    sub_wp = jnp.zeros((pad, Hd), jnp.float32).at[:Hh * Hd].set(sub_w.T)

    return {
        'lin1_w': lin1_w.T, 'lin1_b': lin1_b[None, :],
        'gate_w1x': gate_w1[:, :Hd],            # [out, in] node part of GATEConv.lin1
        'gate_we': gate_w1[:, Hd:],             # [out, De] edge part of GATEConv.lin1
        'gate_w2t': gate_w2.T,
        'gate_attl': gate_att_l, 'gate_attr': gate_att_r, 'gate_b': gate_b[None, :],
        'gat1_w': gat1_w, 'gat1_asrc': asrc, 'gat1_adst': adst,
        'gat1_wea': wea, 'gat1_b': gat_b[None, :],
        'sub_w': sub_wp, 'sub_asrc': sub_att_src[0], 'sub_adst': sub_att_dst[0],
        'sub_b': sub_b[None, :],
    }


def build_dense_graph(src, dst, edge_attr, batch, N, B):
    """Dense masked formulation of PyG's scatter softmax / scatter-add.
    Exact iff the edge list has no duplicate edges and no pre-existing self loops."""
    De = edge_attr.shape[-1]
    rng = jnp.arange(N)
    adj0 = jnp.zeros((N, N), jnp.float32).at[dst, src].set(1.0)             # [target, source]
    ea = jnp.zeros((N, N, De), jnp.float32).at[dst, src].set(edge_attr)
    eaT = jnp.transpose(ea, (2, 0, 1))                                      # [De, Nt, Ns] feature-major
    # GATConv add_self_loops(fill_value='mean'): self-loop attr = mean of incoming edge attrs
    deg = jnp.zeros((N,), jnp.float32).at[dst].add(1.0)
    loop_attr = (jnp.zeros((N, De), jnp.float32).at[dst].add(edge_attr)
                 / jnp.maximum(deg, 1.0)[:, None])
    # bipartite node->graph edges (arange(N), batch); PyG removes src==dst then adds self
    # loops on the first min(N, B) = B indices.
    adj_sub = jnp.zeros((B, N), jnp.float32).at[batch, rng].set(1.0)
    adj_sub = adj_sub.at[jnp.arange(B), jnp.arange(B)].set(1.0)
    pool_mat = jnp.zeros((B, N), jnp.float32).at[batch, rng].set(1.0)       # global_add_pool
    # masks / edge attrs carried in bf16 (0/1 exact; halves the dominant HBM stream)
    return (adj0.astype(jnp.bfloat16), eaT.astype(jnp.bfloat16),
            loop_attr, adj_sub.astype(jnp.bfloat16), pool_mat.astype(jnp.bfloat16))


# ------------------------------------ main ------------------------------------
if __name__ == "__main__":
    Fin, Hd, Hh, De = 16, 8, 4, 8            # in_channels, hidden, heads, edge_dim
    nodes_per_graph, B = 8, 4
    N = nodes_per_graph * B                  # 32 nodes; row_tile=16 -> grid of 2 target tiles

    key = jax.random.PRNGKey(0)
    k_x, k_e, k_p = jax.random.split(key, 3)

    # deterministic synthetic graph: bidirectional ring inside each subgraph
    src_l, dst_l = [], []
    for g in range(B):
        base = g * nodes_per_graph
        for k in range(nodes_per_graph):
            u = base + k
            v = base + (k + 1) % nodes_per_graph
            src_l += [u, v]
            dst_l += [v, u]
    # assumptions of the dense masked formulation
    assert len(set(zip(src_l, dst_l))) == len(src_l), "duplicate edges"
    assert all(u != v for u, v in zip(src_l, dst_l)), "self loops in input edge list"
    src = jnp.array(src_l, jnp.int32)
    dst = jnp.array(dst_l, jnp.int32)
    E = src.shape[0]
    batch = jnp.repeat(jnp.arange(B, dtype=jnp.int32), nodes_per_graph)

    x = jax.random.normal(k_x, (N, Fin), jnp.float32)
    edge_attr = jax.random.normal(k_e, (E, De), jnp.float32)
    params = init_params(k_p, Fin, Hd, Hh, De)

    adj0, eaT, loop_attr, adj_sub, pool_mat = build_dense_graph(src, dst, edge_attr, batch, N, B)

    fwd = jax.jit(hgate_encoder_forward, static_argnames=('row_tile',))
    h_out, z = fwd(params, x, adj0, eaT, loop_attr, pool_mat, adj_sub, row_tile=16)
    jax.block_until_ready((h_out, z))

    assert h_out.shape == (N, Hh * Hd) and z.shape == (B, Hd)
    assert bool(jnp.all(jnp.isfinite(h_out))) and bool(jnp.all(jnp.isfinite(z)))
    print("KERNEL_OK")
</pallas_src>

<mosaic_0001>
module attributes {stable_mosaic.version = 11 : i64} {
  func.func @subgraph_kernel(%arg0: memref<32x128xf32, #tpu.memory_space<vmem>>, %arg1: memref<4x32xbf16, #tpu.memory_space<vmem>>, %arg2: memref<4x32xbf16, #tpu.memory_space<vmem>>, %arg3: memref<128x8xf32, #tpu.memory_space<vmem>>, %arg4: memref<1x8xf32, #tpu.memory_space<vmem>>, %arg5: memref<1x8xf32, #tpu.memory_space<vmem>>, %arg6: memref<1x8xf32, #tpu.memory_space<vmem>>, %arg7: memref<4x128xf32, #tpu.memory_space<vmem>>) attributes {dimension_semantics = [], scalar_prefetch = 0 : i64, scratch_operands = 0 : i64, tpu.core_type = #tpu.core_type<tc>} {
    %c0 = arith.constant 0 : index
    %c0_0 = arith.constant 0 : index
    %0 = vector.load %arg0[%c0, %c0_0] : memref<32x128xf32, #tpu.memory_space<vmem>>, vector<32x128xf32>
    %c0_1 = arith.constant 0 : index
    %c0_2 = arith.constant 0 : index
    %1 = vector.load %arg1[%c0_1, %c0_2] : memref<4x32xbf16, #tpu.memory_space<vmem>>, vector<4x32xbf16>
    %2 = arith.extf %1 : vector<4x32xbf16> to vector<4x32xf32>
    %cst = arith.constant dense<0.000000e+00> : vector<4x128xf32>
    %3 = tpu.matmul %2, %0, %cst {dimension_numbers = #tpu.dot_dimension_numbers<[1], [0], [0], [1], [0, 0, 1, 1], [], []>} : vector<4x32xf32>, vector<32x128xf32>, vector<4x128xf32> -> vector<4x128xf32>
    %cst_3 = arith.constant 0.000000e+00 : f32
    %4 = vector.broadcast %cst_3 : f32 to vector<4x128xf32>
    %5 = arith.maximumf %3, %4 : vector<4x128xf32>
    %c0_4 = arith.constant 0 : index
    %c0_5 = arith.constant 0 : index
    %6 = vector.load %arg3[%c0_4, %c0_5] : memref<128x8xf32, #tpu.memory_space<vmem>>, vector<128x8xf32>
    %cst_6 = arith.constant dense<0.000000e+00> : vector<32x8xf32>
    %7 = tpu.matmul %0, %6, %cst_6 {dimension_numbers = #tpu.dot_dimension_numbers<[1], [0], [0], [1], [0, 0, 1, 1], [], []>} : vector<32x128xf32>, vector<128x8xf32>, vector<32x8xf32> -> vector<32x8xf32>
    %c0_7 = arith.constant 0 : index
    %c0_8 = arith.constant 0 : index
    %8 = vector.load %arg3[%c0_7, %c0_8] : memref<128x8xf32, #tpu.memory_space<vmem>>, vector<128x8xf32>
    %cst_9 = arith.constant dense<0.000000e+00> : vector<4x8xf32>
    %9 = tpu.matmul %5, %8, %cst_9 {dimension_numbers = #tpu.dot_dimension_numbers<[1], [0], [0], [1], [0, 0, 1, 1], [], []>} : vector<4x128xf32>, vector<128x8xf32>, vector<4x8xf32> -> vector<4x8xf32>
    %c0_10 = arith.constant 0 : index
    %c0_11 = arith.constant 0 : index
    %10 = vector.load %arg4[%c0_10, %c0_11] : memref<1x8xf32, #tpu.memory_space<vmem>>, vector<1x8xf32>
    %cst_12 = arith.constant dense<0.000000e+00> : vector<1x32xf32>
    %11 = tpu.matmul %10, %7, %cst_12 {dimension_numbers = #tpu.dot_dimension_numbers<[1], [1], [0], [0], [0, 0, 1, 0], [], []>} : vector<1x8xf32>, vector<32x8xf32>, vector<1x32xf32> -> vector<1x32xf32>
    %c0_13 = arith.constant 0 : index
    %c0_14 = arith.constant 0 : index
    %12 = vector.load %arg5[%c0_13, %c0_14] : memref<1x8xf32, #tpu.memory_space<vmem>>, vector<1x8xf32>
    %13 = vector.broadcast %12 : vector<1x8xf32> to vector<4x8xf32>
    %14 = arith.mulf %9, %13 : vector<4x8xf32>
    %cst_15 = arith.constant dense<0.000000e+00> : vector<4xf32>
    %15 = vector.multi_reduction <add>, %14, %cst_15 [1] : vector<4x8xf32> to vector<4xf32>
    %16 = vector.shape_cast %15 : vector<4xf32> to vector<4x1xf32>
    %17 = vector.broadcast %16 : vector<4x1xf32> to vector<4x32xf32>
    %18 = vector.broadcast %11 : vector<1x32xf32> to vector<4x32xf32>
    %19 = arith.addf %17, %18 : vector<4x32xf32>
    %cst_16 = arith.constant 0.000000e+00 : f32
    %20 = vector.broadcast %cst_16 : f32 to vector<4x32xf32>
    %21 = arith.cmpf oge, %19, %20 : vector<4x32xf32>
    %cst_17 = arith.constant 0.00999999977 : f32
    %22 = vector.broadcast %cst_17 : f32 to vector<4x32xf32>
    %23 = arith.mulf %22, %19 : vector<4x32xf32>
    %24 = arith.select %21, %19, %23 : vector<4x32xi1>, vector<4x32xf32>
    %c0_18 = arith.constant 0 : index
    %c0_19 = arith.constant 0 : index
    %25 = vector.load %arg2[%c0_18, %c0_19] : memref<4x32xbf16, #tpu.memory_space<vmem>>, vector<4x32xbf16>
    %26 = arith.extf %25 : vector<4x32xbf16> to vector<4x32xf32>
    %cst_20 = arith.constant 0.000000e+00 : f32
    %27 = vector.broadcast %cst_20 : f32 to vector<4x32xf32>
    %28 = arith.cmpf ogt, %26, %27 : vector<4x32xf32>
    %cst_21 = arith.constant -1.000000e+30 : f32
    %29 = vector.broadcast %cst_21 : f32 to vector<4x32xf32>
    %30 = arith.select %28, %24, %29 : vector<4x32xi1>, vector<4x32xf32>
    %cst_22 = arith.constant dense<0xFF800000> : vector<4xf32>
    %31 = vector.multi_reduction <maximumf>, %30, %cst_22 [1] : vector<4x32xf32> to vector<4xf32>
    %32 = vector.shape_cast %31 : vector<4xf32> to vector<4x1xf32>
    %33 = vector.broadcast %32 : vector<4x1xf32> to vector<4x32xf32>
    %34 = arith.subf %30, %33 : vector<4x32xf32>
    %35 = math.exp %34 : vector<4x32xf32>
    %36 = arith.mulf %35, %26 : vector<4x32xf32>
    %cst_23 = arith.constant dense<0.000000e+00> : vector<4xf32>
    %37 = vector.multi_reduction <add>, %36, %cst_23 [1] : vector<4x32xf32> to vector<4xf32>
    %38 = vector.shape_cast %37 : vector<4xf32> to vector<4x1xf32>
    %cst_24 = arith.constant 1.000000e-16 : f32
    %39 = vector.broadcast %cst_24 : f32 to vector<4x1xf32>
    %40 = arith.addf %38, %39 : vector<4x1xf32>
    %41 = tpu.reciprocal %40 {approx = true} : vector<4x1xf32> -> vector<4x1xf32>
    %42 = vector.broadcast %41 : vector<4x1xf32> to vector<4x32xf32>
    %43 = arith.mulf %36, %42 : vector<4x32xf32>
    %cst_25 = arith.constant dense<0.000000e+00> : vector<4x8xf32>
    %44 = tpu.matmul %43, %7, %cst_25 {dimension_numbers = #tpu.dot_dimension_numbers<[1], [0], [0], [1], [0, 0, 1, 1], [], []>} : vector<4x32xf32>, vector<32x8xf32>, vector<4x8xf32> -> vector<4x8xf32>
    %c0_26 = arith.constant 0 : index
    %c0_27 = arith.constant 0 : index
    %45 = vector.load %arg6[%c0_26, %c0_27] : memref<1x8xf32, #tpu.memory_space<vmem>>, vector<1x8xf32>
    %46 = vector.broadcast %45 : vector<1x8xf32> to vector<4x8xf32>
    %47 = arith.addf %44, %46 : vector<4x8xf32>
    %cst_28 = arith.constant 0.000000e+00 : f32
    %48 = vector.broadcast %cst_28 : f32 to vector<4x128xf32>
    %c0_29 = arith.constant 0 : index
    %c0_30 = arith.constant 0 : index
    %49 = vector.load %arg7[%c0_29, %c0_30] : memref<4x128xf32, #tpu.memory_space<vmem>>, vector<4x128xf32>
    tpu.vector_store %arg7[%c0_29, %c0_30], %48 {strides = array<i32>} : memref<4x128xf32, #tpu.memory_space<vmem>>, vector<4x128xf32>,
    %c0_31 = arith.constant 0 : index
    %c0_32 = arith.constant 0 : index
    %50 = vector.load %arg7[%c0_31, %c0_32] : memref<4x128xf32, #tpu.memory_space<vmem>>, vector<4x8xf32>
    tpu.vector_store %arg7[%c0_31, %c0_32], %47 {strides = array<i32>} : memref<4x128xf32, #tpu.memory_space<vmem>>, vector<4x8xf32>,
    return
  }
}

module attributes {stable_mosaic.version = 11 : i64} {
  func.func @gatconv_kernel(%arg0: i32, %arg1: memref<32x128xf32, #tpu.memory_space<vmem>>, %arg2: memref<16x128xf32, #tpu.memory_space<vmem>>, %arg3: memref<16x32xbf16, #tpu.memory_space<vmem>>, %arg4: memref<8x16x32xbf16, #tpu.memory_space<vmem>>, %arg5: memref<16x8xf32, #tpu.memory_space<vmem>>, %arg6: memref<128x32xf32, #tpu.memory_space<vmem>>, %arg7: memref<4x32xf32, #tpu.memory_space<vmem>>, %arg8: memref<32x4xf32, #tpu.memory_space<vmem>>, %arg9: memref<8x4xf32, #tpu.memory_space<vmem>>, %arg10: memref<1x32xf32, #tpu.memory_space<vmem>>, %arg11: memref<16x128xf32, #tpu.memory_space<vmem>>) attributes {dimension_semantics = [#tpu.dimension_semantics<parallel>], iteration_bounds = array<i64: 2>, scalar_prefetch = 0 : i64, scratch_operands = 0 : i64, tpu.core_type = #tpu.core_type<tc>, window_params = [{pipeline_mode = #tpu.pipeline_mode<synchronous>, transform_indices = @transform_0, window_bounds = array<i64: 32, 128>}, {transform_indices = @transform_1, window_bounds = array<i64: 16, 128>}, {transform_indices = @transform_2, window_bounds = array<i64: 16, 32>}, {transform_indices = @transform_3, window_bounds = array<i64: 8, 16, 32>}, {transform_indices = @transform_4, window_bounds = array<i64: 16, 8>}, {pipeline_mode = #tpu.pipeline_mode<synchronous>, transform_indices = @transform_5, window_bounds = array<i64: 128, 32>}, {pipeline_mode = #tpu.pipeline_mode<synchronous>, transform_indices = @transform_6, window_bounds = array<i64: 4, 32>}, {pipeline_mode = #tpu.pipeline_mode<synchronous>, transform_indices = @transform_7, window_bounds = array<i64: 32, 4>}, {pipeline_mode = #tpu.pipeline_mode<synchronous>, transform_indices = @transform_8, window_bounds = array<i64: 8, 4>}, {pipeline_mode = #tpu.pipeline_mode<synchronous>, transform_indices = @transform_9, window_bounds = array<i64: 1, 32>}, {transform_indices = @transform_10, window_bounds = array<i64: 16, 128>}]} {
    %c0 = arith.constant 0 : index
    %c0_0 = arith.constant 0 : index
    %0 = vector.load %arg1[%c0, %c0_0] : memref<32x128xf32, #tpu.memory_space<vmem>>, vector<32x128xf32>
    %c0_1 = arith.constant 0 : index
    %c0_2 = arith.constant 0 : index
    %1 = vector.load %arg6[%c0_1, %c0_2] : memref<128x32xf32, #tpu.memory_space<vmem>>, vector<128x32xf32>
    %cst = arith.constant dense<0.000000e+00> : vector<32x32xf32>
    %2 = tpu.matmul %0, %1, %cst {dimension_numbers = #tpu.dot_dimension_numbers<[1], [0], [0], [1], [0, 0, 1, 1], [], []>} : vector<32x128xf32>, vector<128x32xf32>, vector<32x32xf32> -> vector<32x32xf32>
    %c0_3 = arith.constant 0 : index
    %c0_4 = arith.constant 0 : index
    %3 = vector.load %arg2[%c0_3, %c0_4] : memref<16x128xf32, #tpu.memory_space<vmem>>, vector<16x128xf32>
    %c0_5 = arith.constant 0 : index
    %c0_6 = arith.constant 0 : index
    %4 = vector.load %arg6[%c0_5, %c0_6] : memref<128x32xf32, #tpu.memory_space<vmem>>, vector<128x32xf32>
    %cst_7 = arith.constant dense<0.000000e+00> : vector<16x32xf32>
    %5 = tpu.matmul %3, %4, %cst_7 {dimension_numbers = #tpu.dot_dimension_numbers<[1], [0], [0], [1], [0, 0, 1, 1], [], []>} : vector<16x128xf32>, vector<128x32xf32>, vector<16x32xf32> -> vector<16x32xf32>
    %c0_8 = arith.constant 0 : index
    %c0_9 = arith.constant 0 : index
    %6 = vector.load %arg7[%c0_8, %c0_9] : memref<4x32xf32, #tpu.memory_space<vmem>>, vector<4x32xf32>
    %cst_10 = arith.constant dense<0.000000e+00> : vector<4x32xf32>
    %7 = tpu.matmul %6, %2, %cst_10 {dimension_numbers = #tpu.dot_dimension_numbers<[1], [1], [0], [0], [0, 0, 1, 0], [], []>} : vector<4x32xf32>, vector<32x32xf32>, vector<4x32xf32> -> vector<4x32xf32>
    %c0_11 = arith.constant 0 : index
    %c0_12 = arith.constant 0 : index
    %8 = vector.load %arg8[%c0_11, %c0_12] : memref<32x4xf32, #tpu.memory_space<vmem>>, vector<32x4xf32>
    %cst_13 = arith.constant dense<0.000000e+00> : vector<16x4xf32>
    %9 = tpu.matmul %5, %8, %cst_13 {dimension_numbers = #tpu.dot_dimension_numbers<[1], [0], [0], [1], [0, 0, 1, 1], [], []>} : vector<16x32xf32>, vector<32x4xf32>, vector<16x4xf32> -> vector<16x4xf32>
    %c16_i32 = arith.constant 16 : i32
    %10 = arith.muli %arg0, %c16_i32 : i32
    %11 = tpu.iota {dimensions = array<i32: 0>} : vector<16x32xi32>
    %12 = vector.broadcast %10 : i32 to vector<16x32xi32>
    %13 = arith.addi %11, %12 : vector<16x32xi32>
    %14 = tpu.iota {dimensions = array<i32: 1>} : vector<16x32xi32>
    %15 = arith.cmpi eq, %13, %14 : vector<16x32xi32>
    %16 = arith.extui %15 : vector<16x32xi1> to vector<16x32xi32>
    %17 = arith.sitofp %16 : vector<16x32xi32> to vector<16x32xf32>
    %c0_14 = arith.constant 0 : index
    %c0_15 = arith.constant 0 : index
    %18 = vector.load %arg3[%c0_14, %c0_15] : memref<16x32xbf16, #tpu.memory_space<vmem>>, vector<16x32xbf16>
    %19 = arith.extf %18 : vector<16x32xbf16> to vector<16x32xf32>
    %20 = arith.maximumf %19, %17 : vector<16x32xf32>
    %c0_16 = arith.constant 0 : index
    %c0_17 = arith.constant 0 : index
    %21 = vector.load %arg9[%c0_16, %c0_17] : memref<8x4xf32, #tpu.memory_space<vmem>>, vector<8x4xf32>
    %c0_18 = arith.constant 0 : index
    %c0_19 = arith.constant 0 : index
    %22 = vector.load %arg10[%c0_18, %c0_19] : memref<1x32xf32, #tpu.memory_space<vmem>>, vector<1x32xf32>
    %c0_20 = arith.constant 0 : index
    %c0_21 = arith.constant 0 : index
    %23 = vector.load %arg5[%c0_20, %c0_21] : memref<16x8xf32, #tpu.memory_space<vmem>>, vector<16x8xf32>
    %c0_22 = arith.constant 0 : index
    %c0_23 = arith.constant 0 : index
    %c0_24 = arith.constant 0 : index
    %24 = vector.load %arg4[%c0_22, %c0_23, %c0_24] : memref<8x16x32xbf16, #tpu.memory_space<vmem>>, vector<1x16x32xbf16>
    %25 = vector.shape_cast %24 : vector<1x16x32xbf16> to vector<16x32xbf16>
    %26 = arith.extf %25 : vector<16x32xbf16> to vector<16x32xf32>
    %c1 = arith.constant 1 : index
    %c0_25 = arith.constant 0 : index
    %c0_26 = arith.constant 0 : index
    %27 = vector.load %arg4[%c1, %c0_25, %c0_26] : memref<8x16x32xbf16, #tpu.memory_space<vmem>>, vector<1x16x32xbf16>
    %28 = vector.shape_cast %27 : vector<1x16x32xbf16> to vector<16x32xbf16>
    %29 = arith.extf %28 : vector<16x32xbf16> to vector<16x32xf32>
    %c2 = arith.constant 2 : index
    %c0_27 = arith.constant 0 : index
    %c0_28 = arith.constant 0 : index
    %30 = vector.load %arg4[%c2, %c0_27, %c0_28] : memref<8x16x32xbf16, #tpu.memory_space<vmem>>, vector<1x16x32xbf16>
    %31 = vector.shape_cast %30 : vector<1x16x32xbf16> to vector<16x32xbf16>
    %32 = arith.extf %31 : vector<16x32xbf16> to vector<16x32xf32>
    %c3 = arith.constant 3 : index
    %c0_29 = arith.constant 0 : index
    %c0_30 = arith.constant 0 : index
    %33 = vector.load %arg4[%c3, %c0_29, %c0_30] : memref<8x16x32xbf16, #tpu.memory_space<vmem>>, vector<1x16x32xbf16>
    %34 = vector.shape_cast %33 : vector<1x16x32xbf16> to vector<16x32xbf16>
    %35 = arith.extf %34 : vector<16x32xbf16> to vector<16x32xf32>
    %c4 = arith.constant 4 : index
    %c0_31 = arith.constant 0 : index
    %c0_32 = arith.constant 0 : index
    %36 = vector.load %arg4[%c4, %c0_31, %c0_32] : memref<8x16x32xbf16, #tpu.memory_space<vmem>>, vector<1x16x32xbf16>
    %37 = vector.shape_cast %36 : vector<1x16x32xbf16> to vector<16x32xbf16>
    %38 = arith.extf %37 : vector<16x32xbf16> to vector<16x32xf32>
    %c5 = arith.constant 5 : index
    %c0_33 = arith.constant 0 : index
    %c0_34 = arith.constant 0 : index
    %39 = vector.load %arg4[%c5, %c0_33, %c0_34] : memref<8x16x32xbf16, #tpu.memory_space<vmem>>, vector<1x16x32xbf16>
    %40 = vector.shape_cast %39 : vector<1x16x32xbf16> to vector<16x32xbf16>
    %41 = arith.extf %40 : vector<16x32xbf16> to vector<16x32xf32>
    %c6 = arith.constant 6 : index
    %c0_35 = arith.constant 0 : index
    %c0_36 = arith.constant 0 : index
    %42 = vector.load %arg4[%c6, %c0_35, %c0_36] : memref<8x16x32xbf16, #tpu.memory_space<vmem>>, vector<1x16x32xbf16>
    %43 = vector.shape_cast %42 : vector<1x16x32xbf16> to vector<16x32xbf16>
    %44 = arith.extf %43 : vector<16x32xbf16> to vector<16x32xf32>
    %c7 = arith.constant 7 : index
    %c0_37 = arith.constant 0 : index
    %c0_38 = arith.constant 0 : index
    %45 = vector.load %arg4[%c7, %c0_37, %c0_38] : memref<8x16x32xbf16, #tpu.memory_space<vmem>>, vector<1x16x32xbf16>
    %46 = vector.shape_cast %45 : vector<1x16x32xbf16> to vector<16x32xbf16>
    %47 = arith.extf %46 : vector<16x32xbf16> to vector<16x32xf32>
    %cst_39 = arith.constant 0.000000e+00 : f32
    %48 = vector.broadcast %cst_39 : f32 to vector<16x128xf32>
    %c0_40 = arith.constant 0 : index
    %c0_41 = arith.constant 0 : index
    %49 = vector.load %arg11[%c0_40, %c0_41] : memref<16x128xf32, #tpu.memory_space<vmem>>, vector<16x128xf32>
    tpu.vector_store %arg11[%c0_40, %c0_41], %48 {strides = array<i32>} : memref<16x128xf32, #tpu.memory_space<vmem>>, vector<16x128xf32>,
    %cst_42 = arith.constant 0.000000e+00 : f32
    %50 = vector.broadcast %cst_42 : f32 to vector<16x32xf32>
    %cst_43 = arith.constant 0.000000e+00 : f32
    %51 = vector.broadcast %cst_43 : f32 to vector<16x1xf32>
    %52 = vector.extract_strided_slice %21 {offsets = [0, 0], sizes = [1, 1], strides = [1, 1]} : vector<8x4xf32> to vector<1x1xf32>
    %53 = vector.broadcast %52 : vector<1x1xf32> to vector<16x32xf32>
    %54 = arith.mulf %53, %26 : vector<16x32xf32>
    %55 = arith.addf %50, %54 : vector<16x32xf32>
    %56 = vector.extract_strided_slice %23 {offsets = [0, 0], sizes = [16, 1], strides = [1, 1]} : vector<16x8xf32> to vector<16x1xf32>
    %57 = vector.broadcast %52 : vector<1x1xf32> to vector<16x1xf32>
    %58 = arith.mulf %57, %56 : vector<16x1xf32>
    %59 = arith.addf %51, %58 : vector<16x1xf32>
    %60 = vector.extract_strided_slice %21 {offsets = [1, 0], sizes = [1, 1], strides = [1, 1]} : vector<8x4xf32> to vector<1x1xf32>
    %61 = vector.broadcast %60 : vector<1x1xf32> to vector<16x32xf32>
    %62 = arith.mulf %61, %29 : vector<16x32xf32>
    %63 = arith.addf %55, %62 : vector<16x32xf32>
    %64 = vector.extract_strided_slice %23 {offsets = [0, 1], sizes = [16, 1], strides = [1, 1]} : vector<16x8xf32> to vector<16x1xf32>
    %65 = vector.broadcast %60 : vector<1x1xf32> to vector<16x1xf32>
    %66 = arith.mulf %65, %64 : vector<16x1xf32>
    %67 = arith.addf %59, %66 : vector<16x1xf32>
    %68 = vector.extract_strided_slice %21 {offsets = [2, 0], sizes = [1, 1], strides = [1, 1]} : vector<8x4xf32> to vector<1x1xf32>
    %69 = vector.broadcast %68 : vector<1x1xf32> to vector<16x32xf32>
    %70 = arith.mulf %69, %32 : vector<16x32xf32>
    %71 = arith.addf %63, %70 : vector<16x32xf32>
    %72 = vector.extract_strided_slice %23 {offsets = [0, 2], sizes = [16, 1], strides = [1, 1]} : vector<16x8xf32> to vector<16x1xf32>
    %73 = vector.broadcast %68 : vector<1x1xf32> to vector<16x1xf32>
    %74 = arith.mulf %73, %72 : vector<16x1xf32>
    %75 = arith.addf %67, %74 : vector<16x1xf32>
    %76 = vector.extract_strided_slice %21 {offsets = [3, 0], sizes = [1, 1], strides = [1, 1]} : vector<8x4xf32> to vector<1x1xf32>
    %77 = vector.broadcast %76 : vector<1x1xf32> to vector<16x32xf32>
    %78 = arith.mulf %77, %35 : vector<16x32xf32>
    %79 = arith.addf %71, %78 : vector<16x32xf32>
    %80 = vector.extract_strided_slice %23 {offsets = [0, 3], sizes = [16, 1], strides = [1, 1]} : vector<16x8xf32> to vector<16x1xf32>
    %81 = vector.broadcast %76 : vector<1x1xf32> to vector<16x1xf32>
    %82 = arith.mulf %81, %80 : vector<16x1xf32>
    %83 = arith.addf %75, %82 : vector<16x1xf32>
    %84 = vector.extract_strided_slice %21 {offsets = [4, 0], sizes = [1, 1], strides = [1, 1]} : vector<8x4xf32> to vector<1x1xf32>
    %85 = vector.broadcast %84 : vector<1x1xf32> to vector<16x32xf32>
    %86 = arith.mulf %85, %38 : vector<16x32xf32>
    %87 = arith.addf %79, %86 : vector<16x32xf32>
    %88 = vector.extract_strided_slice %23 {offsets = [0, 4], sizes = [16, 1], strides = [1, 1]} : vector<16x8xf32> to vector<16x1xf32>
    %89 = vector.broadcast %84 : vector<1x1xf32> to vector<16x1xf32>
    %90 = arith.mulf %89, %88 : vector<16x1xf32>
    %91 = arith.addf %83, %90 : vector<16x1xf32>
    %92 = vector.extract_strided_slice %21 {offsets = [5, 0], sizes = [1, 1], strides = [1, 1]} : vector<8x4xf32> to vector<1x1xf32>
    %93 = vector.broadcast %92 : vector<1x1xf32> to vector<16x32xf32>
    %94 = arith.mulf %93, %41 : vector<16x32xf32>
    %95 = arith.addf %87, %94 : vector<16x32xf32>
    %96 = vector.extract_strided_slice %23 {offsets = [0, 5], sizes = [16, 1], strides = [1, 1]} : vector<16x8xf32> to vector<16x1xf32>
    %97 = vector.broadcast %92 : vector<1x1xf32> to vector<16x1xf32>
    %98 = arith.mulf %97, %96 : vector<16x1xf32>
    %99 = arith.addf %91, %98 : vector<16x1xf32>
    %100 = vector.extract_strided_slice %21 {offsets = [6, 0], sizes = [1, 1], strides = [1, 1]} : vector<8x4xf32> to vector<1x1xf32>
    %101 = vector.broadcast %100 : vector<1x1xf32> to vector<16x32xf32>
    %102 = arith.mulf %101, %44 : vector<16x32xf32>
    %103 = arith.addf %95, %102 : vector<16x32xf32>
    %104 = vector.extract_strided_slice %23 {offsets = [0, 6], sizes = [16, 1], strides = [1, 1]} : vector<16x8xf32> to vector<16x1xf32>
    %105 = vector.broadcast %100 : vector<1x1xf32> to vector<16x1xf32>
    %106 = arith.mulf %105, %104 : vector<16x1xf32>
    %107 = arith.addf %99, %106 : vector<16x1xf32>
    %108 = vector.extract_strided_slice %21 {offsets = [7, 0], sizes = [1, 1], strides = [1, 1]} : vector<8x4xf32> to vector<1x1xf32>
    %109 = vector.broadcast %108 : vector<1x1xf32> to vector<16x32xf32>
    %110 = arith.mulf %109, %47 : vector<16x32xf32>
    %111 = arith.addf %103, %110 : vector<16x32xf32>
    %112 = vector.extract_strided_slice %23 {offsets = [0, 7], sizes = [16, 1], strides = [1, 1]} : vector<16x8xf32> to vector<16x1xf32>
    %113 = vector.broadcast %108 : vector<1x1xf32> to vector<16x1xf32>
    %114 = arith.mulf %113, %112 : vector<16x1xf32>
    %115 = arith.addf %107, %114 : vector<16x1xf32>
    %116 = vector.broadcast %115 : vector<16x1xf32> to vector<16x32xf32>
    %117 = arith.mulf %17, %116 : vector<16x32xf32>
    %118 = arith.addf %111, %117 : vector<16x32xf32>
    %119 = vector.extract_strided_slice %9 {offsets = [0, 0], sizes = [16, 1], strides = [1, 1]} : vector<16x4xf32> to vector<16x1xf32>
    %120 = vector.broadcast %119 : vector<16x1xf32> to vector<16x32xf32>
    %121 = arith.addf %118, %120 : vector<16x32xf32>
    %122 = vector.extract_strided_slice %7 {offsets = [0, 0], sizes = [1, 32], strides = [1, 1]} : vector<4x32xf32> to vector<1x32xf32>
    %123 = vector.broadcast %122 : vector<1x32xf32> to vector<16x32xf32>
    %124 = arith.addf %121, %123 : vector<16x32xf32>
    %cst_44 = arith.constant 0.000000e+00 : f32
    %125 = vector.broadcast %cst_44 : f32 to vector<16x32xf32>
    %126 = arith.cmpf oge, %124, %125 : vector<16x32xf32>
    %cst_45 = arith.constant 0.00999999977 : f32
    %127 = vector.broadcast %cst_45 : f32 to vector<16x32xf32>
    %128 = arith.mulf %127, %124 : vector<16x32xf32>
    %129 = arith.select %126, %124, %128 : vector<16x32xi1>, vector<16x32xf32>
    %cst_46 = arith.constant 0.000000e+00 : f32
    %130 = vector.broadcast %cst_46 : f32 to vector<16x32xf32>
    %131 = arith.cmpf ogt, %20, %130 : vector<16x32xf32>
    %cst_47 = arith.constant -1.000000e+30 : f32
    %132 = vector.broadcast %cst_47 : f32 to vector<16x32xf32>
    %133 = arith.select %131, %129, %132 : vector<16x32xi1>, vector<16x32xf32>
    %cst_48 = arith.constant dense<0xFF800000> : vector<16xf32>
    %134 = vector.multi_reduction <maximumf>, %133, %cst_48 [1] : vector<16x32xf32> to vector<16xf32>
    %135 = vector.shape_cast %134 : vector<16xf32> to vector<16x1xf32>
    %136 = vector.broadcast %135 : vector<16x1xf32> to vector<16x32xf32>
    %137 = arith.subf %133, %136 : vector<16x32xf32>
    %138 = math.exp %137 : vector<16x32xf32>
    %139 = arith.mulf %138, %20 : vector<16x32xf32>
    %cst_49 = arith.constant dense<0.000000e+00> : vector<16xf32>
    %140 = vector.multi_reduction <add>, %139, %cst_49 [1] : vector<16x32xf32> to vector<16xf32>
    %141 = vector.shape_cast %140 : vector<16xf32> to vector<16x1xf32>
    %cst_50 = arith.constant 1.000000e-16 : f32
    %142 = vector.broadcast %cst_50 : f32 to vector<16x1xf32>
    %143 = arith.addf %141, %142 : vector<16x1xf32>
    %144 = tpu.reciprocal %143 {approx = true} : vector<16x1xf32> -> vector<16x1xf32>
    %145 = vector.broadcast %144 : vector<16x1xf32> to vector<16x32xf32>
    %146 = arith.mulf %139, %145 : vector<16x32xf32>
    %147 = arith.truncf %146 : vector<16x32xf32> to vector<16x32xbf16>
    %148 = vector.extract_strided_slice %2 {offsets = [0, 0], sizes = [32, 8], strides = [1, 1]} : vector<32x32xf32> to vector<32x8xf32>
    %149 = arith.truncf %148 : vector<32x8xf32> to vector<32x8xbf16>
    %cst_51 = arith.constant dense<0.000000e+00> : vector<16x8xf32>
    %150 = tpu.matmul %147, %149, %cst_51 {dimension_numbers = #tpu.dot_dimension_numbers<[1], [0], [0], [1], [0, 0, 1, 1], [], []>} : vector<16x32xbf16>, vector<32x8xbf16>, vector<16x8xf32> -> vector<16x8xf32>
    %151 = vector.extract_strided_slice %22 {offsets = [0, 0], sizes = [1, 8], strides = [1, 1]} : vector<1x32xf32> to vector<1x8xf32>
    %152 = vector.broadcast %151 : vector<1x8xf32> to vector<16x8xf32>
    %153 = arith.addf %150, %152 : vector<16x8xf32>
    %cst_52 = arith.constant 0.000000e+00 : f32
    %154 = vector.broadcast %cst_52 : f32 to vector<16x8xf32>
    %155 = arith.cmpf ogt, %153, %154 : vector<16x8xf32>
    %cst_53 = arith.constant 0.000000e+00 : f32
    %156 = vector.broadcast %cst_53 : f32 to vector<16x8xf32>
    %157 = arith.minimumf %153, %156 : vector<16x8xf32>
    %158 = math.exp %157 : vector<16x8xf32>
    %cst_54 = arith.constant 1.000000e+00 : f32
    %159 = vector.broadcast %cst_54 : f32 to vector<16x8xf32>
    %160 = arith.subf %158, %159 : vector<16x8xf32>
    %161 = arith.select %155, %153, %160 : vector<16x8xi1>, vector<16x8xf32>
    %c0_55 = arith.constant 0 : index
    %c0_56 = arith.constant 0 : index
    %162 = vector.load %arg11[%c0_55, %c0_56] : memref<16x128xf32, #tpu.memory_space<vmem>>, vector<16x8xf32>
    tpu.vector_store %arg11[%c0_55, %c0_56], %161 {strides = array<i32>} : memref<16x128xf32, #tpu.memory_space<vmem>>, vector<16x8xf32>,
    %cst_57 = arith.constant 0.000000e+00 : f32
    %163 = vector.broadcast %cst_57 : f32 to vector<16x32xf32>
    %cst_58 = arith.constant 0.000000e+00 : f32
    %164 = vector.broadcast %cst_58 : f32 to vector<16x1xf32>
    %165 = vector.extract_strided_slice %21 {offsets = [0, 1], sizes = [1, 1], strides = [1, 1]} : vector<8x4xf32> to vector<1x1xf32>
    %166 = vector.broadcast %165 : vector<1x1xf32> to vector<16x32xf32>
    %167 = arith.mulf %166, %26 : vector<16x32xf32>
    %168 = arith.addf %163, %167 : vector<16x32xf32>
    %169 = vector.extract_strided_slice %23 {offsets = [0, 0], sizes = [16, 1], strides = [1, 1]} : vector<16x8xf32> to vector<16x1xf32>
    %170 = vector.broadcast %165 : vector<1x1xf32> to vector<16x1xf32>
    %171 = arith.mulf %170, %169 : vector<16x1xf32>
    %172 = arith.addf %164, %171 : vector<16x1xf32>
    %173 = vector.extract_strided_slice %21 {offsets = [1, 1], sizes = [1, 1], strides = [1, 1]} : vector<8x4xf32> to vector<1x1xf32>
    %174 = vector.broadcast %173 : vector<1x1xf32> to vector<16x32xf32>
    %175 = arith.mulf %174, %29 : vector<16x32xf32>
    %176 = arith.addf %168, %175 : vector<16x32xf32>
    %177 = vector.extract_strided_slice %23 {offsets = [0, 1], sizes = [16, 1], strides = [1, 1]} : vector<16x8xf32> to vector<16x1xf32>
    %178 = vector.broadcast %173 : vector<1x1xf32> to vector<16x1xf32>
    %179 = arith.mulf %178, %177 : vector<16x1xf32>
    %180 = arith.addf %172, %179 : vector<16x1xf32>
    %181 = vector.extract_strided_slice %21 {offsets = [2, 1], sizes = [1, 1], strides = [1, 1]} : vector<8x4xf32> to vector<1x1xf32>
    %182 = vector.broadcast %181 : vector<1x1xf32> to vector<16x32xf32>
    %183 = arith.mulf %182, %32 : vector<16x32xf32>
    %184 = arith.addf %176, %183 : vector<16x32xf32>
    %185 = vector.extract_strided_slice %23 {offsets = [0, 2], sizes = [16, 1], strides = [1, 1]} : vector<16x8xf32> to vector<16x1xf32>
    %186 = vector.broadcast %181 : vector<1x1xf32> to vector<16x1xf32>
    %187 = arith.mulf %186, %185 : vector<16x1xf32>
    %188 = arith.addf %180, %187 : vector<16x1xf32>
    %189 = vector.extract_strided_slice %21 {offsets = [3, 1], sizes = [1, 1], strides = [1, 1]} : vector<8x4xf32> to vector<1x1xf32>
    %190 = vector.broadcast %189 : vector<1x1xf32> to vector<16x32xf32>
    %191 = arith.mulf %190, %35 : vector<16x32xf32>
    %192 = arith.addf %184, %191 : vector<16x32xf32>
    %193 = vector.extract_strided_slice %23 {offsets = [0, 3], sizes = [16, 1], strides = [1, 1]} : vector<16x8xf32> to vector<16x1xf32>
    %194 = vector.broadcast %189 : vector<1x1xf32> to vector<16x1xf32>
    %195 = arith.mulf %194, %193 : vector<16x1xf32>
    %196 = arith.addf %188, %195 : vector<16x1xf32>
    %197 = vector.extract_strided_slice %21 {offsets = [4, 1], sizes = [1, 1], strides = [1, 1]} : vector<8x4xf32> to vector<1x1xf32>
    %198 = vector.broadcast %197 : vector<1x1xf32> to vector<16x32xf32>
    %199 = arith.mulf %198, %38 : vector<16x32xf32>
    %200 = arith.addf %192, %199 : vector<16x32xf32>
    %201 = vector.extract_strided_slice %23 {offsets = [0, 4], sizes = [16, 1], strides = [1, 1]} : vector<16x8xf32> to vector<16x1xf32>
    %202 = vector.broadcast %197 : vector<1x1xf32> to vector<16x1xf32>
    %203 = arith.mulf %202, %201 : vector<16x1xf32>
    %204 = arith.addf %196, %203 : vector<16x1xf32>
    %205 = vector.extract_strided_slice %21 {offsets = [5, 1], sizes = [1, 1], strides = [1, 1]} : vector<8x4xf32> to vector<1x1xf32>
    %206 = vector.broadcast %205 : vector<1x1xf32> to vector<16x32xf32>
    %207 = arith.mulf %206, %41 : vector<16x32xf32>
    %208 = arith.addf %200, %207 : vector<16x32xf32>
    %209 = vector.extract_strided_slice %23 {offsets = [0, 5], sizes = [16, 1], strides = [1, 1]} : vector<16x8xf32> to vector<16x1xf32>
    %210 = vector.broadcast %205 : vector<1x1xf32> to vector<16x1xf32>
    %211 = arith.mulf %210, %209 : vector<16x1xf32>
    %212 = arith.addf %204, %211 : vector<16x1xf32>
    %213 = vector.extract_strided_slice %21 {offsets = [6, 1], sizes = [1, 1], strides = [1, 1]} : vector<8x4xf32> to vector<1x1xf32>
    %214 = vector.broadcast %213 : vector<1x1xf32> to vector<16x32xf32>
    %215 = arith.mulf %214, %44 : vector<16x32xf32>
    %216 = arith.addf %208, %215 : vector<16x32xf32>
    %217 = vector.extract_strided_slice %23 {offsets = [0, 6], sizes = [16, 1], strides = [1, 1]} : vector<16x8xf32> to vector<16x1xf32>
    %218 = vector.broadcast %213 : vector<1x1xf32> to vector<16x1xf32>
    %219 = arith.mulf %218, %217 : vector<16x1xf32>
    %220 = arith.addf %212, %219 : vector<16x1xf32>
    %221 = vector.extract_strided_slice %21 {offsets = [7, 1], sizes = [1, 1], strides = [1, 1]} : vector<8x4xf32> to vector<1x1xf32>
    %222 = vector.broadcast %221 : vector<1x1xf32> to vector<16x32xf32>
    %223 = arith.mulf %222, %47 : vector<16x32xf32>
    %224 = arith.addf %216, %223 : vector<16x32xf32>
    %225 = vector.extract_strided_slice %23 {offsets = [0, 7], sizes = [16, 1], strides = [1, 1]} : vector<16x8xf32> to vector<16x1xf32>
    %226 = vector.broadcast %221 : vector<1x1xf32> to vector<16x1xf32>
    %227 = arith.mulf %226, %225 : vector<16x1xf32>
    %228 = arith.addf %220, %227 : vector<16x1xf32>
    %229 = vector.broadcast %228 : vector<16x1xf32> to vector<16x32xf32>
    %230 = arith.mulf %17, %229 : vector<16x32xf32>
    %231 = arith.addf %224, %230 : vector<16x32xf32>
    %232 = vector.extract_strided_slice %9 {offsets = [0, 1], sizes = [16, 1], strides = [1, 1]} : vector<16x4xf32> to vector<16x1xf32>
    %233 = vector.broadcast %232 : vector<16x1xf32> to vector<16x32xf32>
    %234 = arith.addf %231, %233 : vector<16x32xf32>
    %235 = vector.extract_strided_slice %7 {offsets = [1, 0], sizes = [1, 32], strides = [1, 1]} : vector<4x32xf32> to vector<1x32xf32>
    %236 = vector.broadcast %235 : vector<1x32xf32> to vector<16x32xf32>
    %237 = arith.addf %234, %236 : vector<16x32xf32>
    %cst_59 = arith.constant 0.000000e+00 : f32
    %238 = vector.broadcast %cst_59 : f32 to vector<16x32xf32>
    %239 = arith.cmpf oge, %237, %238 : vector<16x32xf32>
    %cst_60 = arith.constant 0.00999999977 : f32
    %240 = vector.broadcast %cst_60 : f32 to vector<16x32xf32>
    %241 = arith.mulf %240, %237 : vector<16x32xf32>
    %242 = arith.select %239, %237, %241 : vector<16x32xi1>, vector<16x32xf32>
    %cst_61 = arith.constant 0.000000e+00 : f32
    %243 = vector.broadcast %cst_61 : f32 to vector<16x32xf32>
    %244 = arith.cmpf ogt, %20, %243 : vector<16x32xf32>
    %cst_62 = arith.constant -1.000000e+30 : f32
    %245 = vector.broadcast %cst_62 : f32 to vector<16x32xf32>
    %246 = arith.select %244, %242, %245 : vector<16x32xi1>, vector<16x32xf32>
    %cst_63 = arith.constant dense<0xFF800000> : vector<16xf32>
    %247 = vector.multi_reduction <maximumf>, %246, %cst_63 [1] : vector<16x32xf32> to vector<16xf32>
    %248 = vector.shape_cast %247 : vector<16xf32> to vector<16x1xf32>
    %249 = vector.broadcast %248 : vector<16x1xf32> to vector<16x32xf32>
    %250 = arith.subf %246, %249 : vector<16x32xf32>
    %251 = math.exp %250 : vector<16x32xf32>
    %252 = arith.mulf %251, %20 : vector<16x32xf32>
    %cst_64 = arith.constant dense<0.000000e+00> : vector<16xf32>
    %253 = vector.multi_reduction <add>, %252, %cst_64 [1] : vector<16x32xf32> to vector<16xf32>
    %254 = vector.shape_cast %253 : vector<16xf32> to vector<16x1xf32>
    %cst_65 = arith.constant 1.000000e-16 : f32
    %255 = vector.broadcast %cst_65 : f32 to vector<16x1xf32>
    %256 = arith.addf %254, %255 : vector<16x1xf32>
    %257 = tpu.reciprocal %256 {approx = true} : vector<16x1xf32> -> vector<16x1xf32>
    %258 = vector.broadcast %257 : vector<16x1xf32> to vector<16x32xf32>
    %259 = arith.mulf %252, %258 : vector<16x32xf32>
    %260 = arith.truncf %259 : vector<16x32xf32> to vector<16x32xbf16>
    %261 = vector.extract_strided_slice %2 {offsets = [0, 8], sizes = [32, 8], strides = [1, 1]} : vector<32x32xf32> to vector<32x8xf32>
    %262 = arith.truncf %261 : vector<32x8xf32> to vector<32x8xbf16>
    %cst_66 = arith.constant dense<0.000000e+00> : vector<16x8xf32>
    %263 = tpu.matmul %260, %262, %cst_66 {dimension_numbers = #tpu.dot_dimension_numbers<[1], [0], [0], [1], [0, 0, 1, 1], [], []>} : vector<16x32xbf16>, vector<32x8xbf16>, vector<16x8xf32> -> vector<16x8xf32>
    %264 = vector.extract_strided_slice %22 {offsets = [0, 8], sizes = [1, 8], strides = [1, 1]} : vector<1x32xf32> to vector<1x8xf32>
    %265 = vector.broadcast %264 : vector<1x8xf32> to vector<16x8xf32>
    %266 = arith.addf %263, %265 : vector<16x8xf32>
    %cst_67 = arith.constant 0.000000e+00 : f32
    %267 = vector.broadcast %cst_67 : f32 to vector<16x8xf32>
    %268 = arith.cmpf ogt, %266, %267 : vector<16x8xf32>
    %cst_68 = arith.constant 0.000000e+00 : f32
    %269 = vector.broadcast %cst_68 : f32 to vector<16x8xf32>
    %270 = arith.minimumf %266, %269 : vector<16x8xf32>
    %271 = math.exp %270 : vector<16x8xf32>
    %cst_69 = arith.constant 1.000000e+00 : f32
    %272 = vector.broadcast %cst_69 : f32 to vector<16x8xf32>
    %273 = arith.subf %271, %272 : vector<16x8xf32>
    %274 = arith.select %268, %266, %273 : vector<16x8xi1>, vector<16x8xf32>
    %c0_70 = arith.constant 0 : index
    %c8 = arith.constant 8 : index
    %275 = vector.load %arg11[%c0_70, %c8] : memref<16x128xf32, #tpu.memory_space<vmem>>, vector<16x8xf32>
    tpu.vector_store %arg11[%c0_70, %c8], %274 {strides = array<i32>} : memref<16x128xf32, #tpu.memory_space<vmem>>, vector<16x8xf32>,
    %cst_71 = arith.constant 0.000000e+00 : f32
    %276 = vector.broadcast %cst_71 : f32 to vector<16x32xf32>
    %cst_72 = arith.constant 0.000000e+00 : f32
    %277 = vector.broadcast %cst_72 : f32 to vector<16x1xf32>
    %278 = vector.extract_strided_slice %21 {offsets = [0, 2], sizes = [1, 1], strides = [1, 1]} : vector<8x4xf32> to vector<1x1xf32>
    %279 = vector.broadcast %278 : vector<1x1xf32> to vector<16x32xf32>
    %280 = arith.mulf %279, %26 : vector<16x32xf32>
    %281 = arith.addf %276, %280 : vector<16x32xf32>
    %282 = vector.extract_strided_slice %23 {offsets = [0, 0], sizes = [16, 1], strides = [1, 1]} : vector<16x8xf32> to vector<16x1xf32>
    %283 = vector.broadcast %278 : vector<1x1xf32> to vector<16x1xf32>
    %284 = arith.mulf %283, %282 : vector<16x1xf32>
    %285 = arith.addf %277, %284 : vector<16x1xf32>
    %286 = vector.extract_strided_slice %21 {offsets = [1, 2], sizes = [1, 1], strides = [1, 1]} : vector<8x4xf32> to vector<1x1xf32>
    %287 = vector.broadcast %286 : vector<1x1xf32> to vector<16x32xf32>
    %288 = arith.mulf %287, %29 : vector<16x32xf32>
    %289 = arith.addf %281, %288 : vector<16x32xf32>
    %290 = vector.extract_strided_slice %23 {offsets = [0, 1], sizes = [16, 1], strides = [1, 1]} : vector<16x8xf32> to vector<16x1xf32>
    %291 = vector.broadcast %286 : vector<1x1xf32> to vector<16x1xf32>
    %292 = arith.mulf %291, %290 : vector<16x1xf32>
    %293 = arith.addf %285, %292 : vector<16x1xf32>
    %294 = vector.extract_strided_slice %21 {offsets = [2, 2], sizes = [1, 1], strides = [1, 1]} : vector<8x4xf32> to vector<1x1xf32>
    %295 = vector.broadcast %294 : vector<1x1xf32> to vector<16x32xf32>
    %296 = arith.mulf %295, %32 : vector<16x32xf32>
    %297 = arith.addf %289, %296 : vector<16x32xf32>
    %298 = vector.extract_strided_slice %23 {offsets = [0, 2], sizes = [16, 1], strides = [1, 1]} : vector<16x8xf32> to vector<16x1xf32>
    %299 = vector.broadcast %294 : vector<1x1xf32> to vector<16x1xf32>
    %300 = arith.mulf %299, %298 : vector<16x1xf32>
    %301 = arith.addf %293, %300 : vector<16x1xf32>
    %302 = vector.extract_strided_slice %21 {offsets = [3, 2], sizes = [1, 1], strides = [1, 1]} : vector<8x4xf32> to vector<1x1xf32>
    %303 = vector.broadcast %302 : vector<1x1xf32> to vector<16x32xf32>
    %304 = arith.mulf %303, %35 : vector<16x32xf32>
    %305 = arith.addf %297, %304 : vector<16x32xf32>
    %306 = vector.extract_strided_slice %23 {offsets = [0, 3], sizes = [16, 1], strides = [1, 1]} : vector<16x8xf32> to vector<16x1xf32>
    %307 = vector.broadcast %302 : vector<1x1xf32> to vector<16x1xf32>
    %308 = arith.mulf %307, %306 : vector<16x1xf32>
    %309 = arith.addf %301, %308 : vector<16x1xf32>
    %310 = vector.extract_strided_slice %21 {offsets = [4, 2], sizes = [1, 1], strides = [1, 1]} : vector<8x4xf32> to vector<1x1xf32>
    %311 = vector.broadcast %310 : vector<1x1xf32> to vector<16x32xf32>
    %312 = arith.mulf %311, %38 : vector<16x32xf32>
    %313 = arith.addf %305, %312 : vector<16x32xf32>
    %314 = vector.extract_strided_slice %23 {offsets = [0, 4], sizes = [16, 1], strides = [1, 1]} : vector<16x8xf32> to vector<16x1xf32>
    %315 = vector.broadcast %310 : vector<1x1xf32> to vector<16x1xf32>
    %316 = arith.mulf %315, %314 : vector<16x1xf32>
    %317 = arith.addf %309, %316 : vector<16x1xf32>
    %318 = vector.extract_strided_slice %21 {offsets = [5, 2], sizes = [1, 1], strides = [1, 1]} : vector<8x4xf32> to vector<1x1xf32>
    %319 = vector.broadcast %318 : vector<1x1xf32> to vector<16x32xf32>
    %320 = arith.mulf %319, %41 : vector<16x32xf32>
    %321 = arith.addf %313, %320 : vector<16x32xf32>
    %322 = vector.extract_strided_slice %23 {offsets = [0, 5], sizes = [16, 1], strides = [1, 1]} : vector<16x8xf32> to vector<16x1xf32>
    %323 = vector.broadcast %318 : vector<1x1xf32> to vector<16x1xf32>
    %324 = arith.mulf %323, %322 : vector<16x1xf32>
    %325 = arith.addf %317, %324 : vector<16x1xf32>
    %326 = vector.extract_strided_slice %21 {offsets = [6, 2], sizes = [1, 1], strides = [1, 1]} : vector<8x4xf32> to vector<1x1xf32>
    %327 = vector.broadcast %326 : vector<1x1xf32> to vector<16x32xf32>
    %328 = arith.mulf %327, %44 : vector<16x32xf32>
    %329 = arith.addf %321, %328 : vector<16x32xf32>
    %330 = vector.extract_strided_slice %23 {offsets = [0, 6], sizes = [16, 1], strides = [1, 1]} : vector<16x8xf32> to vector<16x1xf32>
    %331 = vector.broadcast %326 : vector<1x1xf32> to vector<16x1xf32>
    %332 = arith.mulf %331, %330 : vector<16x1xf32>
    %333 = arith.addf %325, %332 : vector<16x1xf32>
    %334 = vector.extract_strided_slice %21 {offsets = [7, 2], sizes = [1, 1], strides = [1, 1]} : vector<8x4xf32> to vector<1x1xf32>
    %335 = vector.broadcast %334 : vector<1x1xf32> to vector<16x32xf32>
    %336 = arith.mulf %335, %47 : vector<16x32xf32>
    %337 = arith.addf %329, %336 : vector<16x32xf32>
    %338 = vector.extract_strided_slice %23 {offsets = [0, 7], sizes = [16, 1], strides = [1, 1]} : vector<16x8xf32> to vector<16x1xf32>
    %339 = vector.broadcast %334 : vector<1x1xf32> to vector<16x1xf32>
    %340 = arith.mulf %339, %338 : vector<16x1xf32>
    %341 = arith.addf %333, %340 : vector<16x1xf32>
    %342 = vector.broadcast %341 : vector<16x1xf32> to vector<16x32xf32>
    %343 = arith.mulf %17, %342 : vector<16x32xf32>
    %344 = arith.addf %337, %343 : vector<16x32xf32>
    %345 = vector.extract_strided_slice %9 {offsets = [0, 2], sizes = [16, 1], strides = [1, 1]} : vector<16x4xf32> to vector<16x1xf32>
    %346 = vector.broadcast %345 : vector<16x1xf32> to vector<16x32xf32>
    %347 = arith.addf %344, %346 : vector<16x32xf32>
    %348 = vector.extract_strided_slice %7 {offsets = [2, 0], sizes = [1, 32], strides = [1, 1]} : vector<4x32xf32> to vector<1x32xf32>
    %349 = vector.broadcast %348 : vector<1x32xf32> to vector<16x32xf32>
    %350 = arith.addf %347, %349 : vector<16x32xf32>
    %cst_73 = arith.constant 0.000000e+00 : f32
    %351 = vector.broadcast %cst_73 : f32 to vector<16x32xf32>
    %352 = arith.cmpf oge, %350, %351 : vector<16x32xf32>
    %cst_74 = arith.constant 0.00999999977 : f32
    %353 = vector.broadcast %cst_74 : f32 to vector<16x32xf32>
    %354 = arith.mulf %353, %350 : vector<16x32xf32>
    %355 = arith.select %352, %350, %354 : vector<16x32xi1>, vector<16x32xf32>
    %cst_75 = arith.constant 0.000000e+00 : f32
    %356 = vector.broadcast %cst_75 : f32 to vector<16x32xf32>
    %357 = arith.cmpf ogt, %20, %356 : vector<16x32xf32>
    %cst_76 = arith.constant -1.000000e+30 : f32
    %358 = vector.broadcast %cst_76 : f32 to vector<16x32xf32>
    %359 = arith.select %357, %355, %358 : vector<16x32xi1>, vector<16x32xf32>
    %cst_77 = arith.constant dense<0xFF800000> : vector<16xf32>
    %360 = vector.multi_reduction <maximumf>, %359, %cst_77 [1] : vector<16x32xf32> to vector<16xf32>
    %361 = vector.shape_cast %360 : vector<16xf32> to vector<16x1xf32>
    %362 = vector.broadcast %361 : vector<16x1xf32> to vector<16x32xf32>
    %363 = arith.subf %359, %362 : vector<16x32xf32>
    %364 = math.exp %363 : vector<16x32xf32>
    %365 = arith.mulf %364, %20 : vector<16x32xf32>
    %cst_78 = arith.constant dense<0.000000e+00> : vector<16xf32>
    %366 = vector.multi_reduction <add>, %365, %cst_78 [1] : vector<16x32xf32> to vector<16xf32>
    %367 = vector.shape_cast %366 : vector<16xf32> to vector<16x1xf32>
    %cst_79 = arith.constant 1.000000e-16 : f32
    %368 = vector.broadcast %cst_79 : f32 to vector<16x1xf32>
    %369 = arith.addf %367, %368 : vector<16x1xf32>
    %370 = tpu.reciprocal %369 {approx = true} : vector<16x1xf32> -> vector<16x1xf32>
    %371 = vector.broadcast %370 : vector<16x1xf32> to vector<16x32xf32>
    %372 = arith.mulf %365, %371 : vector<16x32xf32>
    %373 = arith.truncf %372 : vector<16x32xf32> to vector<16x32xbf16>
    %374 = vector.extract_strided_slice %2 {offsets = [0, 16], sizes = [32, 8], strides = [1, 1]} : vector<32x32xf32> to vector<32x8xf32>
    %375 = arith.truncf %374 : vector<32x8xf32> to vector<32x8xbf16>
    %cst_80 = arith.constant dense<0.000000e+00> : vector<16x8xf32>
    %376 = tpu.matmul %373, %375, %cst_80 {dimension_numbers = #tpu.dot_dimension_numbers<[1], [0], [0], [1], [0, 0, 1, 1], [], []>} : vector<16x32xbf16>, vector<32x8xbf16>, vector<16x8xf32> -> vector<16x8xf32>
    %377 = vector.extract_strided_slice %22 {offsets = [0, 16], sizes = [1, 8], strides = [1, 1]} : vector<1x32xf32> to vector<1x8xf32>
    %378 = vector.broadcast %377 : vector<1x8xf32> to vector<16x8xf32>
    %379 = arith.addf %376, %378 : vector<16x8xf32>
    %cst_81 = arith.constant 0.000000e+00 : f32
    %380 = vector.broadcast %cst_81 : f32 to vector<16x8xf32>
    %381 = arith.cmpf ogt, %379, %380 : vector<16x8xf32>
    %cst_82 = arith.constant 0.000000e+00 : f32
    %382 = vector.broadcast %cst_82 : f32 to vector<16x8xf32>
    %383 = arith.minimumf %379, %382 : vector<16x8xf32>
    %384 = math.exp %383 : vector<16x8xf32>
    %cst_83 = arith.constant 1.000000e+00 : f32
    %385 = vector.broadcast %cst_83 : f32 to vector<16x8xf32>
    %386 = arith.subf %384, %385 : vector<16x8xf32>
    %387 = arith.select %381, %379, %386 : vector<16x8xi1>, vector<16x8xf32>
    %c0_84 = arith.constant 0 : index
    %c16 = arith.constant 16 : index
    %388 = vector.load %arg11[%c0_84, %c16] : memref<16x128xf32, #tpu.memory_space<vmem>>, vector<16x8xf32>
    tpu.vector_store %arg11[%c0_84, %c16], %387 {strides = array<i32>} : memref<16x128xf32, #tpu.memory_space<vmem>>, vector<16x8xf32>,
    %cst_85 = arith.constant 0.000000e+00 : f32
    %389 = vector.broadcast %cst_85 : f32 to vector<16x32xf32>
    %cst_86 = arith.constant 0.000000e+00 : f32
    %390 = vector.broadcast %cst_86 : f32 to vector<16x1xf32>
    %391 = vector.extract_strided_slice %21 {offsets = [0, 3], sizes = [1, 1], strides = [1, 1]} : vector<8x4xf32> to vector<1x1xf32>
    %392 = vector.broadcast %391 : vector<1x1xf32> to vector<16x32xf32>
    %393 = arith.mulf %392, %26 : vector<16x32xf32>
    %394 = arith.addf %389, %393 : vector<16x32xf32>
    %395 = vector.extract_strided_slice %23 {offsets = [0, 0], sizes = [16, 1], strides = [1, 1]} : vector<16x8xf32> to vector<16x1xf32>
    %396 = vector.broadcast %391 : vector<1x1xf32> to vector<16x1xf32>
    %397 = arith.mulf %396, %395 : vector<16x1xf32>
    %398 = arith.addf %390, %397 : vector<16x1xf32>
    %399 = vector.extract_strided_slice %21 {offsets = [1, 3], sizes = [1, 1], strides = [1, 1]} : vector<8x4xf32> to vector<1x1xf32>
    %400 = vector.broadcast %399 : vector<1x1xf32> to vector<16x32xf32>
    %401 = arith.mulf %400, %29 : vector<16x32xf32>
    %402 = arith.addf %394, %401 : vector<16x32xf32>
    %403 = vector.extract_strided_slice %23 {offsets = [0, 1], sizes = [16, 1], strides = [1, 1]} : vector<16x8xf32> to vector<16x1xf32>
    %404 = vector.broadcast %399 : vector<1x1xf32> to vector<16x1xf32>
    %405 = arith.mulf %404, %403 : vector<16x1xf32>
    %406 = arith.addf %398, %405 : vector<16x1xf32>
    %407 = vector.extract_strided_slice %21 {offsets = [2, 3], sizes = [1, 1], strides = [1, 1]} : vector<8x4xf32> to vector<1x1xf32>
    %408 = vector.broadcast %407 : vector<1x1xf32> to vector<16x32xf32>
    %409 = arith.mulf %408, %32 : vector<16x32xf32>
    %410 = arith.addf %402, %409 : vector<16x32xf32>
    %411 = vector.extract_strided_slice %23 {offsets = [0, 2], sizes = [16, 1], strides = [1, 1]} : vector<16x8xf32> to vector<16x1xf32>
    %412 = vector.broadcast %407 : vector<1x1xf32> to vector<16x1xf32>
    %413 = arith.mulf %412, %411 : vector<16x1xf32>
    %414 = arith.addf %406, %413 : vector<16x1xf32>
    %415 = vector.extract_strided_slice %21 {offsets = [3, 3], sizes = [1, 1], strides = [1, 1]} : vector<8x4xf32> to vector<1x1xf32>
    %416 = vector.broadcast %415 : vector<1x1xf32> to vector<16x32xf32>
    %417 = arith.mulf %416, %35 : vector<16x32xf32>
    %418 = arith.addf %410, %417 : vector<16x32xf32>
    %419 = vector.extract_strided_slice %23 {offsets = [0, 3], sizes = [16, 1], strides = [1, 1]} : vector<16x8xf32> to vector<16x1xf32>
    %420 = vector.broadcast %415 : vector<1x1xf32> to vector<16x1xf32>
    %421 = arith.mulf %420, %419 : vector<16x1xf32>
    %422 = arith.addf %414, %421 : vector<16x1xf32>
    %423 = vector.extract_strided_slice %21 {offsets = [4, 3], sizes = [1, 1], strides = [1, 1]} : vector<8x4xf32> to vector<1x1xf32>
    %424 = vector.broadcast %423 : vector<1x1xf32> to vector<16x32xf32>
    %425 = arith.mulf %424, %38 : vector<16x32xf32>
    %426 = arith.addf %418, %425 : vector<16x32xf32>
    %427 = vector.extract_strided_slice %23 {offsets = [0, 4], sizes = [16, 1], strides = [1, 1]} : vector<16x8xf32> to vector<16x1xf32>
    %428 = vector.broadcast %423 : vector<1x1xf32> to vector<16x1xf32>
    %429 = arith.mulf %428, %427 : vector<16x1xf32>
    %430 = arith.addf %422, %429 : vector<16x1xf32>
    %431 = vector.extract_strided_slice %21 {offsets = [5, 3], sizes = [1, 1], strides = [1, 1]} : vector<8x4xf32> to vector<1x1xf32>
    %432 = vector.broadcast %431 : vector<1x1xf32> to vector<16x32xf32>
    %433 = arith.mulf %432, %41 : vector<16x32xf32>
    %434 = arith.addf %426, %433 : vector<16x32xf32>
    %435 = vector.extract_strided_slice %23 {offsets = [0, 5], sizes = [16, 1], strides = [1, 1]} : vector<16x8xf32> to vector<16x1xf32>
    %436 = vector.broadcast %431 : vector<1x1xf32> to vector<16x1xf32>
    %437 = arith.mulf %436, %435 : vector<16x1xf32>
    %438 = arith.addf %430, %437 : vector<16x1xf32>
    %439 = vector.extract_strided_slice %21 {offsets = [6, 3], sizes = [1, 1], strides = [1, 1]} : vector<8x4xf32> to vector<1x1xf32>
    %440 = vector.broadcast %439 : vector<1x1xf32> to vector<16x32xf32>
    %441 = arith.mulf %440, %44 : vector<16x32xf32>
    %442 = arith.addf %434, %441 : vector<16x32xf32>
    %443 = vector.extract_strided_slice %23 {offsets = [0, 6], sizes = [16, 1], strides = [1, 1]} : vector<16x8xf32> to vector<16x1xf32>
    %444 = vector.broadcast %439 : vector<1x1xf32> to vector<16x1xf32>
    %445 = arith.mulf %444, %443 : vector<16x1xf32>
    %446 = arith.addf %438, %445 : vector<16x1xf32>
    %447 = vector.extract_strided_slice %21 {offsets = [7, 3], sizes = [1, 1], strides = [1, 1]} : vector<8x4xf32> to vector<1x1xf32>
    %448 = vector.broadcast %447 : vector<1x1xf32> to vector<16x32xf32>
    %449 = arith.mulf %448, %47 : vector<16x32xf32>
    %450 = arith.addf %442, %449 : vector<16x32xf32>
    %451 = vector.extract_strided_slice %23 {offsets = [0, 7], sizes = [16, 1], strides = [1, 1]} : vector<16x8xf32> to vector<16x1xf32>
    %452 = vector.broadcast %447 : vector<1x1xf32> to vector<16x1xf32>
    %453 = arith.mulf %452, %451 : vector<16x1xf32>
    %454 = arith.addf %446, %453 : vector<16x1xf32>
    %455 = vector.broadcast %454 : vector<16x1xf32> to vector<16x32xf32>
    %456 = arith.mulf %17, %455 : vector<16x32xf32>
    %457 = arith.addf %450, %456 : vector<16x32xf32>
    %458 = vector.extract_strided_slice %9 {offsets = [0, 3], sizes = [16, 1], strides = [1, 1]} : vector<16x4xf32> to vector<16x1xf32>
    %459 = vector.broadcast %458 : vector<16x1xf32> to vector<16x32xf32>
    %460 = arith.addf %457, %459 : vector<16x32xf32>
    %461 = vector.extract_strided_slice %7 {offsets = [3, 0], sizes = [1, 32], strides = [1, 1]} : vector<4x32xf32> to vector<1x32xf32>
    %462 = vector.broadcast %461 : vector<1x32xf32> to vector<16x32xf32>
    %463 = arith.addf %460, %462 : vector<16x32xf32>
    %cst_87 = arith.constant 0.000000e+00 : f32
    %464 = vector.broadcast %cst_87 : f32 to vector<16x32xf32>
    %465 = arith.cmpf oge, %463, %464 : vector<16x32xf32>
    %cst_88 = arith.constant 0.00999999977 : f32
    %466 = vector.broadcast %cst_88 : f32 to vector<16x32xf32>
    %467 = arith.mulf %466, %463 : vector<16x32xf32>
    %468 = arith.select %465, %463, %467 : vector<16x32xi1>, vector<16x32xf32>
    %cst_89 = arith.constant 0.000000e+00 : f32
    %469 = vector.broadcast %cst_89 : f32 to vector<16x32xf32>
    %470 = arith.cmpf ogt, %20, %469 : vector<16x32xf32>
    %cst_90 = arith.constant -1.000000e+30 : f32
    %471 = vector.broadcast %cst_90 : f32 to vector<16x32xf32>
    %472 = arith.select %470, %468, %471 : vector<16x32xi1>, vector<16x32xf32>
    %cst_91 = arith.constant dense<0xFF800000> : vector<16xf32>
    %473 = vector.multi_reduction <maximumf>, %472, %cst_91 [1] : vector<16x32xf32> to vector<16xf32>
    %474 = vector.shape_cast %473 : vector<16xf32> to vector<16x1xf32>
    %475 = vector.broadcast %474 : vector<16x1xf32> to vector<16x32xf32>
    %476 = arith.subf %472, %475 : vector<16x32xf32>
    %477 = math.exp %476 : vector<16x32xf32>
    %478 = arith.mulf %477, %20 : vector<16x32xf32>
    %cst_92 = arith.constant dense<0.000000e+00> : vector<16xf32>
    %479 = vector.multi_reduction <add>, %478, %cst_92 [1] : vector<16x32xf32> to vector<16xf32>
    %480 = vector.shape_cast %479 : vector<16xf32> to vector<16x1xf32>
    %cst_93 = arith.constant 1.000000e-16 : f32
    %481 = vector.broadcast %cst_93 : f32 to vector<16x1xf32>
    %482 = arith.addf %480, %481 : vector<16x1xf32>
    %483 = tpu.reciprocal %482 {approx = true} : vector<16x1xf32> -> vector<16x1xf32>
    %484 = vector.broadcast %483 : vector<16x1xf32> to vector<16x32xf32>
    %485 = arith.mulf %478, %484 : vector<16x32xf32>
    %486 = arith.truncf %485 : vector<16x32xf32> to vector<16x32xbf16>
    %487 = vector.extract_strided_slice %2 {offsets = [0, 24], sizes = [32, 8], strides = [1, 1]} : vector<32x32xf32> to vector<32x8xf32>
    %488 = arith.truncf %487 : vector<32x8xf32> to vector<32x8xbf16>
    %cst_94 = arith.constant dense<0.000000e+00> : vector<16x8xf32>
    %489 = tpu.matmul %486, %488, %cst_94 {dimension_numbers = #tpu.dot_dimension_numbers<[1], [0], [0], [1], [0, 0, 1, 1], [], []>} : vector<16x32xbf16>, vector<32x8xbf16>, vector<16x8xf32> -> vector<16x8xf32>
    %490 = vector.extract_strided_slice %22 {offsets = [0, 24], sizes = [1, 8], strides = [1, 1]} : vector<1x32xf32> to vector<1x8xf32>
    %491 = vector.broadcast %490 : vector<1x8xf32> to vector<16x8xf32>
    %492 = arith.addf %489, %491 : vector<16x8xf32>
    %cst_95 = arith.constant 0.000000e+00 : f32
    %493 = vector.broadcast %cst_95 : f32 to vector<16x8xf32>
    %494 = arith.cmpf ogt, %492, %493 : vector<16x8xf32>
    %cst_96 = arith.constant 0.000000e+00 : f32
    %495 = vector.broadcast %cst_96 : f32 to vector<16x8xf32>
    %496 = arith.minimumf %492, %495 : vector<16x8xf32>
    %497 = math.exp %496 : vector<16x8xf32>
    %cst_97 = arith.constant 1.000000e+00 : f32
    %498 = vector.broadcast %cst_97 : f32 to vector<16x8xf32>
    %499 = arith.subf %497, %498 : vector<16x8xf32>
    %500 = arith.select %494, %492, %499 : vector<16x8xi1>, vector<16x8xf32>
    %c0_98 = arith.constant 0 : index
    %c24 = arith.constant 24 : index
    %501 = vector.load %arg11[%c0_98, %c24] : memref<16x128xf32, #tpu.memory_space<vmem>>, vector<16x8xf32>
    tpu.vector_store %arg11[%c0_98, %c24], %500 {strides = array<i32>} : memref<16x128xf32, #tpu.memory_space<vmem>>, vector<16x8xf32>,
    return
  }
  func.func @transform_0(%arg0: i32) -> (i32, i32) {
    %c0_i32 = arith.constant 0 : i32
    %c0_i32_0 = arith.constant 0 : i32
    %c0_i32_1 = arith.constant 0 : i32
    return %c0_i32, %c0_i32_0 : i32, i32
  }
  func.func @transform_1(%arg0: i32) -> (i32, i32) {
    %c0_i32 = arith.constant 0 : i32
    %c0_i32_0 = arith.constant 0 : i32
    return %arg0, %c0_i32 : i32, i32
  }
  func.func @transform_2(%arg0: i32) -> (i32, i32) {
    %c0_i32 = arith.constant 0 : i32
    %c0_i32_0 = arith.constant 0 : i32
    return %arg0, %c0_i32 : i32, i32
  }
  func.func @transform_3(%arg0: i32) -> (i32, i32, i32) {
    %c0_i32 = arith.constant 0 : i32
    %c0_i32_0 = arith.constant 0 : i32
    %c0_i32_1 = arith.constant 0 : i32
    return %c0_i32, %arg0, %c0_i32_0 : i32, i32, i32
  }
  func.func @transform_4(%arg0: i32) -> (i32, i32) {
    %c0_i32 = arith.constant 0 : i32
    %c0_i32_0 = arith.constant 0 : i32
    return %arg0, %c0_i32 : i32, i32
  }
  func.func @transform_5(%arg0: i32) -> (i32, i32) {
    %c0_i32 = arith.constant 0 : i32
    %c0_i32_0 = arith.constant 0 : i32
    %c0_i32_1 = arith.constant 0 : i32
    return %c0_i32, %c0_i32_0 : i32, i32
  }
  func.func @transform_6(%arg0: i32) -> (i32, i32) {
    %c0_i32 = arith.constant 0 : i32
    %c0_i32_0 = arith.constant 0 : i32
    %c0_i32_1 = arith.constant 0 : i32
    return %c0_i32, %c0_i32_0 : i32, i32
  }
  func.func @transform_7(%arg0: i32) -> (i32, i32) {
    %c0_i32 = arith.constant 0 : i32
    %c0_i32_0 = arith.constant 0 : i32
    %c0_i32_1 = arith.constant 0 : i32
    return %c0_i32, %c0_i32_0 : i32, i32
  }
  func.func @transform_8(%arg0: i32) -> (i32, i32) {
    %c0_i32 = arith.constant 0 : i32
    %c0_i32_0 = arith.constant 0 : i32
    %c0_i32_1 = arith.constant 0 : i32
    return %c0_i32, %c0_i32_0 : i32, i32
  }
  func.func @transform_9(%arg0: i32) -> (i32, i32) {
    %c0_i32 = arith.constant 0 : i32
    %c0_i32_0 = arith.constant 0 : i32
    %c0_i32_1 = arith.constant 0 : i32
    return %c0_i32, %c0_i32_0 : i32, i32
  }
  func.func @transform_10(%arg0: i32) -> (i32, i32) {
    %c0_i32 = arith.constant 0 : i32
    %c0_i32_0 = arith.constant 0 : i32
    return %arg0, %c0_i32 : i32, i32
  }
}

module attributes {stable_mosaic.version = 11 : i64} {
  func.func @gateconv_kernel(%arg0: i32, %arg1: memref<32x16xf32, #tpu.memory_space<vmem>>, %arg2: memref<16x16xf32, #tpu.memory_space<vmem>>, %arg3: memref<16x32xbf16, #tpu.memory_space<vmem>>, %arg4: memref<8x16x32xbf16, #tpu.memory_space<vmem>>, %arg5: memref<16x8xf32, #tpu.memory_space<vmem>>, %arg6: memref<1x8xf32, #tpu.memory_space<vmem>>, %arg7: memref<8x8xf32, #tpu.memory_space<vmem>>, %arg8: memref<8x8xf32, #tpu.memory_space<vmem>>, %arg9: memref<8x8xf32, #tpu.memory_space<vmem>>, %arg10: memref<1x8xf32, #tpu.memory_space<vmem>>, %arg11: memref<1x8xf32, #tpu.memory_space<vmem>>, %arg12: memref<1x8xf32, #tpu.memory_space<vmem>>, %arg13: memref<16x128xf32, #tpu.memory_space<vmem>>) attributes {dimension_semantics = [#tpu.dimension_semantics<parallel>], iteration_bounds = array<i64: 2>, scalar_prefetch = 0 : i64, scratch_operands = 0 : i64, tpu.core_type = #tpu.core_type<tc>, window_params = [{pipeline_mode = #tpu.pipeline_mode<synchronous>, transform_indices = @transform_0, window_bounds = array<i64: 32, 16>}, {transform_indices = @transform_1, window_bounds = array<i64: 16, 16>}, {transform_indices = @transform_2, window_bounds = array<i64: 16, 32>}, {transform_indices = @transform_3, window_bounds = array<i64: 8, 16, 32>}, {pipeline_mode = #tpu.pipeline_mode<synchronous>, transform_indices = @transform_4, window_bounds = array<i64: 16, 8>}, {pipeline_mode = #tpu.pipeline_mode<synchronous>, transform_indices = @transform_5, window_bounds = array<i64: 1, 8>}, {pipeline_mode = #tpu.pipeline_mode<synchronous>, transform_indices = @transform_6, window_bounds = array<i64: 8, 8>}, {pipeline_mode = #tpu.pipeline_mode<synchronous>, transform_indices = @transform_7, window_bounds = array<i64: 8, 8>}, {pipeline_mode = #tpu.pipeline_mode<synchronous>, transform_indices = @transform_8, window_bounds = array<i64: 8, 8>}, {pipeline_mode = #tpu.pipeline_mode<synchronous>, transform_indices = @transform_9, window_bounds = array<i64: 1, 8>}, {pipeline_mode = #tpu.pipeline_mode<synchronous>, transform_indices = @transform_10, window_bounds = array<i64: 1, 8>}, {pipeline_mode = #tpu.pipeline_mode<synchronous>, transform_indices = @transform_11, window_bounds = array<i64: 1, 8>}, {transform_indices = @transform_12, window_bounds = array<i64: 16, 128>}]} {
    %c0 = arith.constant 0 : index
    %c0_0 = arith.constant 0 : index
    %0 = vector.load %arg1[%c0, %c0_0] : memref<32x16xf32, #tpu.memory_space<vmem>>, vector<32x16xf32>
    %c0_1 = arith.constant 0 : index
    %c0_2 = arith.constant 0 : index
    %1 = vector.load %arg5[%c0_1, %c0_2] : memref<16x8xf32, #tpu.memory_space<vmem>>, vector<16x8xf32>
    %cst = arith.constant dense<0.000000e+00> : vector<32x8xf32>
    %2 = tpu.matmul %0, %1, %cst {dimension_numbers = #tpu.dot_dimension_numbers<[1], [0], [0], [1], [0, 0, 1, 1], [], []>} : vector<32x16xf32>, vector<16x8xf32>, vector<32x8xf32> -> vector<32x8xf32>
    %c0_3 = arith.constant 0 : index
    %c0_4 = arith.constant 0 : index
    %3 = vector.load %arg6[%c0_3, %c0_4] : memref<1x8xf32, #tpu.memory_space<vmem>>, vector<1x8xf32>
    %4 = vector.broadcast %3 : vector<1x8xf32> to vector<32x8xf32>
    %5 = arith.addf %2, %4 : vector<32x8xf32>
    %cst_5 = arith.constant 0.000000e+00 : f32
    %6 = vector.broadcast %cst_5 : f32 to vector<32x8xf32>
    %7 = arith.cmpf oge, %5, %6 : vector<32x8xf32>
    %cst_6 = arith.constant 0.00999999977 : f32
    %8 = vector.broadcast %cst_6 : f32 to vector<32x8xf32>
    %9 = arith.mulf %8, %5 : vector<32x8xf32>
    %10 = arith.select %7, %5, %9 : vector<32x8xi1>, vector<32x8xf32>
    %c0_7 = arith.constant 0 : index
    %c0_8 = arith.constant 0 : index
    %11 = vector.load %arg2[%c0_7, %c0_8] : memref<16x16xf32, #tpu.memory_space<vmem>>, vector<16x16xf32>
    %c0_9 = arith.constant 0 : index
    %c0_10 = arith.constant 0 : index
    %12 = vector.load %arg5[%c0_9, %c0_10] : memref<16x8xf32, #tpu.memory_space<vmem>>, vector<16x8xf32>
    %cst_11 = arith.constant dense<0.000000e+00> : vector<16x8xf32>
    %13 = tpu.matmul %11, %12, %cst_11 {dimension_numbers = #tpu.dot_dimension_numbers<[1], [0], [0], [1], [0, 0, 1, 1], [], []>} : vector<16x16xf32>, vector<16x8xf32>, vector<16x8xf32> -> vector<16x8xf32>
    %c0_12 = arith.constant 0 : index
    %c0_13 = arith.constant 0 : index
    %14 = vector.load %arg6[%c0_12, %c0_13] : memref<1x8xf32, #tpu.memory_space<vmem>>, vector<1x8xf32>
    %15 = vector.broadcast %14 : vector<1x8xf32> to vector<16x8xf32>
    %16 = arith.addf %13, %15 : vector<16x8xf32>
    %cst_14 = arith.constant 0.000000e+00 : f32
    %17 = vector.broadcast %cst_14 : f32 to vector<16x8xf32>
    %18 = arith.cmpf oge, %16, %17 : vector<16x8xf32>
    %cst_15 = arith.constant 0.00999999977 : f32
    %19 = vector.broadcast %cst_15 : f32 to vector<16x8xf32>
    %20 = arith.mulf %19, %16 : vector<16x8xf32>
    %21 = arith.select %18, %16, %20 : vector<16x8xi1>, vector<16x8xf32>
    %c0_16 = arith.constant 0 : index
    %c0_17 = arith.constant 0 : index
    %22 = vector.load %arg8[%c0_16, %c0_17] : memref<8x8xf32, #tpu.memory_space<vmem>>, vector<8x8xf32>
    %cst_18 = arith.constant dense<0.000000e+00> : vector<32x8xf32>
    %23 = tpu.matmul %10, %22, %cst_18 {dimension_numbers = #tpu.dot_dimension_numbers<[1], [0], [0], [1], [0, 0, 1, 1], [], []>} : vector<32x8xf32>, vector<8x8xf32>, vector<32x8xf32> -> vector<32x8xf32>
    %c0_19 = arith.constant 0 : index
    %c0_20 = arith.constant 0 : index
    %24 = vector.load %arg7[%c0_19, %c0_20] : memref<8x8xf32, #tpu.memory_space<vmem>>, vector<8x8xf32>
    %cst_21 = arith.constant dense<0.000000e+00> : vector<8x32xf32>
    %25 = tpu.matmul %24, %10, %cst_21 {dimension_numbers = #tpu.dot_dimension_numbers<[1], [1], [0], [0], [0, 0, 1, 0], [], []>} : vector<8x8xf32>, vector<32x8xf32>, vector<8x32xf32> -> vector<8x32xf32>
    %c0_22 = arith.constant 0 : index
    %c0_23 = arith.constant 0 : index
    %26 = vector.load %arg11[%c0_22, %c0_23] : memref<1x8xf32, #tpu.memory_space<vmem>>, vector<1x8xf32>
    %27 = vector.broadcast %26 : vector<1x8xf32> to vector<16x8xf32>
    %28 = arith.mulf %21, %27 : vector<16x8xf32>
    %cst_24 = arith.constant dense<0.000000e+00> : vector<16xf32>
    %29 = vector.multi_reduction <add>, %28, %cst_24 [1] : vector<16x8xf32> to vector<16xf32>
    %30 = vector.shape_cast %29 : vector<16xf32> to vector<16x1xf32>
    %c0_25 = arith.constant 0 : index
    %c0_26 = arith.constant 0 : index
    %31 = vector.load %arg9[%c0_25, %c0_26] : memref<8x8xf32, #tpu.memory_space<vmem>>, vector<8x8xf32>
    %c0_27 = arith.constant 0 : index
    %c0_28 = arith.constant 0 : index
    %32 = vector.load %arg10[%c0_27, %c0_28] : memref<1x8xf32, #tpu.memory_space<vmem>>, vector<1x8xf32>
    %c0_29 = arith.constant 0 : index
    %c0_30 = arith.constant 0 : index
    %c0_31 = arith.constant 0 : index
    %33 = vector.load %arg4[%c0_29, %c0_30, %c0_31] : memref<8x16x32xbf16, #tpu.memory_space<vmem>>, vector<1x16x32xbf16>
    %34 = vector.shape_cast %33 : vector<1x16x32xbf16> to vector<16x32xbf16>
    %35 = arith.extf %34 : vector<16x32xbf16> to vector<16x32xf32>
    %c1 = arith.constant 1 : index
    %c0_32 = arith.constant 0 : index
    %c0_33 = arith.constant 0 : index
    %36 = vector.load %arg4[%c1, %c0_32, %c0_33] : memref<8x16x32xbf16, #tpu.memory_space<vmem>>, vector<1x16x32xbf16>
    %37 = vector.shape_cast %36 : vector<1x16x32xbf16> to vector<16x32xbf16>
    %38 = arith.extf %37 : vector<16x32xbf16> to vector<16x32xf32>
    %c2 = arith.constant 2 : index
    %c0_34 = arith.constant 0 : index
    %c0_35 = arith.constant 0 : index
    %39 = vector.load %arg4[%c2, %c0_34, %c0_35] : memref<8x16x32xbf16, #tpu.memory_space<vmem>>, vector<1x16x32xbf16>
    %40 = vector.shape_cast %39 : vector<1x16x32xbf16> to vector<16x32xbf16>
    %41 = arith.extf %40 : vector<16x32xbf16> to vector<16x32xf32>
    %c3 = arith.constant 3 : index
    %c0_36 = arith.constant 0 : index
    %c0_37 = arith.constant 0 : index
    %42 = vector.load %arg4[%c3, %c0_36, %c0_37] : memref<8x16x32xbf16, #tpu.memory_space<vmem>>, vector<1x16x32xbf16>
    %43 = vector.shape_cast %42 : vector<1x16x32xbf16> to vector<16x32xbf16>
    %44 = arith.extf %43 : vector<16x32xbf16> to vector<16x32xf32>
    %c4 = arith.constant 4 : index
    %c0_38 = arith.constant 0 : index
    %c0_39 = arith.constant 0 : index
    %45 = vector.load %arg4[%c4, %c0_38, %c0_39] : memref<8x16x32xbf16, #tpu.memory_space<vmem>>, vector<1x16x32xbf16>
    %46 = vector.shape_cast %45 : vector<1x16x32xbf16> to vector<16x32xbf16>
    %47 = arith.extf %46 : vector<16x32xbf16> to vector<16x32xf32>
    %c5 = arith.constant 5 : index
    %c0_40 = arith.constant 0 : index
    %c0_41 = arith.constant 0 : index
    %48 = vector.load %arg4[%c5, %c0_40, %c0_41] : memref<8x16x32xbf16, #tpu.memory_space<vmem>>, vector<1x16x32xbf16>
    %49 = vector.shape_cast %48 : vector<1x16x32xbf16> to vector<16x32xbf16>
    %50 = arith.extf %49 : vector<16x32xbf16> to vector<16x32xf32>
    %c6 = arith.constant 6 : index
    %c0_42 = arith.constant 0 : index
    %c0_43 = arith.constant 0 : index
    %51 = vector.load %arg4[%c6, %c0_42, %c0_43] : memref<8x16x32xbf16, #tpu.memory_space<vmem>>, vector<1x16x32xbf16>
    %52 = vector.shape_cast %51 : vector<1x16x32xbf16> to vector<16x32xbf16>
    %53 = arith.extf %52 : vector<16x32xbf16> to vector<16x32xf32>
    %c7 = arith.constant 7 : index
    %c0_44 = arith.constant 0 : index
    %c0_45 = arith.constant 0 : index
    %54 = vector.load %arg4[%c7, %c0_44, %c0_45] : memref<8x16x32xbf16, #tpu.memory_space<vmem>>, vector<1x16x32xbf16>
    %55 = vector.shape_cast %54 : vector<1x16x32xbf16> to vector<16x32xbf16>
    %56 = arith.extf %55 : vector<16x32xbf16> to vector<16x32xf32>
    %cst_46 = arith.constant 0.000000e+00 : f32
    %57 = vector.broadcast %cst_46 : f32 to vector<16x32xf32>
    %58 = vector.extract_strided_slice %25 {offsets = [0, 0], sizes = [1, 32], strides = [1, 1]} : vector<8x32xf32> to vector<1x32xf32>
    %59 = vector.extract_strided_slice %31 {offsets = [0, 0], sizes = [1, 1], strides = [1, 1]} : vector<8x8xf32> to vector<1x1xf32>
    %60 = vector.broadcast %59 : vector<1x1xf32> to vector<16x32xf32>
    %61 = arith.mulf %60, %35 : vector<16x32xf32>
    %62 = vector.broadcast %58 : vector<1x32xf32> to vector<16x32xf32>
    %63 = arith.addf %62, %61 : vector<16x32xf32>
    %64 = vector.extract_strided_slice %31 {offsets = [0, 1], sizes = [1, 1], strides = [1, 1]} : vector<8x8xf32> to vector<1x1xf32>
    %65 = vector.broadcast %64 : vector<1x1xf32> to vector<16x32xf32>
    %66 = arith.mulf %65, %38 : vector<16x32xf32>
    %67 = arith.addf %63, %66 : vector<16x32xf32>
    %68 = vector.extract_strided_slice %31 {offsets = [0, 2], sizes = [1, 1], strides = [1, 1]} : vector<8x8xf32> to vector<1x1xf32>
    %69 = vector.broadcast %68 : vector<1x1xf32> to vector<16x32xf32>
    %70 = arith.mulf %69, %41 : vector<16x32xf32>
    %71 = arith.addf %67, %70 : vector<16x32xf32>
    %72 = vector.extract_strided_slice %31 {offsets = [0, 3], sizes = [1, 1], strides = [1, 1]} : vector<8x8xf32> to vector<1x1xf32>
    %73 = vector.broadcast %72 : vector<1x1xf32> to vector<16x32xf32>
    %74 = arith.mulf %73, %44 : vector<16x32xf32>
    %75 = arith.addf %71, %74 : vector<16x32xf32>
    %76 = vector.extract_strided_slice %31 {offsets = [0, 4], sizes = [1, 1], strides = [1, 1]} : vector<8x8xf32> to vector<1x1xf32>
    %77 = vector.broadcast %76 : vector<1x1xf32> to vector<16x32xf32>
    %78 = arith.mulf %77, %47 : vector<16x32xf32>
    %79 = arith.addf %75, %78 : vector<16x32xf32>
    %80 = vector.extract_strided_slice %31 {offsets = [0, 5], sizes = [1, 1], strides = [1, 1]} : vector<8x8xf32> to vector<1x1xf32>
    %81 = vector.broadcast %80 : vector<1x1xf32> to vector<16x32xf32>
    %82 = arith.mulf %81, %50 : vector<16x32xf32>
    %83 = arith.addf %79, %82 : vector<16x32xf32>
    %84 = vector.extract_strided_slice %31 {offsets = [0, 6], sizes = [1, 1], strides = [1, 1]} : vector<8x8xf32> to vector<1x1xf32>
    %85 = vector.broadcast %84 : vector<1x1xf32> to vector<16x32xf32>
    %86 = arith.mulf %85, %53 : vector<16x32xf32>
    %87 = arith.addf %83, %86 : vector<16x32xf32>
    %88 = vector.extract_strided_slice %31 {offsets = [0, 7], sizes = [1, 1], strides = [1, 1]} : vector<8x8xf32> to vector<1x1xf32>
    %89 = vector.broadcast %88 : vector<1x1xf32> to vector<16x32xf32>
    %90 = arith.mulf %89, %56 : vector<16x32xf32>
    %91 = arith.addf %87, %90 : vector<16x32xf32>
    %92 = vector.extract_strided_slice %32 {offsets = [0, 0], sizes = [1, 1], strides = [1, 1]} : vector<1x8xf32> to vector<1x1xf32>
    %cst_47 = arith.constant 0.000000e+00 : f32
    %93 = vector.broadcast %cst_47 : f32 to vector<16x32xf32>
    %94 = arith.cmpf oge, %91, %93 : vector<16x32xf32>
    %cst_48 = arith.constant 0.00999999977 : f32
    %95 = vector.broadcast %cst_48 : f32 to vector<16x32xf32>
    %96 = arith.mulf %95, %91 : vector<16x32xf32>
    %97 = arith.select %94, %91, %96 : vector<16x32xi1>, vector<16x32xf32>
    %98 = vector.broadcast %92 : vector<1x1xf32> to vector<16x32xf32>
    %99 = arith.mulf %98, %97 : vector<16x32xf32>
    %100 = arith.addf %57, %99 : vector<16x32xf32>
    %101 = vector.extract_strided_slice %25 {offsets = [1, 0], sizes = [1, 32], strides = [1, 1]} : vector<8x32xf32> to vector<1x32xf32>
    %102 = vector.extract_strided_slice %31 {offsets = [1, 0], sizes = [1, 1], strides = [1, 1]} : vector<8x8xf32> to vector<1x1xf32>
    %103 = vector.broadcast %102 : vector<1x1xf32> to vector<16x32xf32>
    %104 = arith.mulf %103, %35 : vector<16x32xf32>
    %105 = vector.broadcast %101 : vector<1x32xf32> to vector<16x32xf32>
    %106 = arith.addf %105, %104 : vector<16x32xf32>
    %107 = vector.extract_strided_slice %31 {offsets = [1, 1], sizes = [1, 1], strides = [1, 1]} : vector<8x8xf32> to vector<1x1xf32>
    %108 = vector.broadcast %107 : vector<1x1xf32> to vector<16x32xf32>
    %109 = arith.mulf %108, %38 : vector<16x32xf32>
    %110 = arith.addf %106, %109 : vector<16x32xf32>
    %111 = vector.extract_strided_slice %31 {offsets = [1, 2], sizes = [1, 1], strides = [1, 1]} : vector<8x8xf32> to vector<1x1xf32>
    %112 = vector.broadcast %111 : vector<1x1xf32> to vector<16x32xf32>
    %113 = arith.mulf %112, %41 : vector<16x32xf32>
    %114 = arith.addf %110, %113 : vector<16x32xf32>
    %115 = vector.extract_strided_slice %31 {offsets = [1, 3], sizes = [1, 1], strides = [1, 1]} : vector<8x8xf32> to vector<1x1xf32>
    %116 = vector.broadcast %115 : vector<1x1xf32> to vector<16x32xf32>
    %117 = arith.mulf %116, %44 : vector<16x32xf32>
    %118 = arith.addf %114, %117 : vector<16x32xf32>
    %119 = vector.extract_strided_slice %31 {offsets = [1, 4], sizes = [1, 1], strides = [1, 1]} : vector<8x8xf32> to vector<1x1xf32>
    %120 = vector.broadcast %119 : vector<1x1xf32> to vector<16x32xf32>
    %121 = arith.mulf %120, %47 : vector<16x32xf32>
    %122 = arith.addf %118, %121 : vector<16x32xf32>
    %123 = vector.extract_strided_slice %31 {offsets = [1, 5], sizes = [1, 1], strides = [1, 1]} : vector<8x8xf32> to vector<1x1xf32>
    %124 = vector.broadcast %123 : vector<1x1xf32> to vector<16x32xf32>
    %125 = arith.mulf %124, %50 : vector<16x32xf32>
    %126 = arith.addf %122, %125 : vector<16x32xf32>
    %127 = vector.extract_strided_slice %31 {offsets = [1, 6], sizes = [1, 1], strides = [1, 1]} : vector<8x8xf32> to vector<1x1xf32>
    %128 = vector.broadcast %127 : vector<1x1xf32> to vector<16x32xf32>
    %129 = arith.mulf %128, %53 : vector<16x32xf32>
    %130 = arith.addf %126, %129 : vector<16x32xf32>
    %131 = vector.extract_strided_slice %31 {offsets = [1, 7], sizes = [1, 1], strides = [1, 1]} : vector<8x8xf32> to vector<1x1xf32>
    %132 = vector.broadcast %131 : vector<1x1xf32> to vector<16x32xf32>
    %133 = arith.mulf %132, %56 : vector<16x32xf32>
    %134 = arith.addf %130, %133 : vector<16x32xf32>
    %135 = vector.extract_strided_slice %32 {offsets = [0, 1], sizes = [1, 1], strides = [1, 1]} : vector<1x8xf32> to vector<1x1xf32>
    %cst_49 = arith.constant 0.000000e+00 : f32
    %136 = vector.broadcast %cst_49 : f32 to vector<16x32xf32>
    %137 = arith.cmpf oge, %134, %136 : vector<16x32xf32>
    %cst_50 = arith.constant 0.00999999977 : f32
    %138 = vector.broadcast %cst_50 : f32 to vector<16x32xf32>
    %139 = arith.mulf %138, %134 : vector<16x32xf32>
    %140 = arith.select %137, %134, %139 : vector<16x32xi1>, vector<16x32xf32>
    %141 = vector.broadcast %135 : vector<1x1xf32> to vector<16x32xf32>
    %142 = arith.mulf %141, %140 : vector<16x32xf32>
    %143 = arith.addf %100, %142 : vector<16x32xf32>
    %144 = vector.extract_strided_slice %25 {offsets = [2, 0], sizes = [1, 32], strides = [1, 1]} : vector<8x32xf32> to vector<1x32xf32>
    %145 = vector.extract_strided_slice %31 {offsets = [2, 0], sizes = [1, 1], strides = [1, 1]} : vector<8x8xf32> to vector<1x1xf32>
    %146 = vector.broadcast %145 : vector<1x1xf32> to vector<16x32xf32>
    %147 = arith.mulf %146, %35 : vector<16x32xf32>
    %148 = vector.broadcast %144 : vector<1x32xf32> to vector<16x32xf32>
    %149 = arith.addf %148, %147 : vector<16x32xf32>
    %150 = vector.extract_strided_slice %31 {offsets = [2, 1], sizes = [1, 1], strides = [1, 1]} : vector<8x8xf32> to vector<1x1xf32>
    %151 = vector.broadcast %150 : vector<1x1xf32> to vector<16x32xf32>
    %152 = arith.mulf %151, %38 : vector<16x32xf32>
    %153 = arith.addf %149, %152 : vector<16x32xf32>
    %154 = vector.extract_strided_slice %31 {offsets = [2, 2], sizes = [1, 1], strides = [1, 1]} : vector<8x8xf32> to vector<1x1xf32>
    %155 = vector.broadcast %154 : vector<1x1xf32> to vector<16x32xf32>
    %156 = arith.mulf %155, %41 : vector<16x32xf32>
    %157 = arith.addf %153, %156 : vector<16x32xf32>
    %158 = vector.extract_strided_slice %31 {offsets = [2, 3], sizes = [1, 1], strides = [1, 1]} : vector<8x8xf32> to vector<1x1xf32>
    %159 = vector.broadcast %158 : vector<1x1xf32> to vector<16x32xf32>
    %160 = arith.mulf %159, %44 : vector<16x32xf32>
    %161 = arith.addf %157, %160 : vector<16x32xf32>
    %162 = vector.extract_strided_slice %31 {offsets = [2, 4], sizes = [1, 1], strides = [1, 1]} : vector<8x8xf32> to vector<1x1xf32>
    %163 = vector.broadcast %162 : vector<1x1xf32> to vector<16x32xf32>
    %164 = arith.mulf %163, %47 : vector<16x32xf32>
    %165 = arith.addf %161, %164 : vector<16x32xf32>
    %166 = vector.extract_strided_slice %31 {offsets = [2, 5], sizes = [1, 1], strides = [1, 1]} : vector<8x8xf32> to vector<1x1xf32>
    %167 = vector.broadcast %166 : vector<1x1xf32> to vector<16x32xf32>
    %168 = arith.mulf %167, %50 : vector<16x32xf32>
    %169 = arith.addf %165, %168 : vector<16x32xf32>
    %170 = vector.extract_strided_slice %31 {offsets = [2, 6], sizes = [1, 1], strides = [1, 1]} : vector<8x8xf32> to vector<1x1xf32>
    %171 = vector.broadcast %170 : vector<1x1xf32> to vector<16x32xf32>
    %172 = arith.mulf %171, %53 : vector<16x32xf32>
    %173 = arith.addf %169, %172 : vector<16x32xf32>
    %174 = vector.extract_strided_slice %31 {offsets = [2, 7], sizes = [1, 1], strides = [1, 1]} : vector<8x8xf32> to vector<1x1xf32>
    %175 = vector.broadcast %174 : vector<1x1xf32> to vector<16x32xf32>
    %176 = arith.mulf %175, %56 : vector<16x32xf32>
    %177 = arith.addf %173, %176 : vector<16x32xf32>
    %178 = vector.extract_strided_slice %32 {offsets = [0, 2], sizes = [1, 1], strides = [1, 1]} : vector<1x8xf32> to vector<1x1xf32>
    %cst_51 = arith.constant 0.000000e+00 : f32
    %179 = vector.broadcast %cst_51 : f32 to vector<16x32xf32>
    %180 = arith.cmpf oge, %177, %179 : vector<16x32xf32>
    %cst_52 = arith.constant 0.00999999977 : f32
    %181 = vector.broadcast %cst_52 : f32 to vector<16x32xf32>
    %182 = arith.mulf %181, %177 : vector<16x32xf32>
    %183 = arith.select %180, %177, %182 : vector<16x32xi1>, vector<16x32xf32>
    %184 = vector.broadcast %178 : vector<1x1xf32> to vector<16x32xf32>
    %185 = arith.mulf %184, %183 : vector<16x32xf32>
    %186 = arith.addf %143, %185 : vector<16x32xf32>
    %187 = vector.extract_strided_slice %25 {offsets = [3, 0], sizes = [1, 32], strides = [1, 1]} : vector<8x32xf32> to vector<1x32xf32>
    %188 = vector.extract_strided_slice %31 {offsets = [3, 0], sizes = [1, 1], strides = [1, 1]} : vector<8x8xf32> to vector<1x1xf32>
    %189 = vector.broadcast %188 : vector<1x1xf32> to vector<16x32xf32>
    %190 = arith.mulf %189, %35 : vector<16x32xf32>
    %191 = vector.broadcast %187 : vector<1x32xf32> to vector<16x32xf32>
    %192 = arith.addf %191, %190 : vector<16x32xf32>
    %193 = vector.extract_strided_slice %31 {offsets = [3, 1], sizes = [1, 1], strides = [1, 1]} : vector<8x8xf32> to vector<1x1xf32>
    %194 = vector.broadcast %193 : vector<1x1xf32> to vector<16x32xf32>
    %195 = arith.mulf %194, %38 : vector<16x32xf32>
    %196 = arith.addf %192, %195 : vector<16x32xf32>
    %197 = vector.extract_strided_slice %31 {offsets = [3, 2], sizes = [1, 1], strides = [1, 1]} : vector<8x8xf32> to vector<1x1xf32>
    %198 = vector.broadcast %197 : vector<1x1xf32> to vector<16x32xf32>
    %199 = arith.mulf %198, %41 : vector<16x32xf32>
    %200 = arith.addf %196, %199 : vector<16x32xf32>
    %201 = vector.extract_strided_slice %31 {offsets = [3, 3], sizes = [1, 1], strides = [1, 1]} : vector<8x8xf32> to vector<1x1xf32>
    %202 = vector.broadcast %201 : vector<1x1xf32> to vector<16x32xf32>
    %203 = arith.mulf %202, %44 : vector<16x32xf32>
    %204 = arith.addf %200, %203 : vector<16x32xf32>
    %205 = vector.extract_strided_slice %31 {offsets = [3, 4], sizes = [1, 1], strides = [1, 1]} : vector<8x8xf32> to vector<1x1xf32>
    %206 = vector.broadcast %205 : vector<1x1xf32> to vector<16x32xf32>
    %207 = arith.mulf %206, %47 : vector<16x32xf32>
    %208 = arith.addf %204, %207 : vector<16x32xf32>
    %209 = vector.extract_strided_slice %31 {offsets = [3, 5], sizes = [1, 1], strides = [1, 1]} : vector<8x8xf32> to vector<1x1xf32>
    %210 = vector.broadcast %209 : vector<1x1xf32> to vector<16x32xf32>
    %211 = arith.mulf %210, %50 : vector<16x32xf32>
    %212 = arith.addf %208, %211 : vector<16x32xf32>
    %213 = vector.extract_strided_slice %31 {offsets = [3, 6], sizes = [1, 1], strides = [1, 1]} : vector<8x8xf32> to vector<1x1xf32>
    %214 = vector.broadcast %213 : vector<1x1xf32> to vector<16x32xf32>
    %215 = arith.mulf %214, %53 : vector<16x32xf32>
    %216 = arith.addf %212, %215 : vector<16x32xf32>
    %217 = vector.extract_strided_slice %31 {offsets = [3, 7], sizes = [1, 1], strides = [1, 1]} : vector<8x8xf32> to vector<1x1xf32>
    %218 = vector.broadcast %217 : vector<1x1xf32> to vector<16x32xf32>
    %219 = arith.mulf %218, %56 : vector<16x32xf32>
    %220 = arith.addf %216, %219 : vector<16x32xf32>
    %221 = vector.extract_strided_slice %32 {offsets = [0, 3], sizes = [1, 1], strides = [1, 1]} : vector<1x8xf32> to vector<1x1xf32>
    %cst_53 = arith.constant 0.000000e+00 : f32
    %222 = vector.broadcast %cst_53 : f32 to vector<16x32xf32>
    %223 = arith.cmpf oge, %220, %222 : vector<16x32xf32>
    %cst_54 = arith.constant 0.00999999977 : f32
    %224 = vector.broadcast %cst_54 : f32 to vector<16x32xf32>
    %225 = arith.mulf %224, %220 : vector<16x32xf32>
    %226 = arith.select %223, %220, %225 : vector<16x32xi1>, vector<16x32xf32>
    %227 = vector.broadcast %221 : vector<1x1xf32> to vector<16x32xf32>
    %228 = arith.mulf %227, %226 : vector<16x32xf32>
    %229 = arith.addf %186, %228 : vector<16x32xf32>
    %230 = vector.extract_strided_slice %25 {offsets = [4, 0], sizes = [1, 32], strides = [1, 1]} : vector<8x32xf32> to vector<1x32xf32>
    %231 = vector.extract_strided_slice %31 {offsets = [4, 0], sizes = [1, 1], strides = [1, 1]} : vector<8x8xf32> to vector<1x1xf32>
    %232 = vector.broadcast %231 : vector<1x1xf32> to vector<16x32xf32>
    %233 = arith.mulf %232, %35 : vector<16x32xf32>
    %234 = vector.broadcast %230 : vector<1x32xf32> to vector<16x32xf32>
    %235 = arith.addf %234, %233 : vector<16x32xf32>
    %236 = vector.extract_strided_slice %31 {offsets = [4, 1], sizes = [1, 1], strides = [1, 1]} : vector<8x8xf32> to vector<1x1xf32>
    %237 = vector.broadcast %236 : vector<1x1xf32> to vector<16x32xf32>
    %238 = arith.mulf %237, %38 : vector<16x32xf32>
    %239 = arith.addf %235, %238 : vector<16x32xf32>
    %240 = vector.extract_strided_slice %31 {offsets = [4, 2], sizes = [1, 1], strides = [1, 1]} : vector<8x8xf32> to vector<1x1xf32>
    %241 = vector.broadcast %240 : vector<1x1xf32> to vector<16x32xf32>
    %242 = arith.mulf %241, %41 : vector<16x32xf32>
    %243 = arith.addf %239, %242 : vector<16x32xf32>
    %244 = vector.extract_strided_slice %31 {offsets = [4, 3], sizes = [1, 1], strides = [1, 1]} : vector<8x8xf32> to vector<1x1xf32>
    %245 = vector.broadcast %244 : vector<1x1xf32> to vector<16x32xf32>
    %246 = arith.mulf %245, %44 : vector<16x32xf32>
    %247 = arith.addf %243, %246 : vector<16x32xf32>
    %248 = vector.extract_strided_slice %31 {offsets = [4, 4], sizes = [1, 1], strides = [1, 1]} : vector<8x8xf32> to vector<1x1xf32>
    %249 = vector.broadcast %248 : vector<1x1xf32> to vector<16x32xf32>
    %250 = arith.mulf %249, %47 : vector<16x32xf32>
    %251 = arith.addf %247, %250 : vector<16x32xf32>
    %252 = vector.extract_strided_slice %31 {offsets = [4, 5], sizes = [1, 1], strides = [1, 1]} : vector<8x8xf32> to vector<1x1xf32>
    %253 = vector.broadcast %252 : vector<1x1xf32> to vector<16x32xf32>
    %254 = arith.mulf %253, %50 : vector<16x32xf32>
    %255 = arith.addf %251, %254 : vector<16x32xf32>
    %256 = vector.extract_strided_slice %31 {offsets = [4, 6], sizes = [1, 1], strides = [1, 1]} : vector<8x8xf32> to vector<1x1xf32>
    %257 = vector.broadcast %256 : vector<1x1xf32> to vector<16x32xf32>
    %258 = arith.mulf %257, %53 : vector<16x32xf32>
    %259 = arith.addf %255, %258 : vector<16x32xf32>
    %260 = vector.extract_strided_slice %31 {offsets = [4, 7], sizes = [1, 1], strides = [1, 1]} : vector<8x8xf32> to vector<1x1xf32>
    %261 = vector.broadcast %260 : vector<1x1xf32> to vector<16x32xf32>
    %262 = arith.mulf %261, %56 : vector<16x32xf32>
    %263 = arith.addf %259, %262 : vector<16x32xf32>
    %264 = vector.extract_strided_slice %32 {offsets = [0, 4], sizes = [1, 1], strides = [1, 1]} : vector<1x8xf32> to vector<1x1xf32>
    %cst_55 = arith.constant 0.000000e+00 : f32
    %265 = vector.broadcast %cst_55 : f32 to vector<16x32xf32>
    %266 = arith.cmpf oge, %263, %265 : vector<16x32xf32>
    %cst_56 = arith.constant 0.00999999977 : f32
    %267 = vector.broadcast %cst_56 : f32 to vector<16x32xf32>
    %268 = arith.mulf %267, %263 : vector<16x32xf32>
    %269 = arith.select %266, %263, %268 : vector<16x32xi1>, vector<16x32xf32>
    %270 = vector.broadcast %264 : vector<1x1xf32> to vector<16x32xf32>
    %271 = arith.mulf %270, %269 : vector<16x32xf32>
    %272 = arith.addf %229, %271 : vector<16x32xf32>
    %273 = vector.extract_strided_slice %25 {offsets = [5, 0], sizes = [1, 32], strides = [1, 1]} : vector<8x32xf32> to vector<1x32xf32>
    %274 = vector.extract_strided_slice %31 {offsets = [5, 0], sizes = [1, 1], strides = [1, 1]} : vector<8x8xf32> to vector<1x1xf32>
    %275 = vector.broadcast %274 : vector<1x1xf32> to vector<16x32xf32>
    %276 = arith.mulf %275, %35 : vector<16x32xf32>
    %277 = vector.broadcast %273 : vector<1x32xf32> to vector<16x32xf32>
    %278 = arith.addf %277, %276 : vector<16x32xf32>
    %279 = vector.extract_strided_slice %31 {offsets = [5, 1], sizes = [1, 1], strides = [1, 1]} : vector<8x8xf32> to vector<1x1xf32>
    %280 = vector.broadcast %279 : vector<1x1xf32> to vector<16x32xf32>
    %281 = arith.mulf %280, %38 : vector<16x32xf32>
    %282 = arith.addf %278, %281 : vector<16x32xf32>
    %283 = vector.extract_strided_slice %31 {offsets = [5, 2], sizes = [1, 1], strides = [1, 1]} : vector<8x8xf32> to vector<1x1xf32>
    %284 = vector.broadcast %283 : vector<1x1xf32> to vector<16x32xf32>
    %285 = arith.mulf %284, %41 : vector<16x32xf32>
    %286 = arith.addf %282, %285 : vector<16x32xf32>
    %287 = vector.extract_strided_slice %31 {offsets = [5, 3], sizes = [1, 1], strides = [1, 1]} : vector<8x8xf32> to vector<1x1xf32>
    %288 = vector.broadcast %287 : vector<1x1xf32> to vector<16x32xf32>
    %289 = arith.mulf %288, %44 : vector<16x32xf32>
    %290 = arith.addf %286, %289 : vector<16x32xf32>
    %291 = vector.extract_strided_slice %31 {offsets = [5, 4], sizes = [1, 1], strides = [1, 1]} : vector<8x8xf32> to vector<1x1xf32>
    %292 = vector.broadcast %291 : vector<1x1xf32> to vector<16x32xf32>
    %293 = arith.mulf %292, %47 : vector<16x32xf32>
    %294 = arith.addf %290, %293 : vector<16x32xf32>
    %295 = vector.extract_strided_slice %31 {offsets = [5, 5], sizes = [1, 1], strides = [1, 1]} : vector<8x8xf32> to vector<1x1xf32>
    %296 = vector.broadcast %295 : vector<1x1xf32> to vector<16x32xf32>
    %297 = arith.mulf %296, %50 : vector<16x32xf32>
    %298 = arith.addf %294, %297 : vector<16x32xf32>
    %299 = vector.extract_strided_slice %31 {offsets = [5, 6], sizes = [1, 1], strides = [1, 1]} : vector<8x8xf32> to vector<1x1xf32>
    %300 = vector.broadcast %299 : vector<1x1xf32> to vector<16x32xf32>
    %301 = arith.mulf %300, %53 : vector<16x32xf32>
    %302 = arith.addf %298, %301 : vector<16x32xf32>
    %303 = vector.extract_strided_slice %31 {offsets = [5, 7], sizes = [1, 1], strides = [1, 1]} : vector<8x8xf32> to vector<1x1xf32>
    %304 = vector.broadcast %303 : vector<1x1xf32> to vector<16x32xf32>
    %305 = arith.mulf %304, %56 : vector<16x32xf32>
    %306 = arith.addf %302, %305 : vector<16x32xf32>
    %307 = vector.extract_strided_slice %32 {offsets = [0, 5], sizes = [1, 1], strides = [1, 1]} : vector<1x8xf32> to vector<1x1xf32>
    %cst_57 = arith.constant 0.000000e+00 : f32
    %308 = vector.broadcast %cst_57 : f32 to vector<16x32xf32>
    %309 = arith.cmpf oge, %306, %308 : vector<16x32xf32>
    %cst_58 = arith.constant 0.00999999977 : f32
    %310 = vector.broadcast %cst_58 : f32 to vector<16x32xf32>
    %311 = arith.mulf %310, %306 : vector<16x32xf32>
    %312 = arith.select %309, %306, %311 : vector<16x32xi1>, vector<16x32xf32>
    %313 = vector.broadcast %307 : vector<1x1xf32> to vector<16x32xf32>
    %314 = arith.mulf %313, %312 : vector<16x32xf32>
    %315 = arith.addf %272, %314 : vector<16x32xf32>
    %316 = vector.extract_strided_slice %25 {offsets = [6, 0], sizes = [1, 32], strides = [1, 1]} : vector<8x32xf32> to vector<1x32xf32>
    %317 = vector.extract_strided_slice %31 {offsets = [6, 0], sizes = [1, 1], strides = [1, 1]} : vector<8x8xf32> to vector<1x1xf32>
    %318 = vector.broadcast %317 : vector<1x1xf32> to vector<16x32xf32>
    %319 = arith.mulf %318, %35 : vector<16x32xf32>
    %320 = vector.broadcast %316 : vector<1x32xf32> to vector<16x32xf32>
    %321 = arith.addf %320, %319 : vector<16x32xf32>
    %322 = vector.extract_strided_slice %31 {offsets = [6, 1], sizes = [1, 1], strides = [1, 1]} : vector<8x8xf32> to vector<1x1xf32>
    %323 = vector.broadcast %322 : vector<1x1xf32> to vector<16x32xf32>
    %324 = arith.mulf %323, %38 : vector<16x32xf32>
    %325 = arith.addf %321, %324 : vector<16x32xf32>
    %326 = vector.extract_strided_slice %31 {offsets = [6, 2], sizes = [1, 1], strides = [1, 1]} : vector<8x8xf32> to vector<1x1xf32>
    %327 = vector.broadcast %326 : vector<1x1xf32> to vector<16x32xf32>
    %328 = arith.mulf %327, %41 : vector<16x32xf32>
    %329 = arith.addf %325, %328 : vector<16x32xf32>
    %330 = vector.extract_strided_slice %31 {offsets = [6, 3], sizes = [1, 1], strides = [1, 1]} : vector<8x8xf32> to vector<1x1xf32>
    %331 = vector.broadcast %330 : vector<1x1xf32> to vector<16x32xf32>
    %332 = arith.mulf %331, %44 : vector<16x32xf32>
    %333 = arith.addf %329, %332 : vector<16x32xf32>
    %334 = vector.extract_strided_slice %31 {offsets = [6, 4], sizes = [1, 1], strides = [1, 1]} : vector<8x8xf32> to vector<1x1xf32>
    %335 = vector.broadcast %334 : vector<1x1xf32> to vector<16x32xf32>
    %336 = arith.mulf %335, %47 : vector<16x32xf32>
    %337 = arith.addf %333, %336 : vector<16x32xf32>
    %338 = vector.extract_strided_slice %31 {offsets = [6, 5], sizes = [1, 1], strides = [1, 1]} : vector<8x8xf32> to vector<1x1xf32>
    %339 = vector.broadcast %338 : vector<1x1xf32> to vector<16x32xf32>
    %340 = arith.mulf %339, %50 : vector<16x32xf32>
    %341 = arith.addf %337, %340 : vector<16x32xf32>
    %342 = vector.extract_strided_slice %31 {offsets = [6, 6], sizes = [1, 1], strides = [1, 1]} : vector<8x8xf32> to vector<1x1xf32>
    %343 = vector.broadcast %342 : vector<1x1xf32> to vector<16x32xf32>
    %344 = arith.mulf %343, %53 : vector<16x32xf32>
    %345 = arith.addf %341, %344 : vector<16x32xf32>
    %346 = vector.extract_strided_slice %31 {offsets = [6, 7], sizes = [1, 1], strides = [1, 1]} : vector<8x8xf32> to vector<1x1xf32>
    %347 = vector.broadcast %346 : vector<1x1xf32> to vector<16x32xf32>
    %348 = arith.mulf %347, %56 : vector<16x32xf32>
    %349 = arith.addf %345, %348 : vector<16x32xf32>
    %350 = vector.extract_strided_slice %32 {offsets = [0, 6], sizes = [1, 1], strides = [1, 1]} : vector<1x8xf32> to vector<1x1xf32>
    %cst_59 = arith.constant 0.000000e+00 : f32
    %351 = vector.broadcast %cst_59 : f32 to vector<16x32xf32>
    %352 = arith.cmpf oge, %349, %351 : vector<16x32xf32>
    %cst_60 = arith.constant 0.00999999977 : f32
    %353 = vector.broadcast %cst_60 : f32 to vector<16x32xf32>
    %354 = arith.mulf %353, %349 : vector<16x32xf32>
    %355 = arith.select %352, %349, %354 : vector<16x32xi1>, vector<16x32xf32>
    %356 = vector.broadcast %350 : vector<1x1xf32> to vector<16x32xf32>
    %357 = arith.mulf %356, %355 : vector<16x32xf32>
    %358 = arith.addf %315, %357 : vector<16x32xf32>
    %359 = vector.extract_strided_slice %25 {offsets = [7, 0], sizes = [1, 32], strides = [1, 1]} : vector<8x32xf32> to vector<1x32xf32>
    %360 = vector.extract_strided_slice %31 {offsets = [7, 0], sizes = [1, 1], strides = [1, 1]} : vector<8x8xf32> to vector<1x1xf32>
    %361 = vector.broadcast %360 : vector<1x1xf32> to vector<16x32xf32>
    %362 = arith.mulf %361, %35 : vector<16x32xf32>
    %363 = vector.broadcast %359 : vector<1x32xf32> to vector<16x32xf32>
    %364 = arith.addf %363, %362 : vector<16x32xf32>
    %365 = vector.extract_strided_slice %31 {offsets = [7, 1], sizes = [1, 1], strides = [1, 1]} : vector<8x8xf32> to vector<1x1xf32>
    %366 = vector.broadcast %365 : vector<1x1xf32> to vector<16x32xf32>
    %367 = arith.mulf %366, %38 : vector<16x32xf32>
    %368 = arith.addf %364, %367 : vector<16x32xf32>
    %369 = vector.extract_strided_slice %31 {offsets = [7, 2], sizes = [1, 1], strides = [1, 1]} : vector<8x8xf32> to vector<1x1xf32>
    %370 = vector.broadcast %369 : vector<1x1xf32> to vector<16x32xf32>
    %371 = arith.mulf %370, %41 : vector<16x32xf32>
    %372 = arith.addf %368, %371 : vector<16x32xf32>
    %373 = vector.extract_strided_slice %31 {offsets = [7, 3], sizes = [1, 1], strides = [1, 1]} : vector<8x8xf32> to vector<1x1xf32>
    %374 = vector.broadcast %373 : vector<1x1xf32> to vector<16x32xf32>
    %375 = arith.mulf %374, %44 : vector<16x32xf32>
    %376 = arith.addf %372, %375 : vector<16x32xf32>
    %377 = vector.extract_strided_slice %31 {offsets = [7, 4], sizes = [1, 1], strides = [1, 1]} : vector<8x8xf32> to vector<1x1xf32>
    %378 = vector.broadcast %377 : vector<1x1xf32> to vector<16x32xf32>
    %379 = arith.mulf %378, %47 : vector<16x32xf32>
    %380 = arith.addf %376, %379 : vector<16x32xf32>
    %381 = vector.extract_strided_slice %31 {offsets = [7, 5], sizes = [1, 1], strides = [1, 1]} : vector<8x8xf32> to vector<1x1xf32>
    %382 = vector.broadcast %381 : vector<1x1xf32> to vector<16x32xf32>
    %383 = arith.mulf %382, %50 : vector<16x32xf32>
    %384 = arith.addf %380, %383 : vector<16x32xf32>
    %385 = vector.extract_strided_slice %31 {offsets = [7, 6], sizes = [1, 1], strides = [1, 1]} : vector<8x8xf32> to vector<1x1xf32>
    %386 = vector.broadcast %385 : vector<1x1xf32> to vector<16x32xf32>
    %387 = arith.mulf %386, %53 : vector<16x32xf32>
    %388 = arith.addf %384, %387 : vector<16x32xf32>
    %389 = vector.extract_strided_slice %31 {offsets = [7, 7], sizes = [1, 1], strides = [1, 1]} : vector<8x8xf32> to vector<1x1xf32>
    %390 = vector.broadcast %389 : vector<1x1xf32> to vector<16x32xf32>
    %391 = arith.mulf %390, %56 : vector<16x32xf32>
    %392 = arith.addf %388, %391 : vector<16x32xf32>
    %393 = vector.extract_strided_slice %32 {offsets = [0, 7], sizes = [1, 1], strides = [1, 1]} : vector<1x8xf32> to vector<1x1xf32>
    %cst_61 = arith.constant 0.000000e+00 : f32
    %394 = vector.broadcast %cst_61 : f32 to vector<16x32xf32>
    %395 = arith.cmpf oge, %392, %394 : vector<16x32xf32>
    %cst_62 = arith.constant 0.00999999977 : f32
    %396 = vector.broadcast %cst_62 : f32 to vector<16x32xf32>
    %397 = arith.mulf %396, %392 : vector<16x32xf32>
    %398 = arith.select %395, %392, %397 : vector<16x32xi1>, vector<16x32xf32>
    %399 = vector.broadcast %393 : vector<1x1xf32> to vector<16x32xf32>
    %400 = arith.mulf %399, %398 : vector<16x32xf32>
    %401 = arith.addf %358, %400 : vector<16x32xf32>
    %c0_63 = arith.constant 0 : index
    %c0_64 = arith.constant 0 : index
    %402 = vector.load %arg3[%c0_63, %c0_64] : memref<16x32xbf16, #tpu.memory_space<vmem>>, vector<16x32xbf16>
    %403 = arith.extf %402 : vector<16x32xbf16> to vector<16x32xf32>
    %404 = vector.broadcast %30 : vector<16x1xf32> to vector<16x32xf32>
    %405 = arith.addf %401, %404 : vector<16x32xf32>
    %cst_65 = arith.constant 0.000000e+00 : f32
    %406 = vector.broadcast %cst_65 : f32 to vector<16x32xf32>
    %407 = arith.cmpf oge, %405, %406 : vector<16x32xf32>
    %cst_66 = arith.constant 0.00999999977 : f32
    %408 = vector.broadcast %cst_66 : f32 to vector<16x32xf32>
    %409 = arith.mulf %408, %405 : vector<16x32xf32>
    %410 = arith.select %407, %405, %409 : vector<16x32xi1>, vector<16x32xf32>
    %cst_67 = arith.constant 0.000000e+00 : f32
    %411 = vector.broadcast %cst_67 : f32 to vector<16x32xf32>
    %412 = arith.cmpf ogt, %403, %411 : vector<16x32xf32>
    %cst_68 = arith.constant -1.000000e+30 : f32
    %413 = vector.broadcast %cst_68 : f32 to vector<16x32xf32>
    %414 = arith.select %412, %410, %413 : vector<16x32xi1>, vector<16x32xf32>
    %cst_69 = arith.constant dense<0xFF800000> : vector<16xf32>
    %415 = vector.multi_reduction <maximumf>, %414, %cst_69 [1] : vector<16x32xf32> to vector<16xf32>
    %416 = vector.shape_cast %415 : vector<16xf32> to vector<16x1xf32>
    %417 = vector.broadcast %416 : vector<16x1xf32> to vector<16x32xf32>
    %418 = arith.subf %414, %417 : vector<16x32xf32>
    %419 = math.exp %418 : vector<16x32xf32>
    %420 = arith.mulf %419, %403 : vector<16x32xf32>
    %cst_70 = arith.constant dense<0.000000e+00> : vector<16xf32>
    %421 = vector.multi_reduction <add>, %420, %cst_70 [1] : vector<16x32xf32> to vector<16xf32>
    %422 = vector.shape_cast %421 : vector<16xf32> to vector<16x1xf32>
    %cst_71 = arith.constant 1.000000e-16 : f32
    %423 = vector.broadcast %cst_71 : f32 to vector<16x1xf32>
    %424 = arith.addf %422, %423 : vector<16x1xf32>
    %425 = tpu.reciprocal %424 {approx = true} : vector<16x1xf32> -> vector<16x1xf32>
    %426 = vector.broadcast %425 : vector<16x1xf32> to vector<16x32xf32>
    %427 = arith.mulf %420, %426 : vector<16x32xf32>
    %428 = arith.truncf %427 : vector<16x32xf32> to vector<16x32xbf16>
    %429 = arith.truncf %23 : vector<32x8xf32> to vector<32x8xbf16>
    %cst_72 = arith.constant dense<0.000000e+00> : vector<16x8xf32>
    %430 = tpu.matmul %428, %429, %cst_72 {dimension_numbers = #tpu.dot_dimension_numbers<[1], [0], [0], [1], [0, 0, 1, 1], [], []>} : vector<16x32xbf16>, vector<32x8xbf16>, vector<16x8xf32> -> vector<16x8xf32>
    %c0_73 = arith.constant 0 : index
    %c0_74 = arith.constant 0 : index
    %431 = vector.load %arg12[%c0_73, %c0_74] : memref<1x8xf32, #tpu.memory_space<vmem>>, vector<1x8xf32>
    %432 = vector.broadcast %431 : vector<1x8xf32> to vector<16x8xf32>
    %433 = arith.addf %430, %432 : vector<16x8xf32>
    %cst_75 = arith.constant 0.000000e+00 : f32
    %434 = vector.broadcast %cst_75 : f32 to vector<16x8xf32>
    %435 = arith.cmpf ogt, %433, %434 : vector<16x8xf32>
    %cst_76 = arith.constant 0.000000e+00 : f32
    %436 = vector.broadcast %cst_76 : f32 to vector<16x8xf32>
    %437 = arith.minimumf %433, %436 : vector<16x8xf32>
    %438 = math.exp %437 : vector<16x8xf32>
    %cst_77 = arith.constant 1.000000e+00 : f32
    %439 = vector.broadcast %cst_77 : f32 to vector<16x8xf32>
    %440 = arith.subf %438, %439 : vector<16x8xf32>
    %441 = arith.select %435, %433, %440 : vector<16x8xi1>, vector<16x8xf32>
    %cst_78 = arith.constant 0.000000e+00 : f32
    %442 = vector.broadcast %cst_78 : f32 to vector<16x128xf32>
    %c0_79 = arith.constant 0 : index
    %c0_80 = arith.constant 0 : index
    %443 = vector.load %arg13[%c0_79, %c0_80] : memref<16x128xf32, #tpu.memory_space<vmem>>, vector<16x128xf32>
    tpu.vector_store %arg13[%c0_79, %c0_80], %442 {strides = array<i32>} : memref<16x128xf32, #tpu.memory_space<vmem>>, vector<16x128xf32>,
    %c0_81 = arith.constant 0 : index
    %c0_82 = arith.constant 0 : index
    %444 = vector.load %arg13[%c0_81, %c0_82] : memref<16x128xf32, #tpu.memory_space<vmem>>, vector<16x8xf32>
    tpu.vector_store %arg13[%c0_81, %c0_82], %441 {strides = array<i32>} : memref<16x128xf32, #tpu.memory_space<vmem>>, vector<16x8xf32>,
    return
  }
  func.func @transform_0(%arg0: i32) -> (i32, i32) {
    %c0_i32 = arith.constant 0 : i32
    %c0_i32_0 = arith.constant 0 : i32
    %c0_i32_1 = arith.constant 0 : i32
    return %c0_i32, %c0_i32_0 : i32, i32
  }
  func.func @transform_1(%arg0: i32) -> (i32, i32) {
    %c0_i32 = arith.constant 0 : i32
    %c0_i32_0 = arith.constant 0 : i32
    return %arg0, %c0_i32 : i32, i32
  }
  func.func @transform_2(%arg0: i32) -> (i32, i32) {
    %c0_i32 = arith.constant 0 : i32
    %c0_i32_0 = arith.constant 0 : i32
    return %arg0, %c0_i32 : i32, i32
  }
  func.func @transform_3(%arg0: i32) -> (i32, i32, i32) {
    %c0_i32 = arith.constant 0 : i32
    %c0_i32_0 = arith.constant 0 : i32
    %c0_i32_1 = arith.constant 0 : i32
    return %c0_i32, %arg0, %c0_i32_0 : i32, i32, i32
  }
  func.func @transform_4(%arg0: i32) -> (i32, i32) {
    %c0_i32 = arith.constant 0 : i32
    %c0_i32_0 = arith.constant 0 : i32
    %c0_i32_1 = arith.constant 0 : i32
    return %c0_i32, %c0_i32_0 : i32, i32
  }
  func.func @transform_5(%arg0: i32) -> (i32, i32) {
    %c0_i32 = arith.constant 0 : i32
    %c0_i32_0 = arith.constant 0 : i32
    %c0_i32_1 = arith.constant 0 : i32
    return %c0_i32, %c0_i32_0 : i32, i32
  }
  func.func @transform_6(%arg0: i32) -> (i32, i32) {
    %c0_i32 = arith.constant 0 : i32
    %c0_i32_0 = arith.constant 0 : i32
    %c0_i32_1 = arith.constant 0 : i32
    return %c0_i32, %c0_i32_0 : i32, i32
  }
  func.func @transform_7(%arg0: i32) -> (i32, i32) {
    %c0_i32 = arith.constant 0 : i32
    %c0_i32_0 = arith.constant 0 : i32
    %c0_i32_1 = arith.constant 0 : i32
    return %c0_i32, %c0_i32_0 : i32, i32
  }
  func.func @transform_8(%arg0: i32) -> (i32, i32) {
    %c0_i32 = arith.constant 0 : i32
    %c0_i32_0 = arith.constant 0 : i32
    %c0_i32_1 = arith.constant 0 : i32
    return %c0_i32, %c0_i32_0 : i32, i32
  }
  func.func @transform_9(%arg0: i32) -> (i32, i32) {
    %c0_i32 = arith.constant 0 : i32
    %c0_i32_0 = arith.constant 0 : i32
    %c0_i32_1 = arith.constant 0 : i32
    return %c0_i32, %c0_i32_0 : i32, i32
  }
  func.func @transform_10(%arg0: i32) -> (i32, i32) {
    %c0_i32 = arith.constant 0 : i32
    %c0_i32_0 = arith.constant 0 : i32
    %c0_i32_1 = arith.constant 0 : i32
    return %c0_i32, %c0_i32_0 : i32, i32
  }
  func.func @transform_11(%arg0: i32) -> (i32, i32) {
    %c0_i32 = arith.constant 0 : i32
    %c0_i32_0 = arith.constant 0 : i32
    %c0_i32_1 = arith.constant 0 : i32
    return %c0_i32, %c0_i32_0 : i32, i32
  }
  func.func @transform_12(%arg0: i32) -> (i32, i32) {
    %c0_i32 = arith.constant 0 : i32
    %c0_i32_0 = arith.constant 0 : i32
    return %arg0, %c0_i32 : i32, i32
  }
}

</mosaic_0001>

<bundles_post_ra>
// kernel: hgate_encoder_forward.5
= control target key start
LH: loop header
LB: loop body
LE: loop exit
PB: predicated region body
PF: predicated region fallthrough
CT: control target
= control target key end

     0   :  { %v775_v3 = vmov 0.0|0.0   ;;  %vm776_vm0 = vmmov 0   ;;  %v777_v6 = vmov 0.0   ;;  %vm33_vm1 = vcmask 261120   ;;  %s945_s0 = inlined_call_operand.vmem [shape: f32[32,128], index: 0, kind: input, shape index: {}]   ;;  %s946_s1 = inlined_call_operand.vmem [shape: bf16[4,32], index: 1, kind: input, shape index: {}]   ;;  %s947_s2 = inlined_call_operand.vmem [shape: bf16[4,32], index: 2, kind: input, shape index: {}]   ;;  %s948_s3 = inlined_call_operand.vmem [shape: f32[128,8], index: 3, kind: input, shape index: {}]   ;;  %s949_s4 = inlined_call_operand.vmem [shape: f32[1,8], index: 4, kind: input, shape index: {}]   ;;  %s950_s5 = inlined_call_operand.vmem [shape: f32[1,8], index: 5, kind: input, shape index: {}]   ;;  %s951_s6 = inlined_call_operand.vmem [shape: f32[1,8], index: 6, kind: input, shape index: {}]   ;;  %s952_s7 = inlined_call_operand.hbm [shape: f32[4,128], index: 7, kind: output, shape index: {}]  }
   0x1   :  { %v27_v0 = vld [vmem:[%s945_s0] sm:$0xff]  ;;  %v825_v1 = vld [vmem:[%s945_s0 + $0x8] sm:$0xff]  ;;  %v830_v2 = vld [vmem:[%s945_s0 + $0x10] sm:$0xff]  ;;  %667 = vmatprep.subr.bf16.mxu0 %v775_v3  ;;  %569 = vmatprep.mubr.msk.f32.mxu0 %vm776_vm0, %v777_v6  ;;  %484 = vst [vmem:[#allocation2] sm:$0xf] %v777_v6 }
   0x2   :  { %v668_v4 = vpack.c.bf16 %v825_v1, %v27_v0  ;;  %v837_v5 = vld [vmem:[%s945_s0 + $0x18] sm:$0xff]  ;;  %v108_v7 = vld [vmem:[%s948_s3] sm:$0xff]  ;;  %v109_v8 = vld [vmem:[%s948_s3 + $0x8] sm:$0xff]  ;;  %604 = vmatprep.mubr.f32.mxu1 %v27_v0 }
   0x3   :  { %v110_v9 = vld [vmem:[%s948_s3 + $0x10] sm:$0xff]  ;;  %v111_v10 = vld [vmem:[%s948_s3 + $0x18] sm:$0xff]  ;;  %v671_v11 = vpack.c.bf16 %v837_v5, %v830_v2  ;;  %v31_v12 = vld [vmem:[%s946_s1] sm:$0x3]  ;;  %v673_v13 = vpack.c.bf16 %v109_v8, %v108_v7 }
   0x4   :  { %669 = vmatpush3.bf16.msra.mxu0 %v668_v4  ;;  %v677_v14 = vpack.c.bf16 %v111_v10, %v110_v9  ;;  %v112_v15 = vld [vmem:[%s948_s3 + $0x20] sm:$0xff]  ;;  %v113_v16 = vld [vmem:[%s948_s3 + $0x28] sm:$0xff]  ;;  %v32_v17 = vunpack.c.l.bf16 %v31_v12 }
   0x5   :  { %670 = vmatprep.subr.bf16.mxu0 %v775_v3  ;;  %674 = vmatprep.subr.bf16.mxu1 %v673_v13  ;;  %v681_v18 = vpack.c.bf16 %v113_v16, %v112_v15 }
   0x6   :  { %676 = vmatpush3.bf16.msra.mxu1 %v673_v13 }
   0x7   :  { %678 = vmatprep.subr.bf16.mxu1 %v677_v14 }
   0x8   :  { %672 = vmatpush3.bf16.msra.mxu0 %v671_v11 }
   0x9   :  { %12 = vsyncpa [#allocation3], 0  ;;  %v114_v19 = vld [vmem:[%s948_s3 + $0x30] sm:$0xff]  ;;  %v115_v20 = vld [vmem:[%s948_s3 + $0x38] sm:$0xff]  ;;  %705 = vmatprep.subr.bf16.mxu0 %v775_v3  ;;  %vm280_vm2 = vcmask 64512   ;;  %vm374_vm4 = vcmask 60416   ;;  %v378_v51 = vlaneseq }
   0xa   :  { %680 = vmatpush3.bf16.msra.mxu1 %v677_v14  ;;  %v685_v21 = vpack.c.bf16 %v115_v20, %v114_v19  ;;  %v116_v22 = vld [vmem:[%s948_s3 + $0x40] sm:$0xff]  ;;  %v117_v23 = vld [vmem:[%s948_s3 + $0x48] sm:$0xff]  ;;  %v118_v25 = vld [vmem:[%s948_s3 + $0x50] sm:$0xff]  ;;  %vm390_vm7 = vcmask 257024  }
   0xb   :  { %570 = vmatmul.mubr.msk.f32.vlgmr.msra.gmra.mrb[0].mxu0 %vm33_vm1, %v32_v17  ;;  %682 = vmatprep.subr.bf16.mxu1 %v681_v18  ;;  %v689_v24 = vpack.c.bf16 %v117_v23, %v116_v22  ;;  %v119_v26 = vld [vmem:[%s948_s3 + $0x58] sm:$0xff]  ;;  %v120_v28 = vld [vmem:[%s948_s3 + $0x60] sm:$0xff]  ;;  %v121_v29 = vld [vmem:[%s948_s3 + $0x68] sm:$0xff]  ;;  %v379_v52 = vshrl.u32 %v378_v51, 7 }
   0xc   :  { %707 = vmatpush3.bf16.msra.mxu0 %v673_v13  ;;  %642 = vmatprep.mubr.msk.f32.mxu0 %vm776_vm0, %v777_v6  ;;  %v693_v27 = vpack.c.bf16 %v119_v26, %v118_v25  ;;  %v697_v30 = vpack.c.bf16 %v121_v29, %v120_v28  ;;  %v122_v31 = vld [vmem:[%s948_s3 + $0x70] sm:$0xff]  ;;  %v123_v32 = vld [vmem:[%s948_s3 + $0x78] sm:$0xff]  ;;  %vm731_vm3 = vmpackc.low %vm280_vm2, %vm280_vm2 }
   0xd   :  { %708 = vmatprep.subr.bf16.mxu0 %v775_v3  ;;  %v701_v33 = vpack.c.bf16 %v123_v32, %v122_v31  ;;  %v279_v43 = vld [vmem:[%s949_s4] sm:$0x1]  ;;  %v380_v53 = vsub.s32 0, %v379_v52 }
   0xe   :  { %684 = vmatpush3.bf16.msra.mxu1 %v681_v18  ;;  %v506_v44 = vld [vmem:[%s950_s5] ss:$0 sm:$0xff]  ;;  %s778_s5 = smov [#allocation2]  }
   0xf   :  { %686 = vmatprep.subr.bf16.mxu1 %v685_v21  ;;  %v386_v54 = vld [vmem:[%s947_s2] sm:$0x3]  ;;  %s492_s1 = sshll.u32 %s778_s5, 4  ;;  %s493_s1 = int_to_ptr.vmem [resolvable:$true] %s492_s1 }
  0x10   :  { %710 = vmatpush3.bf16.msra.mxu0 %v677_v14  ;;  %v387_v56 = vunpack.c.l.bf16 %v386_v54  ;;  %v507_v9 = vld [vmem:[%s951_s6] ss:$0 sm:$0xff]  ;;  %s751_s22 = scalar_lea.vmem %s493_s1, 64  ;;  %p756_p1 = scmp.lt.s32.totalorder %s493_s1, %s493_s1 }
  0x11   :  { %711 = vmatprep.subr.bf16.mxu0 %v775_v3  ;;  %p752_p0 = scmp.ne.s32.totalorder %s493_s1, %s751_s22  ;;  %p757_p2 = scmp.lt.s32.totalorder %s751_s22, %s751_s22 }
  0x12   :  { %688 = vmatpush3.bf16.msra.mxu1 %v685_v21  ;;  %vm388_vm6 = vcmp.gt.f32.partialorder %v387_v56, 0.0 }
  0x13   :  { %690 = vmatprep.subr.bf16.mxu1 %v689_v24  ;;  %p758_p3 = por %p757_p2, %p756_p1 }
  0x14   :  { %713 = vmatpush3.bf16.msra.mxu0 %v681_v18 }
  0x15   :  { %714 = vmatprep.subr.bf16.mxu0 %v775_v3  ;;  %p759_p4 = pnand %p758_p3, %p752_p0 }
  0x16   :  { %692 = vmatpush3.bf16.msra.mxu1 %v689_v24 }
  0x17   :  { %694 = vmatprep.subr.bf16.mxu1 %v693_v27 }
  0x18   :  { %716 = vmatpush3.bf16.msra.mxu0 %v685_v21 }
  0x19   :  { %717 = vmatprep.subr.bf16.mxu0 %v775_v3 }
  0x1a   :  { %696 = vmatpush3.bf16.msra.mxu1 %v693_v27 }
  0x1b   :  { %698 = vmatprep.subr.bf16.mxu1 %v697_v30 }
  0x1c   :  { %719 = vmatpush3.bf16.msra.mxu0 %v689_v24 }
  0x1d   :  { %720 = vmatprep.subr.bf16.mxu0 %v775_v3 }
  0x1e   :  { %700 = vmatpush3.bf16.msra.mxu1 %v697_v30 }
  0x1f   :  { %702 = vmatprep.subr.bf16.mxu1 %v701_v33 }
  0x20   :  { %722 = vmatpush3.bf16.msra.mxu0 %v693_v27 }
  0x21   :  { %723 = vmatprep.subr.bf16.mxu0 %v775_v3 }
  0x22   :  { %704 = vmatpush3.bf16.msra.mxu1 %v701_v33 }
  0x23   :  { %729 = vmatprep.subr.bf16.mxu1 %v775_v3 }
  0x24   :  { %725 = vmatpush3.bf16.msra.mxu0 %v697_v30 }
  0x25   :  { %726 = vmatprep.subr.bf16.mxu0 %v775_v3  ;;  %605 = vmatmul.mubr.f32.vlgmr.msra.gmra.mrb[0].mxu1 %v825_v1 }
  0x26   :  { %607 = vmatprep.mubr.f32.mxu1 %v830_v2 }
  0x28   :  { %728 = vmatpush3.bf16.msra.mxu0 %v701_v33 }
  0x29   :  { %737 = vmatprep.subr.bf16.mxu0 %v775_v3  ;;  %608 = vmatmul.mubr.f32.gmra.mrb[2].mxu1 %v837_v5 }
  0x2a   :  { %653 = vmatprep.mubr.msk.f32.mxu1 %vm776_vm0, %v777_v6 }
  0xde   :  { %v103_v34 = vpop.f32.mrb[0].mxu0 }
  0xdf   :  { %v107_v35 = vmax.f32 %v103_v34, 0.0  ;;  %v571_v36 = vpop.f32.mrb[1].mxu0 }
  0xe1   :  { %643 = vmatmul.mubr.f32.vlgmr.msra.gmra.mrb[2].mxu0 %v107_v35 }
  0xe2   :  { %664 = vmatprep.mubr.msk.f32.mxu0 %vm776_vm0, %v777_v6 }
  0xf8   :  { %v606_v37 = vpop.f32.mrb[0].mxu1 }
  0xf9   :  { %v190_v38 = vpop.f32.mrb[1].mxu1 }
  0xfa   :  { %v730_v39 = vpack.c.bf16 %v606_v37, %v190_v38 }
  0xfc   :  { %732 = vmatpush3.bf16.xpose.msk.msra.mxu1 %vm731_vm3, %v730_v39  ;;  %739 = vmatpush3.bf16.msra.mxu0 %v730_v39  ;;  %v609_v40 = vpop.f32.mrb[2].mxu1 }
  0xfd   :  { %v200_v41 = vpop.f32.mrb[3].mxu1  ;;  %733 = vmatprep.subr.bf16.mxu1 %v775_v3  ;;  %740 = vmatprep.subr.bf16.mxu0 %v775_v3 }
  0xfe   :  { %v734_v42 = vpack.c.bf16 %v609_v40, %v200_v41 }
 0x100   :  { %742 = vmatpush3.bf16.msra.mxu0 %v734_v42 }
 0x104   :  { %736 = vmatpush3.bf16.xpose.msk.msra.mxu1 %vm731_vm3, %v734_v42 }
 0x10b   :  { %654 = vmatmul.mubr.msk.f32.vlgmr.msra.gmra.mrb[4].mxu1 %vm280_vm2, %v279_v43 }
 0x1b4   :  { %v275_v45 = vpop.f32.mrb[2].mxu0 }
 0x1b5   :  { %v373_v46 = vmul.f32 %v506_v44, %v275_v45  ;;  %v644_v47 = vpop.f32.mrb[3].mxu0 }
 0x1b7   :  { %v375_v48 = vsel %vm374_vm4, %v373_v46, 0.0 }
 0x1b8   :  { %376 = vadd.xlane.f32.xlu0 %v375_v48 }
 0x1de   :  { %v362_v49 = vpop.f32.mrb[4].mxu1 }
 0x1df   :  { %v655_v50 = vpop.f32.mrb[5].mxu1  ;;  %v381_v55 = vrot.slane %v362_v49, %v380_v53 }
 0x245   :  { %v377_v57 = vpop.xlane.xlu0 %376 }
 0x246   :  { %v382_v58 = vadd.f32 %v381_v55, %v377_v57 }
 0x248   :  { %v384_v59 = vmul.f32 0.01, %v382_v58  ;;  %vm383_vm5 = vcmp.ge.f32.partialorder %v382_v58, 0.0 }
 0x24a   :  { %v385_v60 = vsel %vm383_vm5, %v382_v58, %v384_v59 }
 0x24b   :  { %v389_v61 = vsel %vm388_vm6, %v385_v60, -1e+30 }
 0x24c   :  { %v391_v62 = vsel %vm390_vm7, %v389_v61, -inf }
 0x24d   :  { %392 = vmax.xlane.f32.xlu0 %v391_v62 }
 0x2da   :  { %v393_v63 = vpop.xlane.xlu0 %392 }
 0x2db   :  { %v394_v0 = vsub.f32 %v389_v61, %v393_v63 }
 0x2dd   :  { %v395_v1 = vmul.f32 1.442695, %v394_v0 }
 0x2df   :  { %747 = vpow2.f32 %v395_v1 }
 0x2e9   :  { %v748_v2 = vpop.eup %747 }
 0x2ea   :  { %v397_v3 = vmul.f32 %v748_v2, %v387_v56 }
 0x2ec   :  { %v398_v4 = vsel %vm390_vm7, %v397_v3, 0.0 }
 0x2ed   :  { %399 = vadd.xlane.f32.xlu1 %v398_v4 }
 0x37a   :  { %v400_v5 = vpop.xlane.xlu1 %399 }
 0x37b   :  { %v401_v6 = vadd.f32 1e-16, %v400_v5 }
 0x37d   :  { %749 = vrcp.f32 %v401_v6 }
 0x387   :  { %v750_v7 = vpop.eup %749 }
 0x388   :  { %v403_v8 = vmul.f32 %v750_v7, %v397_v3 }
 0x38a   :  { %665 = vmatmul.mubr.msk.f32.vlgmr.msra.gmra.mrb[4].mxu0 %vm33_vm1, %v403_v8 }
 0x45d   :  { %v480_v10 = vpop.f32.mrb[4].mxu0 }
 0x45e   :  { %v481_v11 = vadd.f32 %v507_v9, %v480_v10  ;;  %v666_v12 = vpop.f32.mrb[5].mxu0 }
 0x460   :  { %485 = vst.msk [vmem:[#allocation2] sm:$0xf] %vm374_vm4, %v481_v11 }
 0x461   :  { %762 = shalt.err (!%p759_p4)
}
 0x462   :  { %s763_s25 = scalar_lea.hbm %s952_s7, 64 }
 0x463   :  { %p764_p5 = scmp.ne.s32.totalorder %s952_s7, %s763_s25  ;;  %p767_p6 = scmp.lt.u32.totalorder %s763_s25, %s952_s7 }
 0x465   :  { %p769_p7 = pnand %p767_p6, %p764_p5 }
 0x467   :  { %772 = shalt.err (!%p769_p7)
}
 0x468   :  { %495 = dma.vmem_to_hbm [thread:$0]  %s493_s1, 64, %s952_s7, [#allocation3]  }
 0x469   :  { %773 = dma.done.wait [#allocation3], 64  }
 0x46a   :  { %774 = vsyncadd [#allocation3], 4294967232 }
 0x46b   :  { %499 = vsyncpa [#allocation3], 1 }

// kernel: hgate_encoder_forward.3
= control target key start
LH: loop header
LB: loop body
LE: loop exit
PB: predicated region body
PF: predicated region fallthrough
CT: control target
= control target key end

     0   :  { %s4598_s0 = inlined_call_operand.hbm [shape: f32[32,16], index: 0, kind: input, shape index: {}, may-alias: {0,1}]   ;;  %s4599_s1 = inlined_call_operand.hbm [shape: f32[32,16], index: 1, kind: input, shape index: {}, may-alias: {0,1}]   ;;  %s4600_s2 = inlined_call_operand.hbm [shape: bf16[32,32], index: 2, kind: input, shape index: {}]   ;;  %s4601_s3 = inlined_call_operand.hbm [shape: bf16[8,32,32], index: 3, kind: input, shape index: {}]   ;;  %s4602_s4 = inlined_call_operand.hbm [shape: f32[16,8], index: 4, kind: input, shape index: {}]   ;;  %s4603_s5 = inlined_call_operand.hbm [shape: f32[1,8], index: 5, kind: input, shape index: {}]   ;;  %s4604_s6 = inlined_call_operand.hbm [shape: f32[8,8], index: 6, kind: input, shape index: {}]   ;;  %s4605_s7 = inlined_call_operand.hbm [shape: f32[8,8], index: 7, kind: input, shape index: {}]   ;;  %s4606_s8 = inlined_call_operand.hbm [shape: f32[8,8], index: 8, kind: input, shape index: {}]   ;;  %s4607_s9 = inlined_call_operand.hbm [shape: f32[1,8], index: 9, kind: input, shape index: {}]   ;;  %s4608_s10 = inlined_call_operand.hbm [shape: f32[1,8], index: 10, kind: input, shape index: {}]   ;;  %s4609_s11 = inlined_call_operand.hbm [shape: f32[1,8], index: 11, kind: input, shape index: {}]   ;;  %s4610_s12 = inlined_call_operand.hbm [shape: f32[32,128], index: 12, kind: output, shape index: {}]  }
   0x1   :  { %4638 = sst [smem:[#allocation130_spill]] %s4598_s0 }
   0x2   :  { %4639 = sst [smem:[#allocation131_spill]] %s4599_s1 }
   0x3   :  { %4640 = sst [smem:[#allocation132_spill]] %s4600_s2 }
   0x4   :  { %4641 = sst [smem:[#allocation133_spill]] %s4601_s3 }
   0x5   :  { %4642 = sst [smem:[#allocation134_spill]] %s4602_s4 }
   0x6   :  { %4643 = sst [smem:[#allocation135_spill]] %s4603_s5 }
   0x7   :  { %4644 = sst [smem:[#allocation136_spill]] %s4604_s6 }
   0x8   :  { %4645 = sst [smem:[#allocation137_spill]] %s4605_s7 }
   0x9   :  { %4646 = sst [smem:[#allocation138_spill]] %s4606_s8 }
   0xa   :  { %4647 = sst [smem:[#allocation139_spill]] %s4607_s9 }
   0xb   :  { %4648 = sst [smem:[#allocation140_spill]] %s4608_s10 }
   0xc   :  { %4649 = sst [smem:[#allocation141_spill]] %s4609_s11 }
   0xd   :  { %4650 = sst [smem:[#allocation142_spill]] %s4610_s12 }
   0xe   :  { %17 = vsyncpa [#allocation3], 0 }
   0xf   :  { %18 = vsyncpa [#allocation6], 0 }
  0x10   :  { %20 = vsyncpa [#allocation6 + $0x1], 0 }
  0x11   :  { %21 = vsyncpa [#allocation9], 0 }
  0x12   :  { %23 = vsyncpa [#allocation9 + $0x1], 0 }
  0x13   :  { %24 = vsyncpa [#allocation12], 0 }
  0x14   :  { %25 = vsyncpa [#allocation15], 0 }
  0x15   :  { %26 = vsyncpa [#allocation18], 0 }
  0x16   :  { %27 = vsyncpa [#allocation21], 0 }
  0x17   :  { %28 = vsyncpa [#allocation4], 0 }
  0x18   :  { %30 = vsyncpa [#allocation4 + $0x1], 0  ;;  %s3190_s21 = smov 0   ;;  %s3192_s22 = smov 0  }
  0x19   :  { %s3194_s23 = smov 0   ;;  %s3196_s24 = smov 0  }
  0x1a LB: > { %4651 = sst [smem:[#allocation35_spill]] %s3067_s21  ;;  %s3211_s25 = sadd.s32 4294967295, %s3079_s24   ;;  %s3079_s24 = sphi %s3196_s24, %s4883_s24   ;;  %s3075_s23 = sphi %s3194_s23, %s4886_s23   ;;  %s3071_s22 = sphi %s3192_s22, %s4885_s22   ;;  %s3067_s21 = sphi %s3190_s21, %s4884_s21  }
  0x1b   : > { %4652 = sst [smem:[#allocation36_spill]] %s3071_s22  ;;  %s2145_s26 = sadd.s32 4294967294, %s3079_s24  }
  0x1c   : > { %4653 = sst [smem:[#allocation37_spill]] %s3075_s23  ;;  %s3215_s27 = sadd.s32 1, %s3079_s24  }
  0x1d   : > { %4654 = sst [smem:[#allocation38_spill]] %s3079_s24  ;;  %s64_s28 = sadd.s32 1, %s3075_s23 }
  0x1e   : > { %4655 = sst [smem:[#allocation39_spill]] %s3211_s25  ;;  %s61_s29 = ssub.s32 %s3079_s24, %s3215_s27 }
  0x1f   : > { %4656 = sst [smem:[#allocation40_spill]] %s3215_s27  ;;  %p71_p0 = scmp.ne.s32.totalorder %s3075_s23, %s3071_s22 }
  0x20   : > { %p62_p1 = scmp.eq.s32.totalorder %s61_s29, 0  ;;  %p72_p2 = scmp.eq.s32.totalorder %s3079_s24, 0 }
  0x21   : > { %p77_p3 = scmp.ne.s32.totalorder %s3071_s22, %s3067_s21  ;;  %p4618_p4 = scmp.eq.s32.totalorder %s3211_s25, 0 }
  0x22   : > { %s3227_s30 = scalar_select %p62_p1, %s3075_s23, %s64_s28  }
  0x23   : > { %p3229_p5 = por %p72_p2, %p71_p0  ;;  %p3235_p6 = por %p4618_p4, %p77_p3 }
  0x24   : > { %4657 = sst [smem:[#allocation41_spill]] %s3227_s30  ;;  %p321_p7 = scmp.eq.s32.totalorder %s3211_s25, 1 }
  0x25   : > { %s4658_s13 = scalar_select %p3229_p5, 1, 0 }
  0x26   : > { %s4659_s14 = scalar_select %p3235_p6, 1, 0 }
  0x27   : > { %p327_p8 = scmp.eq.s32.totalorder %s2145_s26, 1  ;;  %p2146_p9 = scmp.ge.s32.totalorder %s3079_s24, 1 }
  0x28   : > { %4660 = sst [smem:[#allocation42_spill]] %s4659_s14  ;;  %p334_p10 = scmp.lt.s32.totalorder %s3079_s24, 3 }
  0x29   : > { %p3242_p11 = por %p321_p7, %p71_p0  ;;  %p3246_p12 = por %p327_p8, %p77_p3 }
  0x2a   : > { %p3250_p13 = pnand %p2146_p9, %p334_p10  ;;  %s3081_s18 = smov [#allocation11]  }
  0x2b   : > { %s4661_s15 = scalar_select %p3242_p11, 1, 0 }
  0x2c   : > { %s4663_s16 = scalar_select %p3246_p12, 1, 0 }
  0x2d   : > { %4662 = sst [smem:[#allocation43_spill]] %s4661_s15  ;;  %p2532_p1 = pneg %p3250_p13 }
  0x2e   : > { %4664 = sst [smem:[#allocation44_spill]] %s4663_s16  ;;  %s373_s19 = sshll.u32 %s3081_s18, 4  ;;  %s374_s19 = int_to_ptr.vmem [resolvable:$true] %s373_s19 }
  0x2f   : > { %s4665_s17 = scalar_select %p3250_p13, 1, 0 }
  0x30   : > { %s3082_s20 = smov [#allocation14]   ;;  %p3258_p0 = pnand %p2532_p1, %p4618_p4 }
  0x31   : > { %s395_s26 = sshll.u32 %s3082_s20, 4  ;;  %s3083_s29 = smov [#allocation17]   ;;  %s3262_s26 = int_to_ptr.vmem [resolvable:$true] %s395_s26 }
  0x32   : > { %s3264_s30 = sshll.u32 %s3083_s29, 4  ;;  %s4667_s5 = sld [smem:[#allocation135_spill]]  ;;  %s418_s30 = int_to_ptr.vmem [resolvable:$true] %s3264_s30 }
  0x33   : > { %p3274_p3 = pneg %p3258_p0 }
  0x38   : > { %s2677_s21 = scalar_lea.hbm %s4667_s5, 16 }
  0x39   : > { %p2678_p2 = scmp.ne.s32.totalorder %s4667_s5, %s2677_s21  ;;  %p2684_p9 = scmp.lt.u32.totalorder %s2677_s21, %s4667_s5 }
  0x3b   : > { %p2680_p7 = pnand %p3274_p3, %p2678_p2 }
  0x3d   : > { %p2681_p8 = pneg %p2680_p7 }
  0x3f   : > { %p2686_p10 = pnand %p2684_p9, %p2681_p8 }
  0x41   : > { %2689 = shalt.err (!%p2686_p10)
}
  0x42   : > { %s2690_s27 = scalar_lea.vmem %s374_s19, 16  ;;  %s2697_s12 = scalar_lea.vmem %s374_s19, 32 }
  0x43   : > { %p2691_p1 = scmp.ne.s32.totalorder %s374_s19, %s2690_s27  ;;  %p2698_p11 = scmp.lt.s32.totalorder %s374_s19, %s374_s19 }
  0x44   : > { %p2699_p6 = scmp.lt.s32.totalorder %s2697_s12, %s2690_s27 }
  0x45   : > { %p2693_p4 = pnand %p2691_p1, %p3274_p3 }
  0x46   : > { %p2700_p13 = por %p2699_p6, %p2698_p11 }
  0x47   : > { %p2694_p12 = pneg %p2693_p4 }
  0x49   : > { %p2701_p5 = pnand %p2700_p13, %p2694_p12 }
  0x4b   : > { %2704 = shalt.err (!%p2701_p5)
}
  0x4c   : > { %2541 = dma.hbm_to_vmem [thread:$0]  (!%p3258_p0), %s4667_s5, 16, %s374_s19, [#allocation12]  }
  0x4d   : > { %s4669_s7 = sld [smem:[#allocation137_spill]] }
  0x53   : > { %s2705_s29 = scalar_lea.hbm %s4669_s7, 128 }
  0x54   : > { %p2706_p4 = scmp.ne.s32.totalorder %s4669_s7, %s2705_s29  ;;  %p2712_p5 = scmp.lt.u32.totalorder %s2705_s29, %s4669_s7 }
  0x56   : > { %p2708_p2 = pnand %p2706_p4, %p3274_p3 }
  0x58   : > { %p2709_p6 = pneg %p2708_p2 }
  0x5a   : > { %p2714_p11 = pnand %p2712_p5, %p2709_p6 }
  0x5c   : > { %2717 = shalt.err (!%p2714_p11)
}
  0x5d   : > { %s2718_s19 = scalar_lea.vmem %s3262_s26, 128  ;;  %p2726_p8 = scmp.lt.s32.totalorder %s3262_s26, %s3262_s26 }
  0x5e   : > { %p2719_p12 = scmp.ne.s32.totalorder %s3262_s26, %s2718_s19  ;;  %p2727_p9 = scmp.lt.s32.totalorder %s2718_s19, %s2718_s19 }
  0x60   : > { %p2721_p13 = pnand %p2719_p12, %p3274_p3  ;;  %p2728_p10 = por %p2727_p9, %p2726_p8 }
  0x62   : > { %p2722_p7 = pneg %p2721_p13 }
  0x64   : > { %p2729_p1 = pnand %p2728_p10, %p2722_p7 }
  0x66   : > { %2732 = shalt.err (!%p2729_p1)
}
  0x67   : > { %2547 = dma.hbm_to_vmem [thread:$0]  (!%p3258_p0), %s4669_s7, 128, %s3262_s26, [#allocation15]  }
  0x68   : > { %s3084_s16 = smov [#allocation2]   ;;  %s4670_s9 = sld [smem:[#allocation139_spill]] }
  0x69   : > { %s346_s18 = sshll.u32 %s3084_s16, 4  ;;  %s347_s18 = int_to_ptr.vmem [resolvable:$true] %s346_s18 }
  0x6e   : > { %s2733_s29 = scalar_lea.hbm %s4670_s9, 16 }
  0x6f   : > { %p2734_p4 = scmp.ne.s32.totalorder %s4670_s9, %s2733_s29  ;;  %p2740_p5 = scmp.lt.u32.totalorder %s2733_s29, %s4670_s9 }
  0x71   : > { %p2736_p2 = pnand %p2734_p4, %p3274_p3 }
  0x73   : > { %p2737_p6 = pneg %p2736_p2 }
  0x75   : > { %p2742_p11 = pnand %p2740_p5, %p2737_p6 }
  0x77   : > { %2745 = shalt.err (!%p2742_p11)
}
  0x78   : > { %s2746_s26 = scalar_lea.vmem %s418_s30, 16  ;;  %s2753_s22 = scalar_lea.vmem %s418_s30, 32 }
  0x79   : > { %p2747_p12 = scmp.ne.s32.totalorder %s418_s30, %s2746_s26  ;;  %p2754_p8 = scmp.lt.s32.totalorder %s418_s30, %s418_s30 }
  0x7a   : > { %p2755_p9 = scmp.lt.s32.totalorder %s2753_s22, %s2746_s26 }
  0x7b   : > { %p2749_p13 = pnand %p2747_p12, %p3274_p3 }
  0x7c   : > { %p2756_p10 = por %p2755_p9, %p2754_p8 }
  0x7d   : > { %p2750_p7 = pneg %p2749_p13 }
  0x7f   : > { %p2757_p1 = pnand %p2756_p10, %p2750_p7 }
  0x81   : > { %2760 = shalt.err (!%p2757_p1)
}
  0x82   : > { %2553 = dma.hbm_to_vmem [thread:$0]  (!%p3258_p0), %s4670_s9, 16, %s418_s30, [#allocation18]  }
  0x83   : > { %s4671_s0 = sld [smem:[#allocation130_spill]] }
  0x89   : > { %s2761_s15 = scalar_lea.hbm %s4671_s0, 512 }
  0x8a   : > { %p2762_p4 = scmp.ne.s32.totalorder %s4671_s0, %s2761_s15  ;;  %p2768_p5 = scmp.lt.u32.totalorder %s2761_s15, %s4671_s0 }
  0x8c   : > { %p2764_p2 = pnand %p2762_p4, %p3274_p3 }
  0x8e   : > { %p2765_p6 = pneg %p2764_p2 }
  0x90   : > { %p2770_p11 = pnand %p2768_p5, %p2765_p6 }
  0x92   : > { %2773 = shalt.err (!%p2770_p11)
}
  0x93   : > { %s2774_s26 = scalar_lea.vmem %s347_s18, 512  ;;  %p2782_p8 = scmp.lt.s32.totalorder %s347_s18, %s347_s18 }
  0x94   : > { %p2775_p12 = scmp.ne.s32.totalorder %s347_s18, %s2774_s26  ;;  %p2783_p9 = scmp.lt.s32.totalorder %s2774_s26, %s2774_s26 }
  0x96   : > { %p2777_p13 = pnand %p2775_p12, %p3274_p3  ;;  %p2784_p10 = por %p2783_p9, %p2782_p8 }
  0x98   : > { %p2778_p7 = pneg %p2777_p13 }
  0x9a   : > { %p2785_p1 = pnand %p2784_p10, %p2778_p7 }
  0x9c   : > { %2788 = shalt.err (!%p2785_p1)
}
  0x9d   : > { %s3085_s30 = smov 128   ;;  %s3086_s22 = smov 8  }
  0x9e   : > { %2535 = dma.hbm_to_vmem [thread:$0]  (!%p3258_p0), %s4671_s0, 512, %s347_s18, [#allocation3], %s3085_s30, %s3085_s30, %s3086_s22  }
  0x9f   : > { %s3087_s5 = smov [#allocation10]   ;;  %s3088_s15 = smov [#allocation13]  }
  0xa0   : > { %s359_s21 = sshll.u32 %s3087_s5, 4  ;;  %s384_s29 = sshll.u32 %s3088_s15, 4  ;;  %s360_s21 = int_to_ptr.vmem [resolvable:$true] %s359_s21  ;;  %s385_s29 = int_to_ptr.vmem [resolvable:$true] %s384_s29 }
  0xa1   : > { %s4672_s4 = sld [smem:[#allocation134_spill]] }
  0xa7   : > { %s2789_s19 = scalar_lea.hbm %s4672_s4, 256 }
  0xa8   : > { %p2790_p4 = scmp.ne.s32.totalorder %s4672_s4, %s2789_s19  ;;  %p2796_p5 = scmp.lt.u32.totalorder %s2789_s19, %s4672_s4 }
  0xaa   : > { %p2792_p2 = pnand %p2790_p4, %p3274_p3 }
  0xac   : > { %p2793_p6 = pneg %p2792_p2 }
  0xae   : > { %p2798_p11 = pnand %p2796_p5, %p2793_p6 }
  0xb0   : > { %2801 = shalt.err (!%p2798_p11)
}
  0xb1   : > { %s2802_s18 = scalar_lea.vmem %s360_s21, 256  ;;  %p2810_p8 = scmp.lt.s32.totalorder %s360_s21, %s360_s21 }
  0xb2   : > { %p2803_p12 = scmp.ne.s32.totalorder %s360_s21, %s2802_s18  ;;  %p2811_p9 = scmp.lt.s32.totalorder %s2802_s18, %s2802_s18 }
  0xb4   : > { %p2805_p13 = pnand %p2803_p12, %p3274_p3  ;;  %p2812_p10 = por %p2811_p9, %p2810_p8 }
  0xb6   : > { %p2806_p7 = pneg %p2805_p13 }
  0xb8   : > { %p2813_p1 = pnand %p2812_p10, %p2806_p7 }
  0xba   : > { %2816 = shalt.err (!%p2813_p1)
}
  0xbb   : > { %2538 = dma.hbm_to_vmem [thread:$0]  (!%p3258_p0), %s4672_s4, 256, %s360_s21, [#allocation9], %s3085_s30, %s3085_s30, %s3086_s22  }
  0xbc   : > { %s4673_s6 = sld [smem:[#allocation136_spill]] }
  0xc2   : > { %s2817_s16 = scalar_lea.hbm %s4673_s6, 128 }
  0xc3   : > { %p2818_p4 = scmp.ne.s32.totalorder %s4673_s6, %s2817_s16  ;;  %p2824_p5 = scmp.lt.u32.totalorder %s2817_s16, %s4673_s6 }
  0xc5   : > { %p2820_p2 = pnand %p2818_p4, %p3274_p3 }
  0xc7   : > { %p2821_p6 = pneg %p2820_p2 }
  0xc9   : > { %p2826_p11 = pnand %p2824_p5, %p2821_p6 }
  0xcb   : > { %2829 = shalt.err (!%p2826_p11)
}
  0xcc   : > { %s2830_s19 = scalar_lea.vmem %s385_s29, 128  ;;  %p2838_p8 = scmp.lt.s32.totalorder %s385_s29, %s385_s29 }
  0xcd   : > { %p2831_p12 = scmp.ne.s32.totalorder %s385_s29, %s2830_s19  ;;  %p2839_p9 = scmp.lt.s32.totalorder %s2830_s19, %s2830_s19 }
  0xcf   : > { %p2833_p13 = pnand %p2831_p12, %p3274_p3  ;;  %p2840_p10 = por %p2839_p9, %p2838_p8 }
  0xd1   : > { %p2834_p7 = pneg %p2833_p13 }
  0xd3   : > { %p2841_p1 = pnand %p2840_p10, %p2834_p7 }
  0xd5   : > { %2844 = shalt.err (!%p2841_p1)
}
  0xd6   : > { %2544 = dma.hbm_to_vmem [thread:$0]  (!%p3258_p0), %s4673_s6, 128, %s385_s29, [#allocation12]  }
  0xd7   : > { %s3089_s21 = smov [#allocation16]   ;;  %s3090_s18 = smov [#allocation19]  }
  0xd8   : > { %s406_s26 = sshll.u32 %s3089_s21, 4  ;;  %s428_s7 = sshll.u32 %s3090_s18, 4  ;;  %s407_s26 = int_to_ptr.vmem [resolvable:$true] %s406_s26  ;;  %s429_s7 = int_to_ptr.vmem [resolvable:$true] %s428_s7 }
  0xd9   : > { %s4674_s8 = sld [smem:[#allocation138_spill]] }
  0xdf   : > { %s2845_s25 = scalar_lea.hbm %s4674_s8, 128 }
  0xe0   : > { %p2846_p4 = scmp.ne.s32.totalorder %s4674_s8, %s2845_s25  ;;  %p2852_p5 = scmp.lt.u32.totalorder %s2845_s25, %s4674_s8 }
  0xe2   : > { %p2848_p2 = pnand %p2846_p4, %p3274_p3 }
  0xe4   : > { %p2849_p6 = pneg %p2848_p2 }
  0xe6   : > { %p2854_p11 = pnand %p2852_p5, %p2849_p6 }
  0xe8   : > { %2857 = shalt.err (!%p2854_p11)
}
  0xe9   : > { %s2858_s29 = scalar_lea.vmem %s407_s26, 128  ;;  %p2866_p8 = scmp.lt.s32.totalorder %s407_s26, %s407_s26 }
  0xea   : > { %p2859_p12 = scmp.ne.s32.totalorder %s407_s26, %s2858_s29  ;;  %p2867_p9 = scmp.lt.s32.totalorder %s2858_s29, %s2858_s29 }
  0xec   : > { %p2861_p13 = pnand %p2859_p12, %p3274_p3  ;;  %p2868_p10 = por %p2867_p9, %p2866_p8 }
  0xee   : > { %p2862_p7 = pneg %p2861_p13 }
  0xf0   : > { %p2869_p1 = pnand %p2868_p10, %p2862_p7 }
  0xf2   : > { %2872 = shalt.err (!%p2869_p1)
}
  0xf3   : > { %2550 = dma.hbm_to_vmem [thread:$0]  (!%p3258_p0), %s4674_s8, 128, %s407_s26, [#allocation15]  }
  0xf4   : > { %s4675_s10 = sld [smem:[#allocation140_spill]] }
  0xfa   : > { %s2873_s21 = scalar_lea.hbm %s4675_s10, 16 }
  0xfb   : > { %p2874_p4 = scmp.ne.s32.totalorder %s4675_s10, %s2873_s21  ;;  %p2880_p5 = scmp.lt.u32.totalorder %s2873_s21, %s4675_s10 }
  0xfd   : > { %p2876_p2 = pnand %p2874_p4, %p3274_p3 }
  0xff   : > { %p2877_p6 = pneg %p2876_p2 }
 0x101   : > { %p2882_p11 = pnand %p2880_p5, %p2877_p6 }
 0x103   : > { %2885 = shalt.err (!%p2882_p11)
}
 0x104   : > { %s2886_s16 = scalar_lea.vmem %s429_s7, 16  ;;  %s2893_s26 = scalar_lea.vmem %s429_s7, 32 }
 0x105   : > { %p2887_p12 = scmp.ne.s32.totalorder %s429_s7, %s2886_s16  ;;  %p2894_p8 = scmp.lt.s32.totalorder %s429_s7, %s429_s7 }
 0x106   : > { %p2895_p9 = scmp.lt.s32.totalorder %s2893_s26, %s2886_s16 }
 0x107   : > { %p2889_p13 = pnand %p2887_p12, %p3274_p3 }
 0x108   : > { %p2896_p10 = por %p2895_p9, %p2894_p8 }
 0x109   : > { %p2890_p7 = pneg %p2889_p13 }
 0x10b   : > { %p2897_p1 = pnand %p2896_p10, %p2890_p7 }
 0x10d   : > { %2900 = shalt.err (!%p2897_p1)
}
 0x10e   : > { %2556 = dma.hbm_to_vmem [thread:$0]  (!%p3258_p0), %s4675_s10, 16, %s429_s7, [#allocation18]  }
 0x10f   : > { %s3091_s27 = smov [#allocation20]   ;;  %s4676_s11 = sld [smem:[#allocation141_spill]] }
 0x110   : > { %s439_s29 = sshll.u32 %s3091_s27, 4  ;;  %s440_s29 = int_to_ptr.vmem [resolvable:$true] %s439_s29 }
 0x115   : > { %s2901_s30 = scalar_lea.hbm %s4676_s11, 16 }
 0x116   : > { %p2902_p4 = scmp.ne.s32.totalorder %s4676_s11, %s2901_s30  ;;  %p2908_p5 = scmp.lt.u32.totalorder %s2901_s30, %s4676_s11 }
 0x118   : > { %p2904_p2 = pnand %p2902_p4, %p3274_p3 }
 0x11a   : > { %p2905_p6 = pneg %p2904_p2 }
 0x11c   : > { %p2910_p11 = pnand %p2908_p5, %p2905_p6 }
 0x11e   : > { %2913 = shalt.err (!%p2910_p11)
}
 0x11f   : > { %s2914_s7 = scalar_lea.vmem %s440_s29, 16  ;;  %s2921_s9 = scalar_lea.vmem %s440_s29, 32 }
 0x120   : > { %p2915_p12 = scmp.ne.s32.totalorder %s440_s29, %s2914_s7  ;;  %p2922_p8 = scmp.lt.s32.totalorder %s440_s29, %s440_s29 }
 0x121   : > { %p2923_p9 = scmp.lt.s32.totalorder %s2921_s9, %s2914_s7 }
 0x122   : > { %p2917_p13 = pnand %p2915_p12, %p3274_p3 }
 0x123   : > { %p2924_p10 = por %p2923_p9, %p2922_p8 }
 0x124   : > { %p2918_p7 = pneg %p2917_p13 }
 0x126   : > { %p2925_p1 = pnand %p2924_p10, %p2918_p7 }
 0x128   : > { %2928 = shalt.err (!%p2925_p1)
}
 0x129   : > { %2559 = dma.hbm_to_vmem [thread:$0]  (!%p3258_p0), %s4676_s11, 16, %s440_s29, [#allocation21]  }
 0x12a   : > { %p2156_p4 = scmp.ge.s32.totalorder %s3079_s24, 2 }
 0x12b   : > { %s450_s20 = sand.u32 (!%p2156_p4), 1, %s3079_s24   ;;  %s3445_s26 = sand.u32 (!%p2156_p4), 1, %s3075_s23  }
 0x12c   : > { %446 = sbr.rel (%p2156_p4) target bundleno = 372 (0x174), region = 52  ;;  %s2157_s28 = sshll.u32 (!%p2156_p4), %s3445_s26, 4 }
 0x12d   : > { %s2223_s5 = sshll.u32 (!%p2156_p4), %s3079_s24, 8  ;;  %s4677_s1 = sld [smem:[#allocation131_spill]] (!%p2156_p4) }
 0x12e   : > { %s454_s12 = scalar_lea.vmem (!%p2156_p4), [#allocation5], %s2157_s28  ;;  %s2160_s30 = sshll.u32 (!%p2156_p4), %s3445_s26, 3 }
 0x12f   : > { %s461_s19 = sshll.u32 (!%p2156_p4), %s454_s12, 4  ;;  %s3459_s22 = scalar_lea.sflag (!%p2156_p4), [#allocation6], %s450_s20  ;;  %s3454_s19 = int_to_ptr.vmem [resolvable:$true] %s461_s19 }
 0x130   : > { %p4678_p3 = scmp.ne.s32.totalorder (!%p2156_p4), %s4658_s13, 0 }
 0x133   : > { %s3452_s29 = scalar_lea.hbm %s4677_s1, %s2223_s5  ;;  %s2933_s7 = scalar_lea.hbm %s4677_s1, 512 }
 0x134   : > { %s2929_s21 = scalar_lea.hbm %s3452_s29, 256  ;;  %p2934_p5 = scmp.lt.u32.totalorder %s3452_s29, %s4677_s1 }
 0x135   : > { %p2930_p0 = scmp.ne.s32.totalorder %s3452_s29, %s2929_s21  ;;  %p2935_p11 = scmp.lt.u32.totalorder %s2933_s7, %s2929_s21 }
 0x136   : > { %p2937_p13 = scmp.lt.u32.totalorder %s2929_s21, %s3452_s29 }
 0x137   : > { %p2931_p2 = pnand %p2930_p0, %p4678_p3  ;;  %p2936_p12 = por %p2935_p11, %p2934_p5 }
 0x139   : > { %p2932_p6 = pneg %p2931_p2  ;;  %p2938_p7 = por %p2937_p13, %p2936_p12 }
 0x13b   : > { %p2939_p8 = pnand %p2938_p7, %p2932_p6 }
 0x13d   : > { %2942 = shalt.err (!%p2939_p8)
}
 0x13e   : > { %s2943_s16 = scalar_lea.vmem %s3454_s19, 256  ;;  %s3092_s28 = smov [#allocation5]  }
 0x13f   : > { %p2944_p9 = scmp.ne.s32.totalorder %s3454_s19, %s2943_s16  ;;  %s2947_s5 = sshll.u32 %s3092_s28, 4  ;;  %s2948_s5 = int_to_ptr.vmem [resolvable:$false] %s2947_s5 }
 0x140   : > { %s2949_s15 = scalar_lea.vmem %s2948_s5, 512  ;;  %p2950_p0 = scmp.lt.s32.totalorder %s3454_s19, %s2948_s5 }
 0x141   : > { %p2945_p10 = pnand %p2944_p9, %p4678_p3  ;;  %p2951_p2 = scmp.lt.s32.totalorder %s2949_s15, %s2943_s16 }
 0x143   : > { %p2946_p1 = pneg %p2945_p10  ;;  %p2952_p5 = por %p2951_p2, %p2950_p0 }
 0x145   : > { %p2953_p11 = pnand %p2952_p5, %p2946_p1 }
 0x147   : > { %2956 = shalt.err (!%p2953_p11)
}
 0x148   : > { %s3093_s27 = smov 128   ;;  %s3094_s12 = smov 8  }
 0x149   : > { %2499 = dma.hbm_to_vmem [thread:$0]  (%p4678_p3), %s3452_s29, 256, %s3454_s19, %s3459_s22, %s3093_s27, %s3093_s27, %s3094_s12  }
 0x14a   : > { %s2224_s21 = sshll.u32 %s3079_s24, 7  ;;  %s4679_s2 = sld [smem:[#allocation132_spill]] }
 0x14b   : > { %s475_s9 = scalar_lea.vmem [#allocation7], %s2160_s30 }
 0x14c   : > { %s482_s25 = sshll.u32 %s475_s9, 4  ;;  %s3493_s25 = int_to_ptr.vmem [resolvable:$true] %s482_s25 }
 0x150   : > { %s3489_s7 = scalar_lea.hbm %s4679_s2, %s2224_s21  ;;  %s2961_s28 = scalar_lea.hbm %s4679_s2, 256 }
 0x151   : > { %s2957_s16 = scalar_lea.hbm %s3489_s7, 128  ;;  %p2962_p7 = scmp.lt.u32.totalorder %s3489_s7, %s4679_s2 }
 0x152   : > { %p2958_p6 = scmp.ne.s32.totalorder %s3489_s7, %s2957_s16  ;;  %p2963_p8 = scmp.lt.u32.totalorder %s2961_s28, %s2957_s16 }
 0x153   : > { %p2965_p10 = scmp.lt.u32.totalorder %s2957_s16, %s3489_s7 }
 0x154   : > { %p2959_p12 = pnand %p2958_p6, %p4678_p3  ;;  %p2964_p9 = por %p2963_p8, %p2962_p7 }
 0x156   : > { %p2960_p13 = pneg %p2959_p12  ;;  %p2966_p1 = por %p2965_p10, %p2964_p9 }
 0x158   : > { %p2967_p0 = pnand %p2966_p1, %p2960_p13 }
 0x15a   : > { %2970 = shalt.err (!%p2967_p0)
}
 0x15b   : > { %s2971_s30 = scalar_lea.vmem %s3493_s25, 128  ;;  %s3095_s27 = smov [#allocation7]  }
 0x15c   : > { %p2972_p2 = scmp.ne.s32.totalorder %s3493_s25, %s2971_s30  ;;  %s2975_s12 = sshll.u32 %s3095_s27, 4  ;;  %s2976_s12 = int_to_ptr.vmem [resolvable:$false] %s2975_s12 }
 0x15d   : > { %s2977_s18 = scalar_lea.vmem %s2976_s12, 256  ;;  %p2978_p6 = scmp.lt.s32.totalorder %s3493_s25, %s2976_s12 }
 0x15e   : > { %p2973_p5 = pnand %p2972_p2, %p4678_p3  ;;  %p2979_p12 = scmp.lt.s32.totalorder %s2977_s18, %s2971_s30 }
 0x160   : > { %p2974_p11 = pneg %p2973_p5  ;;  %p2980_p7 = por %p2979_p12, %p2978_p6 }
 0x162   : > { %p2981_p8 = pnand %p2980_p7, %p2974_p11 }
 0x164   : > { %2984 = shalt.err (!%p2981_p8)
}
 0x165   : > { %s3096_s14 = smov 64   ;;  %s3097_s9 = smov 4  }
 0x166   : > { %2500 = dma.hbm_to_vmem [thread:$0]  (%p4678_p3), %s3489_s7, 128, %s3493_s25, %s3459_s22, %s3096_s14, %s3096_s14, %s3097_s9  }
 0x167   : > { %s2163_s16 = sshll.u32 %s3445_s26, 6  ;;  %s4680_s3 = sld [smem:[#allocation133_spill]] }
 0x168   : > { %s2501_s5 = scalar_select %p4678_p3, [#allocation0], [#allocation25] }
 0x169   : > { %s496_s15 = scalar_lea.vmem [#allocation8], %s2163_s16  ;;  %s3098_s7 = smov 256  }
 0x16a   : > { %s515_s30 = sshll.u32 %s496_s15, 4  ;;  %s507_s22 = sld [smem:[%s2501_s5]]   ;;  %s516_s30 = int_to_ptr.vmem [resolvable:$true] %s515_s30 }
 0x16b   : > { %2502 = sst [smem:[#allocation24]] (%p4678_p3), %s3098_s7  ;;  %s3099_s25 = smov 128  }
 0x16c   : > { %2503 = sst [smem:[#allocation24 + $0x1]] (%p4678_p3), %s3099_s25  ;;  %s3100_s26 = smov 2  }
 0x16d   : > { %s502_s28 = scalar_lea.hbm %s4680_s3, %s2224_s21  ;;  %2504 = sst [smem:[#allocation24 + $0x2]] (%p4678_p3), %s3100_s26 }
 0x16e   : > { %s3101_s27 = smov 64   ;;  %s3102_s12 = smov 4  }
 0x16f   : > { %2505 = sst [smem:[#allocation24 + $0x3]] (%p4678_p3), %s3101_s27  ;;  %s493_s14 = scalar_lea.sflag [#allocation9], %s450_s20 }
 0x170   : > { %2506 = sst [smem:[#allocation24 + $0x4]] (%p4678_p3), %s3101_s27  ;;  %s2166_s21 = sshll.u32 %s507_s22, 26 }
 0x171   : > { %2507 = sst [smem:[#allocation24 + $0x5]] (%p4678_p3), %s3102_s12  ;;  %s2167_s18 = sadd.s32 134217728, %s2166_s21 }
 0x172   : > { %s3103_s9 = smov [#allocation23]  }
 0x173   : > { %2508 = dma.general (%p4678_p3), %s502_s28, 1024, %s516_s30, %s493_s14, %s3103_s9, [#allocation24], %s2167_s18, 0  }
 0x174 PF: > { %p4681_p13 = scmp.ne.s32.totalorder %s4665_s17, 0 }
 0x176   : > { %540 = sbr.rel (%p4681_p13) target bundleno = 1516 (0x5ec), region = 68 }
 0x17d   : > { %s4682_s16 = sld [smem:[#allocation39_spill]] }
 0x183   : > { %p4683_p9 = scmp.eq.s32.totalorder %s4682_s16, 0 }
 0x185   : > { %3030 = dma.done.wait (%p4683_p9), [#allocation3], 512   ;;  %p4684_p10 = pmov %p4683_p9 }
 0x186   : > { %s4685_s29 = sld [smem:[#allocation36_spill]]  ;;  %s4686_s19 = sld [smem:[#allocation42_spill]] }
 0x187   : > { %3032 = vsyncadd (%p4684_p10), [#allocation3], 4294966784  ;;  %s546_s5 = sand.u32 1, %s4682_s16  }
 0x188   : > { %s547_s20 = scalar_lea.sflag [#allocation6], %s546_s5 }
 0x18c   : > { %s3549_s15 = sand.u32 1, %s4685_s29   ;;  %p4688_p3 = scmp.ne.s32.totalorder %s4686_s19, 0 }
 0x18d   : > { %4687 = sst [smem:[#allocation45_spill]] %s3549_s15  ;;  %s4628_s13 = sshll.u32 %s3549_s15, 4 }
 0x18e   : > { %s3554_s28 = scalar_lea.vmem [#allocation5], %s4628_s13 }
 0x18f   : > { %3034 = dma.done.wait (%p4688_p3), %s547_s20, 384  }
 0x190   : > { %3036 = vsyncadd (%p4688_p3), %s547_s20, 4294966912  ;;  %s2171_s17 = sshll.u32 %s3549_s15, 3  ;;  %s2172_s30 = sshll.u32 %s3549_s15, 6 }
 0x191   : > { %s3562_s22 = scalar_lea.vmem [#allocation7], %s2171_s17  ;;  %s565_s7 = scalar_lea.sflag [#allocation9], %s546_s5 }
 0x192   : > { %4689 = sst [smem:[#allocation46_spill]] %s3562_s22  ;;  %s3564_s25 = scalar_lea.vmem [#allocation8], %s2172_s30 }
 0x193   : > { %3038 = dma.done.wait (%p4688_p3), %s565_s7, 1024  }
 0x194   : > { %3040 = vsyncadd (%p4688_p3), %s565_s7, 4294966272  ;;  %p4690_p1 = pmov %p4683_p9 }
 0x196   : > { %3042 = dma.done.wait (%p4690_p1), [#allocation9], 256   ;;  %p4691_p0 = pmov %p4690_p1 }
 0x198   : > { %3044 = vsyncadd (%p4691_p0), [#allocation9], 4294967040  ;;  %p4692_p2 = pmov %p4691_p0 }
 0x199   : > { %p4693_p5 = pmov %p4691_p0 }
 0x19a   : > { %3046 = dma.done.wait (%p4692_p2), [#allocation12], 144  }
 0x19b   : > { %3048 = vsyncadd (%p4693_p5), [#allocation12], 4294967152  ;;  %p4694_p11 = pmov %p4691_p0 }
 0x19c   : > { %p4695_p6 = pmov %p4691_p0 }
 0x19d   : > { %3050 = dma.done.wait (%p4694_p11), [#allocation15], 256  }
 0x19e   : > { %3052 = vsyncadd (%p4695_p6), [#allocation15], 4294967040  ;;  %p4696_p12 = pmov %p4691_p0 }
 0x19f   : > { %p4697_p7 = pmov %p4691_p0 }
 0x1a0   : > { %3054 = dma.done.wait (%p4696_p12), [#allocation18], 32  }
 0x1a1   : > { %3056 = vsyncadd (%p4697_p7), [#allocation18], 4294967264  ;;  %p4698_p8 = pmov %p4691_p0 }
 0x1a2   : > { %p4699_p13 = pmov %p4691_p0 }
 0x1a3   : > { %3058 = dma.done.wait (%p4698_p8), [#allocation21], 16  }
 0x1a4   : > { %3060 = vsyncadd (%p4699_p13), [#allocation21], 4294967280  ;;  %vm669_vm0 = vcmask 130048   ;;  %v660_v0 = vld [vmem:[#allocation10] sm:$0xff]  ;;  %v661_v1 = vld [vmem:[#allocation10 + $0x8] sm:$0xff]  ;;  %s3104_s26 = smov 125  }
 0x1a5   : > { %v656_v2 = vld [vmem:[#allocation2] sm:$0xff]  ;;  %v2337_v3 = vpack.c.bf16 %v661_v1, %v660_v0  ;;  %v3592_v5 = vld [vmem:[#allocation16] sm:$0xff]  ;;  %v657_v6 = vld [vmem:[#allocation2 + $0x8] sm:$0xff]  ;;  %s3105_s27 = smov 127   ;;  %s3106_s21 = smov 124   ;;  %v3111_v15 = vmov 0.0|0.0  }
 0x1a6   : > { %2297 = vmatprep.mubr.msk.f32.mxu0 %vm669_vm0, %v656_v2  ;;  %v779_v4 = vld [vmem:[%s3554_s28] sm:$0xff]  ;;  %2353 = vpush %v3592_v5  ;;  %v780_v7 = vld [vmem:[%s3554_s28 + $0x8] sm:$0xff]  ;;  %1127 = vrot.lane.b32.xlu1 %v3592_v5, %s3104_s26  ;;  %s3107_s12 = smov 126   ;;  %s3108_s18 = smov 122   ;;  %v3612_v10 = vrot.slane %v3592_v5, 1  ;;  %v3631_v11 = vrot.slane %v3592_v5, 2 }
 0x1a7   : > { %2338 = vmatprep.subr.bf16.mxu0 %v2337_v3  ;;  %2342 = vmatprep.subr.bf16.mxu1 %v2337_v3  ;;  %v658_v8 = vld [vmem:[#allocation2 + $0x10] sm:$0xff]  ;;  %v659_v9 = vld [vmem:[#allocation2 + $0x18] sm:$0xff]  ;;  %s3109_s14 = smov 123   ;;  %s3110_s9 = smov 121   ;;  %v3646_v12 = vrot.slane %v3592_v5, 3  ;;  %v3667_v13 = vrot.slane %v3592_v5, 4 }
 0x1a8   : > { %2340 = vmatpush3.bf16.msra.mxu0 %v2337_v3  ;;  %2344 = vmatpush3.bf16.msra.mxu1 %v2337_v3  ;;  %v868_v14 = vld [vmem:[#allocation14] sm:$0xff]  ;;  %v3681_v16 = vrot.slane %v3592_v5, 5  ;;  %vm3112_vm1 = vmmov 0   ;;  %v4634_v17 = vmov 0.0   ;;  %v3114_v18 = vmov 1  }
 0x1a9   : > { %2307 = vmatprep.mubr.msk.f32.mxu1 %vm669_vm0, %v779_v4  ;;  %1109 = vrot.lane.b32.xlu0 %v3592_v5, %s3105_s27  ;;  %v3115_v19 = vmov 0   ;;  %v3703_v20 = vrot.slane %v3592_v5, 6  ;;  %v3718_v27 = vrot.slane %v3592_v5, 7  ;;  %v3737_v36 = vld [vmem:[#allocation17] ss:$0 sm:$0xff]  ;;  %v3116_v41 = vmov 2  }
 0x1aa   : > { %1136 = vrot.lane.b32.xlu1 %v3592_v5, %s3106_s21  ;;  %2310 = vmatprep.subr.mxu1 %v868_v14  ;;  %v3117_v42 = vmov 3   ;;  %v3118_v45 = vmov 4   ;;  %v3119_v48 = vmov 6   ;;  %v3120_v50 = vmov 5   ;;  %v2182_v61 = vld [vmem:[#allocation11] ss:$0 sm:$0xff] }
 0x1ab   : > { %2298 = vmatmul.mubr.msk.f32.vlgmr.msra.gmra.mrb[0].mxu0 %vm669_vm0, %v657_v6  ;;  %2308 = vmatmul.mubr.msk.f32.vlgmr.msra.gmra.mrb[0].mxu1 %vm669_vm0, %v780_v7  ;;  %v3121_v54 = vmov 7   ;;  %vm869_vm2 = vcmask 64512  }
 0x1ac   : > { %2300 = vmatprep.mubr.msk.f32.mxu0 %vm669_vm0, %v658_v8  ;;  %2311 = vmatpush3.msra.mxu1 %v868_v14  ;;  %vm3754_vm7 = vmpackc.low %vm869_vm2, %vm869_vm2 }
 0x1ad   : > { %1118 = vrot.lane.b32.xlu0 %v3592_v5, %s3107_s12  ;;  %2345 = vmatprep.subr.bf16.mxu0 %v3111_v15 }
 0x1ae   : > { %1154 = vrot.lane.b32.xlu1 %v3592_v5, %s3108_s18  ;;  %2329 = vmatprep.subr.bf16.mxu1 %v4634_v17 }
 0x1af   : > { %2301 = vmatmul.mubr.msk.f32.gmra.mrb[2].mxu0 %vm669_vm0, %v659_v9  ;;  %2657 = vset.pattern.permute.xlu1 %v3114_v18 }
 0x1b0   : > { %2326 = vmatprep.mubr.msk.f32.mxu0 %vm3112_vm1, %v4634_v17  ;;  %2656 = vset.pattern.permute.xlu0 %v3115_v19 }
 0x1b1   : > { %1145 = vrot.lane.b32.xlu0 %v3592_v5, %s3109_s14 }
 0x1b2   : > { %1203 = vrot.lane.b32.xlu1 %v3612_v10, %s3105_s27 }
 0x1b5   : > { %1163 = vrot.lane.b32.xlu0 %v3592_v5, %s3110_s9 }
 0x1b6   : > { %1221 = vrot.lane.b32.xlu1 %v3612_v10, %s3104_s26 }
 0x1b9   : > { %1212 = vrot.lane.b32.xlu0 %v3612_v10, %s3107_s12 }
 0x1ba   : > { %1239 = vrot.lane.b32.xlu1 %v3612_v10, %s3109_s14 }
 0x1bd   : > { %1230 = vrot.lane.b32.xlu0 %v3612_v10, %s3106_s21 }
 0x1be   : > { %1257 = vrot.lane.b32.xlu1 %v3612_v10, %s3110_s9 }
 0x1c1   : > { %1248 = vrot.lane.b32.xlu0 %v3612_v10, %s3108_s18 }
 0x1c2   : > { %1301 = vrot.lane.b32.xlu1 %v3631_v11, %s3107_s12 }
 0x1c5   : > { %1292 = vrot.lane.b32.xlu0 %v3631_v11, %s3105_s27 }
 0x1c6   : > { %1319 = vrot.lane.b32.xlu1 %v3631_v11, %s3106_s21 }
 0x1c9   : > { %1310 = vrot.lane.b32.xlu0 %v3631_v11, %s3104_s26 }
 0x1ca   : > { %1337 = vrot.lane.b32.xlu1 %v3631_v11, %s3108_s18 }
 0x1cd   : > { %1328 = vrot.lane.b32.xlu0 %v3631_v11, %s3109_s14 }
 0x1ce   : > { %1381 = vrot.lane.b32.xlu1 %v3646_v12, %s3105_s27 }
 0x1d1   : > { %1346 = vrot.lane.b32.xlu0 %v3631_v11, %s3110_s9 }
 0x1d2   : > { %1399 = vrot.lane.b32.xlu1 %v3646_v12, %s3104_s26 }
 0x1d5   : > { %1390 = vrot.lane.b32.xlu0 %v3646_v12, %s3107_s12 }
 0x1d6   : > { %1417 = vrot.lane.b32.xlu1 %v3646_v12, %s3109_s14 }
 0x1d7   : > { %s3778_s29 = spop %2353 }
 0x1d9   : > { %1408 = vrot.lane.b32.xlu0 %v3646_v12, %s3106_s21 }
 0x1da   : > { %1435 = vrot.lane.b32.xlu1 %v3646_v12, %s3110_s9 }
 0x1dd   : > { %1426 = vrot.lane.b32.xlu0 %v3646_v12, %s3108_s18 }
 0x1de   : > { %1479 = vrot.lane.b32.xlu1 %v3667_v13, %s3107_s12 }
 0x1e1   : > { %1470 = vrot.lane.b32.xlu0 %v3667_v13, %s3105_s27 }
 0x1e2   : > { %1497 = vrot.lane.b32.xlu1 %v3667_v13, %s3106_s21 }
 0x1e5   : > { %1488 = vrot.lane.b32.xlu0 %v3667_v13, %s3104_s26 }
 0x1e6   : > { %1515 = vrot.lane.b32.xlu1 %v3667_v13, %s3108_s18 }
 0x1e9   : > { %1506 = vrot.lane.b32.xlu0 %v3667_v13, %s3109_s14 }
 0x1ea   : > { %1559 = vrot.lane.b32.xlu1 %v3681_v16, %s3105_s27 }
 0x1ed   : > { %1524 = vrot.lane.b32.xlu0 %v3667_v13, %s3110_s9 }
 0x1ee   : > { %1577 = vrot.lane.b32.xlu1 %v3681_v16, %s3104_s26 }
 0x1f1   : > { %1568 = vrot.lane.b32.xlu0 %v3681_v16, %s3107_s12 }
 0x1f2   : > { %1595 = vrot.lane.b32.xlu1 %v3681_v16, %s3109_s14 }
 0x1f5   : > { %1586 = vrot.lane.b32.xlu0 %v3681_v16, %s3106_s21 }
 0x1f6   : > { %1613 = vrot.lane.b32.xlu1 %v3681_v16, %s3110_s9 }
 0x1f9   : > { %1604 = vrot.lane.b32.xlu0 %v3681_v16, %s3108_s18 }
 0x1fa   : > { %1657 = vrot.lane.b32.xlu1 %v3703_v20, %s3107_s12 }
 0x1fd   : > { %1648 = vrot.lane.b32.xlu0 %v3703_v20, %s3105_s27 }
 0x1fe   : > { %1675 = vrot.lane.b32.xlu1 %v3703_v20, %s3106_s21 }
 0x201   : > { %1666 = vrot.lane.b32.xlu0 %v3703_v20, %s3104_s26 }
 0x202   : > { %1693 = vrot.lane.b32.xlu1 %v3703_v20, %s3108_s18 }
 0x205   : > { %1684 = vrot.lane.b32.xlu0 %v3703_v20, %s3109_s14 }
 0x206   : > { %1737 = vrot.lane.b32.xlu1 %v3718_v27, %s3105_s27 }
 0x209   : > { %1702 = vrot.lane.b32.xlu0 %v3703_v20, %s3110_s9 }
 0x20a   : > { %1755 = vrot.lane.b32.xlu1 %v3718_v27, %s3104_s26 }
 0x20d   : > { %1746 = vrot.lane.b32.xlu0 %v3718_v27, %s3107_s12 }
 0x20e   : > { %1773 = vrot.lane.b32.xlu1 %v3718_v27, %s3109_s14 }
 0x211   : > { %1764 = vrot.lane.b32.xlu0 %v3718_v27, %s3106_s21 }
 0x212   : > { %1791 = vrot.lane.b32.xlu1 %v3718_v27, %s3110_s9 }
 0x215   : > { %1782 = vrot.lane.b32.xlu0 %v3718_v27, %s3108_s18 }
 0x216   : > { %1273 = vperm.xlu1 %2657, %v3737_v36  }
 0x218   : > { %v1128_v21 = vpop.permute.xlu1 %1127 }
 0x219   : > { %1184 = vperm.xlu0 %2656, %v3737_v36  }
 0x21a   : > { %2658 = vset.pattern.permute.xlu1 %v3116_v41 }
 0x21b   : > { %v1110_v22 = vpop.permute.xlu0 %1109  ;;  %1362 = vperm.xlu1 %2658, %v3737_v36  }
 0x21c   : > { %2355 = vpush %v1110_v22  ;;  %v1137_v23 = vpop.permute.xlu1 %1136  ;;  %v2198_v22 = vld [vmem:[#allocation19] ss:$0 sm:$0xff] }
 0x21d   : > { %2659 = vset.pattern.permute.xlu0 %v3117_v42 }
 0x21e   : > { %1451 = vperm.xlu0 %2659, %v3737_v36  }
 0x21f   : > { %v1119_v24 = vpop.permute.xlu0 %1118  ;;  %2660 = vset.pattern.permute.xlu1 %v3118_v45 }
 0x220   : > { %2357 = vpush %v1119_v24  ;;  %v1155_v25 = vpop.permute.xlu1 %1154  ;;  %1540 = vperm.xlu1 %2660, %v3737_v36  }
 0x221   : > { %2359 = vpush %v1128_v21 }
 0x222   : > { %2361 = vpush %v1137_v23  ;;  %2662 = vset.pattern.permute.xlu0 %v3119_v48 }
 0x223   : > { %v1146_v26 = vpop.permute.xlu0 %1145 }
 0x224   : > { %2363 = vpush %v1146_v26  ;;  %v1204_v28 = vpop.permute.xlu1 %1203  ;;  %2661 = vset.pattern.permute.xlu1 %v3120_v50 }
 0x225   : > { %2365 = vpush %v1155_v25  ;;  %1629 = vperm.xlu1 %2661, %v3737_v36  }
 0x227   : > { %v1164_v29 = vpop.permute.xlu0 %1163 }
 0x228   : > { %2367 = vpush %v1164_v29  ;;  %v1222_v30 = vpop.permute.xlu1 %1221 }
 0x229   : > { %2369 = vpush %v3612_v10  ;;  %2663 = vset.pattern.permute.xlu1 %v3121_v54 }
 0x22a   : > { %2371 = vpush %v1204_v28 }
 0x22b   : > { %v1213_v31 = vpop.permute.xlu0 %1212 }
 0x22c   : > { %2373 = vpush %v1213_v31  ;;  %v1240_v32 = vpop.permute.xlu1 %1239 }
 0x22d   : > { %2375 = vpush %v1222_v30 }
 0x22f   : > { %v1231_v33 = vpop.permute.xlu0 %1230 }
 0x230   : > { %2377 = vpush %v1231_v33  ;;  %v1258_v34 = vpop.permute.xlu1 %1257 }
 0x231   : > { %2379 = vpush %v1240_v32 }
 0x233   : > { %v1249_v35 = vpop.permute.xlu0 %1248 }
 0x234   : > { %2381 = vpush %v1249_v35  ;;  %v1302_v37 = vpop.permute.xlu1 %1301 }
 0x235   : > { %2383 = vpush %v1258_v34 }
 0x236   : > { %2385 = vpush %v3631_v11 }
 0x237   : > { %v1293_v38 = vpop.permute.xlu0 %1292 }
 0x238   : > { %2387 = vpush %v1293_v38  ;;  %v1320_v39 = vpop.permute.xlu1 %1319 }
 0x239   : > { %2389 = vpush %v1302_v37 }
 0x23b   : > { %v1311_v40 = vpop.permute.xlu0 %1310 }
 0x23c   : > { %2391 = vpush %v1311_v40  ;;  %v1338_v43 = vpop.permute.xlu1 %1337 }
 0x23d   : > { %2393 = vpush %v1320_v39 }
 0x23f   : > { %v1329_v44 = vpop.permute.xlu0 %1328 }
 0x240   : > { %2395 = vpush %v1329_v44  ;;  %v1382_v46 = vpop.permute.xlu1 %1381 }
 0x241   : > { %2397 = vpush %v1338_v43 }
 0x243   : > { %v1347_v47 = vpop.permute.xlu0 %1346 }
 0x244   : > { %2399 = vpush %v1347_v47  ;;  %v1400_v49 = vpop.permute.xlu1 %1399 }
 0x245   : > { %2401 = vpush %v3646_v12 }
 0x246   : > { %2403 = vpush %v1382_v46  ;;  %v967_v46 = vld [vmem:[#allocation13] sm:$0xff] }
 0x247   : > { %v1391_v51 = vpop.permute.xlu0 %1390 }
 0x248   : > { %2405 = vpush %v1391_v51  ;;  %v1418_v52 = vpop.permute.xlu1 %1417 }
 0x249   : > { %2407 = vpush %v1400_v49 }
 0x24b   : > { %v1409_v53 = vpop.permute.xlu0 %1408 }
 0x24c   : > { %2409 = vpush %v1409_v53  ;;  %v1436_v55 = vpop.permute.xlu1 %1435 }
 0x24d   : > { %2411 = vpush %v1418_v52  ;;  %s3780_s19 = spop %2355 }
 0x24f   : > { %v1427_v56 = vpop.permute.xlu0 %1426 }
 0x250   : > { %2413 = vpush %v1427_v56  ;;  %v1480_v58 = vpop.permute.xlu1 %1479 }
 0x251   : > { %2415 = vpush %v1436_v55  ;;  %s3782_s5 = spop %2357 }
 0x252   : > { %2417 = vpush %v3667_v13  ;;  %s3784_s20 = spop %2359 }
 0x253   : > { %v1471_v57 = vpop.permute.xlu0 %1470  ;;  %s3786_s28 = spop %2361 }
 0x254   : > { %2419 = vpush %v1471_v57  ;;  %v1498_v59 = vpop.permute.xlu1 %1497 }
 0x255   : > { %2421 = vpush %v1480_v58  ;;  %s3788_s17 = spop %2363 }
 0x256   : > { %s3790_s30 = spop %2365 }
 0x257   : > { %v1489_v60 = vpop.permute.xlu0 %1488 }
 0x258   : > { %2423 = vpush %v1489_v60  ;;  %v1516_v62 = vpop.permute.xlu1 %1515 }
 0x259   : > { %2425 = vpush %v1498_v59  ;;  %s3792_s7 = spop %2367  ;;  %v2264_v59 = vld [vmem:[%s3564_s25 + $0x10] sm:$0xff]  }
 0x25a   : > { %s3794_s26 = spop %2369 }
 0x25b   : > { %v1507_v63 = vpop.permute.xlu0 %1506  ;;  %s3796_s27 = spop %2371 }
 0x25c   : > { %2427 = vpush %v1507_v63  ;;  %v1560_v8 = vpop.permute.xlu1 %1559  ;;  %v2266_v63 = vld [vmem:[%s3564_s25 + $0x20] sm:$0xff]  }
 0x25d   : > { %2429 = vpush %v1516_v62  ;;  %s3798_s21 = spop %2373  ;;  %v2265_v62 = vld [vmem:[%s3564_s25 + $0x18] sm:$0xff]  }
 0x25e   : > { %s3800_s12 = spop %2375 }
 0x25f   : > { %v1525_v11 = vpop.permute.xlu0 %1524 }
 0x260   : > { %2431 = vpush %v1525_v11  ;;  %v1578_v29 = vpop.permute.xlu1 %1577  ;;  %v1112_v11 = vstv %s3780_s19 }
 0x261   : > { %2433 = vpush %v3681_v16  ;;  %s3802_s18 = spop %2377 }
 0x262   : > { %2435 = vpush %v1560_v8  ;;  %s3804_s14 = spop %2379  ;;  %v3869_v8 = vunpack.c.h.bf16 %v2265_v62 }
 0x263   : > { %v1569_v33 = vpop.permute.xlu0 %1568 }
 0x264   : > { %2437 = vpush %v1569_v33  ;;  %v1596_v40 = vpop.permute.xlu1 %1595  ;;  %v1157_v33 = vstv %s3790_s30 }
 0x265   : > { %2439 = vpush %v1578_v29  ;;  %s3806_s9 = spop %2381  ;;  %v1148_v29 = vstv %s3788_s17 }
 0x266   : > { %s3808_s13 = spop %2383 }
 0x267   : > { %v1587_v42 = vpop.permute.xlu0 %1586  ;;  %s3810_s0 = spop %2385 }
 0x268   : > { %2441 = vpush %v1587_v42  ;;  %v1614_v43 = vpop.permute.xlu1 %1613  ;;  %v1206_v42 = vstv %s3796_s27 }
 0x269   : > { %2443 = vpush %v1596_v40  ;;  %s3812_s1 = spop %2387 }
 0x26a   : > { %s3814_s2 = spop %2389 }
 0x26b   : > { %v1605_v44 = vpop.permute.xlu0 %1604 }
 0x26c   : > { %2445 = vpush %v1605_v44 }
 0x26d   : > { %2447 = vpush %v1614_v43  ;;  %s3816_s3 = spop %2391 }
 0x26e   : > { %2449 = vpush %v3703_v20  ;;  %s3818_s4 = spop %2393 }
 0x26f   : > { %v1649_v45 = vpop.permute.xlu0 %1648 }
 0x270   : > { %2451 = vpush %v1649_v45  ;;  %v1215_v45 = vstv %s3798_s21 }
 0x271   : > { %s3820_s6 = spop %2395 }
 0x272   : > { %s3822_s8 = spop %2397 }
 0x273   : > { %v1667_v48 = vpop.permute.xlu0 %1666 }
 0x275   : > { %s3824_s10 = spop %2399 }
 0x276   : > { %4702 = sst [smem:[#allocation47_spill]] %s3824_s10  ;;  %s3826_s11 = spop %2401 }
 0x277   : > { %v1685_v50 = vpop.permute.xlu0 %1684  ;;  %s3828_s23 = spop %2403 }
 0x279   : > { %s3830_s24 = spop %2405 }
 0x27a   : > { %s3832_s16 = spop %2407 }
 0x27b   : > { %v1703_v52 = vpop.permute.xlu0 %1702  ;;  %4703 = sst [smem:[#allocation48_spill]] %s3832_s16 }
 0x27d   : > { %s3835_s15 = spop %2409 }
 0x27e   : > { %v2299_v0 = vpop.f32.mrb[0].mxu0  ;;  %v2309_v1 = vpop.f32.mrb[0].mxu1  ;;  %s3837_s22 = spop %2411 }
 0x27f   : > { %v754_v2 = vadd.f32 %v2299_v0, %v2182_v61  ;;  %v748_v3 = vpop.f32.mrb[1].mxu0  ;;  %v859_v4 = vadd.f32 %v2309_v1, %v2182_v61  ;;  %v853_v5 = vpop.f32.mrb[1].mxu1 }
 0x280   : > { %v749_v6 = vadd.f32 %v2182_v61, %v748_v3  ;;  %v854_v7 = vadd.f32 %v2182_v61, %v853_v5  ;;  %v1747_v53 = vpop.permute.xlu0 %1746  ;;  %v2267_v3 = vld [vmem:[%s3564_s25 + $0x28] sm:$0xff]  }
 0x281   : > { %vm768_vm3 = vcmp.ge.f32.partialorder %v754_v2, 0.0  ;;  %v772_v9 = vmul.f32 0.01, %v754_v2  ;;  %vm863_vm4 = vcmp.ge.f32.partialorder %v859_v4, 0.0  ;;  %v865_v10 = vmul.f32 0.01, %v859_v4  ;;  %s3843_s10 = spop %2413 }
 0x282   : > { %vm767_vm5 = vcmp.ge.f32.partialorder %v749_v6, 0.0  ;;  %v771_v12 = vmul.f32 0.01, %v749_v6  ;;  %v2302_v13 = vpop.f32.mrb[2].mxu0  ;;  %vm862_vm6 = vcmp.ge.f32.partialorder %v854_v7, 0.0  ;;  %4704 = sst [smem:[#allocation49_spill]] %s3843_s10  ;;  %s3850_s16 = spop %2415 }
 0x283   : > { %v776_v14 = vsel %vm768_vm3, %v754_v2, %v772_v9  ;;  %v764_v18 = vadd.f32 %v2302_v13, %v2182_v61  ;;  %v758_v19 = vpop.f32.mrb[3].mxu0  ;;  %v864_v21 = vmul.f32 0.01, %v854_v7  ;;  %v867_v23 = vsel %vm863_vm4, %v859_v4, %v865_v10  ;;  %v2268_v4 = vld [vmem:[%s3564_s25 + $0x30] sm:$0xff]   ;;  %s3860_s10 = spop %2417  ;;  %v2269_v9 = vld [vmem:[%s3564_s25 + $0x38] sm:$0xff]  }
 0x284   : > { %v759_v24 = vadd.f32 %v2182_v61, %v758_v19  ;;  %v775_v25 = vsel %vm767_vm5, %v749_v6, %v771_v12  ;;  %v1049_v28 = vmul.f32 %v2198_v22, %v867_v23  ;;  %v1765_v56 = vpop.permute.xlu0 %1764  ;;  %v1099_v61 = vstv %s3778_s29 }
 0x285   : > { %vm770_vm8 = vcmp.ge.f32.partialorder %v764_v18, 0.0  ;;  %v774_v30 = vmul.f32 0.01, %v764_v18  ;;  %2312 = vmatprep.mubr.msk.f32.mxu1 %vm869_vm2, %v775_v25  ;;  %v2346_v31 = vpack.c.bf16 %v776_v14, %v775_v25  ;;  %v866_v32 = vsel %vm862_vm6, %v854_v7, %v864_v21  ;;  %s3880_s29 = spop %2419 }
 0x286   : > { %vm769_vm9 = vcmp.ge.f32.partialorder %v759_v24, 0.0  ;;  %v773_v16 = vmul.f32 0.01, %v759_v24  ;;  %2313 = vmatmul.mubr.msk.f32.vlgmr.msra.gmra.mrb[2].mxu1 %vm869_vm2, %v776_v14  ;;  %v1048_v34 = vmul.f32 %v2198_v22, %v866_v32  ;;  %v1053_v35 = vsel %vm869_vm2, %v1049_v28, 0.0 }
 0x287   : > { %2348 = vmatpush3.bf16.xpose.msk.msra.mxu0 %vm3754_vm7, %v2346_v31  ;;  %v778_v37 = vsel %vm770_vm8, %v764_v18, %v774_v30  ;;  %1054 = vadd.xlane.f32.xlu1 %v1053_v35  ;;  %v3856_v2 = vunpack.c.l.bf16 %v2264_v59  ;;  %v3865_v6 = vunpack.c.h.bf16 %v2264_v59  ;;  %v3867_v7 = vunpack.c.l.bf16 %v2265_v62 }
 0x288   : > { %v777_v38 = vsel %vm769_vm9, %v759_v24, %v773_v16  ;;  %2349 = vmatprep.subr.bf16.mxu0 %v3111_v15  ;;  %v1050_v39 = vsel %vm869_vm2, %v1048_v34, 0.0  ;;  %v1658_v15 = vpop.permute.xlu1 %1657  ;;  %v1783_v58 = vpop.permute.xlu0 %1782  ;;  %v3876_v12 = vunpack.c.l.bf16 %v2266_v63  ;;  %v3878_v13 = vunpack.c.h.bf16 %v2266_v63 }
 0x289   : > { %2315 = vmatprep.mubr.msk.f32.mxu1 %vm869_vm2, %v777_v38  ;;  %v2350_v41 = vpack.c.bf16 %v778_v37, %v777_v38  ;;  %1051 = vadd.xlane.f32.xlu0 %v1050_v39  ;;  %2453 = vpush %v1658_v15  ;;  %v1121_v14 = vstv %s3782_s5  ;;  %v3883_v18 = vunpack.c.l.bf16 %v2267_v3  ;;  %v3885_v19 = vunpack.c.h.bf16 %v2267_v3 }
 0x28a   : > { %2316 = vmatmul.mubr.msk.f32.gmra.mrb[4].mxu1 %vm869_vm2, %v778_v37  ;;  %2455 = vpush %v1667_v48  ;;  %v3887_v21 = vunpack.c.l.bf16 %v2268_v4  ;;  %v1130_v22 = vstv %s3784_s20  ;;  %v1139_v23 = vstv %s3786_s28  ;;  %v3891_v24 = vunpack.c.h.bf16 %v2268_v4 }
 0x28b   : > { %2333 = vmatprep.mubr.msk.bf16.mxu1 %vm3112_vm1, %v4634_v17  ;;  %v3893_v25 = vunpack.c.l.bf16 %v2269_v9  ;;  %v3904_v30 = vunpack.c.h.bf16 %v2269_v9  ;;  %v3909_v31 = vmul.f32 %v3856_v2, %v1121_v14  ;;  %v3912_v32 = vmul.f32 %v3865_v6, %v1121_v14 }
 0x28c   : > { %v1676_v47 = vpop.permute.xlu1 %1675  ;;  %v1166_v16 = vstv %s3792_s7  ;;  %v3917_v34 = vmul.f32 %v3867_v7, %v1130_v22  ;;  %v3920_v35 = vmul.f32 %v3869_v8, %v1130_v22  ;;  %v3923_v37 = vmul.f32 %v3876_v12, %v1139_v23 }
 0x28d   : > { %2457 = vpush %v1676_v47  ;;  %4705 = vst [vmem:[#allocation50_spill] sm:$0xff] %v3904_v30  ;;  %v1193_v38 = vstv %s3794_s26  ;;  %v3929_v39 = vmul.f32 %v3878_v13, %v1139_v23  ;;  %v3932_v40 = vmul.f32 %v3883_v18, %v1148_v29  ;;  %v3941_v43 = vmul.f32 %v3887_v21, %v1157_v33 }
 0x28e   : > { %2459 = vpush %v1685_v50  ;;  %v3944_v44 = vmul.f32 %v3891_v24, %v1157_v33  ;;  %v3947_v15 = vmul.f32 %v3893_v25, %v1166_v16  ;;  %v1224_v48 = vstv %s3800_s12  ;;  %v1282_v59 = vstv %s3810_s0  ;;  %s4715_s0 = sld [smem:[#allocation47_spill]] }
 0x28f   : > { %2352 = vmatpush3.bf16.xpose.msk.msra.mxu0 %vm3754_vm7, %v2350_v41  ;;  %v3935_v41 = vmul.f32 %v3885_v19, %v1148_v29  ;;  %4706 = vst [vmem:[#allocation51_spill] sm:$0xff] %v3941_v43  ;;  %v1295_v3 = vstv %s3812_s1  ;;  %v1304_v14 = vstv %s3814_s2  ;;  %v1313_v29 = vstv %s3816_s3  ;;  %s4719_s3 = sld [smem:[#allocation48_spill]] }
 0x290   : > { %v1694_v49 = vpop.permute.xlu1 %1693  ;;  %4707 = vst [vmem:[#allocation52_spill] sm:$0xff] %v3944_v44  ;;  %4708 = vst [vmem:[#allocation53_spill] sm:$0xff] %v3947_v15  ;;  %v1322_v33 = vstv %s3818_s4  ;;  %v1371_v17 = vstv %s3826_s11 }
 0x291   : > { %2461 = vpush %v1694_v49  ;;  %v1233_v49 = vstv %s3802_s18 }
 0x292   : > { %2463 = vpush %v1703_v52 }
 0x293   : > { %2465 = vpush %v3718_v27  ;;  %v2228_v27 = vld [vmem:[%s3564_s25] sm:$0xff]  }
 0x294   : > { %v1738_v51 = vpop.permute.xlu1 %1737  ;;  %v3845_v60 = vunpack.c.h.bf16 %v2228_v27 }
 0x295   : > { %2467 = vpush %v1738_v51 }
 0x296   : > { %2327 = vmatmul.mubr.msk.f32.vlgmr.msra.gmra.mrb[4].mxu0 %vm869_vm2, %v967_v46  ;;  %2469 = vpush %v1747_v53  ;;  %v3873_v10 = vmul.f32 %v3845_v60, %v1099_v61  ;;  %v3951_v46 = vmul.f32 %v3904_v30, %v1166_v16  ;;  %v3961_v50 = vmul.f32 %v3845_v60, %v1193_v38 }
 0x297   : > { %v3973_v53 = vmul.f32 %v3856_v2, %v1215_v45  ;;  %v4025_v16 = vmul.f32 %v3845_v60, %v1282_v59 }
 0x298   : > { %1807 = vperm.xlu1 %2663, %v3737_v36   ;;  %v1756_v20 = vpop.permute.xlu1 %1755  ;;  %4709 = vst [vmem:[#allocation54_spill] sm:$0xff] %v3951_v46 }
 0x299   : > { %2471 = vpush %v1756_v20  ;;  %v1242_v20 = vstv %s3804_s14 }
 0x29a   : > { %2473 = vpush %v1765_v56  ;;  %v1251_v56 = vstv %s3806_s9  ;;  %v3996_v62 = vmul.f32 %v3883_v18, %v1242_v20  ;;  %v3999_v63 = vmul.f32 %v3885_v19, %v1242_v20  ;;  %v1340_v20 = vstv %s3822_s8 }
 0x29b   : > { %v4003_v4 = vmul.f32 %v3887_v21, %v1251_v56  ;;  %v4006_v9 = vmul.f32 %v3891_v24, %v1251_v56  ;;  %v1349_v56 = vstv %s4715_s0 }
 0x29c   : > { %v1774_v55 = vpop.permute.xlu1 %1773  ;;  %4711 = vst [vmem:[#allocation56_spill] sm:$0xff] %v3996_v62  ;;  %4712 = vst [vmem:[#allocation57_spill] sm:$0xff] %v3999_v63  ;;  %v4073_v46 = vmul.f32 %v3893_v25, %v1349_v56  ;;  %v1473_v62 = vstv %s3880_s29 }
 0x29d   : > { %2475 = vpush %v1774_v55  ;;  %v3976_v55 = vmul.f32 %v3865_v6, %v1215_v45  ;;  %4713 = vst [vmem:[#allocation58_spill] sm:$0xff] %v4003_v4  ;;  %v1331_v45 = vstv %s3820_s6  ;;  %s4726_s6 = sld [smem:[#allocation49_spill]]  ;;  %v4070_v4 = vmul.f32 %v3891_v24, %v1340_v20 }
 0x29e   : > { %2477 = vpush %v1783_v58  ;;  %v3981_v58 = vmul.f32 %v3867_v7, %v1224_v48  ;;  %4714 = vst [vmem:[#allocation59_spill] sm:$0xff] %v4006_v9  ;;  %v1384_v9 = vstv %s3828_s23 }
 0x29f   : > { %1718 = vperm.xlu0 %2662, %v3737_v36   ;;  %v3839_v36 = vunpack.c.l.bf16 %v2228_v27  ;;  %v3984_v27 = vmul.f32 %v3869_v8, %v1224_v48  ;;  %v4035_v48 = vmul.f32 %v3856_v2, %v1304_v14  ;;  %4727 = vst [vmem:[#allocation69_spill] sm:$0xff] %v4070_v4  ;;  %4728 = vst [vmem:[#allocation70_spill] sm:$0xff] %v4073_v46 }
 0x2a0   : > { %v1792_v57 = vpop.permute.xlu1 %1791 }
 0x2a1   : > { %2479 = vpush %v1792_v57  ;;  %v3863_v5 = vmul.f32 %v3839_v36, %v1099_v61  ;;  %v3954_v47 = vmul.f32 %v3839_v36, %v1193_v38  ;;  %v1260_v57 = vstv %s3808_s13  ;;  %v3993_v61 = vmul.f32 %v3878_v13, %v1233_v49 }
 0x2a2   : > { %v4015_v22 = vmul.f32 %v3904_v30, %v1260_v57  ;;  %v4018_v23 = vmul.f32 %v3839_v36, %v1282_v59  ;;  %v4048_v59 = vmul.f32 %v3869_v8, %v1313_v29 }
 0x2a3   : > { %2664 = vset.pattern.permute.xlu0 %v3121_v54  ;;  %v2263_v54 = vld [vmem:[%s3564_s25 + $0x8] sm:$0xff]   ;;  %s3895_s25 = spop %2421  ;;  %4710 = vst [vmem:[#allocation55_spill] sm:$0xff] %v3993_v61 }
 0x2a4   : > { %v3852_v0 = vunpack.c.l.bf16 %v2263_v54  ;;  %v3854_v1 = vunpack.c.h.bf16 %v2263_v54  ;;  %s3906_s19 = spop %2423  ;;  %v3987_v54 = vmul.f32 %v3876_v12, %v1233_v49  ;;  %4717 = vst [vmem:[#allocation61_spill] sm:$0xff] %v4015_v22  ;;  %v4038_v49 = vmul.f32 %v3865_v6, %v1304_v14  ;;  %4720 = vst [vmem:[#allocation63_spill] sm:$0xff] %v4048_v59 }
 0x2a5   : > { %s3926_s5 = spop %2425  ;;  %v4057_v14 = vmul.f32 %v3878_v13, %v1322_v33  ;;  %v4060_v22 = vmul.f32 %v3883_v18, %v1331_v45 }
 0x2a6   : > { %v3898_v26 = vmul.f32 %v3852_v0, %v1112_v11  ;;  %v3901_v28 = vmul.f32 %v3854_v1, %v1112_v11  ;;  %s3938_s20 = spop %2427  ;;  %v3964_v51 = vmul.f32 %v3852_v0, %v1206_v42  ;;  %v3967_v52 = vmul.f32 %v3854_v1, %v1206_v42 }
 0x2a7   : > { %s3958_s28 = spop %2429  ;;  %v4009_v11 = vmul.f32 %v3893_v25, %v1260_v57  ;;  %v4028_v38 = vmul.f32 %v3852_v0, %v1295_v3  ;;  %v4031_v42 = vmul.f32 %v3854_v1, %v1295_v3  ;;  %v4045_v57 = vmul.f32 %v3867_v7, %v1313_v29  ;;  %4722 = vst [vmem:[#allocation65_spill] sm:$0xff] %v4057_v14 }
 0x2a8   : > { %s3970_s17 = spop %2431  ;;  %v4051_v3 = vmul.f32 %v3876_v12, %v1322_v33  ;;  %4723 = vst [vmem:[#allocation66_spill] sm:$0xff] %v4060_v22  ;;  %v4067_v29 = vmul.f32 %v3887_v21, %v1340_v20  ;;  %v1393_v33 = vstv %s3830_s24  ;;  %v4079_v22 = vmul.f32 %v3904_v30, %v1349_v56 }
 0x2a9   : > { %s3990_s30 = spop %2433  ;;  %4716 = vst [vmem:[#allocation60_spill] sm:$0xff] %v4009_v11  ;;  %4718 = vst [vmem:[#allocation62_spill] sm:$0xff] %v4045_v57  ;;  %v4063_v11 = vmul.f32 %v3885_v19, %v1331_v45  ;;  %v4082_v45 = vmul.f32 %v3839_v36, %v1371_v17  ;;  %v4089_v20 = vmul.f32 %v3845_v60, %v1371_v17  ;;  %v1420_v56 = vstv %s3837_s22 }
 0x2aa   : > { %s4012_s13 = spop %2435  ;;  %4721 = vst [vmem:[#allocation64_spill] sm:$0xff] %v4051_v3  ;;  %4725 = vst [vmem:[#allocation68_spill] sm:$0xff] %v4067_v29  ;;  %v1411_v29 = vstv %s3835_s15  ;;  %v4092_v4 = vmul.f32 %v3852_v0, %v1384_v9  ;;  %v4095_v46 = vmul.f32 %v3854_v1, %v1384_v9  ;;  %v4102_v15 = vmul.f32 %v3865_v6, %v1393_v33 }
 0x2ab   : > { %s4022_s1 = spop %2437  ;;  %4724 = vst [vmem:[#allocation67_spill] sm:$0xff] %v4063_v11  ;;  %4729 = vst [vmem:[#allocation71_spill] sm:$0xff] %v4079_v22  ;;  %v1402_v11 = vstv %s4719_s3  ;;  %v4099_v22 = vmul.f32 %v3856_v2, %v1393_v33  ;;  %v1429_v14 = vstv %s4726_s6  ;;  %v1438_v3 = vstv %s3850_s16 }
 0x2ac   : > { %s4042_s2 = spop %2439  ;;  %4731 = vst [vmem:[#allocation73_spill] sm:$0xff] %v4102_v15  ;;  %v4109_v17 = vmul.f32 %v3867_v7, %v1402_v11  ;;  %v4112_v63 = vmul.f32 %v3869_v8, %v1402_v11  ;;  %v4115_v9 = vmul.f32 %v3876_v12, %v1411_v29  ;;  %v4121_v33 = vmul.f32 %v3878_v13, %v1411_v29 }
 0x2ad   : > { %s4054_s4 = spop %2441  ;;  %4730 = vst [vmem:[#allocation72_spill] sm:$0xff] %v4099_v22  ;;  %v1460_v22 = vstv %s3860_s10  ;;  %v4124_v15 = vmul.f32 %v3883_v18, %v1420_v56  ;;  %v4131_v11 = vmul.f32 %v3887_v21, %v1429_v14  ;;  %v1482_v29 = vstv %s3895_s25 }
 0x2ae   : > { %s4076_s8 = spop %2443  ;;  %4732 = vst [vmem:[#allocation74_spill] sm:$0xff] %v4109_v17  ;;  %4733 = vst [vmem:[#allocation75_spill] sm:$0xff] %v4112_v63  ;;  %v4127_v17 = vmul.f32 %v3885_v19, %v1420_v56  ;;  %v4137_v63 = vmul.f32 %v3893_v25, %v1438_v3  ;;  %v4146_v56 = vmul.f32 %v3839_v36, %v1460_v22 }
 0x2af   : > { %s4086_s11 = spop %2445  ;;  %4734 = vst [vmem:[#allocation76_spill] sm:$0xff] %v4115_v9  ;;  %4735 = vst [vmem:[#allocation77_spill] sm:$0xff] %v4121_v33  ;;  %v4134_v9 = vmul.f32 %v3891_v24, %v1429_v14  ;;  %v4151_v33 = vmul.f32 %v3845_v60, %v1460_v22  ;;  %v4154_v14 = vmul.f32 %v3852_v0, %v1473_v62  ;;  %v1527_v22 = vstv %s3970_s17 }
 0x2b0   : > { %s4106_s23 = spop %2447  ;;  %4736 = vst [vmem:[#allocation78_spill] sm:$0xff] %v4124_v15  ;;  %4737 = vst [vmem:[#allocation79_spill] sm:$0xff] %v4127_v17  ;;  %v4143_v15 = vmul.f32 %v3904_v30, %v1438_v3  ;;  %v1491_v17 = vstv %s3906_s19  ;;  %v4163_v3 = vmul.f32 %v3856_v2, %v1482_v29  ;;  %v1598_v44 = vstv %s4076_s8 }
 0x2b1   : > { %s4118_s24 = spop %2449  ;;  %4738 = vst [vmem:[#allocation80_spill] sm:$0xff] %v4131_v11  ;;  %4739 = vst [vmem:[#allocation81_spill] sm:$0xff] %v4134_v9  ;;  %v1500_v11 = vstv %s3926_s5  ;;  %v1509_v9 = vstv %s3938_s20  ;;  %v1607_v43 = vstv %s4086_s11  ;;  %s4871_s5 = sld [smem:[#allocation46_spill]] }
 0x2b2   : > { %4740 = vst [vmem:[#allocation82_spill] sm:$0xff] %v4137_v63  ;;  %s4140_s10 = spop %2451  ;;  %4741 = vst [vmem:[#allocation83_spill] sm:$0xff] %v4143_v15  ;;  %v4157_v63 = vmul.f32 %v3854_v1, %v1473_v62  ;;  %v4166_v15 = vmul.f32 %v3865_v6, %v1482_v29  ;;  %v4176_v62 = vmul.f32 %v3869_v8, %v1491_v17  ;;  %s4872_s20 = sld [smem:[#allocation45_spill]] }
 0x2b3   : > { %4742 = vst [vmem:[#allocation84_spill] sm:$0xff] %v4146_v56  ;;  %4743 = vst [vmem:[#allocation85_spill] sm:$0xff] %v4151_v33  ;;  %v1518_v56 = vstv %s3958_s28  ;;  %v4183_v29 = vmul.f32 %v3878_v13, %v1500_v11  ;;  %v4189_v33 = vmul.f32 %v3885_v19, %v1509_v9 }
 0x2b4   : > { %4744 = vst [vmem:[#allocation86_spill] sm:$0xff] %v4154_v14  ;;  %4745 = vst [vmem:[#allocation87_spill] sm:$0xff] %v4157_v63  ;;  %v4173_v14 = vmul.f32 %v3867_v7, %v1491_v17  ;;  %v4179_v63 = vmul.f32 %v3876_v12, %v1500_v11  ;;  %v4195_v17 = vmul.f32 %v3887_v21, %v1518_v56  ;;  %v1571_v11 = vstv %s4022_s1 }
 0x2b5   : > { %4746 = vst [vmem:[#allocation88_spill] sm:$0xff] %v4163_v3  ;;  %4747 = vst [vmem:[#allocation89_spill] sm:$0xff] %v4166_v15  ;;  %v1549_v3 = vstv %s3990_s30  ;;  %v4186_v15 = vmul.f32 %v3883_v18, %v1509_v9  ;;  %v4207_v9 = vmul.f32 %v3904_v30, %v1527_v22  ;;  %s4875_s30 = sld [smem:[#allocation39_spill]] }
 0x2b6   : > { %4748 = vst [vmem:[#allocation90_spill] sm:$0xff] %v4173_v14  ;;  %4749 = vst [vmem:[#allocation91_spill] sm:$0xff] %v4176_v62  ;;  %v1562_v14 = vstv %s4012_s13  ;;  %v4198_v62 = vmul.f32 %v3891_v24, %v1518_v56  ;;  %v4215_v56 = vmul.f32 %v3845_v60, %v1549_v3  ;;  %s4876_s13 = sld [smem:[#allocation43_spill]] }
 0x2b7   : > { %4750 = vst [vmem:[#allocation92_spill] sm:$0xff] %v4179_v63  ;;  %4751 = vst [vmem:[#allocation93_spill] sm:$0xff] %v4183_v29  ;;  %v4201_v63 = vmul.f32 %v3893_v25, %v1527_v22  ;;  %v1589_v29 = vstv %s4054_s4  ;;  %s4877_s4 = sld [smem:[#allocation142_spill]] }
 0x2b8   : > { %4752 = vst [vmem:[#allocation94_spill] sm:$0xff] %v4186_v15  ;;  %4753 = vst [vmem:[#allocation95_spill] sm:$0xff] %v4189_v33  ;;  %v4210_v33 = vmul.f32 %v3839_v36, %v1549_v3  ;;  %v1580_v15 = vstv %s4042_s2  ;;  %s4873_s28 = sshll.u32 %s4872_s20, 4  ;;  %s1928_s8 = scalar_lea.sflag [#allocation4], %s4872_s20 }
 0x2b9   : > { %4754 = vst [vmem:[#allocation96_spill] sm:$0xff] %v4195_v17  ;;  %4755 = vst [vmem:[#allocation97_spill] sm:$0xff] %v4198_v62  ;;  %v4218_v62 = vmul.f32 %v3852_v0, %v1562_v14  ;;  %s4536_s17 = scalar_lea.vmem [#allocation22], %s4873_s28 }
 0x2ba   : > { %s4160_s16 = spop %2453  ;;  %4756 = vst [vmem:[#allocation98_spill] sm:$0xff] %v4201_v63  ;;  %4757 = vst [vmem:[#allocation99_spill] sm:$0xff] %v4207_v9  ;;  %v4221_v63 = vmul.f32 %v3854_v1, %v1562_v14  ;;  %v4227_v9 = vmul.f32 %v3856_v2, %v1571_v11  ;;  %v4239_v14 = vmul.f32 %v3869_v8, %v1580_v15  ;;  %s1941_s1 = sshll.u32 %s4536_s17, 4  ;;  %s4550_s1 = int_to_ptr.vmem [resolvable:$true] %s1941_s1 }
 0x2bb   : > { %s4170_s15 = spop %2455  ;;  %4758 = vst [vmem:[#allocation100_spill] sm:$0xff] %v4210_v33  ;;  %4759 = vst [vmem:[#allocation101_spill] sm:$0xff] %v4215_v56  ;;  %v4230_v33 = vmul.f32 %v3865_v6, %v1571_v11  ;;  %v1616_v56 = vstv %s4106_s23  ;;  %v4246_v11 = vmul.f32 %v3878_v13, %v1589_v29  ;;  %s2226_s0 = sshll.u32 %s4875_s30, 8 }
 0x2bc   : > { %4760 = vst [vmem:[#allocation102_spill] sm:$0xff] %v4218_v62  ;;  %4761 = vst [vmem:[#allocation103_spill] sm:$0xff] %v4221_v63  ;;  %v4236_v62 = vmul.f32 %v3867_v7, %v1580_v15  ;;  %v4242_v63 = vmul.f32 %v3876_v12, %v1589_v29  ;;  %v1651_v29 = vstv %s4140_s10  ;;  %v4273_v59 = vmul.f32 %v3904_v30, %v1616_v56  ;;  %s2985_s11 = scalar_lea.vmem %s4550_s1, 256  ;;  %p4878_p10 = scmp.ne.s32.totalorder %s4876_s13, 0 }
 0x2bd   : > { %4762 = vst [vmem:[#allocation104_spill] sm:$0xff] %v4227_v9  ;;  %4763 = vst [vmem:[#allocation105_spill] sm:$0xff] %v4230_v33  ;;  %v4249_v33 = vmul.f32 %v3883_v18, %v1598_v44  ;;  %v1669_v9 = vstv %s4170_s15  ;;  %v4289_v57 = vmul.f32 %v3854_v1, %v1651_v29  ;;  %s4548_s6 = scalar_lea.hbm %s4877_s4, %s2226_s0  ;;  %p2986_p9 = scmp.ne.s32.totalorder %s4550_s1, %s2985_s11 }
 0x2be   : > { %s4192_s22 = spop %2457  ;;  %4764 = vst [vmem:[#allocation106_spill] sm:$0xff] %v4236_v62  ;;  %4765 = vst [vmem:[#allocation107_spill] sm:$0xff] %v4239_v14  ;;  %v4261_v14 = vmul.f32 %v3891_v24, %v1607_v43  ;;  %v4772_v62 = vmov 0.0   ;;  %s3122_s23 = smov [#allocation22]  }
 0x2bf   : > { %s4204_s7 = spop %2459  ;;  %4766 = vst [vmem:[#allocation108_spill] sm:$0xff] %v4242_v63  ;;  %4767 = vst [vmem:[#allocation109_spill] sm:$0xff] %v4246_v11  ;;  %v4258_v63 = vmul.f32 %v3887_v21, %v1607_v43  ;;  %p2987_p3 = pnand %p2986_p9, %p4878_p10 }
 0x2c0   : > { %4768 = vst [vmem:[#allocation110_spill] sm:$0xff] %v4249_v33  ;;  %4771 = vst [vmem:[#allocation113_spill] sm:$0xff] %v4261_v14  ;;  %v1660_v33 = vstv %s4160_s16  ;;  %v1678_v14 = vstv %s4192_s22 }
 0x2c1   : > { %4770 = vst [vmem:[#allocation112_spill] sm:$0xff] %v4258_v63  ;;  %4774 = vst [vmem:[#allocation115_spill] sm:$0xff] %v4273_v59  ;;  %v1687_v63 = vstv %s4204_s7  ;;  %p2988_p1 = pneg %p2987_p3 }
 0x2c2   : > { %s4224_s26 = spop %2461  ;;  %4778 = vst [vmem:[#allocation119_spill] sm:$0xff] %v4289_v57  ;;  %v4307_v57 = vmul.f32 %v3876_v12, %v1678_v14 }
 0x2c3   : > { %s4233_s27 = spop %2463 }
 0x2c4   : > { %s4255_s21 = spop %2465  ;;  %4783 = vst [vmem:[#allocation124_spill] sm:$0xff] %v4307_v57 }
 0x2c6   : > { %s4270_s12 = spop %2467 }
 0x2c7   : > { %s4280_s18 = spop %2469 }
 0x2c8   : > { %v1749_v57 = vstv %s4280_s18 }
 0x2ca   : > { %s2472_s14 = spop %2471 }
 0x2cb   : > { %s2474_s9 = spop %2473 }
 0x2ce   : > { %s2476_s29 = spop %2475 }
 0x2cf   : > { %s2478_s25 = spop %2477 }
 0x2d0   : > { %v1785_v30 = vstv %s2478_s25 }
 0x2d2   : > { %s4369_s19 = spop %2479 }
 0x359   : > { %v2314_v17 = vpop.f32.mrb[2].mxu1 }
 0x35a   : > { %v948_v22 = vpop.f32.mrb[3].mxu1 }
 0x35b   : > { %v1858_v3 = vpack.c.bf16 %v2314_v17, %v948_v22  ;;  %v4252_v17 = vmul.f32 %v3885_v19, %v1598_v44  ;;  %v1638_v22 = vstv %s4118_s24  ;;  %v1103_v44 = vlaneseq  ;;  %s2989_s24 = sshll.u32 %s3122_s23, 4  ;;  %s2990_s24 = int_to_ptr.vmem [resolvable:$false] %s2989_s24 }
 0x35c   : > { %v4276_v43 = vmul.f32 %v3839_v36, %v1638_v22  ;;  %s2991_s10 = scalar_lea.vmem %s2990_s24, 512  ;;  %p2992_p0 = scmp.lt.s32.totalorder %s4550_s1, %s2990_s24 }
 0x35d   : > { %4769 = vst [vmem:[#allocation111_spill] sm:$0xff] %v4252_v17  ;;  %v2317_v15 = vpop.f32.mrb[4].mxu1  ;;  %2330 = vmatpush3.bf16.msra.mxu1 %v1858_v3  ;;  %v4266_v17 = vmul.f32 %v3893_v25, %v1616_v56  ;;  %v1696_v56 = vstv %s4224_s26  ;;  %v4301_v59 = vshrl.u32 %v1103_v44, 7  ;;  %v1727_v44 = vstv %s4255_s21  ;;  %p2993_p2 = scmp.lt.s32.totalorder %s2991_s10, %s2985_s11 }
 0x35e   : > { %v958_v11 = vpop.f32.mrb[5].mxu1  ;;  %2331 = vmatprep.subr.bf16.mxu1 %v4772_v62  ;;  %4775 = vst [vmem:[#allocation116_spill] sm:$0xff] %v4276_v43  ;;  %v4283_v62 = vmul.f32 %v3845_v60, %v1638_v22  ;;  %v4299_v22 = vmul.f32 %v3867_v7, %v1669_v9  ;;  %v1776_v43 = vstv %s2476_s29 }
 0x35f   : > { %4773 = vst [vmem:[#allocation114_spill] sm:$0xff] %v4266_v17  ;;  %v1859_v3 = vpack.c.bf16 %v2317_v15, %v958_v11  ;;  %v4286_v17 = vmul.f32 %v3852_v0, %v1651_v29  ;;  %v4293_v11 = vmul.f32 %v3856_v2, %v1660_v33  ;;  %v4296_v15 = vmul.f32 %v3865_v6, %v1660_v33  ;;  %p2994_p5 = por %p2993_p2, %p2992_p0 }
 0x360   : > { %4776 = vst [vmem:[#allocation117_spill] sm:$0xff] %v4283_v62  ;;  %4781 = vst [vmem:[#allocation122_spill] sm:$0xff] %v4299_v22  ;;  %v4304_v29 = vmul.f32 %v3869_v8, %v1669_v9  ;;  %v4316_v33 = vmul.f32 %v3885_v19, %v1687_v63  ;;  %v4319_v22 = vmul.f32 %v3887_v21, %v1696_v56 }
 0x361   : > { %4777 = vst [vmem:[#allocation118_spill] sm:$0xff] %v4286_v17  ;;  %2332 = vmatpush3.bf16.msra.mxu1 %v1859_v3  ;;  %4779 = vst [vmem:[#allocation120_spill] sm:$0xff] %v4293_v11  ;;  %v4310_v3 = vmul.f32 %v3878_v13, %v1678_v14  ;;  %v4313_v11 = vmul.f32 %v3883_v18, %v1687_v63  ;;  %v4324_v9 = vmul.f32 %v3891_v24, %v1696_v56  ;;  %p2995_p11 = pnand %p2994_p5, %p2988_p1 }
 0x362   : > { %4780 = vst [vmem:[#allocation121_spill] sm:$0xff] %v4296_v15  ;;  %4782 = vst [vmem:[#allocation123_spill] sm:$0xff] %v4304_v29  ;;  %v1740_v15 = vstv %s4270_s12  ;;  %v1758_v17 = vstv %s2472_s14  ;;  %v1767_v14 = vstv %s2474_s9  ;;  %v1288_v63 = vsub.s32 2, %v4301_v59 }
 0x363   : > { %4784 = vst [vmem:[#allocation125_spill] sm:$0xff] %v4310_v3  ;;  %4785 = vst [vmem:[#allocation126_spill] sm:$0xff] %v4313_v11  ;;  %v1105_v3 = vsub.s32 0, %v4301_v59  ;;  %v1199_v11 = vsub.s32 1, %v4301_v59  ;;  %v1742_v62 = vmul.f32 %v3852_v0, %v1740_v15  ;;  %v1743_v56 = vmul.f32 %v3854_v1, %v1740_v15 }
 0x364   : > { %4786 = vst [vmem:[#allocation127_spill] sm:$0xff] %v4316_v33  ;;  %4787 = vst [vmem:[#allocation128_spill] sm:$0xff] %v4319_v22  ;;  %v1729_v33 = vmul.f32 %v3839_v36, %v1727_v44  ;;  %v1730_v22 = vmul.f32 %v3845_v60, %v1727_v44  ;;  %v4336_v29 = vmul.f32 %v3856_v2, %v1749_v57  ;;  %v1377_v1 = vsub.s32 3, %v4301_v59 }
 0x365   : > { %4788 = vst [vmem:[#allocation129_spill] sm:$0xff] %v4324_v9  ;;  %v4339_v9 = vmul.f32 %v3865_v6, %v1749_v57  ;;  %v4342_v61 = vmul.f32 %v3867_v7, %v1758_v17  ;;  %v4345_v36 = vmul.f32 %v3869_v8, %v1758_v17  ;;  %v4348_v60 = vmul.f32 %v3876_v12, %v1767_v14 }
 0x366   : > { %v4354_v2 = vmul.f32 %v3878_v13, %v1767_v14  ;;  %v4360_v8 = vmul.f32 %v3883_v18, %v1776_v43  ;;  %v4363_v12 = vmul.f32 %v3885_v19, %v1776_v43  ;;  %v4366_v17 = vmul.f32 %v3887_v21, %v1785_v30 }
 0x367   : > { %v1733_v44 = vsub.s32 7, %v4301_v59  ;;  %v4376_v14 = vmul.f32 %v3891_v24, %v1785_v30 }
 0x369   : > { %v4350_v0 = vpop.f32.mrb[4].mxu0 }
 0x36a   : > { %v1106_v6 = vrot.slane %v4350_v0, %v1105_v3  ;;  %v1200_v57 = vrot.slane %v4350_v0, %v1199_v11  ;;  %v1289_v7 = vrot.slane %v4350_v0, %v1288_v63  ;;  %v2328_v15 = vpop.f32.mrb[5].mxu0  ;;  %v1378_v43 = vrot.slane %v4350_v0, %v1377_v1 }
 0x36b   : > { %v1734_v30 = vrot.slane %v4350_v0, %v1733_v44 }
 0x36c   : > { %v1107_v13 = vadd.f32 %v1106_v6, %v3863_v5  ;;  %v1108_v11 = vadd.f32 %v1106_v6, %v3873_v10  ;;  %v1201_v3 = vadd.f32 %v1200_v57, %v3954_v47  ;;  %v1202_v18 = vadd.f32 %v1200_v57, %v3961_v50 }
 0x36d   : > { %v1290_v19 = vadd.f32 %v1289_v7, %v4018_v23  ;;  %v1291_v21 = vadd.f32 %v1289_v7, %v4025_v16  ;;  %v1794_v6 = vstv %s4369_s19  ;;  %v1735_v7 = vadd.f32 %v1734_v30, %v1729_v33  ;;  %v4789_v33 = vld [vmem:[#allocation55_spill] sm:$0xff] }
 0x36e   : > { %v1116_v63 = vadd.f32 %v3898_v26, %v1107_v13  ;;  %v1117_v5 = vadd.f32 %v3901_v28, %v1108_v11  ;;  %v1210_v10 = vadd.f32 %v3964_v51, %v1201_v3  ;;  %v1211_v47 = vadd.f32 %v3967_v52, %v1202_v18  ;;  %v4790_v18 = vld [vmem:[#allocation62_spill] sm:$0xff] }
 0x36f   : > { %v1299_v50 = vadd.f32 %v4028_v38, %v1290_v19  ;;  %v1300_v24 = vadd.f32 %v4031_v42, %v1291_v21  ;;  %v1379_v28 = vadd.f32 %v1378_v43, %v4082_v45  ;;  %v1380_v51 = vadd.f32 %v1378_v43, %v4089_v20  ;;  %v4791_v19 = vld [vmem:[#allocation63_spill] sm:$0xff] }
 0x370   : > { %v1125_v23 = vadd.f32 %v3909_v31, %v1116_v63  ;;  %v1126_v16 = vadd.f32 %v3912_v32, %v1117_v5  ;;  %v1219_v26 = vadd.f32 %v3973_v53, %v1210_v10  ;;  %v1220_v1 = vadd.f32 %v3976_v55, %v1211_v47  ;;  %v4792_v43 = vld [vmem:[#allocation51_spill] sm:$0xff]  ;;  %v4794_v5 = vld [vmem:[#allocation56_spill] sm:$0xff]  ;;  %v4795_v10 = vld [vmem:[#allocation57_spill] sm:$0xff] }
 0x371   : > { %v1466_v52 = vsub.s32 4, %v4301_v59  ;;  %v1555_v38 = vsub.s32 5, %v4301_v59  ;;  %v4400_v42 = vmul.f32 %v3893_v25, %v1794_v6  ;;  %v1644_v53 = vsub.s32 6, %v4301_v59  ;;  %v4796_v47 = vld [vmem:[#allocation64_spill] sm:$0xff] }
 0x372   : > { %v1134_v31 = vadd.f32 %v3917_v34, %v1125_v23  ;;  %v1135_v32 = vadd.f32 %v3920_v35, %v1126_v16  ;;  %v1228_v55 = vadd.f32 %v3981_v58, %v1219_v26  ;;  %v1229_v45 = vadd.f32 %v3984_v27, %v1220_v1  ;;  %v4798_v16 = vld [vmem:[#allocation53_spill] sm:$0xff]  ;;  %v4799_v26 = vld [vmem:[#allocation54_spill] sm:$0xff] }
 0x373   : > { %v1308_v20 = vadd.f32 %v4035_v48, %v1299_v50  ;;  %v1309_v57 = vadd.f32 %v4038_v49, %v1300_v24  ;;  %v1736_v15 = vadd.f32 %v1734_v30, %v1730_v22  ;;  %v1388_v34 = vadd.f32 %v4092_v4, %v1379_v28  ;;  %v4797_v50 = vld [vmem:[#allocation65_spill] sm:$0xff]  ;;  %v4800_v1 = vld [vmem:[#allocation58_spill] sm:$0xff] }
 0x374   : > { %v1143_v44 = vadd.f32 %v3923_v37, %v1134_v31  ;;  %v1144_v13 = vadd.f32 %v3929_v39, %v1135_v32  ;;  %v1389_v35 = vadd.f32 %v4095_v46, %v1380_v51  ;;  %v1467_v11 = vrot.slane %v4350_v0, %v1466_v52  ;;  %v4801_v51 = vld [vmem:[#allocation59_spill] sm:$0xff] }
 0x375   : > { %v1556_v58 = vrot.slane %v4350_v0, %v1555_v38  ;;  %v1744_v3 = vadd.f32 %v1742_v62, %v1735_v7  ;;  %v1745_v27 = vadd.f32 %v1743_v56, %v1736_v15  ;;  %v1237_v22 = vadd.f32 %v3987_v54, %v1228_v55  ;;  %v4793_v62 = vld [vmem:[#allocation52_spill] sm:$0xff]  ;;  %v4802_v38 = vld [vmem:[#allocation66_spill] sm:$0xff]  ;;  %v4803_v32 = vld [vmem:[#allocation67_spill] sm:$0xff] }
 0x376   : > { %v1152_v48 = vadd.f32 %v3932_v40, %v1143_v44  ;;  %v1153_v49 = vadd.f32 %v3935_v41, %v1144_v13  ;;  %v1238_v37 = vadd.f32 %v4789_v33, %v1229_v45  ;;  %v1317_v39 = vadd.f32 %v4790_v18, %v1308_v20  ;;  %v4804_v45 = vld [vmem:[#allocation72_spill] sm:$0xff]  ;;  %v4807_v13 = vld [vmem:[#allocation61_spill] sm:$0xff] }
 0x377   : > { %v1318_v4 = vadd.f32 %v4791_v19, %v1309_v57  ;;  %v1753_v46 = vadd.f32 %v4336_v29, %v1744_v3  ;;  %v1754_v21 = vadd.f32 %v4339_v9, %v1745_v27  ;;  %v1246_v40 = vadd.f32 %v4794_v5, %v1237_v22  ;;  %v4805_v57 = vld [vmem:[#allocation73_spill] sm:$0xff]  ;;  %v4806_v15 = vld [vmem:[#allocation60_spill] sm:$0xff]  ;;  %v4814_v5 = vld [vmem:[#allocation70_spill] sm:$0xff] }
 0x378   : > { %v1161_v63 = vadd.f32 %v4792_v43, %v1152_v48  ;;  %v1162_v56 = vadd.f32 %v4793_v62, %v1153_v49  ;;  %v1247_v41 = vadd.f32 %v4795_v10, %v1238_v37  ;;  %v1326_v54 = vadd.f32 %v4796_v47, %v1317_v39  ;;  %v4808_v27 = vld [vmem:[#allocation84_spill] sm:$0xff]  ;;  %v4809_v49 = vld [vmem:[#allocation85_spill] sm:$0xff] }
 0x379   : > { %v1327_v24 = vadd.f32 %v4797_v50, %v1318_v4  ;;  %v1762_v30 = vadd.f32 %v4342_v61, %v1753_v46  ;;  %v1763_v23 = vadd.f32 %v4345_v36, %v1754_v21  ;;  %v1255_v28 = vadd.f32 %v4800_v1, %v1246_v40  ;;  %v4810_v33 = vld [vmem:[#allocation68_spill] sm:$0xff]  ;;  %v4811_v18 = vld [vmem:[#allocation69_spill] sm:$0xff]  ;;  %v4815_v40 = vld [vmem:[#allocation71_spill] sm:$0xff] }
 0x37a   : > { %v1170_v29 = vadd.f32 %v4798_v16, %v1161_v63  ;;  %v1171_v9 = vadd.f32 %v4799_v26, %v1162_v56  ;;  %v1256_v52 = vadd.f32 %v4801_v51, %v1247_v41  ;;  %v1335_v31 = vadd.f32 %v4802_v38, %v1326_v54  ;;  %v4812_v19 = vld [vmem:[#allocation100_spill] sm:$0xff]  ;;  %v4813_v4 = vld [vmem:[#allocation101_spill] sm:$0xff]  ;;  %v4816_v41 = vld [vmem:[#allocation86_spill] sm:$0xff] }
 0x37b   : > { %v1336_v55 = vadd.f32 %v4803_v32, %v1327_v24  ;;  %v1397_v20 = vadd.f32 %v4804_v45, %v1388_v34  ;;  %v1398_v7 = vadd.f32 %v4805_v57, %v1389_v35  ;;  %v1264_v44 = vadd.f32 %v4806_v15, %v1255_v28  ;;  %v4817_v54 = vld [vmem:[#allocation87_spill] sm:$0xff]  ;;  %v4818_v24 = vld [vmem:[#allocation74_spill] sm:$0xff]  ;;  %v4822_v57 = vld [vmem:[#allocation76_spill] sm:$0xff] }
 0x37c   : > { %vm1172_vm10 = vcmp.ge.f32.partialorder %v1170_v29, 0.0  ;;  %vm1173_vm11 = vcmp.ge.f32.partialorder %v1171_v9, 0.0  ;;  %v1174_v61 = vmul.f32 0.01, %v1170_v29  ;;  %v1175_v36 = vmul.f32 0.01, %v1171_v9 }
 0x37d   : > { %v1265_v3 = vadd.f32 %v4807_v13, %v1256_v52  ;;  %v1468_v48 = vadd.f32 %v1467_v11, %v4808_v27  ;;  %v1469_v22 = vadd.f32 %v1467_v11, %v4809_v49  ;;  %v1344_v37 = vadd.f32 %v4810_v33, %v1335_v31  ;;  %v4819_v16 = vld [vmem:[#allocation75_spill] sm:$0xff]  ;;  %v4820_v32 = vld [vmem:[#allocation102_spill] sm:$0xff] }
 0x37e   : > { %v1345_v39 = vadd.f32 %v4811_v18, %v1336_v55  ;;  %v1557_v34 = vadd.f32 %v1556_v58, %v4812_v19  ;;  %v1558_v35 = vadd.f32 %v1556_v58, %v4813_v4  ;;  %v1771_v46 = vadd.f32 %v4348_v60, %v1762_v30  ;;  %v1185_v30 = vpop.permute.xlu0 %1184  ;;  %v4821_v45 = vld [vmem:[#allocation103_spill] sm:$0xff]  ;;  %v4828_v19 = vld [vmem:[#allocation89_spill] sm:$0xff] }
 0x37f   : > { %v1772_v21 = vadd.f32 %v4354_v2, %v1763_v23  ;;  %v1176_v43 = vsel %vm1172_vm10, %v1170_v29, %v1174_v61  ;;  %v1177_v63 = vsel %vm1173_vm11, %v1171_v9, %v1175_v36  ;;  %vm1266_vm12 = vcmp.ge.f32.partialorder %v1264_v44, 0.0  ;;  %v1274_v9 = vpop.permute.xlu1 %1273  ;;  %v4824_v61 = vld [vmem:[#allocation50_spill] sm:$0xff] }
 0x380   : > { %vm1267_vm13 = vcmp.ge.f32.partialorder %v1265_v3, 0.0  ;;  %v1268_v62 = vmul.f32 0.01, %v1264_v44  ;;  %v1269_v56 = vmul.f32 0.01, %v1265_v3  ;;  %v1353_v11 = vadd.f32 %v4814_v5, %v1344_v37  ;;  %v4834_v5 = vld [vmem:[#allocation91_spill] sm:$0xff] }
 0x381   : > { %v1354_v10 = vadd.f32 %v4815_v40, %v1345_v39  ;;  %v1477_v47 = vadd.f32 %v4816_v41, %v1468_v48  ;;  %v1478_v50 = vadd.f32 %v4817_v54, %v1469_v22  ;;  %v1406_v58 = vadd.f32 %v4818_v24, %v1397_v20  ;;  %v4825_v48 = vld [vmem:[#allocation78_spill] sm:$0xff]  ;;  %v4826_v22 = vld [vmem:[#allocation79_spill] sm:$0xff] }
 0x382   : > { %v1407_v60 = vadd.f32 %v4819_v16, %v1398_v7  ;;  %v1780_v2 = vadd.f32 %v4360_v8, %v1771_v46  ;;  %v1781_v23 = vadd.f32 %v4363_v12, %v1772_v21  ;;  %v1270_v29 = vsel %vm1266_vm12, %v1264_v44, %v1268_v62  ;;  %v4823_v7 = vld [vmem:[#allocation77_spill] sm:$0xff]  ;;  %v4833_v62 = vld [vmem:[#allocation90_spill] sm:$0xff]  ;;  %v4836_v41 = vld [vmem:[#allocation83_spill] sm:$0xff] }
 0x383   : > { %v1271_v26 = vsel %vm1267_vm13, %v1265_v3, %v1269_v56  ;;  %v1187_v1 = vmul.f32 %v1185_v30, %v1176_v43  ;;  %v1188_v28 = vmul.f32 %v1185_v30, %v1177_v63  ;;  %vm1355_vm14 = vcmp.ge.f32.partialorder %v1353_v11, 0.0  ;;  %v4832_v46 = vld [vmem:[#allocation105_spill] sm:$0xff]  ;;  %v4835_v40 = vld [vmem:[#allocation82_spill] sm:$0xff]  ;;  %v4838_v24 = vld [vmem:[#allocation107_spill] sm:$0xff] }
 0x384   : > { %vm1356_vm15 = vcmp.ge.f32.partialorder %v1354_v10, 0.0  ;;  %v1276_v51 = vmul.f32 %v1274_v9, %v1270_v29  ;;  %v1277_v52 = vmul.f32 %v1274_v9, %v1271_v26  ;;  %v1357_v38 = vmul.f32 0.01, %v1353_v11  ;;  %v4837_v54 = vld [vmem:[#allocation106_spill] sm:$0xff]  ;;  %v4839_v16 = vld [vmem:[#allocation92_spill] sm:$0xff]  ;;  %v4840_v30 = vld [vmem:[#allocation93_spill] sm:$0xff] }
 0x385   : > { %v1358_v31 = vmul.f32 0.01, %v1354_v10  ;;  %v1566_v55 = vadd.f32 %v4820_v32, %v1557_v34  ;;  %v1567_v20 = vadd.f32 %v4821_v45, %v1558_v35  ;;  %v1415_v8 = vadd.f32 %v4822_v57, %v1406_v58  ;;  %v1363_v34 = vpop.permute.xlu1 %1362  ;;  %v4831_v35 = vld [vmem:[#allocation104_spill] sm:$0xff]  ;;  %v4842_v26 = vld [vmem:[#allocation117_spill] sm:$0xff] }
 0x386   : > { %v1416_v12 = vadd.f32 %v4823_v7, %v1407_v60  ;;  %v4464_v36 = vmul.f32 %v4824_v61, %v1794_v6  ;;  %v1645_v15 = vrot.slane %v4350_v0, %v1644_v53  ;;  %v4470_v44 = vadd.f32 %v4366_v17, %v1780_v2  ;;  %v4827_v6 = vld [vmem:[#allocation88_spill] sm:$0xff]  ;;  %v4830_v17 = vld [vmem:[#allocation81_spill] sm:$0xff]  ;;  %v4847_v7 = vld [vmem:[#allocation118_spill] sm:$0xff] }
 0x387   : > { %v4473_v13 = vadd.f32 %v4376_v14, %v1781_v23  ;;  %v1359_v3 = vsel %vm1355_vm14, %v1353_v11, %v1357_v38  ;;  %v1360_v27 = vsel %vm1356_vm15, %v1354_v10, %v1358_v31  ;;  %v1424_v49 = vadd.f32 %v4825_v48, %v1415_v8  ;;  %v4829_v0 = vld [vmem:[#allocation80_spill] sm:$0xff]  ;;  %v4844_v38 = vld [vmem:[#allocation95_spill] sm:$0xff]  ;;  %v4846_v45 = vld [vmem:[#allocation109_spill] sm:$0xff] }
 0x388   : > { %v1425_v33 = vadd.f32 %v4826_v22, %v1416_v12  ;;  %v1278_v37 = vadd.f32 %v1276_v51, %v1187_v1  ;;  %v1279_v18 = vadd.f32 %v1277_v52, %v1188_v28  ;;  %v1486_v39 = vadd.f32 %v4827_v6, %v1477_v47  ;;  %v4841_v23 = vld [vmem:[#allocation116_spill] sm:$0xff]  ;;  %v4843_v51 = vld [vmem:[#allocation94_spill] sm:$0xff]  ;;  %v4850_v6 = vld [vmem:[#allocation97_spill] sm:$0xff] }
 0x389   : > { %v1487_v59 = vadd.f32 %v4828_v19, %v1478_v50  ;;  %v1433_v53 = vadd.f32 %v4829_v0, %v1424_v49  ;;  %v1575_v14 = vadd.f32 %v4831_v35, %v1566_v55  ;;  %v1576_v21 = vadd.f32 %v4832_v46, %v1567_v20  ;;  %v4845_v32 = vld [vmem:[#allocation108_spill] sm:$0xff]  ;;  %v1541_v48 = vpop.permute.xlu1 %1540  ;;  %v1452_v19 = vpop.permute.xlu0 %1451  ;;  %v4852_v0 = vld [vmem:[#allocation111_spill] sm:$0xff]  ;;  %v4854_v35 = vld [vmem:[#allocation121_spill] sm:$0xff] }
 0x38a   : > { %v1434_v4 = vadd.f32 %v4830_v17, %v1425_v33  ;;  %v1365_v43 = vmul.f32 %v1363_v34, %v1359_v3  ;;  %v1366_v63 = vmul.f32 %v1363_v34, %v1360_v27  ;;  %v1495_v56 = vadd.f32 %v4833_v62, %v1486_v39  ;;  %v4848_v3 = vld [vmem:[#allocation119_spill] sm:$0xff]  ;;  %v4849_v22 = vld [vmem:[#allocation96_spill] sm:$0xff]  ;;  %v4855_v62 = vld [vmem:[#allocation98_spill] sm:$0xff] }
 0x38b   : > { %v1496_v11 = vadd.f32 %v4834_v5, %v1487_v59  ;;  %v1442_v10 = vadd.f32 %v4835_v40, %v1433_v53  ;;  %v1584_v50 = vadd.f32 %v4837_v54, %v1575_v14  ;;  %v1585_v58 = vadd.f32 %v4838_v24, %v1576_v21  ;;  %v4851_v59 = vld [vmem:[#allocation110_spill] sm:$0xff]  ;;  %v4853_v17 = vld [vmem:[#allocation120_spill] sm:$0xff]  ;;  %v4856_v5 = vld [vmem:[#allocation99_spill] sm:$0xff] }
 0x38c   : > { %v1443_v47 = vadd.f32 %v4836_v41, %v1434_v4  ;;  %v1504_v60 = vadd.f32 %v4839_v16, %v1495_v56  ;;  %v1646_v29 = vadd.f32 %v1645_v15, %v4841_v23  ;;  %v1647_v9 = vadd.f32 %v1645_v15, %v4842_v26  ;;  %v4859_v40 = vld [vmem:[#allocation122_spill] sm:$0xff]  ;;  %v4860_v41 = vld [vmem:[#allocation123_spill] sm:$0xff]  ;;  %v4864_v23 = vld [vmem:[#allocation125_spill] sm:$0xff] }
 0x38d   : > { %v1505_v2 = vadd.f32 %v4840_v30, %v1496_v11  ;;  %vm1444_vm0 = vcmp.ge.f32.partialorder %v1442_v10, 0.0  ;;  %v1446_v1 = vmul.f32 0.01, %v1442_v10  ;;  %v1593_v55 = vadd.f32 %v4845_v32, %v1584_v50  ;;  %v4861_v24 = vld [vmem:[#allocation114_spill] sm:$0xff]  ;;  %v4862_v16 = vld [vmem:[#allocation115_spill] sm:$0xff]  ;;  %v4863_v30 = vld [vmem:[#allocation124_spill] sm:$0xff]  ;;  %v1630_v26 = vpop.permute.xlu1 %1629 }
 0x38e   : > { %vm1445_vm1 = vcmp.ge.f32.partialorder %v1443_v47, 0.0  ;;  %v1447_v28 = vmul.f32 0.01, %v1443_v47  ;;  %v1513_v52 = vadd.f32 %v4843_v51, %v1504_v60  ;;  %v1594_v20 = vadd.f32 %v4846_v45, %v1585_v58  ;;  %v4865_v45 = vld [vmem:[#allocation126_spill] sm:$0xff] }
 0x38f   : > { %v1514_v31 = vadd.f32 %v4844_v38, %v1505_v2  ;;  %v1448_v57 = vsel %vm1444_vm0, %v1442_v10, %v1446_v1  ;;  %v1655_v12 = vadd.f32 %v4847_v7, %v1646_v29  ;;  %v1656_v27 = vadd.f32 %v4848_v3, %v1647_v9 }
 0x390   : > { %v1449_v8 = vsel %vm1445_vm1, %v1443_v47, %v1447_v28  ;;  %v1367_v15 = vadd.f32 %v1365_v43, %v1278_v37  ;;  %v1368_v49 = vadd.f32 %v1366_v63, %v1279_v18  ;;  %v1522_v33 = vadd.f32 %v4849_v22, %v1513_v52  ;;  %v4857_v18 = vld [vmem:[#allocation112_spill] sm:$0xff]  ;;  %v4858_v63 = vld [vmem:[#allocation113_spill] sm:$0xff] }
 0x391   : > { %v1523_v39 = vadd.f32 %v4850_v6, %v1514_v31  ;;  %v1602_v34 = vadd.f32 %v4851_v59, %v1593_v55  ;;  %v1603_v53 = vadd.f32 %v4852_v0, %v1594_v20  ;;  %v1664_v4 = vadd.f32 %v4853_v17, %v1655_v12  ;;  %v1052_v31 = vpop.xlane.xlu0 %1051  ;;  %v1055_v3 = vpop.xlane.xlu1 %1054 }
 0x392   : > { %v1665_v14 = vadd.f32 %v4854_v35, %v1656_v27  ;;  %v1454_v46 = vmul.f32 %v1452_v19, %v1448_v57  ;;  %v1455_v21 = vmul.f32 %v1452_v19, %v1449_v8  ;;  %v1531_v56 = vadd.f32 %v4855_v62, %v1522_v33  ;;  %v4866_v57 = vld [vmem:[#allocation127_spill] sm:$0xff]  ;;  %v4870_v33 = vld [vmem:[#allocation129_spill] sm:$0xff] }
 0x393   : > { %v1532_v37 = vadd.f32 %v4856_v5, %v1523_v39  ;;  %v1611_v43 = vadd.f32 %v4857_v18, %v1602_v34  ;;  %v1612_v11 = vadd.f32 %v4858_v63, %v1603_v53  ;;  %v1673_v10 = vadd.f32 %v4859_v40, %v1664_v4 }
 0x394   : > { %v1674_v47 = vadd.f32 %v4860_v41, %v1665_v14  ;;  %vm1533_vm3 = vcmp.ge.f32.partialorder %v1531_v56, 0.0  ;;  %v1535_v54 = vmul.f32 0.01, %v1531_v56  ;;  %v1798_v9 = vadd.f32 %v4400_v42, %v4470_v44 }
 0x395   : > { %vm1534_vm4 = vcmp.ge.f32.partialorder %v1532_v37, 0.0  ;;  %v1536_v50 = vmul.f32 0.01, %v1532_v37  ;;  %v1620_v58 = vadd.f32 %v4861_v24, %v1611_v43  ;;  %v1621_v60 = vadd.f32 %v4862_v16, %v1612_v11  ;;  %v1719_v17 = vpop.permute.xlu0 %1718  ;;  %v2260_v43 = vld [vmem:[%s4871_s5] sm:$0xff]  }
 0x396   : > { %v1682_v2 = vadd.f32 %v4863_v30, %v1673_v10  ;;  %v1683_v29 = vadd.f32 %v4864_v23, %v1674_v47  ;;  %v1799_v1 = vadd.f32 %v4464_v36, %v4473_v13  ;;  %v1537_v28 = vsel %vm1533_vm3, %v1531_v56, %v1535_v54 }
 0x397   : > { %v1538_v51 = vsel %vm1534_vm4, %v1532_v37, %v1536_v50  ;;  %v1456_v52 = vadd.f32 %v1454_v46, %v1367_v15  ;;  %v1457_v38 = vadd.f32 %v1455_v21, %v1368_v49  ;;  %vm1622_vm5 = vcmp.ge.f32.partialorder %v1620_v58, 0.0  ;;  %v4869_v49 = vld [vmem:[#allocation128_spill] sm:$0xff]  ;;  %v1808_v46 = vpop.permute.xlu1 %1807 }
 0x398   : > { %vm1623_vm6 = vcmp.ge.f32.partialorder %v1621_v60, 0.0  ;;  %v1624_v32 = vmul.f32 0.01, %v1620_v58  ;;  %v1625_v55 = vmul.f32 0.01, %v1621_v60  ;;  %v1691_v20 = vadd.f32 %v4865_v45, %v1682_v2 }
 0x399   : > { %v1692_v8 = vadd.f32 %v4866_v57, %v1683_v29  ;;  %v4867_v7 = vstv %s4233_s27  ;;  %v1543_v36 = vmul.f32 %v1541_v48, %v1537_v28  ;;  %v1544_v13 = vmul.f32 %v1541_v48, %v1538_v51 }
 0x39a   : > { %v1707_v12 = vmul.f32 %v3893_v25, %v4867_v7  ;;  %v4868_v42 = vmov %v4867_v7  ;;  %v1626_v27 = vsel %vm1622_vm5, %v1620_v58, %v1624_v32  ;;  %v1627_v15 = vsel %vm1623_vm6, %v1621_v60, %v1625_v55 }
 0x39b   : > { %v1708_v44 = vmul.f32 %v4824_v61, %v4868_v42  ;;  %v1700_v22 = vadd.f32 %v4869_v49, %v1691_v20  ;;  %v1701_v6 = vadd.f32 %v4870_v33, %v1692_v8  ;;  %v1545_v39 = vadd.f32 %v1543_v36, %v1456_v52 }
 0x39c   : > { %v1546_v19 = vadd.f32 %v1544_v13, %v1457_v38  ;;  %v1802_v59 = vmul.f32 0.01, %v1798_v9  ;;  %v1803_v34 = vmul.f32 0.01, %v1799_v1  ;;  %vm1800_vm7 = vcmp.ge.f32.partialorder %v1798_v9, 0.0 }
 0x39d   : > { %v1709_v0 = vadd.f32 %v1707_v12, %v1700_v22  ;;  %v1710_v53 = vadd.f32 %v1708_v44, %v1701_v6  ;;  %vm1801_vm8 = vcmp.ge.f32.partialorder %v1799_v1, 0.0  ;;  %v1632_v25 = vmul.f32 %v1630_v26, %v1626_v27  ;;  %v2214_v22 = vld [vmem:[#allocation20] ss:$0 sm:$0xff] }
 0x39e   : > { %v1633_v61 = vmul.f32 %v1630_v26, %v1627_v15  ;;  %v1804_v21 = vsel %vm1800_vm7, %v1798_v9, %v1802_v59  ;;  %v1805_v62 = vsel %vm1801_vm8, %v1799_v1, %v1803_v34  ;;  %v2262_v41 = vunpack.c.h.bf16 %v2260_v43 }
 0x39f   : > { %vm1711_vm9 = vcmp.ge.f32.partialorder %v1709_v0, 0.0  ;;  %vm1712_vm10 = vcmp.ge.f32.partialorder %v1710_v53, 0.0  ;;  %v1713_v48 = vmul.f32 0.01, %v1709_v0  ;;  %v1714_v4 = vmul.f32 0.01, %v1710_v53 }
 0x3a0   : > { %v1634_v35 = vadd.f32 %v1632_v25, %v1545_v39  ;;  %v1635_v14 = vadd.f32 %v1633_v61, %v1546_v19  ;;  %v1810_v63 = vmul.f32 %v1808_v46, %v1804_v21  ;;  %v1811_v11 = vmul.f32 %v1808_v46, %v1805_v62 }
 0x3a1   : > { %v1715_v56 = vsel %vm1711_vm9, %v1709_v0, %v1713_v48  ;;  %v1716_v5 = vsel %vm1712_vm10, %v1710_v53, %v1714_v4  ;;  %v2261_v47 = vunpack.c.l.bf16 %v2260_v43  ;;  %vm1827_vm11 = vcmp.gt.f32.partialorder %v2262_v41, 0.0 }
 0x3a2   : > { %v1721_v37 = vmul.f32 %v1719_v17, %v1715_v56  ;;  %v1722_v18 = vmul.f32 %v1719_v17, %v1716_v5  ;;  %vm1830_vm15 = vcmask 261120   ;;  %v4874_v7 = vmov 0.0  }
 0x3a3   : > { %vm1826_vm12 = vcmp.gt.f32.partialorder %v2261_v47, 0.0  ;;  %1923 = vst [vmem:[%s4536_s17] sm:$0xff] %v4874_v7  ;;  %1924 = vst [vmem:[%s4536_s17 + $0x8] sm:$0xff] %v4874_v7 }
 0x3a4   : > { %v1723_v40 = vadd.f32 %v1721_v37, %v1634_v35  ;;  %v1724_v10 = vadd.f32 %v1722_v18, %v1635_v14 }
 0x3a6   : > { %v1812_v54 = vadd.f32 %v1810_v63, %v1723_v40  ;;  %v1813_v50 = vadd.f32 %v1811_v11, %v1724_v10 }
 0x3a8   : > { %v1819_v24 = vadd.f32 %v1813_v50, %v1055_v3  ;;  %v1818_v58 = vadd.f32 %v1812_v54, %v1052_v31 }
 0x3aa   : > { %vm1821_vm13 = vcmp.ge.f32.partialorder %v1819_v24, 0.0  ;;  %v1823_v16 = vmul.f32 0.01, %v1819_v24  ;;  %vm1820_vm14 = vcmp.ge.f32.partialorder %v1818_v58, 0.0  ;;  %v1822_v60 = vmul.f32 0.01, %v1818_v58 }
 0x3ac   : > { %v1825_v30 = vsel %vm1821_vm13, %v1819_v24, %v1823_v16  ;;  %v1824_v2 = vsel %vm1820_vm14, %v1818_v58, %v1822_v60 }
 0x3ad   : > { %v1829_v23 = vsel %vm1827_vm11, %v1825_v30, -1e+30  ;;  %v1828_v29 = vsel %vm1826_vm12, %v1824_v2, -1e+30 }
 0x3ae   : > { %v1834_v26 = vsel %vm1830_vm15, %v1829_v23, -inf  ;;  %v1831_v9 = vsel %vm1830_vm15, %v1828_v29, -inf }
 0x3af   : > { %1835 = vmax.xlane.f32.xlu0 %v1834_v26  ;;  %1832 = vmax.xlane.f32.xlu1 %v1831_v9 }
 0x43c   : > { %v1836_v1 = vpop.xlane.xlu0 %1835  ;;  %v1833_v28 = vpop.xlane.xlu1 %1832 }
 0x43d   : > { %v1838_v51 = vsub.f32 %v1829_v23, %v1836_v1  ;;  %v1837_v52 = vsub.f32 %v1828_v29, %v1833_v28 }
 0x43f   : > { %v1841_v38 = vmul.f32 1.442695, %v1838_v51  ;;  %v1839_v31 = vmul.f32 1.442695, %v1837_v52 }
 0x441   : > { %2665 = vpow2.f32 %v1841_v38 }
 0x442   : > { %2667 = vpow2.f32 %v1839_v31 }
 0x44b   : > { %v2666_v32 = vpop.eup %2665 }
 0x44c   : > { %v2668_v55 = vpop.eup %2667  ;;  %v1844_v57 = vmul.f32 %v2666_v32, %v2262_v41 }
 0x44d   : > { %v1843_v45 = vmul.f32 %v2668_v55, %v2261_v47 }
 0x44e   : > { %v1848_v8 = vsel %vm1830_vm15, %v1844_v57, 0.0 }
 0x44f   : > { %v1845_v20 = vsel %vm1830_vm15, %v1843_v45, 0.0 }
 0x450   : > { %1846 = vadd.xlane.f32.xlu1 %v1845_v20 }
 0x454   : > { %1849 = vadd.xlane.f32.xlu1 %v1848_v8 }
 0x4dd   : > { %v1847_v12 = vpop.xlane.xlu1 %1846 }
 0x4de   : > { %v1851_v42 = vadd.f32 1e-16, %v1847_v12 }
 0x4e0   : > { %2669 = vrcp.f32 %v1851_v42 }
 0x4e1   : > { %v1850_v44 = vpop.xlane.xlu1 %1849 }
 0x4e2   : > { %v1852_v36 = vadd.f32 1e-16, %v1850_v44 }
 0x4e4   : > { %2671 = vrcp.f32 %v1852_v36 }
 0x4ea   : > { %v2670_v13 = vpop.eup %2669 }
 0x4eb   : > { %v1855_v27 = vmul.f32 %v2670_v13, %v1843_v45 }
 0x4ee   : > { %v2672_v3 = vpop.eup %2671 }
 0x4ef   : > { %v1856_v15 = vmul.f32 %v2672_v3, %v1844_v57 }
 0x4f1   : > { %v1857_v49 = vpack.c.bf16 %v1856_v15, %v1855_v27 }
 0x4f3   : > { %2334 = vmatmul.mubr.msk.bf16.vlgmr.msra.gmra.mrb[8].mxu1 %vm1830_vm15, %v1857_v49 }
 0x5c6   : > { %v1904_v33 = vpop.f32.mrb[8].mxu1 }
 0x5c7   : > { %v1905_v6 = vadd.f32 %v2214_v22, %v1904_v33  ;;  %v2335_v39 = vpop.f32.mrb[9].mxu1 }
 0x5c8   : > { %v1907_v19 = vpop.f32.mrb[10].mxu1 }
 0x5c9   : > { %v1913_v59 = vmin.f32 %v1905_v6, 0.0  ;;  %v1908_v34 = vadd.f32 %v2214_v22, %v1907_v19  ;;  %v2336_v0 = vpop.f32.mrb[11].mxu1  ;;  %vm1911_vm0 = vcmp.gt.f32.partialorder %v1905_v6, 0.0 }
 0x5cb   : > { %v1915_v53 = vmul.f32 1.442695, %v1913_v59  ;;  %v1914_v25 = vmin.f32 %v1908_v34, 0.0  ;;  %vm1912_vm1 = vcmp.gt.f32.partialorder %v1908_v34, 0.0 }
 0x5cd   : > { %2673 = vpow2.f32 %v1915_v53  ;;  %v1917_v61 = vmul.f32 1.442695, %v1914_v25 }
 0x5cf   : > { %2675 = vpow2.f32 %v1917_v61 }
 0x5d7   : > { %v2674_v17 = vpop.eup %2673 }
 0x5d8   : > { %v2216_v48 = vadd.f32 -1.0, %v2674_v17 }
 0x5d9   : > { %v2676_v4 = vpop.eup %2675 }
 0x5da   : > { %v1921_v35 = vsel %vm1911_vm0, %v1905_v6, %v2216_v48  ;;  %v2217_v14 = vadd.f32 -1.0, %v2676_v4 }
 0x5db   : > { %1925 = vst.msk [vmem:[%s4536_s17] sm:$0xff] %vm869_vm2, %v1921_v35 }
 0x5dc   : > { %v1922_v46 = vsel %vm1912_vm1, %v1908_v34, %v2217_v14 }
 0x5dd   : > { %1926 = vst.msk [vmem:[%s4536_s17 + $0x8] sm:$0xff] %vm869_vm2, %v1922_v46 }
 0x5de   : > { %2998 = shalt.err (!%p2995_p11)
}
 0x5df   : > { %s2999_s16 = scalar_lea.hbm %s4548_s6, 256  ;;  %s3003_s7 = scalar_lea.hbm %s4877_s4, 512 }
 0x5e0   : > { %p3000_p6 = scmp.ne.s32.totalorder %s4548_s6, %s2999_s16  ;;  %p3004_p8 = scmp.lt.u32.totalorder %s4548_s6, %s4877_s4 }
 0x5e1   : > { %p3005_p13 = scmp.lt.u32.totalorder %s3003_s7, %s2999_s16  ;;  %p3007_p3 = scmp.lt.u32.totalorder %s2999_s16, %s4548_s6 }
 0x5e2   : > { %p3001_p12 = pnand %p3000_p6, %p4878_p10 }
 0x5e3   : > { %p3006_p9 = por %p3005_p13, %p3004_p8 }
 0x5e4   : > { %p3002_p7 = pneg %p3001_p12 }
 0x5e5   : > { %p3008_p1 = por %p3007_p3, %p3006_p9 }
 0x5e7   : > { %p3009_p0 = pnand %p3008_p1, %p3002_p7 }
 0x5e9   : > { %3012 = shalt.err (!%p3009_p0)
}
 0x5ea   : > { %s3123_s21 = smov 128   ;;  %s3124_s12 = smov 8  }
 0x5eb   : > { %2530 = dma.vmem_to_hbm [thread:$0]  (%p4878_p10), %s4550_s1, 256, %s4548_s6, %s1928_s8, %s3123_s21, %s3123_s21, %s3124_s12  }
 0x5ec PF: > { %s4879_s18 = sld [smem:[#allocation35_spill]]  ;;  %s4880_s14 = sld [smem:[#allocation44_spill]] }
 0x5f2   : > { %s1956_s29 = sand.u32 1, %s4879_s18   ;;  %p4882_p2 = scmp.ne.s32.totalorder %s4880_s14, 0 }
 0x5f3   : > { %s1957_s25 = scalar_lea.sflag [#allocation4], %s1956_s29 }
 0x5f4   : > { %p2561_p5 = pnand %p2156_p4, %p4882_p2 }
 0x5f6   : > { %3062 = dma.done.wait (!%p2561_p5), %s1957_s25, 256  }
 0x5f7   : > { %3064 = vsyncadd (!%p2561_p5), %s1957_s25, 4294967040  ;;  %s4883_s24 = sld [smem:[#allocation40_spill]]  ;;  %s4884_s21 = sld [smem:[#allocation36_spill]] }
 0x5f8   : > { %s4885_s22 = sld [smem:[#allocation37_spill]]  ;;  %s4886_s23 = sld [smem:[#allocation41_spill]] }
 0x5fd   : > { %p33_p11 = scmp.ge.s32.totalorder %s4883_s24, 4  }
 0x5ff   :  { %35 = sbr.rel (!%p33_p11) target bundleno = 26 (0x1a), region = 186 }
 0x606   :  { %1962 = vsyncpa [#allocation3], 1 }
 0x607   :  { %1964 = vsyncpa [#allocation3 + $0x1], 1 }
 0x608   :  { %1965 = vsyncpa [#allocation6], 1 }
 0x609   :  { %1967 = vsyncpa [#allocation6 + $0x1], 1 }
 0x60a   :  { %1968 = vsyncpa [#allocation9], 1 }
 0x60b   :  { %1970 = vsyncpa [#allocation9 + $0x1], 1 }
 0x60c   :  { %1971 = vsyncpa [#allocation12], 1 }
 0x60d   :  { %1972 = vsyncpa [#allocation15], 1 }
 0x60e   :  { %1973 = vsyncpa [#allocation18], 1 }
 0x60f   :  { %1974 = vsyncpa [#allocation21], 1 }
 0x610   :  { %1975 = vsyncpa [#allocation4], 1 }
 0x611   :  { %1977 = vsyncpa [#allocation4 + $0x1], 1 }

// kernel: hgate_encoder_forward.4
= control target key start
LH: loop header
LB: loop body
LE: loop exit
PB: predicated region body
PF: predicated region fallthrough
CT: control target
= control target key end

     0   :  { %s4565_s0 = inlined_call_operand.hbm [shape: f32[32,128], index: 0, kind: input, shape index: {}, may-alias: {0,1}]   ;;  %s4566_s1 = inlined_call_operand.hbm [shape: f32[32,128], index: 1, kind: input, shape index: {}, may-alias: {0,1}]   ;;  %s4567_s2 = inlined_call_operand.hbm [shape: bf16[32,32], index: 2, kind: input, shape index: {}]   ;;  %s4568_s3 = inlined_call_operand.hbm [shape: bf16[8,32,32], index: 3, kind: input, shape index: {}]   ;;  %s4569_s4 = inlined_call_operand.hbm [shape: f32[32,8], index: 4, kind: input, shape index: {}]   ;;  %s4570_s5 = inlined_call_operand.hbm [shape: f32[128,32], index: 5, kind: input, shape index: {}]   ;;  %s4571_s6 = inlined_call_operand.hbm [shape: f32[4,32], index: 6, kind: input, shape index: {}]   ;;  %s4572_s7 = inlined_call_operand.hbm [shape: f32[32,4], index: 7, kind: input, shape index: {}]   ;;  %s4573_s8 = inlined_call_operand.hbm [shape: f32[8,4], index: 8, kind: input, shape index: {}]   ;;  %s4574_s9 = inlined_call_operand.hbm [shape: f32[1,32], index: 9, kind: input, shape index: {}]   ;;  %s4575_s10 = inlined_call_operand.hbm [shape: f32[32,128], index: 10, kind: output, shape index: {}]  }
   0x1   :  { %4593 = sst [smem:[#allocation37_spill]] %s4565_s0 }
   0x2   :  { %4594 = sst [smem:[#allocation38_spill]] %s4566_s1 }
   0x3   :  { %4595 = sst [smem:[#allocation39_spill]] %s4567_s2 }
   0x4   :  { %4596 = sst [smem:[#allocation40_spill]] %s4570_s5 }
   0x5   :  { %4597 = sst [smem:[#allocation41_spill]] %s4575_s10 }
   0x6   :  { %15 = vsyncpa [#allocation3], 0 }
   0x7   :  { %16 = vsyncpa [#allocation6], 0 }
   0x8   :  { %18 = vsyncpa [#allocation6 + $0x1], 0 }
   0x9   :  { %19 = vsyncpa [#allocation9], 0 }
   0xa   :  { %21 = vsyncpa [#allocation9 + $0x1], 0 }
   0xb   :  { %22 = vsyncpa [#allocation12], 0 }
   0xc   :  { %23 = vsyncpa [#allocation15], 0 }
   0xd   :  { %24 = vsyncpa [#allocation18], 0 }
   0xe   :  { %25 = vsyncpa [#allocation4], 0 }
   0xf   :  { %27 = vsyncpa [#allocation4 + $0x1], 0  ;;  %s3410_s13 = smov 0   ;;  %s3412_s14 = smov 0  }
  0x10   :  { %s3414_s15 = smov 0   ;;  %s3416_s16 = smov 0  }
  0x11 LB: > { %4598 = sst [smem:[#allocation30_spill]] %s3295_s13  ;;  %s3431_s17 = sadd.s32 4294967295, %s3307_s16   ;;  %s3307_s16 = sphi %s3416_s16, %s4639_s16   ;;  %s3303_s15 = sphi %s3414_s15, %s4643_s15   ;;  %s3299_s14 = sphi %s3412_s14, %s4642_s14   ;;  %s3295_s13 = sphi %s3410_s13, %s4640_s13  }
  0x12   : > { %4599 = sst [smem:[#allocation31_spill]] %s3299_s14  ;;  %s2298_s18 = sadd.s32 4294967294, %s3307_s16  }
  0x13   : > { %s3435_s19 = sadd.s32 1, %s3307_s16   ;;  %s61_s20 = sadd.s32 1, %s3303_s15 }
  0x14   : > { %4600 = sst [smem:[#allocation32_spill]] %s3435_s19  ;;  %s58_s21 = ssub.s32 %s3307_s16, %s3435_s19 }
  0x15   : > { %p68_p0 = scmp.ne.s32.totalorder %s3303_s15, %s3299_s14  ;;  %p59_p1 = scmp.eq.s32.totalorder %s58_s21, 0 }
  0x16   : > { %p69_p2 = scmp.eq.s32.totalorder %s3307_s16, 0  ;;  %p74_p3 = scmp.ne.s32.totalorder %s3299_s14, %s3295_s13 }
  0x17   : > { %p4579_p4 = scmp.eq.s32.totalorder %s3431_s17, 0  ;;  %p281_p7 = scmp.eq.s32.totalorder %s3431_s17, 1 }
  0x18   : > { %s3447_s22 = scalar_select %p59_p1, %s3303_s15, %s61_s20  }
  0x19   : > { %p3449_p5 = por %p69_p2, %p68_p0  ;;  %p3455_p6 = por %p4579_p4, %p74_p3 }
  0x1a   : > { %4601 = sst [smem:[#allocation33_spill]] %s3447_s22  ;;  %p287_p8 = scmp.eq.s32.totalorder %s2298_s18, 1 }
  0x1b   : > { %s4602_s23 = scalar_select %p3449_p5, 1, 0 }
  0x1c   : > { %s4603_s24 = scalar_select %p3455_p6, 1, 0 }
  0x1d   : > { %p2299_p9 = scmp.ge.s32.totalorder %s3307_s16, 1  ;;  %p294_p10 = scmp.lt.s32.totalorder %s3307_s16, 3 }
  0x1e   : > { %4604 = sst [smem:[#allocation34_spill]] %s4603_s24  ;;  %p3462_p11 = por %p281_p7, %p68_p0 }
  0x1f   : > { %p3466_p12 = por %p287_p8, %p74_p3  ;;  %p3470_p13 = pnand %p2299_p9, %p294_p10 }
  0x20   : > { %s4605_s25 = scalar_select %p3462_p11, 1, 0 }
  0x21   : > { %s4607_s26 = scalar_select %p3466_p12, 1, 0 }
  0x22   : > { %4606 = sst [smem:[#allocation35_spill]] %s4605_s25  ;;  %p2796_p1 = pneg %p3470_p13 }
  0x23   : > { %4608 = sst [smem:[#allocation36_spill]] %s4607_s26  ;;  %s3309_s28 = smov [#allocation11]  }
  0x24   : > { %s4609_s27 = scalar_select %p3470_p13, 1, 0 }
  0x25   : > { %s319_s29 = sshll.u32 %s3309_s28, 4  ;;  %p3478_p2 = pnand %p2796_p1, %p4579_p4  ;;  %s320_s29 = int_to_ptr.vmem [resolvable:$true] %s319_s29 }
  0x26   : > { %s3310_s11 = smov [#allocation14]   ;;  %s4611_s5 = sld [smem:[#allocation40_spill]] }
  0x27   : > { %s343_s12 = sshll.u32 %s3310_s11, 4  ;;  %p3492_p3 = pneg %p3478_p2  ;;  %s3482_s12 = int_to_ptr.vmem [resolvable:$true] %s343_s12 }
  0x2c   : > { %s2969_s21 = scalar_lea.hbm %s4611_s5, 2048 }
  0x2d   : > { %p2970_p0 = scmp.ne.s32.totalorder %s4611_s5, %s2969_s21  ;;  %p2976_p9 = scmp.lt.u32.totalorder %s2969_s21, %s4611_s5 }
  0x2f   : > { %p2972_p7 = pnand %p3492_p3, %p2970_p0 }
  0x31   : > { %p2973_p8 = pneg %p2972_p7 }
  0x33   : > { %p2978_p10 = pnand %p2976_p9, %p2973_p8 }
  0x35   : > { %2981 = shalt.err (!%p2978_p10)
}
  0x36   : > { %s2982_s18 = scalar_lea.vmem %s320_s29, 2048  ;;  %p2990_p11 = scmp.lt.s32.totalorder %s320_s29, %s320_s29 }
  0x37   : > { %p2983_p1 = scmp.ne.s32.totalorder %s320_s29, %s2982_s18  ;;  %p2991_p6 = scmp.lt.s32.totalorder %s2982_s18, %s2982_s18 }
  0x39   : > { %p2985_p4 = pnand %p2983_p1, %p3492_p3  ;;  %p2992_p13 = por %p2991_p6, %p2990_p11 }
  0x3b   : > { %p2986_p12 = pneg %p2985_p4 }
  0x3d   : > { %p2993_p5 = pnand %p2992_p13, %p2986_p12 }
  0x3f   : > { %2996 = shalt.err (!%p2993_p5)
}
  0x40   : > { %s3311_s19 = smov 128   ;;  %s3312_s22 = smov 8  }
  0x41   : > { %2802 = dma.hbm_to_vmem [thread:$0]  (!%p3478_p2), %s4611_s5, 2048, %s320_s29, [#allocation12], %s3311_s19, %s3311_s19, %s3312_s22  }
  0x42   : > { %s2997_s13 = scalar_lea.hbm %s4572_s7, 512 }
  0x43   : > { %p2998_p4 = scmp.ne.s32.totalorder %s4572_s7, %s2997_s13  ;;  %p3004_p11 = scmp.lt.u32.totalorder %s2997_s13, %s4572_s7 }
  0x45   : > { %p3000_p5 = pnand %p2998_p4, %p3492_p3 }
  0x47   : > { %p3001_p6 = pneg %p3000_p5 }
  0x49   : > { %p3006_p12 = pnand %p3004_p11, %p3001_p6 }
  0x4b   : > { %3009 = shalt.err (!%p3006_p12)
}
  0x4c   : > { %s3010_s29 = scalar_lea.vmem %s3482_s12, 512  ;;  %p3018_p8 = scmp.lt.s32.totalorder %s3482_s12, %s3482_s12 }
  0x4d   : > { %p3011_p13 = scmp.ne.s32.totalorder %s3482_s12, %s3010_s29  ;;  %p3019_p9 = scmp.lt.s32.totalorder %s3010_s29, %s3010_s29 }
  0x4f   : > { %p3013_p0 = pnand %p3011_p13, %p3492_p3  ;;  %p3020_p10 = por %p3019_p9, %p3018_p8 }
  0x51   : > { %p3014_p7 = pneg %p3013_p0 }
  0x53   : > { %p3021_p1 = pnand %p3020_p10, %p3014_p7 }
  0x55   : > { %3024 = shalt.err (!%p3021_p1)
}
  0x56   : > { %2808 = dma.hbm_to_vmem [thread:$0]  (!%p3478_p2), %s4572_s7, 512, %s3482_s12, [#allocation15], %s3311_s19, %s3311_s19, %s3312_s22  }
  0x57   : > { %s3313_s24 = smov [#allocation2]   ;;  %s3314_s26 = smov [#allocation13]  }
  0x58   : > { %s306_s25 = sshll.u32 %s3313_s24, 4  ;;  %s333_s20 = sshll.u32 %s3314_s26, 4  ;;  %s307_s25 = int_to_ptr.vmem [resolvable:$true] %s306_s25  ;;  %s334_s20 = int_to_ptr.vmem [resolvable:$true] %s333_s20 }
  0x59   : > { %s4613_s0 = sld [smem:[#allocation37_spill]] }
  0x5f   : > { %s3025_s18 = scalar_lea.hbm %s4613_s0, 512 }
  0x60   : > { %p3026_p4 = scmp.ne.s32.totalorder %s4613_s0, %s3025_s18  ;;  %p3032_p11 = scmp.lt.u32.totalorder %s3025_s18, %s4613_s0 }
  0x62   : > { %p3028_p5 = pnand %p3026_p4, %p3492_p3 }
  0x64   : > { %p3029_p6 = pneg %p3028_p5 }
  0x66   : > { %p3034_p12 = pnand %p3032_p11, %p3029_p6 }
  0x68   : > { %3037 = shalt.err (!%p3034_p12)
}
  0x69   : > { %s3038_s12 = scalar_lea.vmem %s307_s25, 512  ;;  %p3046_p8 = scmp.lt.s32.totalorder %s307_s25, %s307_s25 }
  0x6a   : > { %p3039_p13 = scmp.ne.s32.totalorder %s307_s25, %s3038_s12  ;;  %p3047_p9 = scmp.lt.s32.totalorder %s3038_s12, %s3038_s12 }
  0x6c   : > { %p3041_p0 = pnand %p3039_p13, %p3492_p3  ;;  %p3048_p10 = por %p3047_p9, %p3046_p8 }
  0x6e   : > { %p3042_p7 = pneg %p3041_p0 }
  0x70   : > { %p3049_p1 = pnand %p3048_p10, %p3042_p7 }
  0x72   : > { %3052 = shalt.err (!%p3049_p1)
}
  0x73   : > { %2799 = dma.hbm_to_vmem [thread:$0]  (!%p3478_p2), %s4613_s0, 512, %s307_s25, [#allocation3], %s3311_s19, %s3311_s19, %s3312_s22  }
  0x74   : > { %s3053_s26 = scalar_lea.hbm %s4571_s6, 64 }
  0x75   : > { %p3054_p4 = scmp.ne.s32.totalorder %s4571_s6, %s3053_s26  ;;  %p3060_p11 = scmp.lt.u32.totalorder %s3053_s26, %s4571_s6 }
  0x77   : > { %p3056_p5 = pnand %p3054_p4, %p3492_p3 }
  0x79   : > { %p3057_p6 = pneg %p3056_p5 }
  0x7b   : > { %p3062_p12 = pnand %p3060_p11, %p3057_p6 }
  0x7d   : > { %3065 = shalt.err (!%p3062_p12)
}
  0x7e   : > { %s3066_s10 = scalar_lea.vmem %s334_s20, 64  ;;  %p3074_p8 = scmp.lt.s32.totalorder %s334_s20, %s334_s20 }
  0x7f   : > { %p3067_p13 = scmp.ne.s32.totalorder %s334_s20, %s3066_s10  ;;  %p3075_p9 = scmp.lt.s32.totalorder %s3066_s10, %s3066_s10 }
  0x81   : > { %p3069_p0 = pnand %p3067_p13, %p3492_p3  ;;  %p3076_p10 = por %p3075_p9, %p3074_p8 }
  0x83   : > { %p3070_p7 = pneg %p3069_p0 }
  0x85   : > { %p3077_p1 = pnand %p3076_p10, %p3070_p7 }
  0x87   : > { %3080 = shalt.err (!%p3077_p1)
}
  0x88   : > { %2805 = dma.hbm_to_vmem [thread:$0]  (!%p3478_p2), %s4571_s6, 64, %s334_s20, [#allocation12]  }
  0x89   : > { %s3315_s25 = smov [#allocation16]   ;;  %s3316_s5 = smov [#allocation17]  }
  0x8a   : > { %s357_s12 = sshll.u32 %s3315_s25, 4  ;;  %s368_s14 = sshll.u32 %s3316_s5, 4  ;;  %s358_s12 = int_to_ptr.vmem [resolvable:$true] %s357_s12  ;;  %s369_s14 = int_to_ptr.vmem [resolvable:$true] %s368_s14 }
  0x8b   : > { %s3081_s26 = scalar_lea.hbm %s4573_s8, 128 }
  0x8c   : > { %p3082_p4 = scmp.ne.s32.totalorder %s4573_s8, %s3081_s26  ;;  %p3088_p11 = scmp.lt.u32.totalorder %s3081_s26, %s4573_s8 }
  0x8e   : > { %p3084_p5 = pnand %p3082_p4, %p3492_p3 }
  0x90   : > { %p3085_p6 = pneg %p3084_p5 }
  0x92   : > { %p3090_p12 = pnand %p3088_p11, %p3085_p6 }
  0x94   : > { %3093 = shalt.err (!%p3090_p12)
}
  0x95   : > { %s3094_s20 = scalar_lea.vmem %s358_s12, 128  ;;  %p3102_p8 = scmp.lt.s32.totalorder %s358_s12, %s358_s12 }
  0x96   : > { %p3095_p13 = scmp.ne.s32.totalorder %s358_s12, %s3094_s20  ;;  %p3103_p9 = scmp.lt.s32.totalorder %s3094_s20, %s3094_s20 }
  0x98   : > { %p3097_p0 = pnand %p3095_p13, %p3492_p3  ;;  %p3104_p10 = por %p3103_p9, %p3102_p8 }
  0x9a   : > { %p3098_p7 = pneg %p3097_p0 }
  0x9c   : > { %p3105_p1 = pnand %p3104_p10, %p3098_p7 }
  0x9e   : > { %3108 = shalt.err (!%p3105_p1)
}
  0x9f   : > { %2811 = dma.hbm_to_vmem [thread:$0]  (!%p3478_p2), %s4573_s8, 128, %s358_s12, [#allocation15]  }
  0xa0   : > { %s3109_s5 = scalar_lea.hbm %s4574_s9, 16 }
  0xa1   : > { %p3110_p4 = scmp.ne.s32.totalorder %s4574_s9, %s3109_s5  ;;  %p3116_p11 = scmp.lt.u32.totalorder %s3109_s5, %s4574_s9 }
  0xa3   : > { %p3112_p5 = pnand %p3110_p4, %p3492_p3 }
  0xa5   : > { %p3113_p6 = pneg %p3112_p5 }
  0xa7   : > { %p3118_p12 = pnand %p3116_p11, %p3113_p6 }
  0xa9   : > { %3121 = shalt.err (!%p3118_p12)
}
  0xaa   : > { %s3122_s11 = scalar_lea.vmem %s369_s14, 16  ;;  %s3129_s12 = scalar_lea.vmem %s369_s14, 32 }
  0xab   : > { %p3123_p13 = scmp.ne.s32.totalorder %s369_s14, %s3122_s11  ;;  %p3130_p8 = scmp.lt.s32.totalorder %s369_s14, %s369_s14 }
  0xac   : > { %p3131_p9 = scmp.lt.s32.totalorder %s3129_s12, %s3122_s11 }
  0xad   : > { %p3125_p0 = pnand %p3123_p13, %p3492_p3 }
  0xae   : > { %p3132_p10 = por %p3131_p9, %p3130_p8 }
  0xaf   : > { %p3126_p7 = pneg %p3125_p0 }
  0xb1   : > { %p3133_p1 = pnand %p3132_p10, %p3126_p7 }
  0xb3   : > { %3136 = shalt.err (!%p3133_p1)
}
  0xb4   : > { %2814 = dma.hbm_to_vmem [thread:$0]  (!%p3478_p2), %s4574_s9, 16, %s369_s14, [#allocation18]  }
  0xb5   : > { %p2306_p4 = scmp.ge.s32.totalorder %s3307_s16, 2 }
  0xb6   : > { %s379_s28 = sand.u32 (!%p2306_p4), 1, %s3307_s16   ;;  %s3617_s20 = sand.u32 (!%p2306_p4), 1, %s3303_s15  }
  0xb7   : > { %375 = sbr.rel (%p2306_p4) target bundleno = 278 (0x116), region = 40  ;;  %s2307_s30 = sshll.u32 (!%p2306_p4), %s3617_s20, 4 }
  0xb8   : > { %s2375_s10 = sshll.u32 (!%p2306_p4), %s3307_s16, 8  ;;  %s4614_s1 = sld [smem:[#allocation38_spill]] (!%p2306_p4) }
  0xb9   : > { %s383_s25 = scalar_lea.vmem (!%p2306_p4), [#allocation5], %s2307_s30  ;;  %s2310_s13 = sshll.u32 (!%p2306_p4), %s3617_s20, 3 }
  0xba   : > { %s390_s5 = sshll.u32 (!%p2306_p4), %s383_s25, 4  ;;  %s3635_s24 = scalar_lea.sflag (!%p2306_p4), [#allocation6], %s379_s28  ;;  %s3630_s5 = int_to_ptr.vmem [resolvable:$true] %s390_s5 }
  0xbb   : > { %p4615_p3 = scmp.ne.s32.totalorder (!%p2306_p4), %s4602_s23, 0 }
  0xbe   : > { %s3626_s22 = scalar_lea.hbm %s4614_s1, %s2375_s10  ;;  %s3141_s12 = scalar_lea.hbm %s4614_s1, 512 }
  0xbf   : > { %s3137_s26 = scalar_lea.hbm %s3626_s22, 256  ;;  %p3142_p11 = scmp.lt.u32.totalorder %s3626_s22, %s4614_s1 }
  0xc0   : > { %p3138_p2 = scmp.ne.s32.totalorder %s3626_s22, %s3137_s26  ;;  %p3143_p12 = scmp.lt.u32.totalorder %s3141_s12, %s3137_s26 }
  0xc1   : > { %p3145_p0 = scmp.lt.u32.totalorder %s3137_s26, %s3626_s22 }
  0xc2   : > { %p3139_p5 = pnand %p3138_p2, %p4615_p3  ;;  %p3144_p13 = por %p3143_p12, %p3142_p11 }
  0xc4   : > { %p3140_p6 = pneg %p3139_p5  ;;  %p3146_p7 = por %p3145_p0, %p3144_p13 }
  0xc6   : > { %p3147_p8 = pnand %p3146_p7, %p3140_p6 }
  0xc8   : > { %3150 = shalt.err (!%p3147_p8)
}
  0xc9   : > { %s3151_s14 = scalar_lea.vmem %s3630_s5, 256  ;;  %s3317_s19 = smov [#allocation5]  }
  0xca   : > { %p3152_p9 = scmp.ne.s32.totalorder %s3630_s5, %s3151_s14  ;;  %s3155_s25 = sshll.u32 %s3317_s19, 4  ;;  %s3156_s25 = int_to_ptr.vmem [resolvable:$false] %s3155_s25 }
  0xcb   : > { %s3157_s21 = scalar_lea.vmem %s3156_s25, 512  ;;  %p3158_p2 = scmp.lt.s32.totalorder %s3630_s5, %s3156_s25 }
  0xcc   : > { %p3153_p10 = pnand %p3152_p9, %p4615_p3  ;;  %p3159_p5 = scmp.lt.s32.totalorder %s3157_s21, %s3151_s14 }
  0xce   : > { %p3154_p1 = pneg %p3153_p10  ;;  %p3160_p11 = por %p3159_p5, %p3158_p2 }
  0xd0   : > { %p3161_p12 = pnand %p3160_p11, %p3154_p1 }
  0xd2   : > { %3164 = shalt.err (!%p3161_p12)
}
  0xd3   : > { %s4591_s26 = smov 128   ;;  %s4592_s11 = smov 8  }
  0xd4   : > { %2767 = dma.hbm_to_vmem [thread:$0]  (%p4615_p3), %s3626_s22, 256, %s3630_s5, %s3635_s24, %s4591_s26, %s4591_s26, %s4592_s11  }
  0xd5   : > { %s2376_s12 = sshll.u32 %s3307_s16, 7  ;;  %s4616_s2 = sld [smem:[#allocation39_spill]] }
  0xd6   : > { %s404_s19 = scalar_lea.vmem [#allocation7], %s2310_s13 }
  0xd7   : > { %s411_s25 = sshll.u32 %s404_s19, 4  ;;  %s3672_s25 = int_to_ptr.vmem [resolvable:$true] %s411_s25 }
  0xdb   : > { %s3668_s14 = scalar_lea.hbm %s4616_s2, %s2376_s12  ;;  %s3169_s18 = scalar_lea.hbm %s4616_s2, 256 }
  0xdc   : > { %s3165_s21 = scalar_lea.hbm %s3668_s14, 128  ;;  %p3170_p7 = scmp.lt.u32.totalorder %s3668_s14, %s4616_s2 }
  0xdd   : > { %p3166_p6 = scmp.ne.s32.totalorder %s3668_s14, %s3165_s21  ;;  %p3171_p8 = scmp.lt.u32.totalorder %s3169_s18, %s3165_s21 }
  0xde   : > { %p3173_p10 = scmp.lt.u32.totalorder %s3165_s21, %s3668_s14 }
  0xdf   : > { %p3167_p13 = pnand %p3166_p6, %p4615_p3  ;;  %p3172_p9 = por %p3171_p8, %p3170_p7 }
  0xe1   : > { %p3168_p0 = pneg %p3167_p13  ;;  %p3174_p1 = por %p3173_p10, %p3172_p9 }
  0xe3   : > { %p3175_p2 = pnand %p3174_p1, %p3168_p0 }
  0xe5   : > { %3178 = shalt.err (!%p3175_p2)
}
  0xe6   : > { %s3179_s13 = scalar_lea.vmem %s3672_s25, 128  ;;  %s3320_s19 = smov [#allocation7]  }
  0xe7   : > { %p3180_p5 = scmp.ne.s32.totalorder %s3672_s25, %s3179_s13  ;;  %s3183_s22 = sshll.u32 %s3320_s19, 4  ;;  %s3184_s22 = int_to_ptr.vmem [resolvable:$false] %s3183_s22 }
  0xe8   : > { %s3185_s26 = scalar_lea.vmem %s3184_s22, 256  ;;  %p3186_p6 = scmp.lt.s32.totalorder %s3672_s25, %s3184_s22 }
  0xe9   : > { %p3181_p11 = pnand %p3180_p5, %p4615_p3  ;;  %p3187_p13 = scmp.lt.s32.totalorder %s3185_s26, %s3179_s13 }
  0xeb   : > { %p3182_p12 = pneg %p3181_p11  ;;  %p3188_p7 = por %p3187_p13, %p3186_p6 }
  0xed   : > { %p3189_p8 = pnand %p3188_p7, %p3182_p12 }
  0xef   : > { %3192 = shalt.err (!%p3189_p8)
}
  0xf0   : > { %s3321_s21 = smov 64   ;;  %s3322_s5 = smov 4  }
  0xf1   : > { %2768 = dma.hbm_to_vmem [thread:$0]  (%p4615_p3), %s3668_s14, 128, %s3672_s25, %s3635_s24, %s3321_s21, %s3321_s21, %s3322_s5  }
  0xf2   : > { %s2313_s18 = sshll.u32 %s3617_s20, 6  ;;  %s431_s19 = scalar_lea.hbm %s4568_s3, %s2376_s12 }
  0xf3   : > { %s2769_s22 = scalar_select %p4615_p3, [#allocation0], [#allocation22] }
  0xf4   : > { %s425_s26 = scalar_lea.vmem [#allocation8], %s2313_s18  ;;  %s3323_s14 = smov 256  }
  0xf5   : > { %s444_s11 = sshll.u32 %s425_s26, 4  ;;  %s436_s24 = sld [smem:[%s2769_s22]]   ;;  %s445_s11 = int_to_ptr.vmem [resolvable:$true] %s444_s11 }
  0xf6   : > { %2770 = sst [smem:[#allocation21]] (%p4615_p3), %s3323_s14  ;;  %s3324_s25 = smov 128  }
  0xf7   : > { %2771 = sst [smem:[#allocation21 + $0x1]] (%p4615_p3), %s3324_s25  ;;  %s3325_s21 = smov 2  }
  0xf8   : > { %2772 = sst [smem:[#allocation21 + $0x2]] (%p4615_p3), %s3325_s21  ;;  %s3326_s5 = smov 64  }
  0xf9   : > { %2773 = sst [smem:[#allocation21 + $0x3]] (%p4615_p3), %s3326_s5  ;;  %s3327_s18 = smov 4  }
  0xfa   : > { %2774 = sst [smem:[#allocation21 + $0x4]] (%p4615_p3), %s3326_s5  ;;  %s3718_s13 = scalar_lea.sflag [#allocation9], %s379_s28 }
  0xfb   : > { %s2316_s12 = sshll.u32 %s436_s24, 26  ;;  %2775 = sst [smem:[#allocation21 + $0x5]] (%p4615_p3), %s3327_s18 }
  0xfc   : > { %s2317_s29 = sadd.s32 134217728, %s2316_s12  ;;  %s3328_s22 = smov [#allocation20]  }
  0xfd   : > { %2776 = dma.general (%p4615_p3), %s431_s19, 1024, %s445_s11, %s3718_s13, %s3328_s22, [#allocation21], %s2317_s29, 0  }
  0xfe   : > { %s3728_s25 = scalar_lea.hbm %s4569_s4, %s2375_s10  ;;  %s471_s28 = scalar_lea.vmem [#allocation10], %s2307_s30 }
  0xff   : > { %s478_s24 = sshll.u32 %s471_s28, 4  ;;  %s3193_s21 = scalar_lea.hbm %s3728_s25, 256  ;;  %s3732_s24 = int_to_ptr.vmem [resolvable:$true] %s478_s24 }
 0x100   : > { %p3194_p0 = scmp.ne.s32.totalorder %s3728_s25, %s3193_s21  ;;  %s3197_s5 = scalar_lea.hbm %s4569_s4, 512 }
 0x101   : > { %p3198_p1 = scmp.lt.u32.totalorder %s3728_s25, %s4569_s4  ;;  %p3199_p2 = scmp.lt.u32.totalorder %s3197_s5, %s3193_s21 }
 0x102   : > { %p3195_p9 = pnand %p3194_p0, %p4615_p3  ;;  %p3201_p11 = scmp.lt.u32.totalorder %s3193_s21, %s3728_s25 }
 0x103   : > { %p3200_p5 = por %p3199_p2, %p3198_p1 }
 0x104   : > { %p3196_p10 = pneg %p3195_p9 }
 0x105   : > { %p3202_p12 = por %p3201_p11, %p3200_p5 }
 0x107   : > { %p3203_p6 = pnand %p3202_p12, %p3196_p10 }
 0x109   : > { %3206 = shalt.err (!%p3203_p6)
}
 0x10a   : > { %s3207_s20 = scalar_lea.vmem %s3732_s24, 256  ;;  %s3329_s30 = smov [#allocation10]  }
 0x10b   : > { %p3208_p13 = scmp.ne.s32.totalorder %s3732_s24, %s3207_s20  ;;  %s3211_s18 = sshll.u32 %s3329_s30, 4  ;;  %s3212_s18 = int_to_ptr.vmem [resolvable:$false] %s3211_s18 }
 0x10c   : > { %s3213_s29 = scalar_lea.vmem %s3212_s18, 512  ;;  %p3214_p0 = scmp.lt.s32.totalorder %s3732_s24, %s3212_s18 }
 0x10d   : > { %p3209_p7 = pnand %p3208_p13, %p4615_p3  ;;  %p3215_p9 = scmp.lt.s32.totalorder %s3213_s29, %s3207_s20 }
 0x10f   : > { %p3210_p8 = pneg %p3209_p7  ;;  %p3216_p1 = por %p3215_p9, %p3214_p0 }
 0x111   : > { %p3217_p2 = pnand %p3216_p1, %p3210_p8 }
 0x113   : > { %3220 = shalt.err (!%p3217_p2)
}
 0x114   : > { %s4617_s22 = smov 8   ;;  %s4618_s26 = smov 128  }
 0x115   : > { %2777 = dma.hbm_to_vmem [thread:$0]  (%p4615_p3), %s3728_s25, 256, %s3732_s24, %s3718_s13, %s4618_s26, %s4618_s26, %s4617_s22  }
 0x116 PF: > { %p4619_p10 = scmp.ne.s32.totalorder %s4609_s27, 0 }
 0x117   : > { %p4620_p5 = scmp.eq.s32.totalorder (!%p4619_p10), %s3431_s17, 0 }
 0x118   : > { %490 = sbr.rel (%p4619_p10) target bundleno = 1616 (0x650), region = 60 }
 0x11f   : > { %3266 = dma.done.wait (%p4620_p5), [#allocation3], 512   ;;  %p4621_p11 = pmov %p4620_p5 }
 0x120   : > { %s4622_s14 = sld [smem:[#allocation31_spill]]  ;;  %s4623_s23 = sld [smem:[#allocation34_spill]] }
 0x121   : > { %3268 = vsyncadd (%p4621_p11), [#allocation3], 4294966784  ;;  %s496_s28 = sand.u32 1, %s3431_s17  }
 0x122   : > { %s497_s13 = scalar_lea.sflag [#allocation6], %s496_s28 }
 0x126   : > { %s3767_s21 = sand.u32 1, %s4622_s14   ;;  %p4624_p3 = scmp.ne.s32.totalorder %s4623_s23, 0 }
 0x127   : > { %s3770_s11 = sshll.u32 %s3767_s21, 4 }
 0x128   : > { %s500_s25 = scalar_lea.vmem [#allocation5], %s3770_s11 }
 0x129   : > { %3270 = dma.done.wait (%p4624_p3), %s497_s13, 384  }
 0x12a   : > { %3272 = vsyncadd (%p4624_p3), %s497_s13, 4294966912  ;;  %s2324_s27 = sshll.u32 %s3767_s21, 3  ;;  %s2325_s24 = sshll.u32 %s3767_s21, 6 }
 0x12b   : > { %s3779_s19 = scalar_lea.vmem [#allocation7], %s2324_s27  ;;  %s515_s5 = scalar_lea.sflag [#allocation9], %s496_s28 }
 0x12c   : > { %s3781_s10 = scalar_lea.vmem [#allocation8], %s2325_s24 }
 0x12d   : > { %3274 = dma.done.wait (%p4624_p3), %s515_s5, 1280  }
 0x12e   : > { %3276 = vsyncadd (%p4624_p3), %s515_s5, 4294966016  ;;  %s527_s12 = scalar_lea.vmem [#allocation10], %s3770_s11  ;;  %p4625_p12 = pmov %p4620_p5 }
 0x12f   : > { %p4626_p6 = pmov %p4620_p5 }
 0x130   : > { %3278 = dma.done.wait (%p4625_p12), [#allocation12], 2112  }
 0x131   : > { %3280 = vsyncadd (%p4626_p6), [#allocation12], 4294965184  ;;  %p4627_p13 = pmov %p4620_p5 }
 0x132   : > { %p4628_p7 = pmov %p4620_p5 }
 0x133   : > { %3282 = dma.done.wait (%p4627_p13), [#allocation15], 640  }
 0x134   : > { %3284 = vsyncadd (%p4628_p7), [#allocation15], 4294966656  ;;  %p4629_p8 = pmov %p4620_p5 }
 0x135   : > { %p4630_p0 = pmov %p4620_p5 }
 0x136   : > { %3286 = dma.done.wait (%p4629_p8), [#allocation18], 16  }
 0x137   : > { %3288 = vsyncadd (%p4630_p0), [#allocation18], 4294967280  ;;  %v609_v0 = vld [vmem:[#allocation11] sm:$0xff]  ;;  %v610_v1 = vld [vmem:[#allocation11 + $0x8] sm:$0xff]  ;;  %s3330_s20 = smov 1   ;;  %s3331_s30 = smov 127   ;;  %v960_v49 = vlaneseq }
 0x138   : > { %v611_v2 = vld [vmem:[#allocation11 + $0x10] sm:$0xff]  ;;  %v2611_v3 = vpack.c.bf16 %v610_v1, %v609_v0  ;;  %v612_v4 = vld [vmem:[#allocation11 + $0x18] sm:$0xff]  ;;  %v613_v6 = vld [vmem:[#allocation11 + $0x20] sm:$0xff]  ;;  %v3332_v40 = vmov 0.0|0.0   ;;  %s3333_s18 = smov 126   ;;  %v3334_v43 = vmov 0.0  }
 0x139   : > { %v2615_v5 = vpack.c.bf16 %v612_v4, %v611_v2  ;;  %v614_v7 = vld [vmem:[#allocation11 + $0x28] sm:$0xff]  ;;  %v710_v9 = vld [vmem:[%s500_s25] sm:$0xff]  ;;  %v616_v11 = vld [vmem:[#allocation11 + $0x38] sm:$0xff]  ;;  %s3335_s29 = smov 125   ;;  %vm3336_vm0 = vmmov 0   ;;  %s3337_s22 = smov 124  }
 0x13a   : > { %2644 = vmatprep.subr.bf16.mxu1 %v2611_v3  ;;  %2612 = vmatprep.subr.bf16.mxu0 %v2611_v3  ;;  %v2619_v8 = vpack.c.bf16 %v614_v7, %v613_v6  ;;  %v615_v10 = vld [vmem:[#allocation11 + $0x30] sm:$0xff]  ;;  %v617_v15 = vld [vmem:[#allocation11 + $0x40] sm:$0xff]  ;;  %v618_v16 = vld [vmem:[#allocation11 + $0x48] sm:$0xff]  ;;  %s3338_s26 = smov 123   ;;  %s3339_s14 = smov 2   ;;  %v3341_v48 = vmov 0  }
 0x13b   : > { %2646 = vmatpush3.bf16.msra.mxu1 %v2611_v3  ;;  %2614 = vmatpush3.bf16.msra.mxu0 %v2611_v3  ;;  %v605_v12 = vld [vmem:[#allocation2] sm:$0xff]  ;;  %v2623_v14 = vpack.c.bf16 %v616_v11, %v615_v10  ;;  %v2627_v17 = vpack.c.bf16 %v618_v16, %v617_v15  ;;  %v620_v19 = vld [vmem:[#allocation11 + $0x58] sm:$0xff]  ;;  %v621_v21 = vld [vmem:[#allocation11 + $0x60] sm:$0xff]  ;;  %s3340_s23 = smov 3   ;;  %s3342_s28 = smov 122   ;;  %v3890_v51 = vshrl.u32 %v960_v49, 7 }
 0x13c   : > { %2648 = vmatprep.subr.bf16.mxu1 %v2615_v5  ;;  %2616 = vmatprep.subr.bf16.mxu0 %v2615_v5  ;;  %v3804_v13 = vld [vmem:[%s527_s12] sm:$0xff]  ;;  %v622_v22 = vld [vmem:[#allocation11 + $0x68] sm:$0xff]  ;;  %v624_v25 = vld [vmem:[#allocation11 + $0x78] sm:$0xff]  ;;  %s3343_s13 = smov 121   ;;  %vm788_vm1 = vcmask 261120   ;;  %vm1330_vm15 = vcmask 64512  }
 0x13d   : > { %2554 = vmatprep.mubr.f32.mxu1 %v710_v9  ;;  %2516 = vmatprep.mubr.f32.mxu0 %v605_v12  ;;  %v619_v18 = vld [vmem:[#allocation11 + $0x50] sm:$0xff]  ;;  %v2635_v23 = vpack.c.bf16 %v622_v22, %v621_v21  ;;  %v874_v27 = vld [vmem:[#allocation14] sm:$0xff]  ;;  %v877_v31 = vld [vmem:[#allocation14 + $0x18] sm:$0xff]  ;;  %v1035_v53 = vsub.s32 0, %v3890_v51  ;;  %v1051_v54 = vsub.s32 1, %v3890_v51  ;;  %v1075_v57 = vsub.s32 2, %v3890_v51 }
 0x13e   : > { %1342 = vrot.lane.b32.xlu1 %v3804_v13, %s3330_s20  ;;  %v2631_v20 = vpack.c.bf16 %v620_v19, %v619_v18  ;;  %v623_v24 = vld [vmem:[#allocation11 + $0x70] sm:$0xff]  ;;  %v711_v32 = vld [vmem:[%s500_s25 + $0x8] sm:$0xff]  ;;  %v607_v34 = vld [vmem:[#allocation2 + $0x10] sm:$0xff]  ;;  %1055 = vrot.lane.b32.xlu0 %v3804_v13, %s3331_s30  ;;  %v1097_v63 = vsub.s32 3, %v3890_v51  ;;  %v1119_v3 = vsub.s32 4, %v3890_v51 }
 0x13f   : > { %2650 = vmatpush3.bf16.msra.mxu1 %v2615_v5  ;;  %2618 = vmatpush3.bf16.msra.mxu0 %v2615_v5  ;;  %v2639_v26 = vpack.c.bf16 %v624_v25, %v623_v24  ;;  %v875_v28 = vld [vmem:[#allocation14 + $0x8] sm:$0xff]  ;;  %v876_v30 = vld [vmem:[#allocation14 + $0x10] sm:$0xff]  ;;  %v3818_v38 = vld [vmem:[#allocation16] sm:$0xff] }
 0x140   : > { %2652 = vmatprep.subr.bf16.mxu1 %v2619_v8  ;;  %2620 = vmatprep.subr.bf16.mxu0 %v2619_v8  ;;  %v2683_v29 = vpack.c.bf16 %v875_v28, %v874_v27  ;;  %v606_v33 = vld [vmem:[#allocation2 + $0x8] sm:$0xff]  ;;  %v2687_v35 = vpack.c.bf16 %v877_v31, %v876_v30  ;;  %v608_v36 = vld [vmem:[#allocation2 + $0x18] sm:$0xff]  ;;  %v3821_v39 = vrot.slane %v3818_v38, 1  ;;  %2691 = vpush %v3818_v38  ;;  %v1065_v41 = vrot.slane %v3818_v38, 2  ;;  %vm3947_vm2 = vmpackc.low %vm788_vm1, %vm788_vm1 }
 0x141   : > { %v3814_v37 = vld [vmem:[%s527_s12 + $0x8] sm:$0xff]  ;;  %v1087_v42 = vrot.slane %v3818_v38, 3  ;;  %v1109_v44 = vrot.slane %v3818_v38, 4  ;;  %v1131_v45 = vrot.slane %v3818_v38, 5  ;;  %v1153_v46 = vrot.slane %v3818_v38, 6  ;;  %2906 = vset.pattern.permute.xlu0 %v3341_v48  ;;  %2907 = vset.pattern.permute.xlu1 %v3341_v48 }
 0x142   : > { %1344 = vrot.lane.b32.xlu1 %v3814_v37, %s3330_s20  ;;  %1057 = vrot.lane.b32.xlu0 %v3814_v37, %s3331_s30  ;;  %2693 = vpush %v3821_v39  ;;  %v1175_v47 = vrot.slane %v3818_v38, 7  ;;  %v3904_v58 = vrot.slane %v3818_v38, %v1035_v53  ;;  %v3909_v59 = vrot.slane %v3818_v38, %v1051_v54  ;;  %v1163_v28 = vsub.s32 6, %v3890_v51 }
 0x143   : > { %2654 = vmatpush3.bf16.msra.mxu1 %v2619_v8  ;;  %2622 = vmatpush3.bf16.msra.mxu0 %v2619_v8  ;;  %2695 = vpush %v1065_v41  ;;  %v3918_v62 = vrot.slane %v3818_v38, %v1075_v57 }
 0x144   : > { %2656 = vmatprep.subr.bf16.mxu1 %v2623_v14  ;;  %2624 = vmatprep.subr.bf16.mxu0 %v2623_v14  ;;  %2697 = vpush %v1087_v42  ;;  %v1038_v0 = vmul.f32 %v3904_v58, %v3814_v37  ;;  %v1037_v4 = vmul.f32 %v3904_v58, %v3804_v13 }
 0x145   : > { %2699 = vpush %v1109_v44  ;;  %v1362_v7 = vmul.f32 %v3909_v59, %v3814_v37  ;;  %v1361_v12 = vmul.f32 %v3909_v59, %v3804_v13 }
 0x146   : > { %1079 = vrot.lane.b32.xlu1 %v3814_v37, %s3333_s18  ;;  %1077 = vrot.lane.b32.xlu0 %v3804_v13, %s3333_s18  ;;  %2701 = vpush %v1131_v45 }
 0x147   : > { %2658 = vmatpush3.bf16.msra.mxu1 %v2623_v14  ;;  %2626 = vmatpush3.bf16.msra.mxu0 %v2623_v14  ;;  %2703 = vpush %v1153_v46  ;;  %v1141_v14 = vsub.s32 5, %v3890_v51 }
 0x148   : > { %2660 = vmatprep.subr.bf16.mxu1 %v2627_v17  ;;  %2628 = vmatprep.subr.bf16.mxu0 %v2627_v17  ;;  %2705 = vpush %v1175_v47 }
 0x14a   : > { %1101 = vrot.lane.b32.xlu1 %v3814_v37, %s3335_s29  ;;  %1099 = vrot.lane.b32.xlu0 %v3804_v13, %s3335_s29 }
 0x14b   : > { %2662 = vmatpush3.bf16.msra.mxu1 %v2627_v17  ;;  %2630 = vmatpush3.bf16.msra.mxu0 %v2627_v17  ;;  %v1098_v17 = vrot.slane %v3818_v38, %v1097_v63 }
 0x14c   : > { %2664 = vmatprep.subr.bf16.mxu1 %v2631_v20  ;;  %2632 = vmatprep.subr.bf16.mxu0 %v2631_v20 }
 0x14e   : > { %1123 = vrot.lane.b32.xlu1 %v3814_v37, %s3337_s22  ;;  %1121 = vrot.lane.b32.xlu0 %v3804_v13, %s3337_s22 }
 0x14f   : > { %2666 = vmatpush3.bf16.msra.mxu1 %v2631_v20  ;;  %2634 = vmatpush3.bf16.msra.mxu0 %v2631_v20 }
 0x150   : > { %2668 = vmatprep.subr.bf16.mxu1 %v2635_v23  ;;  %2636 = vmatprep.subr.bf16.mxu0 %v2635_v23 }
 0x152   : > { %1145 = vrot.lane.b32.xlu1 %v3814_v37, %s3338_s26  ;;  %1143 = vrot.lane.b32.xlu0 %v3804_v13, %s3338_s26 }
 0x153   : > { %2670 = vmatpush3.bf16.msra.mxu1 %v2635_v23  ;;  %2638 = vmatpush3.bf16.msra.mxu0 %v2635_v23  ;;  %v3957_v23 = vrot.slane %v3818_v38, %v1119_v3 }
 0x154   : > { %2672 = vmatprep.subr.bf16.mxu1 %v2639_v26  ;;  %2640 = vmatprep.subr.bf16.mxu0 %v2639_v26 }
 0x156   : > { %1597 = vrot.lane.b32.xlu1 %v3814_v37, %s3339_s14  ;;  %1595 = vrot.lane.b32.xlu0 %v3804_v13, %s3339_s14 }
 0x157   : > { %2674 = vmatpush3.bf16.msra.mxu1 %v2639_v26  ;;  %2642 = vmatpush3.bf16.msra.mxu0 %v2639_v26 }
 0x158   : > { %2684 = vmatprep.subr.bf16.mxu1 %v2683_v29  ;;  %2675 = vmatprep.subr.bf16.mxu0 %v3332_v40 }
 0x15a   : > { %2555 = vmatmul.mubr.f32.vlgmr.msra.gmra.mrb[0].mxu1 %v711_v32  ;;  %2517 = vmatmul.mubr.f32.vlgmr.msra.gmra.mrb[0].mxu0 %v606_v33 }
 0x15b   : > { %2519 = vmatprep.mubr.f32.mxu0 %v607_v34  ;;  %2686 = vmatpush3.bf16.msra.mxu1 %v2683_v29  ;;  %v1185_v29 = vsub.s32 7, %v3890_v51  ;;  %v3976_v34 = vrot.slane %v3818_v38, %v1141_v14 }
 0x15c   : > { %2688 = vmatprep.subr.bf16.mxu1 %v2687_v35  ;;  %1848 = vrot.lane.b32.xlu1 %v3814_v37, %s3340_s23 }
 0x15d   : > { %1846 = vrot.lane.b32.xlu0 %v3804_v13, %s3340_s23  ;;  %v3998_v3 = vrot.slane %v3818_v38, %v1185_v29 }
 0x15e   : > { %2520 = vmatmul.mubr.f32.gmra.mrb[2].mxu0 %v608_v36 }
 0x15f   : > { %2690 = vmatpush3.bf16.msra.mxu1 %v2687_v35  ;;  %2565 = vmatprep.mubr.msk.f32.mxu0 %vm3336_vm0, %v3334_v43 }
 0x160   : > { %2579 = vmatprep.subr.bf16.mxu1 %v3334_v43  ;;  %1167 = vrot.lane.b32.xlu1 %v3814_v37, %s3342_s28 }
 0x161   : > { %1165 = vrot.lane.b32.xlu0 %v3804_v13, %s3342_s28 }
 0x164   : > { %1189 = vrot.lane.b32.xlu1 %v3814_v37, %s3343_s13 }
 0x165   : > { %1187 = vrot.lane.b32.xlu0 %v3804_v13, %s3343_s13 }
 0x168   : > { %1352 = vrot.lane.b32.xlu1 %v3821_v39, %s3331_s30 }
 0x169   : > { %1333 = vrot.lane.b32.xlu0 %v3818_v38, %s3331_s30 }
 0x16c   : > { %1378 = vrot.lane.b32.xlu1 %v1087_v42, %s3331_s30 }
 0x16d   : > { %1365 = vrot.lane.b32.xlu0 %v1065_v41, %s3331_s30 }
 0x170   : > { %1404 = vrot.lane.b32.xlu1 %v1131_v45, %s3331_s30 }
 0x171   : > { %1391 = vrot.lane.b32.xlu0 %v1109_v44, %s3331_s30  ;;  %s2692_s25 = spop %2691 }
 0x173   : > { %s2694_s27 = spop %2693 }
 0x174   : > { %1430 = vrot.lane.b32.xlu1 %v1175_v47, %s3331_s30  ;;  %s4100_s24 = spop %2695 }
 0x175   : > { %1417 = vrot.lane.b32.xlu0 %v1153_v46, %s3331_s30  ;;  %s4102_s5 = spop %2697 }
 0x176   : > { %s4104_s12 = spop %2699 }
 0x177   : > { %s4106_s20 = spop %2701 }
 0x178   : > { %1605 = vrot.lane.b32.xlu1 %v3821_v39, %s3333_s18  ;;  %s4108_s30 = spop %2703 }
 0x179   : > { %1586 = vrot.lane.b32.xlu0 %v3818_v38, %s3333_s18 }
 0x17c   : > { %1631 = vrot.lane.b32.xlu1 %v1087_v42, %s3333_s18 }
 0x17d   : > { %1618 = vrot.lane.b32.xlu0 %v1065_v41, %s3333_s18 }
 0x180   : > { %1657 = vrot.lane.b32.xlu1 %v1131_v45, %s3333_s18 }
 0x181   : > { %1644 = vrot.lane.b32.xlu0 %v1109_v44, %s3333_s18 }
 0x184   : > { %1683 = vrot.lane.b32.xlu1 %v1175_v47, %s3333_s18 }
 0x185   : > { %1670 = vrot.lane.b32.xlu0 %v1153_v46, %s3333_s18  ;;  %s4110_s18 = spop %2705 }
 0x188   : > { %1856 = vrot.lane.b32.xlu1 %v3821_v39, %s3335_s29 }
 0x189   : > { %1837 = vrot.lane.b32.xlu0 %v3818_v38, %s3335_s29 }
 0x18c   : > { %1882 = vrot.lane.b32.xlu1 %v1087_v42, %s3335_s29 }
 0x18d   : > { %1869 = vrot.lane.b32.xlu0 %v1065_v41, %s3335_s29 }
 0x190   : > { %1908 = vrot.lane.b32.xlu1 %v1131_v45, %s3335_s29 }
 0x191   : > { %1895 = vrot.lane.b32.xlu0 %v1109_v44, %s3335_s29 }
 0x194   : > { %1934 = vrot.lane.b32.xlu1 %v1175_v47, %s3335_s29 }
 0x195   : > { %1921 = vrot.lane.b32.xlu0 %v1153_v46, %s3335_s29 }
 0x1b0   : > { %v1343_v50 = vpop.permute.xlu1 %1342  ;;  %v3892_v52 = vpop.permute.xlu0 %1055 }
 0x1b1   : > { %v1061_v5 = vmul.f32 %v3892_v52, %v3909_v59  ;;  %v1348_v11 = vmul.f32 %v1343_v50, %v3904_v58  ;;  %v1374_v32 = vmul.f32 %v3918_v62, %v3892_v52  ;;  %v1614_v35 = vmul.f32 %v1343_v50, %v3909_v59 }
 0x1b2   : > { %v3984_v42 = vmul.f32 %v1343_v50, %v3918_v62 }
 0x1b3   : > { %v1063_v22 = vadd.f32 %v1061_v5, %v1037_v4  ;;  %v1363_v31 = vadd.f32 %v1361_v12, %v1348_v11  ;;  %v4013_v11 = vmul.f32 %v1098_v17, %v3814_v37  ;;  %v1640_v12 = vmul.f32 %v1098_v17, %v3892_v52 }
 0x1b4   : > { %v3896_v55 = vpop.permute.xlu1 %1344  ;;  %v3898_v56 = vpop.permute.xlu0 %1057 }
 0x1b5   : > { %v1062_v1 = vmul.f32 %v3898_v56, %v3909_v59  ;;  %v1349_v6 = vmul.f32 %v3896_v55, %v3904_v58  ;;  %v1375_v27 = vmul.f32 %v3918_v62, %v3898_v56  ;;  %v1376_v4 = vadd.f32 %v1374_v32, %v1363_v31 }
 0x1b7   : > { %v1064_v19 = vadd.f32 %v1062_v1, %v1038_v0  ;;  %v1364_v26 = vadd.f32 %v1362_v7, %v1349_v6  ;;  %v3995_v1 = vrot.slane %v3818_v38, %v1163_v28  ;;  %v1628_v6 = vmul.f32 %v3918_v62, %v3814_v37 }
 0x1b8   : > { %v3911_v60 = vpop.permute.xlu1 %1079  ;;  %v3913_v61 = vpop.permute.xlu0 %1077  ;;  %v1627_v7 = vmul.f32 %v3918_v62, %v3804_v13 }
 0x1b9   : > { %v1084_v20 = vmul.f32 %v3911_v60, %v3918_v62  ;;  %v1083_v24 = vmul.f32 %v3913_v61, %v3918_v62  ;;  %v1377_v0 = vadd.f32 %v1375_v27, %v1364_v26  ;;  %v1387_v5 = vmul.f32 %v1098_v17, %v3913_v61 }
 0x1ba   : > { %v1641_v27 = vmul.f32 %v1098_v17, %v3898_v56 }
 0x1bb   : > { %v1086_v36 = vadd.f32 %v1084_v20, %v1064_v19  ;;  %v1085_v45 = vadd.f32 %v1083_v24, %v1063_v22  ;;  %v1891_v19 = vmul.f32 %v1098_v17, %v3804_v13  ;;  %v1879_v20 = vmul.f32 %v3896_v55, %v3918_v62 }
 0x1bc   : > { %v3925_v2 = vpop.permute.xlu1 %1101  ;;  %v3936_v8 = vpop.permute.xlu0 %1099  ;;  %v1389_v28 = vadd.f32 %v1387_v5, %v1376_v4 }
 0x1bd   : > { %v1106_v41 = vmul.f32 %v3925_v2, %v1098_v17  ;;  %v1105_v46 = vmul.f32 %v3936_v8, %v1098_v17  ;;  %v1401_v24 = vmul.f32 %v3957_v23, %v3925_v2  ;;  %v1400_v13 = vmul.f32 %v3957_v23, %v3936_v8 }
 0x1bf   : > { %v1107_v14 = vadd.f32 %v1105_v46, %v1085_v45  ;;  %v1402_v4 = vadd.f32 %v1400_v13, %v1389_v28 }
 0x1c0   : > { %v3961_v25 = vpop.permute.xlu1 %1123  ;;  %v3968_v30 = vpop.permute.xlu0 %1121 }
 0x1c1   : > { %v1128_v38 = vmul.f32 %v3961_v25, %v3957_v23  ;;  %v1413_v5 = vmul.f32 %v3976_v34, %v3968_v30 }
 0x1c3   : > { %v1415_v13 = vadd.f32 %v1413_v5, %v1402_v4 }
 0x1c4   : > { %v3989_v47 = vpop.permute.xlu1 %1145  ;;  %v4000_v50 = vpop.permute.xlu0 %1143 }
 0x1c5   : > { %v1150_v62 = vmul.f32 %v3989_v47, %v3976_v34 }
 0x1c8   : > { %v1596_v26 = vpop.permute.xlu0 %1595 }
 0x1c9   : > { %v1601_v29 = vmul.f32 %v1596_v26, %v3904_v58 }
 0x1cb   : > { %v1616_v18 = vadd.f32 %v1614_v35, %v1601_v29  ;;  %v1426_v29 = vmul.f32 %v3995_v1, %v4000_v50 }
 0x22d   : > { %v2556_v9 = vpop.f32.mrb[0].mxu1  ;;  %v2518_v10 = vpop.f32.mrb[0].mxu0 }
 0x22e   : > { %v778_v15 = vpop.f32.mrb[1].mxu1  ;;  %v691_v16 = vpop.f32.mrb[1].mxu0 }
 0x22f   : > { %2576 = vmatprep.mubr.msk.f32.mxu1 %vm788_vm1, %v778_v15  ;;  %v3954_v21 = vpack.c.bf16 %v2518_v10, %v691_v16  ;;  %v1108_v10 = vadd.f32 %v1106_v41, %v1086_v36  ;;  %v1127_v15 = vmul.f32 %v3968_v30, %v3957_v23  ;;  %v1598_v16 = vpop.permute.xlu1 %1597  ;;  %v1865_v36 = vmul.f32 %v1596_v26, %v3909_v59 }
 0x230   : > { %2577 = vmatmul.mubr.msk.f32.vlgmr.msra.gmra.mrb[2].mxu1 %vm788_vm1, %v2556_v9  ;;  %v1615_v9 = vmul.f32 %v3896_v55, %v3909_v59  ;;  %v1602_v37 = vmul.f32 %v1598_v16, %v3904_v58  ;;  %v1866_v32 = vmul.f32 %v1598_v16, %v3909_v59  ;;  %v1654_v41 = vmul.f32 %v3957_v23, %v3911_v60 }
 0x231   : > { %2678 = vmatpush3.bf16.xpose.msk.msra.mxu0 %vm3947_vm2, %v3954_v21  ;;  %v2521_v33 = vpop.f32.mrb[2].mxu0  ;;  %2580 = vmatpush3.bf16.msra.mxu1 %v3954_v21  ;;  %v1130_v55 = vadd.f32 %v1128_v38, %v1108_v10  ;;  %v1629_v10 = vadd.f32 %v1627_v7, %v1616_v18  ;;  %v1414_v59 = vmul.f32 %v3976_v34, %v3961_v25 }
 0x232   : > { %v701_v39 = vpop.f32.mrb[3].mxu0  ;;  %2679 = vmatprep.subr.bf16.mxu0 %v3332_v40  ;;  %2581 = vmatprep.subr.bf16.mxu1 %v3334_v43  ;;  %v1388_v40 = vmul.f32 %v1098_v17, %v3911_v60  ;;  %v1617_v31 = vadd.f32 %v1615_v9, %v1602_v37  ;;  %v1129_v17 = vadd.f32 %v1127_v15, %v1107_v14  ;;  %v787_v9 = vld [vmem:[#allocation13] sm:$0xf] }
 0x233   : > { %v3986_v44 = vpack.c.bf16 %v2521_v33, %v701_v39  ;;  %2583 = vmatprep.mubr.msk.bf16.mxu1 %vm3336_vm0, %v3334_v43  ;;  %v1149_v33 = vmul.f32 %v4000_v50, %v3976_v34  ;;  %v1849_v39 = vpop.permute.xlu1 %1848  ;;  %v1152_v35 = vadd.f32 %v1150_v62, %v1130_v55  ;;  %v1904_v26 = vmul.f32 %v3957_v23, %v3892_v52 }
 0x234   : > { %v1390_v22 = vadd.f32 %v1388_v40, %v1377_v0  ;;  %v1630_v46 = vadd.f32 %v1628_v6, %v1617_v31  ;;  %v1853_v0 = vmul.f32 %v1849_v39, %v3904_v58  ;;  %v1847_v40 = vpop.permute.xlu0 %1846  ;;  %v1653_v6 = vmul.f32 %v3957_v23, %v3913_v61 }
 0x235   : > { %2582 = vmatpush3.bf16.msra.mxu1 %v3986_v44  ;;  %v1852_v38 = vmul.f32 %v1847_v40, %v3904_v58  ;;  %v1151_v16 = vadd.f32 %v1149_v33, %v1129_v17  ;;  %v1667_v7 = vmul.f32 %v3976_v34, %v3925_v2  ;;  %v1427_v62 = vmul.f32 %v3995_v1, %v3989_v47 }
 0x236   : > { %2595 = vmatprep.subr.bf16.mxu1 %v3334_v43  ;;  %v1403_v45 = vadd.f32 %v1401_v24, %v1390_v22  ;;  %v1643_v14 = vadd.f32 %v1641_v27, %v1630_v46  ;;  %v1868_v15 = vadd.f32 %v1866_v32, %v1853_v0  ;;  %v1642_v22 = vadd.f32 %v1640_v12, %v1629_v10 }
 0x237   : > { %v1867_v24 = vadd.f32 %v1865_v36, %v1852_v38  ;;  %v1168_v37 = vpop.permute.xlu1 %1167  ;;  %v1666_v32 = vmul.f32 %v3976_v34, %v3936_v8  ;;  %v1917_v39 = vmul.f32 %v3976_v34, %v3913_v61  ;;  %v1428_v40 = vadd.f32 %v1426_v29, %v1415_v13 }
 0x238   : > { %v1881_v58 = vadd.f32 %v1879_v20, %v1868_v15  ;;  %v1172_v28 = vmul.f32 %v1168_v37, %v3995_v1  ;;  %v1166_v27 = vpop.permute.xlu0 %1165  ;;  %v1416_v52 = vadd.f32 %v1414_v59, %v1403_v45  ;;  %v1656_v31 = vadd.f32 %v1654_v41, %v1643_v14 }
 0x239   : > { %2682 = vmatpush3.bf16.xpose.msk.msra.mxu0 %vm3947_vm2, %v3986_v44  ;;  %v1880_v12 = vadd.f32 %v3984_v42, %v1867_v24  ;;  %v1171_v55 = vmul.f32 %v1166_v27, %v3995_v1  ;;  %v1655_v17 = vadd.f32 %v1653_v6, %v1642_v22  ;;  %v1905_v42 = vmul.f32 %v3957_v23, %v3898_v56 }
 0x23a   : > { %2587 = vmatprep.subr.bf16.mxu0 %v3334_v43  ;;  %v1174_v20 = vadd.f32 %v1172_v28, %v1152_v35  ;;  %v1894_v45 = vadd.f32 %v4013_v11, %v1881_v58  ;;  %v1680_v41 = vmul.f32 %v3995_v1, %v3961_v25  ;;  %v1439_v4 = vmul.f32 %v3998_v3, %v1166_v27 }
 0x23b   : > { %v1893_v33 = vadd.f32 %v1891_v19, %v1880_v12  ;;  %v1173_v18 = vadd.f32 %v1171_v55, %v1151_v16  ;;  %v1190_v36 = vpop.permute.xlu1 %1189  ;;  %v1429_v5 = vadd.f32 %v1427_v62, %v1416_v52  ;;  %v1669_v23 = vadd.f32 %v1667_v7, %v1656_v31 }
 0x23c   : > { %v1194_v46 = vmul.f32 %v1190_v36, %v3998_v3  ;;  %v1188_v0 = vpop.permute.xlu0 %1187  ;;  %v1679_v61 = vmul.f32 %v3995_v1, %v3968_v30  ;;  %v1668_v38 = vadd.f32 %v1666_v32, %v1655_v17  ;;  %v1918_v35 = vmul.f32 %v3976_v34, %v3911_v60 }
 0x23d   : > { %v1193_v19 = vmul.f32 %v1188_v0, %v3998_v3  ;;  %v1906_v11 = vadd.f32 %v1904_v26, %v1893_v33  ;;  %v1907_v14 = vadd.f32 %v1905_v42, %v1894_v45  ;;  %v1441_v6 = vadd.f32 %v1439_v4, %v1428_v40 }
 0x23e   : > { %v1196_v56 = vadd.f32 %v1194_v46, %v1174_v20  ;;  %v1693_v16 = vmul.f32 %v3998_v3, %v3989_v47  ;;  %v1682_v24 = vadd.f32 %v1680_v41, %v1669_v23  ;;  %v1692_v26 = vmul.f32 %v3998_v3, %v4000_v50 }
 0x23f   : > { %v1195_v10 = vadd.f32 %v1193_v19, %v1173_v18  ;;  %v1353_v59 = vpop.permute.xlu1 %1352  ;;  %v1681_v7 = vadd.f32 %v1679_v61, %v1668_v38  ;;  %v1919_v60 = vadd.f32 %v1917_v39, %v1906_v11  ;;  %v1931_v58 = vmul.f32 %v3995_v1, %v3925_v2  ;;  %v2416_v11 = vld [vmem:[%s3781_s10 + $0x8] sm:$0xff]  }
 0x240   : > { %2566 = vmatmul.mubr.msk.f32.vlgmr.msra.gmra.mrb[4].mxu0 %vm788_vm1, %v787_v9  ;;  %v1440_v9 = vmul.f32 %v3998_v3, %v1168_v37  ;;  %1204 = vperm.xlu1 %2907, %v1196_v56   ;;  %v1334_v15 = vpop.permute.xlu0 %1333  ;;  %v1930_v37 = vmul.f32 %v3995_v1, %v3936_v8  ;;  %v3344_v28 = vmov 1   ;;  %v1920_v27 = vadd.f32 %v1918_v35, %v1907_v14 }
 0x241   : > { %2591 = vmatprep.mubr.msk.bf16.mxu0 %vm3336_vm0, %v3334_v43  ;;  %1199 = vperm.xlu0 %2906, %v1195_v10   ;;  %2707 = vpush %v1334_v15  ;;  %v1695_v8 = vadd.f32 %v1693_v16, %v1682_v24  ;;  %v1943_v50 = vmul.f32 %v3998_v3, %v3968_v30  ;;  %v3345_v52 = vmov 2   ;;  %v3346_v30 = vmov 3  }
 0x242   : > { %v1442_v22 = vadd.f32 %v1440_v9, %v1429_v5  ;;  %2709 = vpush %v1353_v59  ;;  %v1694_v13 = vadd.f32 %v1692_v26, %v1681_v7  ;;  %v1932_v29 = vadd.f32 %v1930_v37, %v1919_v60  ;;  %v1944_v2 = vmul.f32 %v3998_v3, %v3961_v25 }
 0x243   : > { %v1379_v34 = vpop.permute.xlu1 %1378  ;;  %v1933_v1 = vadd.f32 %v1931_v58, %v1920_v27  ;;  %v1027_v38 = vstv %s2692_s25  ;;  %v4128_v59 = vunpack.c.l.bf16 %v2416_v11  ;;  %v1043_v35 = vstv %s2694_s27 }
 0x244   : > { %2908 = vset.pattern.permute.xlu1 %v3344_v28  ;;  %v1366_v47 = vpop.permute.xlu0 %1365  ;;  %v1945_v62 = vadd.f32 %v1943_v50, %v1932_v29  ;;  %v4134_v15 = vunpack.c.h.bf16 %v2416_v11  ;;  %v1067_v7 = vstv %s4100_s24  ;;  %v1089_v50 = vstv %s4102_s5  ;;  %v2419_v29 = vld [vmem:[%s3781_s10 + $0x20] sm:$0xff]  }
 0x245   : > { %1445 = vperm.xlu1 %2908, %v1441_v6   ;;  %2909 = vset.pattern.permute.xlu0 %v3344_v28  ;;  %2711 = vpush %v1366_v47  ;;  %v1946_v31 = vadd.f32 %v1944_v2, %v1933_v1  ;;  %v2417_v6 = vld [vmem:[%s3781_s10 + $0x10] sm:$0xff]  }
 0x246   : > { %1450 = vperm.xlu0 %2909, %v1442_v22   ;;  %2713 = vpush %v1379_v34  ;;  %v1045_v22 = vmul.f32 %v4128_v59, %v1043_v35  ;;  %v1046_v37 = vmul.f32 %v4134_v15, %v1043_v35  ;;  %v4143_v26 = vunpack.c.l.bf16 %v2417_v6  ;;  %v4148_v60 = vunpack.c.h.bf16 %v2417_v6  ;;  %v2418_v34 = vld [vmem:[%s3781_s10 + $0x18] sm:$0xff]  }
 0x247   : > { %v1405_v12 = vpop.permute.xlu1 %1404 }
 0x248   : > { %v1392_v55 = vpop.permute.xlu0 %1391  ;;  %v1070_v47 = vmul.f32 %v4148_v60, %v1067_v7 }
 0x249   : > { %2911 = vset.pattern.permute.xlu1 %v3345_v52  ;;  %2715 = vpush %v1392_v55 }
 0x24a   : > { %1703 = vperm.xlu1 %2911, %v1695_v8   ;;  %2910 = vset.pattern.permute.xlu0 %v3345_v52  ;;  %2717 = vpush %v1405_v12  ;;  %v4155_v8 = vunpack.c.l.bf16 %v2418_v34 }
 0x24b   : > { %1698 = vperm.xlu0 %2910, %v1694_v13   ;;  %v1431_v32 = vpop.permute.xlu1 %1430  ;;  %v4160_v13 = vunpack.c.h.bf16 %v2418_v34 }
 0x24c   : > { %v1418_v20 = vpop.permute.xlu0 %1417  ;;  %v1091_v2 = vmul.f32 %v4155_v8, %v1089_v50 }
 0x24d   : > { %2719 = vpush %v1418_v20  ;;  %v1092_v55 = vmul.f32 %v4160_v13, %v1089_v50  ;;  %v2420_v20 = vld [vmem:[%s3781_s10 + $0x28] sm:$0xff]  }
 0x24e   : > { %2912 = vset.pattern.permute.xlu1 %v3346_v30  ;;  %2721 = vpush %v1431_v32 }
 0x24f   : > { %1949 = vperm.xlu1 %2912, %v1945_v62   ;;  %2913 = vset.pattern.permute.xlu0 %v3346_v30  ;;  %v1606_v3 = vpop.permute.xlu1 %1605  ;;  %v1111_v62 = vstv %s4104_s12 }
 0x250   : > { %1954 = vperm.xlu0 %2913, %v1946_v31   ;;  %v1587_v25 = vpop.permute.xlu0 %1586  ;;  %v4172_v31 = vunpack.c.h.bf16 %v2419_v29 }
 0x251   : > { %2723 = vpush %v1587_v25 }
 0x252   : > { %2725 = vpush %v1606_v3 }
 0x253   : > { %2914 = vset.pattern.permute.xlu1 %v3341_v48  ;;  %v1632_v33 = vpop.permute.xlu1 %1631 }
 0x254   : > { %2918 = vset.pattern.permute.xlu0 %v3344_v28  ;;  %v1619_v17 = vpop.permute.xlu0 %1618 }
 0x255   : > { %2727 = vpush %v1619_v17 }
 0x256   : > { %2729 = vpush %v1632_v33  ;;  %v1114_v33 = vmul.f32 %v4172_v31, %v1111_v62 }
 0x257   : > { %v1658_v36 = vpop.permute.xlu1 %1657 }
 0x258   : > { %v1645_v18 = vpop.permute.xlu0 %1644 }
 0x259   : > { %2731 = vpush %v1645_v18  ;;  %v1133_v18 = vstv %s4106_s20 }
 0x25a   : > { %2733 = vpush %v1658_v36  ;;  %v4182_v36 = vunpack.c.l.bf16 %v2420_v20 }
 0x25b   : > { %v1684_v39 = vpop.permute.xlu1 %1683 }
 0x25c   : > { %v1671_v42 = vpop.permute.xlu0 %1670 }
 0x25d   : > { %2735 = vpush %v1671_v42  ;;  %v4184_v42 = vunpack.c.h.bf16 %v2420_v20 }
 0x25e   : > { %2737 = vpush %v1684_v39 }
 0x25f   : > { %v1857_v46 = vpop.permute.xlu1 %1856 }
 0x260   : > { %v1838_v45 = vpop.permute.xlu0 %1837 }
 0x261   : > { %2739 = vpush %v1838_v45 }
 0x262   : > { %2741 = vpush %v1857_v46  ;;  %v2421_v46 = vld [vmem:[%s3781_s10 + $0x30] sm:$0xff]  }
 0x263   : > { %v1883_v41 = vpop.permute.xlu1 %1882  ;;  %v4202_v11 = vunpack.c.h.bf16 %v2421_v46 }
 0x264   : > { %v1870_v0 = vpop.permute.xlu0 %1869 }
 0x265   : > { %2743 = vpush %v1870_v0 }
 0x266   : > { %2745 = vpush %v1883_v41 }
 0x267   : > { %v1909_v4 = vpop.permute.xlu1 %1908 }
 0x268   : > { %v1896_v40 = vpop.permute.xlu0 %1895 }
 0x269   : > { %2747 = vpush %v1896_v40  ;;  %v1135_v40 = vmul.f32 %v4182_v36, %v1133_v18 }
 0x26a   : > { %2749 = vpush %v1909_v4  ;;  %v1136_v4 = vmul.f32 %v4184_v42, %v1133_v18 }
 0x26b   : > { %v1935_v5 = vpop.permute.xlu1 %1934 }
 0x26c   : > { %v1922_v19 = vpop.permute.xlu0 %1921 }
 0x26d   : > { %2751 = vpush %v1922_v19  ;;  %v2422_v19 = vld [vmem:[%s3781_s10 + $0x38] sm:$0xff]  }
 0x26e   : > { %2753 = vpush %v1935_v5  ;;  %v4207_v6 = vunpack.c.l.bf16 %v2422_v19 }
 0x272   : > { %s4112_s29 = spop %2707 }
 0x273   : > { %s4114_s22 = spop %2709  ;;  %v1336_v32 = vstv %s4112_s29 }
 0x276   : > { %s4116_s26 = spop %2711 }
 0x277   : > { %s4118_s14 = spop %2713  ;;  %v1368_v0 = vstv %s4116_s26 }
 0x278   : > { %v1370_v35 = vmul.f32 %v4143_v26, %v1368_v0  ;;  %v1371_v50 = vmul.f32 %v4148_v60, %v1368_v0 }
 0x27a   : > { %s4120_s23 = spop %2715 }
 0x27b   : > { %s4124_s28 = spop %2717 }
 0x27c   : > { %v1407_v0 = vstv %s4124_s28  ;;  %s4473_s28 = scalar_lea.vmem [#allocation19], %s3770_s11  ;;  %s3350_s11 = smov 8  }
 0x27d   : > { %1023 = vst [vmem:[%s4473_s28] sm:$0xff] %v3334_v43  ;;  %1024 = vst [vmem:[%s4473_s28 + $0x8] sm:$0xff] %v3334_v43 }
 0x27e   : > { %s4130_s13 = spop %2719 }
 0x27f   : > { %s4139_s0 = spop %2721 }
 0x282   : > { %s4146_s25 = spop %2723 }
 0x283   : > { %s4152_s27 = spop %2725 }
 0x286   : > { %s4158_s24 = spop %2727 }
 0x287   : > { %s4164_s1 = spop %2729 }
 0x28a   : > { %s4170_s2 = spop %2731 }
 0x28b   : > { %s4178_s5 = spop %2733 }
 0x28e   : > { %s4188_s12 = spop %2735 }
 0x28f   : > { %s4195_s20 = spop %2737 }
 0x292   : > { %s4205_s29 = spop %2739 }
 0x303   : > { %v2578_v9 = vpop.f32.mrb[2].mxu1 }
 0x304   : > { %1218 = vperm.xlu1 %2914, %v2578_v9   ;;  %v950_v56 = vpop.f32.mrb[3].mxu1 }
 0x305   : > { %1458 = vperm.xlu0 %2918, %v950_v56  }
 0x308   : > { %2915 = vset.pattern.permute.xlu1 %v3344_v28  ;;  %v1069_v28 = vmul.f32 %v4143_v26, %v1067_v7 }
 0x309   : > { %1462 = vperm.xlu1 %2915, %v2578_v9   ;;  %2919 = vset.pattern.permute.xlu0 %v3346_v30 }
 0x30a   : > { %1962 = vperm.xlu0 %2919, %v950_v56  }
 0x30d   : > { %2916 = vset.pattern.permute.xlu1 %v3341_v48  ;;  %v2385_v48 = vld [vmem:[%s3781_s10] sm:$0xff]   ;;  %s4218_s10 = spop %2741 }
 0x30e   : > { %1213 = vperm.xlu1 %2916, %v950_v56   ;;  %v4126_v10 = vunpack.c.l.bf16 %v2385_v48  ;;  %v4132_v14 = vunpack.c.h.bf16 %v2385_v48  ;;  %v4200_v48 = vunpack.c.l.bf16 %v2421_v46  ;;  %v1859_v20 = vstv %s4218_s10 }
 0x310   : > { %v1029_v16 = vmul.f32 %v4126_v10, %v1027_v38  ;;  %v1030_v24 = vmul.f32 %v4132_v14, %v1027_v38  ;;  %v1338_v39 = vmul.f32 %v4126_v10, %v1336_v32 }
 0x312   : > { %2917 = vset.pattern.permute.xlu1 %v3345_v52  ;;  %v1047_v58 = vadd.f32 %v1045_v22, %v1029_v16  ;;  %v1048_v27 = vadd.f32 %v1046_v37, %v1030_v24  ;;  %v4167_v52 = vunpack.c.l.bf16 %v2419_v29  ;;  %v1381_v16 = vstv %s4118_s14  ;;  %s3348_s14 = smov 112  }
 0x313   : > { %1715 = vperm.xlu1 %2917, %v2578_v9   ;;  %v4098_v23 = vpop.f32.mrb[4].mxu0  ;;  %v962_v22 = vadd.s32 8, %v3890_v51  ;;  %v4212_v24 = vand.u32 127, %v960_v49 }
 0x314   : > { %v2567_v61 = vpop.f32.mrb[5].mxu0  ;;  %v1071_v12 = vadd.f32 %v1069_v28, %v1047_v58  ;;  %v1072_v1 = vadd.f32 %v1070_v47, %v1048_v27  ;;  %v1113_v3 = vmul.f32 %v4167_v52, %v1111_v62  ;;  %v4216_v58 = vunpack.c.h.bf16 %v2422_v19 }
 0x315   : > { %v1177_v27 = vstv %s4110_s18  ;;  %v1840_v62 = vstv %s4205_s29  ;;  %s2340_s18 = sshll.u32 %s3431_s17, 4  ;;  %s4634_s29 = sld [smem:[#allocation41_spill]] }
 0x316   : > { %v1093_v25 = vadd.f32 %v1091_v2, %v1071_v12  ;;  %v1094_v17 = vadd.f32 %v1092_v55, %v1072_v1  ;;  %v1179_v29 = vmul.f32 %v4207_v6, %v1177_v27  ;;  %v1383_v12 = vmul.f32 %v4155_v8, %v1381_v16 }
 0x317   : > { %1711 = vperm.xlu1 %2917, %v950_v56   ;;  %v1339_v56 = vmul.f32 %v4132_v14, %v1336_v32  ;;  %v1394_v2 = vstv %s4120_s23  ;;  %v1589_v1 = vstv %s4146_s25  ;;  %v1608_v55 = vstv %s4152_s27  ;;  %s3349_s23 = smov 104   ;;  %s3352_s25 = smov 24  }
 0x318   : > { %v1115_v41 = vadd.f32 %v1113_v3, %v1093_v25  ;;  %v1116_v5 = vadd.f32 %v1114_v33, %v1094_v17  ;;  %v1592_v25 = vmul.f32 %v4132_v14, %v1589_v1  ;;  %v1611_v3 = vmul.f32 %v4134_v15, %v1608_v55  ;;  %v4234_v17 = vpop.permute.xlu1 %1204  ;;  %s4633_s27 = sld [smem:[#allocation35_spill]] }
 0x319   : > { %v1591_v19 = vmul.f32 %v4126_v10, %v1589_v1 }
 0x31a   : > { %v1137_v37 = vadd.f32 %v1135_v40, %v1115_v41  ;;  %v1138_v28 = vadd.f32 %v1136_v4, %v1116_v5  ;;  %v1842_v41 = vmul.f32 %v4126_v10, %v1840_v62  ;;  %v1861_v40 = vmul.f32 %v4128_v59, %v1859_v20  ;;  %v4246_v4 = vpop.permute.xlu0 %1199 }
 0x31b   : > { %2920 = vset.pattern.permute.xlu1 %v3346_v30  ;;  %v1355_v30 = vstv %s4114_s22  ;;  %v1610_v5 = vmul.f32 %v4128_v59, %v1608_v55  ;;  %v1420_v10 = vstv %s4130_s13  ;;  %v1433_v55 = vstv %s4139_s0  ;;  %s3351_s13 = smov 16  }
 0x31c   : > { %1966 = vperm.xlu1 %2920, %v2578_v9   ;;  %v1357_v45 = vmul.f32 %v4128_v59, %v1355_v30  ;;  %v1155_v9 = vstv %s4108_s30  ;;  %v1358_v61 = vmul.f32 %v4134_v15, %v1355_v30  ;;  %v1180_v30 = vmul.f32 %v4216_v58, %v1177_v27  ;;  %s4232_s30 = spop %2743 }
 0x31d   : > { %v1157_v7 = vmul.f32 %v4200_v48, %v1155_v9  ;;  %v1158_v34 = vmul.f32 %v4202_v11, %v1155_v9  ;;  %v1621_v9 = vstv %s4158_s24  ;;  %s4256_s22 = spop %2745  ;;  %s2379_s24 = sshll.u32 %s3431_s17, 8 }
 0x31e   : > { %v1359_v38 = vadd.f32 %v1357_v45, %v1338_v39  ;;  %v1360_v47 = vadd.f32 %v1358_v61, %v1339_v56  ;;  %v1384_v39 = vmul.f32 %v4160_v13, %v1381_v16  ;;  %v1396_v45 = vmul.f32 %v4167_v52, %v1394_v2  ;;  %s4270_s26 = spop %2747  ;;  %s4516_s10 = scalar_lea.hbm %s4634_s29, %s2379_s24 }
 0x31f   : > { %v1159_v32 = vadd.f32 %v1157_v7, %v1137_v37  ;;  %v1160_v33 = vadd.f32 %v1158_v34, %v1138_v28  ;;  %v1872_v56 = vstv %s4232_s30  ;;  %v1624_v16 = vmul.f32 %v4148_v60, %v1621_v9  ;;  %s4290_s0 = spop %2749  ;;  %s2089_s30 = scalar_lea.sflag [#allocation4], %s3767_s21 }
 0x320   : > { %v1372_v49 = vadd.f32 %v1370_v35, %v1359_v38  ;;  %v1373_v18 = vadd.f32 %v1371_v50, %v1360_v47  ;;  %v1397_v38 = vmul.f32 %v4172_v31, %v1394_v2  ;;  %v1613_v35 = vadd.f32 %v1611_v3, %v1592_v25  ;;  %v4263_v50 = vpop.permute.xlu1 %1445  ;;  %v4272_v3 = vpop.permute.xlu0 %1450  ;;  %p4635_p1 = scmp.ne.s32.totalorder %s4633_s27, 0  ;;  %s3353_s17 = smov [#allocation19]  }
 0x321   : > { %v4252_v61 = vadd.f32 %v1179_v29, %v1159_v32  ;;  %v1409_v7 = vmul.f32 %v4182_v36, %v1407_v0  ;;  %v963_v34 = vstv %s2340_s18  ;;  %v1863_v28 = vadd.f32 %v1861_v40, %v1842_v41 }
 0x322   : > { %v1385_v46 = vadd.f32 %v1383_v12, %v1372_v49  ;;  %v1386_v37 = vadd.f32 %v1384_v39, %v1373_v18  ;;  %v1874_v27 = vmul.f32 %v4143_v26, %v1872_v56  ;;  %v965_v47 = vadd.s32 %v963_v34, %v962_v22 }
 0x323   : > { %v1612_v29 = vadd.f32 %v1610_v5, %v1591_v19  ;;  %v1623_v49 = vmul.f32 %v4143_v26, %v1621_v9  ;;  %v1634_v12 = vstv %s4164_s1  ;;  %v1885_v2 = vstv %s4256_s22  ;;  %s4318_s1 = spop %2751  ;;  %s3225_s22 = sshll.u32 %s3353_s17, 4  ;;  %s3226_s22 = int_to_ptr.vmem [resolvable:$false] %s3225_s22 }
 0x324   : > { %v1398_v59 = vadd.f32 %v1396_v45, %v1385_v46  ;;  %v1182_v1 = vadd.f32 %v1180_v30, %v1160_v33  ;;  %v1626_v32 = vadd.f32 %v1624_v16, %v1613_v35  ;;  %v1637_v25 = vmul.f32 %v4160_v13, %v1634_v12  ;;  %v4278_v45 = vld [vmem:[%s3779_s19] sm:$0xff]   ;;  %v4292_v16 = vpop.permute.xlu1 %1703  ;;  %s3347_s19 = smov 120  }
 0x325   : > { %v1399_v22 = vadd.f32 %v1397_v38, %v1386_v37  ;;  %v1410_v18 = vmul.f32 %v4184_v42, %v1407_v0  ;;  %v1422_v39 = vmul.f32 %v4200_v48, %v1420_v10  ;;  %v1423_v26 = vmul.f32 %v4202_v11, %v1420_v10 }
 0x326   : > { %v1411_v30 = vadd.f32 %v1409_v7, %v1398_v59  ;;  %v1876_v33 = vadd.f32 %v1874_v27, %v1863_v28  ;;  %vm969_vm3 = vcmp.eq.s32.totalorder %v965_v47, %v4212_v24  ;;  %v1887_v46 = vmul.f32 %v4155_v8, %v1885_v2 }
 0x327   : > { %v1625_v41 = vadd.f32 %v1623_v49, %v1612_v29  ;;  %v1636_v40 = vmul.f32 %v4155_v8, %v1634_v12  ;;  %v1647_v0 = vstv %s4170_s2  ;;  %v1898_v19 = vstv %s4270_s26  ;;  %v4309_v49 = vpop.permute.xlu0 %1698  ;;  %s4333_s2 = spop %2753  ;;  %s3227_s26 = scalar_lea.vmem %s3226_s22, 512 }
 0x328   : > { %v1435_v5 = vmul.f32 %v4207_v6, %v1433_v55  ;;  %v1639_v9 = vadd.f32 %v1637_v25, %v1626_v32  ;;  %v1650_v38 = vmul.f32 %v4172_v31, %v1647_v0  ;;  %v2383_v35 = vunpack.c.h.bf16 %v4278_v45 }
 0x329   : > { %v1412_v37 = vadd.f32 %v1410_v18, %v1399_v22  ;;  %v1843_v8 = vmul.f32 %v4132_v14, %v1840_v62  ;;  %v1862_v7 = vmul.f32 %v4134_v15, %v1859_v20  ;;  %v964_v10 = vadd.s32 %v963_v34, %v3890_v51 }
 0x32a   : > { %v1424_v59 = vadd.f32 %v1422_v39, %v1411_v30  ;;  %v4304_v28 = vsel %vm969_vm3, 1.0, %v3334_v43  ;;  %v1889_v27 = vadd.f32 %v1887_v46, %v1876_v33  ;;  %v1900_v29 = vmul.f32 %v4167_v52, %v1898_v19  ;;  %v1950_v33 = vpop.permute.xlu1 %1949 }
 0x32b   : > { %v1638_v12 = vadd.f32 %v1636_v40, %v1625_v41  ;;  %v1649_v14 = vmul.f32 %v4167_v52, %v1647_v0  ;;  %v1660_v62 = vstv %s4178_s5  ;;  %v1911_v15 = vstv %s4290_s0  ;;  %s2102_s5 = sshll.u32 %s4473_s28, 4  ;;  %s4519_s5 = int_to_ptr.vmem [resolvable:$true] %s2102_s5 }
 0x32c   : > { %v1436_v20 = vmul.f32 %v4216_v58, %v1433_v55  ;;  %v1652_v34 = vadd.f32 %v1650_v38, %v1639_v9  ;;  %v1663_v47 = vmul.f32 %v4184_v42, %v1660_v62  ;;  %v1208_v32 = vmul.f32 %v4304_v28, %v4234_v17  ;;  %s3221_s18 = scalar_lea.vmem %s4519_s5, 256  ;;  %p3228_p5 = scmp.lt.s32.totalorder %s4519_s5, %s3226_s22 }
 0x32d   : > { %v1425_v25 = vadd.f32 %v1423_v26, %v1412_v37  ;;  %v1864_v22 = vadd.f32 %v1862_v7, %v1843_v8  ;;  %v1875_v18 = vmul.f32 %v4148_v60, %v1872_v56  ;;  %vm968_vm4 = vcmp.eq.s32.totalorder %v964_v10, %v4212_v24  ;;  %v4335_v56 = vpop.permute.xlu0 %1954  ;;  %p3222_p9 = scmp.ne.s32.totalorder %s4519_s5, %s3221_s18  ;;  %p3229_p11 = scmp.lt.s32.totalorder %s3227_s26, %s3221_s18 }
 0x32e   : > { %v1437_v52 = vadd.f32 %v1435_v5, %v1424_v59  ;;  %v4325_v55 = vmax.f32 %v2383_v35, %v4304_v28  ;;  %v1902_v39 = vadd.f32 %v1900_v29, %v1889_v27  ;;  %v1913_v30 = vmul.f32 %v4182_v36, %v1911_v15 }
 0x32f   : > { %v1651_v17 = vadd.f32 %v1649_v14, %v1638_v12  ;;  %v1662_v46 = vmul.f32 %v4182_v36, %v1660_v62  ;;  %v1673_v41 = vstv %s4188_s12  ;;  %v1924_v26 = vstv %s4318_s1  ;;  %p3223_p2 = pnand %p3222_p9, %p4635_p1  ;;  %p3230_p3 = por %p3229_p11, %p3228_p5 }
 0x330   : > { %v1665_v40 = vadd.f32 %v1663_v47, %v1652_v34  ;;  %v1676_v60 = vmul.f32 %v4202_v11, %v1673_v41  ;;  %v2341_v24 = vsel %vm968_vm4, 1.0, %v3334_v43  ;;  %v1210_v0 = vadd.f32 %v1208_v32, %v1182_v1 }
 0x331   : > { %v1877_v5 = vadd.f32 %v1875_v18, %v1864_v22  ;;  %v1888_v9 = vmul.f32 %v4160_v13, %v1885_v2  ;;  %v1453_v36 = vmul.f32 %v2341_v24, %v4263_v50  ;;  %v1226_v38 = vrot.slane %v4098_v23, %v1035_v53  ;;  %p3224_p10 = pneg %p3223_p2 }
 0x332   : > { %v1438_v35 = vadd.f32 %v1436_v20, %v1425_v25  ;;  %v1915_v37 = vadd.f32 %v1913_v30, %v1902_v39  ;;  %v1454_v8 = vmul.f32 %v4304_v28, %v4272_v3  ;;  %v1926_v7 = vmul.f32 %v4200_v48, %v1924_v26 }
 0x333   : > { %v1664_v1 = vadd.f32 %v1662_v46, %v1651_v17  ;;  %v1686_v59 = vstv %s4195_s20  ;;  %v1937_v27 = vstv %s4333_s2  ;;  %v1675_v13 = vmul.f32 %v4200_v48, %v1673_v41  ;;  %p3231_p12 = pnand %p3230_p3, %p3224_p10 }
 0x334   : > { %v1678_v50 = vadd.f32 %v1676_v60, %v1665_v40  ;;  %v1689_v2 = vmul.f32 %v4216_v58, %v1686_v59  ;;  %v1207_v53 = vmul.f32 %v2341_v24, %v4246_v4  ;;  %v1890_v14 = vadd.f32 %v1888_v9, %v1877_v5 }
 0x335   : > { %v1901_v62 = vmul.f32 %v4172_v31, %v1898_v19  ;;  %v1455_v3 = vadd.f32 %v1453_v36, %v1437_v52  ;;  %v1928_v34 = vadd.f32 %v1926_v7, %v1915_v37  ;;  %v1939_v47 = vmul.f32 %v4207_v6, %v1937_v27 }
 0x336   : > { %v1456_v32 = vadd.f32 %v1454_v8, %v1438_v35  ;;  %vm1236_vm5 = vcmp.gt.f32.partialorder %v4325_v55, 0.0  ;;  %v1470_v48 = vrot.slane %v4098_v23, %v1051_v54  ;;  %v1677_v18 = vadd.f32 %v1675_v13, %v1664_v1 }
 0x337   : > { %v1688_v39 = vmul.f32 %v4207_v6, %v1686_v59  ;;  %v2382_v31 = vunpack.c.l.bf16 %v4278_v45  ;;  %v1691_v52 = vadd.f32 %v1689_v2, %v1678_v50  ;;  %v1903_v30 = vadd.f32 %v1901_v62, %v1890_v14 }
 0x338   : > { %v1914_v17 = vmul.f32 %v4184_v42, %v1911_v15  ;;  %v1941_v41 = vadd.f32 %v1939_v47, %v1928_v34  ;;  %v1957_v40 = vmul.f32 %v2341_v24, %v1950_v33  ;;  %v1209_v6 = vadd.f32 %v1207_v53, %v4252_v61 }
 0x339   : > { %v4372_v15 = vmax.f32 %v2382_v31, %v2341_v24  ;;  %v1927_v36 = vmul.f32 %v4202_v11, %v1924_v26  ;;  %v1690_v8 = vadd.f32 %v1688_v39, %v1677_v18  ;;  %v1974_v50 = vrot.slane %v4098_v23, %v1097_v63 }
 0x33a   : > { %v1916_v33 = vadd.f32 %v1914_v17, %v1903_v30  ;;  %v1959_v7 = vadd.f32 %v1957_v40, %v1941_v41  ;;  %v1723_v53 = vrot.slane %v4098_v23, %v1075_v57 }
 0x33b   : > { %vm1235_vm10 = vcmp.gt.f32.partialorder %v4372_v15, 0.0 }
 0x33c   : > { %v1929_v26 = vadd.f32 %v1927_v36, %v1916_v33 }
 0x383   : > { %v1219_v10 = vpop.permute.xlu1 %1218 }
 0x384   : > { %v1222_v29 = vadd.f32 %v1219_v10, %v1210_v0  ;;  %v1459_v12 = vpop.permute.xlu0 %1458  ;;  %v1707_v0 = vmul.f32 %v4304_v28, %v4292_v16  ;;  %v1706_v16 = vmul.f32 %v2341_v24, %v4309_v49  ;;  %v1940_v49 = vmul.f32 %v4216_v58, %v1937_v27 }
 0x385   : > { %v1465_v25 = vadd.f32 %v1459_v12, %v1455_v3  ;;  %v1958_v27 = vmul.f32 %v4304_v28, %v4335_v56 }
 0x386   : > { %v1228_v20 = vadd.f32 %v1226_v38, %v1222_v29  ;;  %v1709_v1 = vadd.f32 %v1707_v0, %v1691_v52  ;;  %v1708_v3 = vadd.f32 %v1706_v16, %v1690_v8  ;;  %v1942_v58 = vadd.f32 %v1940_v49, %v1929_v26 }
 0x387   : > { %v1471_v5 = vadd.f32 %v1470_v48, %v1465_v25 }
 0x388   : > { %v1463_v22 = vpop.permute.xlu1 %1462  ;;  %vm1230_vm6 = vcmp.ge.f32.partialorder %v1228_v20, 0.0  ;;  %v1232_v4 = vmul.f32 0.01, %v1228_v20 }
 0x389   : > { %v1466_v19 = vadd.f32 %v1463_v22, %v1456_v32  ;;  %v1963_v35 = vpop.permute.xlu0 %1962  ;;  %v1475_v29 = vmul.f32 0.01, %v1471_v5  ;;  %vm1473_vm8 = vcmp.ge.f32.partialorder %v1471_v5, 0.0  ;;  %v1960_v22 = vadd.f32 %v1958_v27, %v1942_v58 }
 0x38a   : > { %v1234_v46 = vsel %vm1230_vm6, %v1228_v20, %v1232_v4  ;;  %v1969_v13 = vadd.f32 %v1963_v35, %v1959_v7 }
 0x38b   : > { %v1472_v60 = vadd.f32 %v1470_v48, %v1466_v19  ;;  %v4365_v54 = vsel %vm1236_vm5, %v1234_v46, -1e+30  ;;  %v1477_v63 = vsel %vm1473_vm8, %v1471_v5, %v1475_v29  ;;  %vm1583_vm8 = vcmask 130112  }
 0x38c   : > { %v1242_v45 = vsel %vm788_vm1, %v4365_v54, -inf  ;;  %v1975_v14 = vadd.f32 %v1974_v50, %v1969_v13  ;;  %v1479_v57 = vsel %vm1235_vm10, %v1477_v63, -1e+30 }
 0x38d   : > { %v1214_v9 = vpop.permute.xlu1 %1213  ;;  %1243 = vmax.xlane.f32.xlu1 %v1242_v45  ;;  %vm1474_vm7 = vcmp.ge.f32.partialorder %v1472_v60, 0.0  ;;  %v1476_v42 = vmul.f32 0.01, %v1472_v60  ;;  %v1481_v4 = vsel %vm788_vm1, %v1479_v57, -inf }
 0x38e   : > { %v1221_v37 = vadd.f32 %v1214_v9, %v1209_v6  ;;  %v1979_v48 = vmul.f32 0.01, %v1975_v14  ;;  %vm1977_vm12 = vcmp.ge.f32.partialorder %v1975_v14, 0.0 }
 0x38f   : > { %v1478_v10 = vsel %vm1474_vm7, %v1472_v60, %v1476_v42 }
 0x390   : > { %v1227_v61 = vadd.f32 %v1226_v38, %v1221_v37  ;;  %v4378_v59 = vsel %vm1236_vm5, %v1478_v10, -1e+30  ;;  %v1981_v19 = vsel %vm1977_vm12, %v1975_v14, %v1979_v48 }
 0x391   : > { %v1484_v11 = vsel %vm788_vm1, %v4378_v59, -inf  ;;  %v1983_v41 = vsel %vm1235_vm10, %v1981_v19, -1e+30 }
 0x392   : > { %v1716_v24 = vpop.permute.xlu1 %1715  ;;  %1485 = vmax.xlane.f32.xlu0 %v1484_v11  ;;  %vm1229_vm9 = vcmp.ge.f32.partialorder %v1227_v61, 0.0  ;;  %v1231_v38 = vmul.f32 0.01, %v1227_v61  ;;  %v1985_v0 = vsel %vm788_vm1, %v1983_v41, -inf }
 0x393   : > { %v1719_v2 = vadd.f32 %v1716_v24, %v1709_v1 }
 0x394   : > { %v1233_v12 = vsel %vm1229_vm9, %v1227_v61, %v1231_v38  ;;  %vm1834_vm9 = vcmask 195712  }
 0x395   : > { %v1725_v62 = vadd.f32 %v1723_v53, %v1719_v2  ;;  %v1237_v20 = vsel %vm1235_vm10, %v1233_v12, -1e+30 }
 0x396   : > { %v1712_v34 = vpop.permute.xlu1 %1711  ;;  %v1239_v47 = vsel %vm788_vm1, %v1237_v20, -inf }
 0x397   : > { %v1718_v51 = vadd.f32 %v1712_v34, %v1708_v3  ;;  %1240 = vmax.xlane.f32.xlu0 %v1239_v47  ;;  %vm1727_vm11 = vcmp.ge.f32.partialorder %v1725_v62, 0.0  ;;  %v1729_v23 = vmul.f32 0.01, %v1725_v62 }
 0x399   : > { %v1724_v32 = vadd.f32 %v1723_v53, %v1718_v51  ;;  %v1731_v25 = vsel %vm1727_vm11, %v1725_v62, %v1729_v23 }
 0x39a   : > { %v1733_v28 = vsel %vm1236_vm5, %v1731_v25, -1e+30 }
 0x39b   : > { %v1967_v18 = vpop.permute.xlu1 %1966  ;;  %1482 = vmax.xlane.f32.xlu0 %v1481_v4  ;;  %vm1726_vm13 = vcmp.ge.f32.partialorder %v1724_v32, 0.0  ;;  %v1728_v56 = vmul.f32 0.01, %v1724_v32  ;;  %v1737_v30 = vsel %vm788_vm1, %v1733_v28, -inf }
 0x39c   : > { %v1970_v39 = vadd.f32 %v1967_v18, %v1960_v22 }
 0x39d   : > { %v1730_v31 = vsel %vm1726_vm13, %v1724_v32, %v1728_v56 }
 0x39e   : > { %v1976_v52 = vadd.f32 %v1974_v50, %v1970_v39  ;;  %v1732_v17 = vsel %vm1235_vm10, %v1730_v31, -1e+30  ;;  %vm2085_vm10 = vcmask 261312  }
 0x39f   : > { %1738 = vmax.xlane.f32.xlu0 %v1737_v30  ;;  %v1734_v46 = vsel %vm788_vm1, %v1732_v17, -inf }
 0x3a0   : > { %1735 = vmax.xlane.f32.xlu1 %v1734_v46  ;;  %vm1978_vm14 = vcmp.ge.f32.partialorder %v1976_v52, 0.0  ;;  %v1980_v40 = vmul.f32 0.01, %v1976_v52 }
 0x3a2   : > { %v1982_v60 = vsel %vm1978_vm14, %v1976_v52, %v1980_v40  ;;  %v4466_v52 = vld [vmem:[#allocation17] ss:$0 sm:$0xff] }
 0x3a3   : > { %v1984_v5 = vsel %vm1236_vm5, %v1982_v60, -1e+30 }
 0x3a4   : > { %1986 = vmax.xlane.f32.xlu1 %v1985_v0  ;;  %v1988_v6 = vsel %vm788_vm1, %v1984_v5, -inf }
 0x3a5   : > { %1989 = vmax.xlane.f32.xlu0 %v1988_v6 }
 0x3b5   : > { %1510 = vrot.lane.b32.xlu1 %v3954_v21, %s3347_s19 }
 0x3b9   : > { %1761 = vrot.lane.b32.xlu1 %v3954_v21, %s3348_s14 }
 0x3bb   : > { %1512 = vrot.lane.b32.xlu0 %v3986_v44, %s3347_s19 }
 0x3bd   : > { %2012 = vrot.lane.b32.xlu1 %v3954_v21, %s3349_s23 }
 0x41a   : > { %v1244_v45 = vpop.xlane.xlu1 %1243 }
 0x41b   : > { %v1246_v9 = vsub.f32 %v4365_v54, %v1244_v45 }
 0x41d   : > { %v1249_v42 = vmul.f32 1.442695, %v1246_v9 }
 0x41f   : > { %2921 = vpow2.f32 %v1249_v42  ;;  %v1486_v33 = vpop.xlane.xlu0 %1485 }
 0x420   : > { %v1488_v36 = vsub.f32 %v4378_v59, %v1486_v33 }
 0x422   : > { %v1491_v35 = vmul.f32 1.442695, %v1488_v36 }
 0x424   : > { %2923 = vpow2.f32 %v1491_v35  ;;  %v1241_v37 = vpop.xlane.xlu0 %1240 }
 0x425   : > { %v1245_v8 = vsub.f32 %v1237_v20, %v1241_v37 }
 0x427   : > { %v1247_v16 = vmul.f32 1.442695, %v1245_v8 }
 0x428   : > { %v1483_v7 = vpop.xlane.xlu0 %1482 }
 0x429   : > { %v2922_v10 = vpop.eup %2921  ;;  %2925 = vpow2.f32 %v1247_v16  ;;  %v1487_v61 = vsub.f32 %v1479_v57, %v1483_v7 }
 0x42a   : > { %v4421_v1 = vmul.f32 %v2922_v10, %v4325_v55 }
 0x42b   : > { %v1489_v21 = vmul.f32 1.442695, %v1487_v61 }
 0x42c   : > { %v1739_v29 = vpop.xlane.xlu0 %1738  ;;  %v1256_v54 = vsel %vm788_vm1, %v4421_v1, 0.0 }
 0x42d   : > { %2927 = vpow2.f32 %v1489_v21  ;;  %v1741_v13 = vsub.f32 %v1733_v28, %v1739_v29  ;;  %v1736_v59 = vpop.xlane.xlu1 %1735  ;;  %1257 = vadd.xlane.f32.xlu0 %v1256_v54 }
 0x42e   : > { %v2924_v50 = vpop.eup %2923  ;;  %v1740_v11 = vsub.f32 %v1732_v17, %v1736_v59 }
 0x42f   : > { %v1744_v26 = vmul.f32 1.442695, %v1741_v13  ;;  %v4426_v49 = vmul.f32 %v2924_v50, %v4325_v55 }
 0x430   : > { %v1742_v24 = vmul.f32 1.442695, %v1740_v11 }
 0x431   : > { %2929 = vpow2.f32 %v1744_v26  ;;  %v1987_v38 = vpop.xlane.xlu1 %1986  ;;  %v1498_v2 = vsel %vm788_vm1, %v4426_v49, 0.0 }
 0x432   : > { %2931 = vpow2.f32 %v1742_v24  ;;  %v1991_v53 = vsub.f32 %v1983_v41, %v1987_v38  ;;  %1499 = vadd.xlane.f32.xlu0 %v1498_v2  ;;  %v1990_v12 = vpop.xlane.xlu0 %1989 }
 0x433   : > { %v2926_v63 = vpop.eup %2925  ;;  %v1992_v14 = vsub.f32 %v1984_v5, %v1990_v12 }
 0x434   : > { %v1993_v62 = vmul.f32 1.442695, %v1991_v53  ;;  %v4431_v3 = vmul.f32 %v2926_v63, %v4372_v15 }
 0x435   : > { %v1995_v20 = vmul.f32 1.442695, %v1992_v14  ;;  %v1511_v58 = vpop.permute.xlu1 %1510 }
 0x436   : > { %2933 = vpow2.f32 %v1993_v62  ;;  %2588 = vmatpush3.bf16.msra.mxu0 %v1511_v58  ;;  %v1253_v27 = vsel %vm788_vm1, %v4431_v3, 0.0  ;;  %v1513_v51 = vpop.permute.xlu0 %1512 }
 0x437   : > { %v2928_v34 = vpop.eup %2927  ;;  %2935 = vpow2.f32 %v1995_v20  ;;  %1254 = vadd.xlane.f32.xlu1 %v1253_v27  ;;  %2589 = vmatprep.subr.bf16.mxu0 %v3334_v43 }
 0x438   : > { %v4437_v47 = vmul.f32 %v2928_v34, %v4372_v15 }
 0x43a   : > { %2590 = vmatpush3.bf16.msra.mxu0 %v1513_v51  ;;  %v1495_v57 = vsel %vm788_vm1, %v4437_v47, 0.0 }
 0x43b   : > { %v2930_v23 = vpop.eup %2929  ;;  %1496 = vadd.xlane.f32.xlu1 %v1495_v57  ;;  %2603 = vmatprep.subr.bf16.mxu0 %v3334_v43 }
 0x43c   : > { %v2932_v32 = vpop.eup %2931  ;;  %v4443_v25 = vmul.f32 %v2930_v23, %v4325_v55 }
 0x43d   : > { %v4446_v48 = vmul.f32 %v2932_v32, %v4372_v15 }
 0x43e   : > { %v1751_v22 = vsel %vm788_vm1, %v4443_v25, 0.0 }
 0x43f   : > { %1752 = vadd.xlane.f32.xlu0 %v1751_v22  ;;  %v1748_v4 = vsel %vm788_vm1, %v4446_v48, 0.0 }
 0x440   : > { %v2934_v18 = vpop.eup %2933  ;;  %1749 = vadd.xlane.f32.xlu1 %v1748_v4 }
 0x441   : > { %v2936_v28 = vpop.eup %2935  ;;  %v4453_v56 = vmul.f32 %v2934_v18, %v4372_v15 }
 0x442   : > { %v4456_v39 = vmul.f32 %v2936_v28, %v4325_v55 }
 0x443   : > { %v1999_v31 = vsel %vm788_vm1, %v4453_v56, 0.0 }
 0x444   : > { %2000 = vadd.xlane.f32.xlu1 %v1999_v31  ;;  %v2002_v19 = vsel %vm788_vm1, %v4456_v39, 0.0 }
 0x445   : > { %2003 = vadd.xlane.f32.xlu0 %v2002_v19 }
 0x455   : > { %2014 = vrot.lane.b32.xlu1 %v3986_v44, %s3349_s23 }
 0x459   : > { %1767 = vrot.lane.b32.xlu1 %v4466_v52, %s3348_s14 }
 0x45b   : > { %1763 = vrot.lane.b32.xlu0 %v3986_v44, %s3348_s14  ;;  %v1762_v44 = vpop.permute.xlu1 %1761 }
 0x45f   : > { %1516 = vrot.lane.b32.xlu0 %v4466_v52, %s3347_s19  ;;  %v2013_v15 = vpop.permute.xlu1 %2012 }
 0x463   : > { %2018 = vrot.lane.b32.xlu0 %v4466_v52, %s3349_s23 }
 0x4ba   : > { %v1258_v55 = vpop.xlane.xlu0 %1257 }
 0x4bb   : > { %v1260_v30 = vadd.f32 1e-16, %v1258_v55 }
 0x4bd   : > { %2937 = vrcp.f32 %v1260_v30 }
 0x4bf   : > { %v1500_v17 = vpop.xlane.xlu0 %1499 }
 0x4c0   : > { %v1502_v41 = vadd.f32 1e-16, %v1500_v17 }
 0x4c4   : > { %v1255_v46 = vpop.xlane.xlu1 %1254 }
 0x4c5   : > { %v1259_v40 = vadd.f32 1e-16, %v1255_v46 }
 0x4c7   : > { %2939 = vrcp.f32 %v1259_v40  ;;  %v2938_v42 = vpop.eup %2937 }
 0x4c8   : > { %v1497_v60 = vpop.xlane.xlu1 %1496  ;;  %2941 = vrcp.f32 %v1502_v41  ;;  %v1264_v35 = vmul.f32 %v2938_v42, %v4421_v1 }
 0x4c9   : > { %v1501_v0 = vadd.f32 1e-16, %v1497_v60 }
 0x4cb   : > { %2943 = vrcp.f32 %v1501_v0 }
 0x4cc   : > { %v1753_v5 = vpop.xlane.xlu0 %1752 }
 0x4cd   : > { %v1755_v6 = vadd.f32 1e-16, %v1753_v5  ;;  %v1750_v45 = vpop.xlane.xlu1 %1749 }
 0x4ce   : > { %v1754_v9 = vadd.f32 1e-16, %v1750_v45 }
 0x4cf   : > { %2945 = vrcp.f32 %v1755_v6 }
 0x4d0   : > { %2947 = vrcp.f32 %v1754_v9 }
 0x4d1   : > { %v2940_v33 = vpop.eup %2939  ;;  %v2001_v36 = vpop.xlane.xlu1 %2000 }
 0x4d2   : > { %v1263_v37 = vmul.f32 %v2940_v33, %v4431_v3  ;;  %v2005_v8 = vadd.f32 1e-16, %v2001_v36  ;;  %v2004_v16 = vpop.xlane.xlu0 %2003  ;;  %v2942_v7 = vpop.eup %2941 }
 0x4d3   : > { %v2006_v10 = vadd.f32 1e-16, %v2004_v16  ;;  %v1506_v29 = vmul.f32 %v2942_v7, %v4426_v49 }
 0x4d4   : > { %2949 = vrcp.f32 %v2005_v8  ;;  %v1265_v61 = vpack.c.bf16 %v1264_v35, %v1263_v37 }
 0x4d5   : > { %v2944_v21 = vpop.eup %2943  ;;  %2951 = vrcp.f32 %v2006_v10  ;;  %v2015_v38 = vpop.permute.xlu1 %2014 }
 0x4d6   : > { %v1505_v54 = vmul.f32 %v2944_v21, %v4437_v47  ;;  %2584 = vmatmul.mubr.msk.bf16.vlgmr.msra.gmra.mrb[4].mxu1 %vm788_vm1, %v1265_v61  ;;  %v1764_v11 = vpop.permute.xlu0 %1763 }
 0x4d7   : > { %2596 = vmatpush3.bf16.msra.mxu1 %v1762_v44  ;;  %2599 = vmatprep.mubr.msk.bf16.mxu1 %vm3336_vm0, %v3334_v43 }
 0x4d8   : > { %2597 = vmatprep.subr.bf16.mxu1 %v3334_v43  ;;  %v1507_v1 = vpack.c.bf16 %v1506_v29, %v1505_v54 }
 0x4d9   : > { %v2946_v13 = vpop.eup %2945  ;;  %v1768_v28 = vpop.permute.xlu1 %1767 }
 0x4da   : > { %v2948_v59 = vpop.eup %2947  ;;  %v1759_v50 = vmul.f32 %v2946_v13, %v4443_v25  ;;  %2592 = vmatmul.mubr.msk.bf16.vlgmr.msra.gmra.mrb[8].mxu0 %vm788_vm1, %v1507_v1 }
 0x4db   : > { %v1758_v26 = vmul.f32 %v2948_v59, %v4446_v48  ;;  %2598 = vmatpush3.bf16.msra.mxu1 %v1764_v11  ;;  %2604 = vmatpush3.bf16.msra.mxu0 %v2013_v15 }
 0x4dc   : > { %2605 = vmatprep.subr.bf16.mxu0 %v3334_v43  ;;  %2607 = vmatprep.mubr.msk.bf16.mxu0 %vm3336_vm0, %v3334_v43  ;;  %v1517_v43 = vpop.permute.xlu0 %1516 }
 0x4dd   : > { %v1760_v49 = vpack.c.bf16 %v1759_v50, %v1758_v26 }
 0x4de   : > { %v2950_v24 = vpop.eup %2949 }
 0x4df   : > { %v2952_v2 = vpop.eup %2951  ;;  %v2009_v53 = vmul.f32 %v2950_v24, %v4453_v56  ;;  %2606 = vmatpush3.bf16.msra.mxu0 %v2015_v38  ;;  %2600 = vmatmul.mubr.msk.bf16.vlgmr.msra.gmra.mrb[8].mxu1 %vm788_vm1, %v1760_v49 }
 0x4e0   : > { %v2010_v12 = vmul.f32 %v2952_v2, %v4456_v39  ;;  %v2019_v46 = vpop.permute.xlu0 %2018 }
 0x4e2   : > { %v2011_v63 = vpack.c.bf16 %v2010_v12, %v2009_v53 }
 0x4e4   : > { %2608 = vmatmul.mubr.msk.bf16.vlgmr.msra.gmra.mrb[12].mxu0 %vm788_vm1, %v2011_v63 }
 0x5a9   : > { %v1311_v14 = vpop.f32.mrb[4].mxu1 }
 0x5aa   : > { %v1312_v62 = vadd.f32 %v4466_v52, %v1311_v14  ;;  %v2585_v3 = vpop.f32.mrb[5].mxu1 }
 0x5ab   : > { %v1314_v20 = vpop.f32.mrb[6].mxu1 }
 0x5ac   : > { %v1320_v58 = vmin.f32 %v1312_v62, 0.0  ;;  %v1315_v27 = vadd.f32 %v4466_v52, %v1314_v20  ;;  %v2586_v34 = vpop.f32.mrb[7].mxu1  ;;  %vm1318_vm0 = vcmp.gt.f32.partialorder %v1312_v62, 0.0 }
 0x5ad   : > { %v1556_v47 = vpop.f32.mrb[8].mxu0 }
 0x5ae   : > { %v1322_v51 = vmul.f32 1.442695, %v1320_v58  ;;  %v1321_v57 = vmin.f32 %v1315_v27, 0.0  ;;  %v1557_v23 = vadd.f32 %v1556_v47, %v1517_v43  ;;  %v2593_v32 = vpop.f32.mrb[9].mxu0  ;;  %vm1319_vm1 = vcmp.gt.f32.partialorder %v1315_v27, 0.0 }
 0x5af   : > { %v1559_v25 = vpop.f32.mrb[10].mxu0 }
 0x5b0   : > { %2953 = vpow2.f32 %v1322_v51  ;;  %v1324_v48 = vmul.f32 1.442695, %v1321_v57  ;;  %v1565_v22 = vmin.f32 %v1557_v23, 0.0  ;;  %v1560_v4 = vadd.f32 %v1559_v25, %v1517_v43  ;;  %v2594_v18 = vpop.f32.mrb[11].mxu0 }
 0x5b1   : > { %vm1563_vm2 = vcmp.gt.f32.partialorder %v1557_v23, 0.0 }
 0x5b2   : > { %2955 = vpow2.f32 %v1324_v48  ;;  %v1567_v56 = vmul.f32 1.442695, %v1565_v22  ;;  %v1566_v39 = vmin.f32 %v1560_v4, 0.0  ;;  %v1807_v31 = vpop.f32.mrb[8].mxu1  ;;  %vm1564_vm3 = vcmp.gt.f32.partialorder %v1560_v4, 0.0 }
 0x5b3   : > { %v1808_v19 = vadd.f32 %v1807_v31, %v1768_v28  ;;  %v2601_v44 = vpop.f32.mrb[9].mxu1 }
 0x5b4   : > { %2957 = vpow2.f32 %v1567_v56  ;;  %v1569_v52 = vmul.f32 1.442695, %v1566_v39  ;;  %v1810_v55 = vpop.f32.mrb[10].mxu1 }
 0x5b5   : > { %v1816_v15 = vmin.f32 %v1808_v19, 0.0  ;;  %v1811_v30 = vadd.f32 %v1810_v55, %v1768_v28  ;;  %v2602_v17 = vpop.f32.mrb[11].mxu1  ;;  %vm1814_vm4 = vcmp.gt.f32.partialorder %v1808_v19, 0.0 }
 0x5b6   : > { %2959 = vpow2.f32 %v1569_v52 }
 0x5b7   : > { %v1818_v41 = vmul.f32 1.442695, %v1816_v15  ;;  %v1817_v40 = vmin.f32 %v1811_v30, 0.0  ;;  %v2058_v60 = vpop.f32.mrb[12].mxu0  ;;  %vm1815_vm5 = vcmp.gt.f32.partialorder %v1811_v30, 0.0 }
 0x5b8   : > { %v2059_v0 = vadd.f32 %v2058_v60, %v2019_v46  ;;  %v2609_v5 = vpop.f32.mrb[13].mxu0 }
 0x5b9   : > { %2961 = vpow2.f32 %v1818_v41  ;;  %v1820_v6 = vmul.f32 1.442695, %v1817_v40  ;;  %v2061_v45 = vpop.f32.mrb[14].mxu0 }
 0x5ba   : > { %v2954_v9 = vpop.eup %2953  ;;  %v2067_v42 = vmin.f32 %v2059_v0, 0.0  ;;  %v2062_v33 = vadd.f32 %v2061_v45, %v2019_v46  ;;  %v2610_v36 = vpop.f32.mrb[15].mxu0  ;;  %vm2065_vm6 = vcmp.gt.f32.partialorder %v2059_v0, 0.0 }
 0x5bb   : > { %v2359_v35 = vadd.f32 -1.0, %v2954_v9  ;;  %2963 = vpow2.f32 %v1820_v6 }
 0x5bc   : > { %v2956_v37 = vpop.eup %2955  ;;  %v2069_v8 = vmul.f32 1.442695, %v2067_v42  ;;  %v2068_v16 = vmin.f32 %v2062_v33, 0.0  ;;  %vm2066_vm7 = vcmp.gt.f32.partialorder %v2062_v33, 0.0 }
 0x5bd   : > { %v1328_v7 = vsel %vm1318_vm0, %v1312_v62, %v2359_v35  ;;  %v2360_v10 = vadd.f32 -1.0, %v2956_v37 }
 0x5be   : > { %v2958_v61 = vpop.eup %2957  ;;  %1331 = vst.msk [vmem:[%s4473_s28] sm:$0xff] %vm1330_vm15, %v1328_v7  ;;  %2965 = vpow2.f32 %v2069_v8  ;;  %v2071_v21 = vmul.f32 1.442695, %v2068_v16 }
 0x5bf   : > { %v1329_v29 = vsel %vm1319_vm1, %v1315_v27, %v2360_v10  ;;  %v2362_v54 = vadd.f32 -1.0, %v2958_v61 }
 0x5c0   : > { %v2960_v1 = vpop.eup %2959  ;;  %1332 = vst.msk [vmem:[%s4473_s28 + $0x8] sm:$0xff] %vm1330_vm15, %v1329_v29  ;;  %2967 = vpow2.f32 %v2071_v21 }
 0x5c1   : > { %v1573_v13 = vsel %vm1563_vm2, %v1557_v23, %v2362_v54  ;;  %v2363_v59 = vadd.f32 -1.0, %v2960_v1 }
 0x5c2   : > { %1577 = vrot.lane.b32.xlu1 %v1573_v13, %s3350_s11 }
 0x5c3   : > { %v2962_v50 = vpop.eup %2961  ;;  %v1574_v11 = vsel %vm1564_vm3, %v1560_v4, %v2363_v59 }
 0x5c4   : > { %1579 = vrot.lane.b32.xlu0 %v1574_v11, %s3350_s11  ;;  %v2365_v26 = vadd.f32 -1.0, %v2962_v50 }
 0x5c5   : > { %v2964_v49 = vpop.eup %2963 }
 0x5c6   : > { %v1824_v24 = vsel %vm1814_vm4, %v1808_v19, %v2365_v26  ;;  %v2366_v38 = vadd.f32 -1.0, %v2964_v49 }
 0x5c7   : > { %1828 = vrot.lane.b32.xlu1 %v1824_v24, %s3351_s13 }
 0x5c8   : > { %v2966_v2 = vpop.eup %2965  ;;  %v1825_v53 = vsel %vm1815_vm5, %v1811_v30, %v2366_v38 }
 0x5c9   : > { %1830 = vrot.lane.b32.xlu0 %v1825_v53, %s3351_s13  ;;  %v2368_v12 = vadd.f32 -1.0, %v2966_v2 }
 0x5ca   : > { %v2968_v63 = vpop.eup %2967 }
 0x5cb   : > { %v2075_v14 = vsel %vm2065_vm6, %v2059_v0, %v2368_v12  ;;  %v2369_v62 = vadd.f32 -1.0, %v2968_v63 }
 0x5cc   : > { %2079 = vrot.lane.b32.xlu1 %v2075_v14, %s3352_s25 }
 0x5cd   : > { %v2076_v3 = vsel %vm2066_vm7, %v2062_v33, %v2369_v62 }
 0x5ce   : > { %2081 = vrot.lane.b32.xlu0 %v2076_v3, %s3352_s25 }
 0x634   : > { %v1578_v20 = vpop.permute.xlu1 %1577 }
 0x635   : > { %1584 = vst.msk [vmem:[%s4473_s28] sm:$0xff] %vm1583_vm8, %v1578_v20 }
 0x636   : > { %v1580_v43 = vpop.permute.xlu0 %1579 }
 0x637   : > { %1585 = vst.msk [vmem:[%s4473_s28 + $0x8] sm:$0xff] %vm1583_vm8, %v1580_v43 }
 0x639   : > { %v1829_v58 = vpop.permute.xlu1 %1828 }
 0x63a   : > { %1835 = vst.msk [vmem:[%s4473_s28] sm:$0xff] %vm1834_vm9, %v1829_v58 }
 0x63b   : > { %v1831_v27 = vpop.permute.xlu0 %1830 }
 0x63c   : > { %1836 = vst.msk [vmem:[%s4473_s28 + $0x8] sm:$0xff] %vm1834_vm9, %v1831_v27 }
 0x63e   : > { %v2080_v34 = vpop.permute.xlu1 %2079 }
 0x63f   : > { %2086 = vst.msk [vmem:[%s4473_s28] sm:$0xff] %vm2085_vm10, %v2080_v34 }
 0x640   : > { %v2082_v47 = vpop.permute.xlu0 %2081 }
 0x641   : > { %2087 = vst.msk [vmem:[%s4473_s28 + $0x8] sm:$0xff] %vm2085_vm10, %v2082_v47 }
 0x642   : > { %3234 = shalt.err (!%p3231_p12)
}
 0x643   : > { %s3235_s0 = scalar_lea.hbm %s4516_s10, 256  ;;  %s3239_s19 = scalar_lea.hbm %s4634_s29, 512 }
 0x644   : > { %p3236_p6 = scmp.ne.s32.totalorder %s4516_s10, %s3235_s0  ;;  %p3240_p8 = scmp.lt.u32.totalorder %s4516_s10, %s4634_s29 }
 0x645   : > { %p3241_p0 = scmp.lt.u32.totalorder %s3239_s19, %s3235_s0  ;;  %p3243_p2 = scmp.lt.u32.totalorder %s3235_s0, %s4516_s10 }
 0x646   : > { %p3237_p13 = pnand %p3236_p6, %p4635_p1 }
 0x647   : > { %p3242_p9 = por %p3241_p0, %p3240_p8 }
 0x648   : > { %p3238_p7 = pneg %p3237_p13 }
 0x649   : > { %p3244_p10 = por %p3243_p2, %p3242_p9 }
 0x64b   : > { %p3245_p5 = pnand %p3244_p10, %p3238_p7 }
 0x64d   : > { %3248 = shalt.err (!%p3245_p5)
}
 0x64e   : > { %s3354_s28 = smov 128  }
 0x64f   : > { %2794 = dma.vmem_to_hbm [thread:$0]  (%p4635_p1), %s4519_s5, 256, %s4516_s10, %s2089_s30, %s3354_s28, %s3354_s28, %s3350_s11  }
 0x650 PF: > { %s4636_s13 = sld [smem:[#allocation30_spill]]  ;;  %s4637_s25 = sld [smem:[#allocation36_spill]] }
 0x656   : > { %s2117_s24 = sand.u32 1, %s4636_s13   ;;  %p4638_p11 = scmp.ne.s32.totalorder %s4637_s25, 0 }
 0x657   : > { %s2118_s12 = scalar_lea.sflag [#allocation4], %s2117_s24 }
 0x658   : > { %p2816_p3 = pnand %p2306_p4, %p4638_p11 }
 0x65a   : > { %3290 = dma.done.wait (!%p2816_p3), %s2118_s12, 256  }
 0x65b   : > { %3292 = vsyncadd (!%p2816_p3), %s2118_s12, 4294967040  ;;  %s4639_s16 = sld [smem:[#allocation32_spill]]  ;;  %s4640_s13 = sld [smem:[#allocation31_spill]] }
 0x65c   : > { %s4641_s27 = sld [smem:[#allocation33_spill]]  ;;  %s4642_s14 = smov %s3303_s15 }
 0x661   : > { %p30_p12 = scmp.ge.s32.totalorder %s4639_s16, 4  }
 0x662   : > { %s4643_s15 = smov %s4641_s27 }
 0x663   :  { %32 = sbr.rel (!%p30_p12) target bundleno = 17 (0x11), region = 177 }
 0x66a   :  { %2123 = vsyncpa [#allocation3], 1 }
 0x66b   :  { %2125 = vsyncpa [#allocation3 + $0x1], 1 }
 0x66c   :  { %2126 = vsyncpa [#allocation6], 1 }
 0x66d   :  { %2128 = vsyncpa [#allocation6 + $0x1], 1 }
 0x66e   :  { %2129 = vsyncpa [#allocation9], 1 }
 0x66f   :  { %2131 = vsyncpa [#allocation9 + $0x1], 1 }
 0x670   :  { %2132 = vsyncpa [#allocation12], 1 }
 0x671   :  { %2133 = vsyncpa [#allocation15], 1 }
 0x672   :  { %2134 = vsyncpa [#allocation18], 1 }
 0x673   :  { %2135 = vsyncpa [#allocation4], 1 }
 0x674   :  { %2137 = vsyncpa [#allocation4 + $0x1], 1 }

</bundles_post_ra>
